<compile_context>
chip_gen: v5e
topology: v5e:2x2
jax: 0.10.0
libtpu: 0.0.40
codegen_flags: <defaults>
</compile_context>

<pallas_src>
import jax
import jax.numpy as jnp
from jax.experimental import pallas as pl
from jax.experimental.pallas import tpu as pltpu


# ----------------------------- Pallas kernel -------------------------------------


def _make_bottleneck_kernel(H, W, Cin, Cpad, G):
    HW = H * W
    L = HW + 2 * G        # guarded, row-flattened staging length
    SHW = HW + 2 * W      # length of the dx-shifted windows

    def kernel(x_ref, w1_ref, b1_ref, w2_ref, b2_ref, w3_ref, b3_ref,
               out_ref, xp_ref, buf_ref, col_ref):
        f32, bf16 = jnp.float32, jnp.bfloat16

        # --- lane-pad x to 128 (conv1 LHS + f32 residual); zero only the tail -----
        xp_ref[:, 0:Cin] = x_ref[...]
        if Cin < Cpad:
            xp_ref[:, Cin:Cpad] = jnp.zeros((HW, Cpad - Cin), f32)
        xv = xp_ref[...]                                        # (HW, Cpad) f32

        # --- conv1 (1x1) + bn1 + relu  ->  bf16 guarded staging --------------------
        h1 = jnp.dot(xv.astype(bf16), w1_ref[...], preferred_element_type=f32)
        h1 = jnp.maximum(h1 + b1_ref[...], 0.0)                 # (HW, Cpad) f32
        buf_ref[0:G, :] = jnp.zeros((G, Cpad), bf16)            # top guard rows
        buf_ref[G + HW:L, :] = jnp.zeros((G, Cpad), bf16)       # bottom guard rows
        buf_ref[G:G + HW, :] = h1.astype(bf16)                  # aligned store

        # --- im2col build: (HW, 9*Cpad) bf16 ---------------------------------------
        # dy (row) taps are aligned contiguous slices of buf; the dx = +-1 column
        # shifts come from two off-by-one window loads; width-edge zero padding
        # (j == 0 for dx=0, j == W-1 for dx=2) is applied once per shifted window.
        kcol = jax.lax.broadcasted_iota(jnp.int32, (SHW, Cpad), 0) % W
        s_l = jnp.where(kcol > 0,     buf_ref[G - W - 1:G + W + HW - 1, :], 0)
        s_r = jnp.where(kcol < W - 1, buf_ref[G - W + 1:G + W + HW + 1, :], 0)
        for dy in range(3):
            r0 = G + (dy - 1) * W
            c0 = dy * 3 * Cpad
            col_ref[:, c0:c0 + Cpad] = s_l[dy * W:dy * W + HW, :]
            col_ref[:, c0 + Cpad:c0 + 2 * Cpad] = buf_ref[r0:r0 + HW, :]
            col_ref[:, c0 + 2 * Cpad:c0 + 3 * Cpad] = s_r[dy * W:dy * W + HW, :]

        # --- conv2 (3x3, pad=1, stride=1) as ONE K = 9*Cpad matmul + bn2 + relu ----
        h2 = jnp.dot(col_ref[...], w2_ref[...], preferred_element_type=f32)
        h2 = jnp.maximum(h2 + b2_ref[...], 0.0)                 # (HW, Cpad) f32

        # --- conv3 (1x1) + bn3 + identity (f32) + relu; bf16 lane-dense store ------
        y = jnp.dot(h2.astype(bf16), w3_ref[...], preferred_element_type=f32)
        y = jnp.maximum(y + b3_ref[...] + xv, 0.0)              # residual add in f32
        out_ref[...] = y.astype(bf16)

    return kernel


# ----------------------------- wrapper --------------------------------------------


def _fold_bn(gamma, beta, mean, var, eps=1e-5):
    scale = gamma / jnp.sqrt(var + eps)
    return scale, beta - mean * scale


def bottleneck_forward(x_nchw, params, eps=1e-5):
    """Bottleneck.forward (stride=1, downsample=None).  NCHW in / NCHW out."""
    N, Cin, H, W = x_nchw.shape
    w1, w2, w3 = params["w1"], params["w2"], params["w3"]
    Cmid = w1.shape[-1]
    Cout = w3.shape[-1]
    assert w1.shape == (1, 1, Cin, Cmid)
    assert w2.shape == (3, 3, Cmid, Cmid)
    assert w3.shape == (1, 1, Cmid, Cout)
    # downsample=None  =>  the residual add requires inplanes == planes * expansion
    assert Cout == Cin, "no-downsample Bottleneck needs inplanes == planes*expansion"

    CPAD = 128
    assert max(Cin, Cmid, Cout) <= CPAD  # TODO(synk): channel-block grid for >128
    assert W % 8 == 0                    # keeps conv2 staging slices 8-sublane aligned
    HW = H * W
    # guard rows above/below the row-flattened frame: multiple of 16 (bf16 packed
    # tile) and >= W+1 so every dy/dx tap window stays inside the staging buffer.
    G = (W + 16) // 16 * 16

    s1, c1 = _fold_bn(params["bn1_gamma"], params["bn1_beta"],
                      params["bn1_mean"], params["bn1_var"], eps)
    s2, c2 = _fold_bn(params["bn2_gamma"], params["bn2_beta"],
                      params["bn2_mean"], params["bn2_var"], eps)
    s3, c3 = _fold_bn(params["bn3_gamma"], params["bn3_beta"],
                      params["bn3_mean"], params["bn3_var"], eps)

    def pad_w(w2d):  # (ci, co) -> (CPAD, CPAD) bf16
        ci, co = w2d.shape
        return jnp.pad(w2d, ((0, CPAD - ci), (0, CPAD - co))).astype(jnp.bfloat16)

    def pad_b(b):    # (c,) -> (1, CPAD) f32
        return jnp.pad(b, (0, CPAD - b.shape[0])).reshape(1, CPAD).astype(jnp.float32)

    # fold BN scale into the conv weights once (host/XLA side, tiny tensors)
    w1p = pad_w(w1[0, 0] * s1[None, :])
    w3p = pad_w(w3[0, 0] * s3[None, :])
    # conv2: fold BN, pad channels, flatten taps -> one (9*CPAD, CPAD) im2col matrix
    w2s = w2 * s2[None, None, None, :]                                  # (3,3,Cmid,Cmid)
    w2p = jnp.pad(w2s, ((0, 0), (0, 0), (0, CPAD - Cmid), (0, CPAD - Cmid)))
    w2p = w2p.reshape(9 * CPAD, CPAD).astype(jnp.bfloat16)              # (1152, 128)
    b1p, b2p, b3p = pad_b(c1), pad_b(c2), pad_b(c3)

    # NCHW -> NHWC -> (N, H*W, Cin); channel padding happens inside the kernel.
    x_rows = jnp.transpose(x_nchw, (0, 2, 3, 1)).reshape(N, HW, Cin).astype(jnp.float32)

    out = pl.pallas_call(
        _make_bottleneck_kernel(H, W, Cin, CPAD, G),
        grid=(N,),
        in_specs=[
            pl.BlockSpec((None, HW, Cin), lambda n: (n, 0, 0)),      # x (per image)
            pl.BlockSpec((CPAD, CPAD), lambda n: (0, 0)),            # w1 (fetched once)
            pl.BlockSpec((1, CPAD), lambda n: (0, 0)),               # b1
            pl.BlockSpec((9 * CPAD, CPAD), lambda n: (0, 0)),        # w2 im2col matrix
            pl.BlockSpec((1, CPAD), lambda n: (0, 0)),               # b2
            pl.BlockSpec((CPAD, CPAD), lambda n: (0, 0)),            # w3
            pl.BlockSpec((1, CPAD), lambda n: (0, 0)),               # b3
        ],
        out_specs=pl.BlockSpec((None, HW, CPAD), lambda n: (n, 0, 0)),
        out_shape=jax.ShapeDtypeStruct((N, HW, CPAD), jnp.bfloat16),  # bf16 writeback
        scratch_shapes=[
            pltpu.VMEM((HW, CPAD), jnp.float32),                 # xp: lane-padded x (f32)
            pltpu.VMEM((HW + 2 * G, CPAD), jnp.bfloat16),        # guarded bf16 h1 staging
            pltpu.VMEM((HW, 9 * CPAD), jnp.bfloat16),            # im2col buffer
        ],
        compiler_params=pltpu.CompilerParams(
            dimension_semantics=("parallel",),
            # ~2 MiB actual footprint at these shapes; re-derive when scaling HW
            # (the (HW, 9*128) bf16 im2col buffer dominates, e.g. ~7 MiB at 56x56).
            vmem_limit_bytes=32 * 1024 * 1024,
        ),
    )(x_rows, w1p, b1p, w2p, b2p, w3p, b3p)

    out = out[:, :, :Cout].astype(jnp.float32).reshape(N, H, W, Cout)
    return jnp.transpose(out, (0, 3, 1, 2))


# ----------------------------- references -----------------------------------------


def _conv(x, w, padding):
    return jax.lax.conv_general_dilated(
        x, w, window_strides=(1, 1), padding=padding,
        dimension_numbers=("NHWC", "HWIO", "NHWC"))


def _reference_forward(x_nchw, params, eps=1e-5):
    """Exact f32 reference: conv -> BN(eval) -> relu chain of the torch module."""
    def bn(y, g, b, m, v):
        return (y - m) / jnp.sqrt(v + eps) * g + b

    x = jnp.transpose(x_nchw, (0, 2, 3, 1)).astype(jnp.float32)
    h = jnp.maximum(bn(_conv(x, params["w1"], ((0, 0), (0, 0))),
                       params["bn1_gamma"], params["bn1_beta"],
                       params["bn1_mean"], params["bn1_var"]), 0.0)
    h = jnp.maximum(bn(_conv(h, params["w2"], ((1, 1), (1, 1))),
                       params["bn2_gamma"], params["bn2_beta"],
                       params["bn2_mean"], params["bn2_var"]), 0.0)
    o = bn(_conv(h, params["w3"], ((0, 0), (0, 0))),
           params["bn3_gamma"], params["bn3_beta"],
           params["bn3_mean"], params["bn3_var"]) + x
    return jnp.transpose(jnp.maximum(o, 0.0), (0, 3, 1, 2))


def _reference_forward_bf16_ops(x_nchw, params, eps=1e-5):
    """Reference at the kernel's operand precision (bf16 matmul inputs, f32 math,
    bf16 final store), isolating structural errors from expected bf16 rounding."""
    q = lambda a: a.astype(jnp.bfloat16).astype(jnp.float32)
    s1, c1 = _fold_bn(params["bn1_gamma"], params["bn1_beta"],
                      params["bn1_mean"], params["bn1_var"], eps)
    s2, c2 = _fold_bn(params["bn2_gamma"], params["bn2_beta"],
                      params["bn2_mean"], params["bn2_var"], eps)
    s3, c3 = _fold_bn(params["bn3_gamma"], params["bn3_beta"],
                      params["bn3_mean"], params["bn3_var"], eps)
    x = jnp.transpose(x_nchw, (0, 2, 3, 1)).astype(jnp.float32)
    w1, w2, w3 = q(params["w1"] * s1), q(params["w2"] * s2), q(params["w3"] * s3)
    h = jnp.maximum(_conv(q(x), w1, ((0, 0), (0, 0))) + c1, 0.0)
    h = jnp.maximum(_conv(q(h), w2, ((1, 1), (1, 1))) + c2, 0.0)
    o = _conv(q(h), w3, ((0, 0), (0, 0))) + c3 + x          # identity stays f32
    o = jnp.maximum(o, 0.0).astype(jnp.bfloat16).astype(jnp.float32)  # bf16 store
    return jnp.transpose(o, (0, 3, 1, 2))


# ----------------------------- params / main --------------------------------------


def init_params(key, inplanes, planes, expansion=4):
    outplanes = planes * expansion
    ks = jax.random.split(key, 15)

    def he(k, shape, fan_in):
        return jax.random.normal(k, shape, jnp.float32) * jnp.sqrt(2.0 / fan_in)

    def bn(kg, kb, km, kv, c):
        return (jax.random.uniform(kg, (c,), jnp.float32, 0.5, 1.5),
                jax.random.normal(kb, (c,), jnp.float32) * 0.1,
                jax.random.normal(km, (c,), jnp.float32) * 0.1,
                jax.random.uniform(kv, (c,), jnp.float32, 0.5, 1.5))

    g1, b1, m1, v1 = bn(ks[3], ks[4], ks[5], ks[6], planes)
    g2, b2, m2, v2 = bn(ks[7], ks[8], ks[9], ks[10], planes)
    g3, b3, m3, v3 = bn(ks[11], ks[12], ks[13], ks[14], outplanes)
    return {
        "w1": he(ks[0], (1, 1, inplanes, planes), inplanes),     # conv1x1 (HWIO)
        "w2": he(ks[1], (3, 3, planes, planes), 9 * planes),     # conv3x3, pad=1
        "w3": he(ks[2], (1, 1, planes, outplanes), planes),      # conv1x1
        "bn1_gamma": g1, "bn1_beta": b1, "bn1_mean": m1, "bn1_var": v1,
        "bn2_gamma": g2, "bn2_beta": b2, "bn2_mean": m2, "bn2_var": v2,
        "bn3_gamma": g3, "bn3_beta": b3, "bn3_mean": m3, "bn3_var": v3,
    }


if __name__ == "__main__":
    key = jax.random.PRNGKey(0)
    kx, kp = jax.random.split(key)

    # Bottleneck(inplanes=16, planes=4): 1x1 16->4, 3x3 4->4, 1x1 4->16, +identity.
    N, H, W = 2, 16, 16
    planes, expansion = 4, 4
    inplanes = planes * expansion      # required when downsample is None

    x = jax.random.normal(kx, (N, inplanes, H, W), jnp.float32)   # NCHW like torch
    params = init_params(kp, inplanes, planes, expansion)

    out = jax.block_until_ready(bottleneck_forward(x, params))
    assert out.shape == (N, inplanes, H, W)

    # structural check at the kernel's operand precision (bf16 matmuls, bf16 store)
    ref_q = jax.block_until_ready(_reference_forward_bf16_ops(x, params))
    assert jnp.allclose(out, ref_q, rtol=2e-2, atol=2e-2), \
        f"mismatch vs bf16-operand reference: {jnp.max(jnp.abs(out - ref_q))}"

    # sanity check vs exact f32 module semantics (loose tol covers bf16 rounding)
    ref = jax.block_until_ready(_reference_forward(x, params))
    assert jnp.allclose(out, ref, rtol=1e-1, atol=1e-1), \
        f"mismatch vs f32 reference: {jnp.max(jnp.abs(out - ref))}"

    print("KERNEL_OK")
</pallas_src>

<mosaic_0001>
module attributes {stable_mosaic.version = 11 : i64} {
  func.func @kernel(%arg0: i32, %arg1: memref<1x256x16xf32, #tpu.memory_space<vmem>>, %arg2: memref<128x128xbf16, #tpu.memory_space<vmem>>, %arg3: memref<1x128xf32, #tpu.memory_space<vmem>>, %arg4: memref<1152x128xbf16, #tpu.memory_space<vmem>>, %arg5: memref<1x128xf32, #tpu.memory_space<vmem>>, %arg6: memref<128x128xbf16, #tpu.memory_space<vmem>>, %arg7: memref<1x128xf32, #tpu.memory_space<vmem>>, %arg8: memref<1x256x128xbf16, #tpu.memory_space<vmem>>, %arg9: memref<256x128xf32, #tpu.memory_space<vmem>>, %arg10: memref<320x128xbf16, #tpu.memory_space<vmem>>, %arg11: memref<256x1152xbf16, #tpu.memory_space<vmem>>) attributes {dimension_semantics = [#tpu.dimension_semantics<parallel>], iteration_bounds = array<i64: 2>, scalar_prefetch = 0 : i64, scratch_operands = 3 : i64, tpu.core_type = #tpu.core_type<tc>, window_params = [{transform_indices = @transform_0, window_bounds = array<i64: 1, 256, 16>}, {pipeline_mode = #tpu.pipeline_mode<synchronous>, transform_indices = @transform_1, window_bounds = array<i64: 128, 128>}, {pipeline_mode = #tpu.pipeline_mode<synchronous>, transform_indices = @transform_2, window_bounds = array<i64: 1, 128>}, {pipeline_mode = #tpu.pipeline_mode<synchronous>, transform_indices = @transform_3, window_bounds = array<i64: 1152, 128>}, {pipeline_mode = #tpu.pipeline_mode<synchronous>, transform_indices = @transform_4, window_bounds = array<i64: 1, 128>}, {pipeline_mode = #tpu.pipeline_mode<synchronous>, transform_indices = @transform_5, window_bounds = array<i64: 128, 128>}, {pipeline_mode = #tpu.pipeline_mode<synchronous>, transform_indices = @transform_6, window_bounds = array<i64: 1, 128>}, {transform_indices = @transform_7, window_bounds = array<i64: 1, 256, 128>}]} {
    %c0 = arith.constant 0 : index
    %c0_0 = arith.constant 0 : index
    %c0_1 = arith.constant 0 : index
    %0 = vector.load %arg1[%c0, %c0_0, %c0_1] : memref<1x256x16xf32, #tpu.memory_space<vmem>>, vector<1x256x16xf32>
    %1 = vector.shape_cast %0 : vector<1x256x16xf32> to vector<256x16xf32>
    %c0_2 = arith.constant 0 : index
    %c0_3 = arith.constant 0 : index
    %2 = vector.load %arg9[%c0_2, %c0_3] : memref<256x128xf32, #tpu.memory_space<vmem>>, vector<256x16xf32>
    tpu.vector_store %arg9[%c0_2, %c0_3], %1 {strides = array<i32>} : memref<256x128xf32, #tpu.memory_space<vmem>>, vector<256x16xf32>,
    %cst = arith.constant 0.000000e+00 : f32
    %3 = vector.broadcast %cst : f32 to vector<256x112xf32>
    %c0_4 = arith.constant 0 : index
    %c16 = arith.constant 16 : index
    %4 = vector.load %arg9[%c0_4, %c16] : memref<256x128xf32, #tpu.memory_space<vmem>>, vector<256x112xf32>
    tpu.vector_store %arg9[%c0_4, %c16], %3 {strides = array<i32>} : memref<256x128xf32, #tpu.memory_space<vmem>>, vector<256x112xf32>,
    %c0_5 = arith.constant 0 : index
    %c0_6 = arith.constant 0 : index
    %5 = vector.load %arg9[%c0_5, %c0_6] : memref<256x128xf32, #tpu.memory_space<vmem>>, vector<256x128xf32>
    %6 = arith.truncf %5 : vector<256x128xf32> to vector<256x128xbf16>
    %c0_7 = arith.constant 0 : index
    %c0_8 = arith.constant 0 : index
    %7 = vector.load %arg2[%c0_7, %c0_8] : memref<128x128xbf16, #tpu.memory_space<vmem>>, vector<128x128xbf16>
    %cst_9 = arith.constant dense<0.000000e+00> : vector<256x128xf32>
    %8 = tpu.matmul %6, %7, %cst_9 {dimension_numbers = #tpu.dot_dimension_numbers<[1], [0], [0], [1], [0, 0, 1, 1], [], []>} : vector<256x128xbf16>, vector<128x128xbf16>, vector<256x128xf32> -> vector<256x128xf32>
    %c0_10 = arith.constant 0 : index
    %c0_11 = arith.constant 0 : index
    %9 = vector.load %arg3[%c0_10, %c0_11] : memref<1x128xf32, #tpu.memory_space<vmem>>, vector<1x128xf32>
    %10 = vector.broadcast %9 : vector<1x128xf32> to vector<256x128xf32>
    %11 = arith.addf %8, %10 : vector<256x128xf32>
    %cst_12 = arith.constant 0.000000e+00 : f32
    %12 = vector.broadcast %cst_12 : f32 to vector<256x128xf32>
    %13 = arith.maximumf %11, %12 : vector<256x128xf32>
    %cst_13 = arith.constant 0.000000e+00 : bf16
    %14 = vector.broadcast %cst_13 : bf16 to vector<32x128xbf16>
    %c0_14 = arith.constant 0 : index
    %c0_15 = arith.constant 0 : index
    %15 = vector.load %arg10[%c0_14, %c0_15] : memref<320x128xbf16, #tpu.memory_space<vmem>>, vector<32x128xbf16>
    tpu.vector_store %arg10[%c0_14, %c0_15], %14 {strides = array<i32>} : memref<320x128xbf16, #tpu.memory_space<vmem>>, vector<32x128xbf16>,
    %cst_16 = arith.constant 0.000000e+00 : bf16
    %16 = vector.broadcast %cst_16 : bf16 to vector<32x128xbf16>
    %c288 = arith.constant 288 : index
    %c0_17 = arith.constant 0 : index
    %17 = vector.load %arg10[%c288, %c0_17] : memref<320x128xbf16, #tpu.memory_space<vmem>>, vector<32x128xbf16>
    tpu.vector_store %arg10[%c288, %c0_17], %16 {strides = array<i32>} : memref<320x128xbf16, #tpu.memory_space<vmem>>, vector<32x128xbf16>,
    %18 = arith.truncf %13 : vector<256x128xf32> to vector<256x128xbf16>
    %c32 = arith.constant 32 : index
    %c0_18 = arith.constant 0 : index
    %19 = vector.load %arg10[%c32, %c0_18] : memref<320x128xbf16, #tpu.memory_space<vmem>>, vector<256x128xbf16>
    tpu.vector_store %arg10[%c32, %c0_18], %18 {strides = array<i32>} : memref<320x128xbf16, #tpu.memory_space<vmem>>, vector<256x128xbf16>,
    %20 = tpu.iota {dimensions = array<i32: 0>} : vector<288x128xi32>
    %c16_i32 = arith.constant 16 : i32
    %c0_i32 = arith.constant 0 : i32
    %21 = arith.cmpi eq, %c16_i32, %c0_i32 : i32
    %c1_i32 = arith.constant 1 : i32
    %22 = arith.select %21, %c1_i32, %c16_i32 : i32
    %23 = vector.broadcast %22 : i32 to vector<288x128xi32>
    %24 = arith.remsi %20, %23 : vector<288x128xi32>
    %c0_i32_19 = arith.constant 0 : i32
    %25 = vector.broadcast %c0_i32_19 : i32 to vector<288x128xi32>
    %26 = arith.cmpi ne, %24, %25 : vector<288x128xi32>
    %c0_i32_20 = arith.constant 0 : i32
    %27 = vector.broadcast %c0_i32_20 : i32 to vector<288x128xi32>
    %28 = arith.cmpi slt, %24, %27 : vector<288x128xi32>
    %c0_i32_21 = arith.constant 0 : i32
    %29 = arith.cmpi slt, %22, %c0_i32_21 : i32
    %30 = vector.broadcast %29 : i1 to vector<288x128xi1>
    %31 = vector.broadcast %30 : vector<288x128xi1> to vector<288x128xi1>
    %32 = arith.xori %28, %31 : vector<288x128xi1>
    %33 = arith.andi %32, %26 : vector<288x128xi1>
    %34 = vector.broadcast %22 : i32 to vector<288x128xi32>
    %35 = arith.addi %24, %34 : vector<288x128xi32>
    %36 = arith.select %33, %35, %24 : vector<288x128xi1>, vector<288x128xi32>
    %c0_i32_22 = arith.constant 0 : i32
    %37 = vector.broadcast %c0_i32_22 : i32 to vector<288x128xi32>
    %38 = arith.cmpi sgt, %36, %37 : vector<288x128xi32>
    %c15 = arith.constant 15 : index
    %c0_23 = arith.constant 0 : index
    %39 = vector.load %arg10[%c15, %c0_23] : memref<320x128xbf16, #tpu.memory_space<vmem>>, vector<288x128xbf16>
    %c0_i32_24 = arith.constant 0 : i32
    %40 = arith.sitofp %c0_i32_24 : i32 to bf16
    %41 = vector.broadcast %40 : bf16 to vector<288x128xbf16>
    %42 = arith.select %38, %39, %41 : vector<288x128xi1>, vector<288x128xbf16>
    %c15_i32 = arith.constant 15 : i32
    %43 = vector.broadcast %c15_i32 : i32 to vector<288x128xi32>
    %44 = arith.cmpi slt, %36, %43 : vector<288x128xi32>
    %c17 = arith.constant 17 : index
    %c0_25 = arith.constant 0 : index
    %45 = vector.load %arg10[%c17, %c0_25] : memref<320x128xbf16, #tpu.memory_space<vmem>>, vector<288x128xbf16>
    %c0_i32_26 = arith.constant 0 : i32
    %46 = arith.sitofp %c0_i32_26 : i32 to bf16
    %47 = vector.broadcast %46 : bf16 to vector<288x128xbf16>
    %48 = arith.select %44, %45, %47 : vector<288x128xi1>, vector<288x128xbf16>
    %49 = vector.extract_strided_slice %42 {offsets = [0, 0], sizes = [256, 128], strides = [1, 1]} : vector<288x128xbf16> to vector<256x128xbf16>
    %c0_27 = arith.constant 0 : index
    %c0_28 = arith.constant 0 : index
    %50 = vector.load %arg11[%c0_27, %c0_28] : memref<256x1152xbf16, #tpu.memory_space<vmem>>, vector<256x128xbf16>
    tpu.vector_store %arg11[%c0_27, %c0_28], %49 {strides = array<i32>} : memref<256x1152xbf16, #tpu.memory_space<vmem>>, vector<256x128xbf16>,
    %c16_29 = arith.constant 16 : index
    %c0_30 = arith.constant 0 : index
    %51 = vector.load %arg10[%c16_29, %c0_30] : memref<320x128xbf16, #tpu.memory_space<vmem>>, vector<256x128xbf16>
    %c0_31 = arith.constant 0 : index
    %c128 = arith.constant 128 : index
    %52 = vector.load %arg11[%c0_31, %c128] : memref<256x1152xbf16, #tpu.memory_space<vmem>>, vector<256x128xbf16>
    tpu.vector_store %arg11[%c0_31, %c128], %51 {strides = array<i32>} : memref<256x1152xbf16, #tpu.memory_space<vmem>>, vector<256x128xbf16>,
    %53 = vector.extract_strided_slice %48 {offsets = [0, 0], sizes = [256, 128], strides = [1, 1]} : vector<288x128xbf16> to vector<256x128xbf16>
    %c0_32 = arith.constant 0 : index
    %c256 = arith.constant 256 : index
    %54 = vector.load %arg11[%c0_32, %c256] : memref<256x1152xbf16, #tpu.memory_space<vmem>>, vector<256x128xbf16>
    tpu.vector_store %arg11[%c0_32, %c256], %53 {strides = array<i32>} : memref<256x1152xbf16, #tpu.memory_space<vmem>>, vector<256x128xbf16>,
    %55 = vector.extract_strided_slice %42 {offsets = [16, 0], sizes = [256, 128], strides = [1, 1]} : vector<288x128xbf16> to vector<256x128xbf16>
    %c0_33 = arith.constant 0 : index
    %c384 = arith.constant 384 : index
    %56 = vector.load %arg11[%c0_33, %c384] : memref<256x1152xbf16, #tpu.memory_space<vmem>>, vector<256x128xbf16>
    tpu.vector_store %arg11[%c0_33, %c384], %55 {strides = array<i32>} : memref<256x1152xbf16, #tpu.memory_space<vmem>>, vector<256x128xbf16>,
    %c32_34 = arith.constant 32 : index
    %c0_35 = arith.constant 0 : index
    %57 = vector.load %arg10[%c32_34, %c0_35] : memref<320x128xbf16, #tpu.memory_space<vmem>>, vector<256x128xbf16>
    %c0_36 = arith.constant 0 : index
    %c512 = arith.constant 512 : index
    %58 = vector.load %arg11[%c0_36, %c512] : memref<256x1152xbf16, #tpu.memory_space<vmem>>, vector<256x128xbf16>
    tpu.vector_store %arg11[%c0_36, %c512], %57 {strides = array<i32>} : memref<256x1152xbf16, #tpu.memory_space<vmem>>, vector<256x128xbf16>,
    %59 = vector.extract_strided_slice %48 {offsets = [16, 0], sizes = [256, 128], strides = [1, 1]} : vector<288x128xbf16> to vector<256x128xbf16>
    %c0_37 = arith.constant 0 : index
    %c640 = arith.constant 640 : index
    %60 = vector.load %arg11[%c0_37, %c640] : memref<256x1152xbf16, #tpu.memory_space<vmem>>, vector<256x128xbf16>
    tpu.vector_store %arg11[%c0_37, %c640], %59 {strides = array<i32>} : memref<256x1152xbf16, #tpu.memory_space<vmem>>, vector<256x128xbf16>,
    %61 = vector.extract_strided_slice %42 {offsets = [32, 0], sizes = [256, 128], strides = [1, 1]} : vector<288x128xbf16> to vector<256x128xbf16>
    %c0_38 = arith.constant 0 : index
    %c768 = arith.constant 768 : index
    %62 = vector.load %arg11[%c0_38, %c768] : memref<256x1152xbf16, #tpu.memory_space<vmem>>, vector<256x128xbf16>
    tpu.vector_store %arg11[%c0_38, %c768], %61 {strides = array<i32>} : memref<256x1152xbf16, #tpu.memory_space<vmem>>, vector<256x128xbf16>,
    %c48 = arith.constant 48 : index
    %c0_39 = arith.constant 0 : index
    %63 = vector.load %arg10[%c48, %c0_39] : memref<320x128xbf16, #tpu.memory_space<vmem>>, vector<256x128xbf16>
    %c0_40 = arith.constant 0 : index
    %c896 = arith.constant 896 : index
    %64 = vector.load %arg11[%c0_40, %c896] : memref<256x1152xbf16, #tpu.memory_space<vmem>>, vector<256x128xbf16>
    tpu.vector_store %arg11[%c0_40, %c896], %63 {strides = array<i32>} : memref<256x1152xbf16, #tpu.memory_space<vmem>>, vector<256x128xbf16>,
    %65 = vector.extract_strided_slice %48 {offsets = [32, 0], sizes = [256, 128], strides = [1, 1]} : vector<288x128xbf16> to vector<256x128xbf16>
    %c0_41 = arith.constant 0 : index
    %c1024 = arith.constant 1024 : index
    %66 = vector.load %arg11[%c0_41, %c1024] : memref<256x1152xbf16, #tpu.memory_space<vmem>>, vector<256x128xbf16>
    tpu.vector_store %arg11[%c0_41, %c1024], %65 {strides = array<i32>} : memref<256x1152xbf16, #tpu.memory_space<vmem>>, vector<256x128xbf16>,
    %c0_42 = arith.constant 0 : index
    %c0_43 = arith.constant 0 : index
    %67 = vector.load %arg11[%c0_42, %c0_43] : memref<256x1152xbf16, #tpu.memory_space<vmem>>, vector<256x1152xbf16>
    %c0_44 = arith.constant 0 : index
    %c0_45 = arith.constant 0 : index
    %68 = vector.load %arg4[%c0_44, %c0_45] : memref<1152x128xbf16, #tpu.memory_space<vmem>>, vector<1152x128xbf16>
    %cst_46 = arith.constant dense<0.000000e+00> : vector<256x128xf32>
    %69 = tpu.matmul %67, %68, %cst_46 {dimension_numbers = #tpu.dot_dimension_numbers<[1], [0], [0], [1], [0, 0, 1, 1], [], []>} : vector<256x1152xbf16>, vector<1152x128xbf16>, vector<256x128xf32> -> vector<256x128xf32>
    %c0_47 = arith.constant 0 : index
    %c0_48 = arith.constant 0 : index
    %70 = vector.load %arg5[%c0_47, %c0_48] : memref<1x128xf32, #tpu.memory_space<vmem>>, vector<1x128xf32>
    %71 = vector.broadcast %70 : vector<1x128xf32> to vector<256x128xf32>
    %72 = arith.addf %69, %71 : vector<256x128xf32>
    %cst_49 = arith.constant 0.000000e+00 : f32
    %73 = vector.broadcast %cst_49 : f32 to vector<256x128xf32>
    %74 = arith.maximumf %72, %73 : vector<256x128xf32>
    %75 = arith.truncf %74 : vector<256x128xf32> to vector<256x128xbf16>
    %c0_50 = arith.constant 0 : index
    %c0_51 = arith.constant 0 : index
    %76 = vector.load %arg6[%c0_50, %c0_51] : memref<128x128xbf16, #tpu.memory_space<vmem>>, vector<128x128xbf16>
    %cst_52 = arith.constant dense<0.000000e+00> : vector<256x128xf32>
    %77 = tpu.matmul %75, %76, %cst_52 {dimension_numbers = #tpu.dot_dimension_numbers<[1], [0], [0], [1], [0, 0, 1, 1], [], []>} : vector<256x128xbf16>, vector<128x128xbf16>, vector<256x128xf32> -> vector<256x128xf32>
    %c0_53 = arith.constant 0 : index
    %c0_54 = arith.constant 0 : index
    %78 = vector.load %arg7[%c0_53, %c0_54] : memref<1x128xf32, #tpu.memory_space<vmem>>, vector<1x128xf32>
    %79 = vector.broadcast %78 : vector<1x128xf32> to vector<256x128xf32>
    %80 = arith.addf %77, %79 : vector<256x128xf32>
    %81 = arith.addf %80, %5 : vector<256x128xf32>
    %cst_55 = arith.constant 0.000000e+00 : f32
    %82 = vector.broadcast %cst_55 : f32 to vector<256x128xf32>
    %83 = arith.maximumf %81, %82 : vector<256x128xf32>
    %84 = arith.truncf %83 : vector<256x128xf32> to vector<256x128xbf16>
    %c0_56 = arith.constant 0 : index
    %c0_57 = arith.constant 0 : index
    %c0_58 = arith.constant 0 : index
    %85 = vector.load %arg8[%c0_56, %c0_57, %c0_58] : memref<1x256x128xbf16, #tpu.memory_space<vmem>>, vector<1x256x128xbf16>
    %86 = vector.shape_cast %85 : vector<1x256x128xbf16> to vector<256x128xbf16>
    %87 = vector.shape_cast %84 : vector<256x128xbf16> to vector<1x256x128xbf16>
    tpu.vector_store %arg8[%c0_56, %c0_57, %c0_58], %87 {strides = array<i32>} : memref<1x256x128xbf16, #tpu.memory_space<vmem>>, vector<1x256x128xbf16>,
    return
  }
  func.func @transform_0(%arg0: i32) -> (i32, i32, i32) {
    %c0_i32 = arith.constant 0 : i32
    %c0_i32_0 = arith.constant 0 : i32
    %c0_i32_1 = arith.constant 0 : i32
    return %arg0, %c0_i32, %c0_i32_0 : i32, i32, i32
  }
  func.func @transform_1(%arg0: i32) -> (i32, i32) {
    %c0_i32 = arith.constant 0 : i32
    %c0_i32_0 = arith.constant 0 : i32
    %c0_i32_1 = arith.constant 0 : i32
    return %c0_i32, %c0_i32_0 : i32, i32
  }
  func.func @transform_2(%arg0: i32) -> (i32, i32) {
    %c0_i32 = arith.constant 0 : i32
    %c0_i32_0 = arith.constant 0 : i32
    %c0_i32_1 = arith.constant 0 : i32
    return %c0_i32, %c0_i32_0 : i32, i32
  }
  func.func @transform_3(%arg0: i32) -> (i32, i32) {
    %c0_i32 = arith.constant 0 : i32
    %c0_i32_0 = arith.constant 0 : i32
    %c0_i32_1 = arith.constant 0 : i32
    return %c0_i32, %c0_i32_0 : i32, i32
  }
  func.func @transform_4(%arg0: i32) -> (i32, i32) {
    %c0_i32 = arith.constant 0 : i32
    %c0_i32_0 = arith.constant 0 : i32
    %c0_i32_1 = arith.constant 0 : i32
    return %c0_i32, %c0_i32_0 : i32, i32
  }
  func.func @transform_5(%arg0: i32) -> (i32, i32) {
    %c0_i32 = arith.constant 0 : i32
    %c0_i32_0 = arith.constant 0 : i32
    %c0_i32_1 = arith.constant 0 : i32
    return %c0_i32, %c0_i32_0 : i32, i32
  }
  func.func @transform_6(%arg0: i32) -> (i32, i32) {
    %c0_i32 = arith.constant 0 : i32
    %c0_i32_0 = arith.constant 0 : i32
    %c0_i32_1 = arith.constant 0 : i32
    return %c0_i32, %c0_i32_0 : i32, i32
  }
  func.func @transform_7(%arg0: i32) -> (i32, i32, i32) {
    %c0_i32 = arith.constant 0 : i32
    %c0_i32_0 = arith.constant 0 : i32
    %c0_i32_1 = arith.constant 0 : i32
    return %arg0, %c0_i32, %c0_i32_0 : i32, i32, i32
  }
}

</mosaic_0001>

<bundles_post_ra>
// kernel: tpu_custom_call.1
= control target key start
LH: loop header
LB: loop body
LE: loop exit
PB: predicated region body
PF: predicated region fallthrough
CT: control target
= control target key end

     0   :  { %s12300_s0 = inlined_call_operand.vmem [shape: f32[2,256,16], index: 0, kind: input, shape index: {}]   ;;  %s12301_s1 = inlined_call_operand.hbm [shape: bf16[128,128], index: 1, kind: input, shape index: {}]   ;;  %s12302_s2 = inlined_call_operand.vmem [shape: f32[1,128], index: 2, kind: input, shape index: {}]   ;;  %s12303_s3 = inlined_call_operand.vmem [shape: bf16[1152,128], index: 3, kind: input, shape index: {}]   ;;  %s12304_s4 = inlined_call_operand.vmem [shape: f32[1,128], index: 4, kind: input, shape index: {}]   ;;  %s12305_s5 = inlined_call_operand.hbm [shape: bf16[128,128], index: 5, kind: input, shape index: {}]   ;;  %s12306_s6 = inlined_call_operand.hbm [shape: f32[1,128], index: 6, kind: input, shape index: {}]   ;;  %s12307_s7 = inlined_call_operand.hbm [shape: bf16[2,256,128], index: 7, kind: output, shape index: {}]  }
   0x1   :  { %12321 = sst [smem:[#allocation126_spill]] %s12301_s1 }
   0x2   :  { %12 = vsyncpa [#allocation6], 0 }
   0x3   :  { %13 = vsyncpa [#allocation9], 0 }
   0x4   :  { %14 = vsyncpa [#allocation7], 0 }
   0x5   :  { %16 = vsyncpa [#allocation7 + $0x1], 0  ;;  %s8361_s24 = smov 0   ;;  %s8363_s25 = smov 0  }
   0x6   :  { %s8365_s26 = smov 0   ;;  %s8367_s27 = smov 0  }
   0x7 LB: > { %s8382_s28 = sadd.s32 4294967295, %s8309_s27   ;;  %s6605_s29 = sadd.s32 4294967294, %s8309_s27   ;;  %s8309_s27 = sphi %s8367_s27, %s12930_s27   ;;  %s8305_s26 = sphi %s8365_s26, %s12929_s26   ;;  %s8301_s25 = sphi %s8363_s25, %s12928_s25   ;;  %s8297_s24 = sphi %s8361_s24, %s12927_s24  }
   0x8   : > { %s8386_s30 = sadd.s32 1, %s8309_s27   ;;  %s181_s8 = sadd.s32 1, %s8305_s26 }
   0x9   : > { %s178_s9 = ssub.s32 %s8309_s27, %s8386_s30  ;;  %p191_p0 = scmp.ne.s32.totalorder %s8305_s26, %s8301_s25 }
   0xa   : > { %p179_p1 = scmp.eq.s32.totalorder %s178_s9, 0  ;;  %p192_p2 = scmp.eq.s32.totalorder %s8382_s28, 1 }
   0xb   : > { %p197_p3 = scmp.ne.s32.totalorder %s8301_s25, %s8297_s24  ;;  %p198_p4 = scmp.eq.s32.totalorder %s6605_s29, 1 }
   0xc   : > { %s8397_s10 = scalar_select %p179_p1, %s8305_s26, %s181_s8  }
   0xd   : > { %p8399_p5 = por %p192_p2, %p191_p0  ;;  %p8403_p6 = por %p198_p4, %p197_p3 }
   0xe   : > { %p6606_p7 = scmp.ge.s32.totalorder %s8309_s27, 1  ;;  %p205_p8 = scmp.lt.s32.totalorder %s8309_s27, 3 }
   0xf   : > { %p8029_p9 = scmp.eq.s32.totalorder %s8382_s28, 0  ;;  %s239_s16 = sshll.u32 %s12305_s5, 4  ;;  %s240_s16 = int_to_ptr.hbm [resolvable:$true] %s239_s16 }
  0x10   : > { %p8410_p10 = pnand %p6606_p7, %p205_p8  ;;  %s12325_s1 = sld [smem:[#allocation126_spill]] }
  0x11   : > { %s8311_s21 = smov [#allocation8]   ;;  %s8312_s23 = smov 64  }
  0x12   : > { %p8015_p11 = pneg %p8410_p10  ;;  %s241_s22 = sshll.u32 %s8311_s21, 4  ;;  %s242_s22 = int_to_ptr.vmem [resolvable:$true] %s241_s22 }
  0x13   : > { %s8313_s29 = smov 4   ;;  %s8314_s8 = smov [#allocation5]  }
  0x14   : > { %p8424_p12 = pnand %p8029_p9, %p8015_p11  ;;  %s218_s9 = sshll.u32 %s8314_s8, 4  ;;  %s219_s9 = int_to_ptr.vmem [resolvable:$true] %s218_s9 }
  0x15   : > { %s254_s17 = sshll.u32 %s12306_s6, 4  ;;  %s8315_s18 = smov [#allocation10]   ;;  %s255_s17 = int_to_ptr.hbm [resolvable:$true] %s254_s17 }
  0x16   : > { %s216_s19 = sshll.u32 %s12325_s1, 4  ;;  %s256_s1 = sshll.u32 %s8315_s18, 4  ;;  %s217_s19 = int_to_ptr.hbm [resolvable:$true] %s216_s19  ;;  %s257_s1 = int_to_ptr.vmem [resolvable:$true] %s256_s1 }
  0x17   : > { %8021 = dma.hbm_to_vmem [thread:$0]  (!%p8424_p12), %s240_s16, 1024, %s242_s22, [#allocation9], %s8312_s23, %s8312_s23, %s8313_s29  }
  0x18   : > { %8018 = dma.hbm_to_vmem [thread:$0]  (!%p8424_p12), %s217_s19, 1024, %s219_s9, [#allocation6], %s8312_s23, %s8312_s23, %s8313_s29  }
  0x19   : > { %8024 = dma.hbm_to_vmem [thread:$0]  (!%p8424_p12), %s255_s17, 16, %s257_s1, [#allocation9]  }
  0x1a   : > { %277 = sbr.rel (%p8410_p10) target bundleno = 1390 (0x56e), region = 48 }
  0x1f   : > { %8284 = dma.done.wait (%p8029_p9), [#allocation6], 1024  }
  0x20   : > { %8286 = vsyncadd (%p8029_p9), [#allocation6], 4294966272 }
  0x21   : > { %8288 = dma.done.wait (%p8029_p9), [#allocation9], 1040  }
  0x22   : > { %8290 = vsyncadd (%p8029_p9), [#allocation9], 4294966256  ;;  %p320_p13 = scmp.lt.s32.totalorder %s8382_s28, 1  ;;  %v12308_v0 = vmov 0   ;;  %v7560_v1 = vld [vmem:[#allocation5 + $0x38] sm:$0xff]  ;;  %vm360_vm0 = vcmask 130048   ;;  %v735_v45 = vlaneseq }
  0x23   : > { %664 = vst [vmem:[#allocation3 + $0x4] sm:$0xf] %v12308_v0  ;;  %542 = vmatpush.bf16.msra.mxu0 %v7560_v1  ;;  %v7559_v2 = vld [vmem:[#allocation5 + $0x30] sm:$0xff]  ;;  %vm393_vm1 = vcmask 1047680   ;;  %7977 = vmatpush.bf16.msra.mxu3 %v7560_v1  ;;  %v8317_v6 = vmov 0.0   ;;  %v7558_v8 = vld [vmem:[#allocation5 + $0x28] sm:$0xff] }
  0x24   : > { %s321_s16 = scalar_select %p320_p13, %s8382_s28, 1  ;;  %665 = vst [vmem:[#allocation3 + $0x8] sm:$0xf] %v12308_v0  ;;  %v7557_v9 = vld [vmem:[#allocation5 + $0x20] sm:$0xff]  ;;  %v7556_v10 = vld [vmem:[#allocation5 + $0x18] sm:$0xff]  ;;  %v7555_v13 = vld [vmem:[#allocation5 + $0x10] sm:$0xff] }
  0x25   : > { %666 = vst [vmem:[#allocation3 + $0xc] sm:$0xf] %v12308_v0  ;;  %v7554_v14 = vld [vmem:[#allocation5 + $0x8] sm:$0xff]  ;;  %v7553_v15 = vld [vmem:[#allocation5] sm:$0xff]  ;;  %v8519_v39 = vld [vmem:[%s12303_s3 + $0x78] sm:$0xff]  ;;  %v8538_v48 = vshrl.u32 %v735_v45, 7 }
  0x26   : > { %s7552_s1 = sshll.u32 %s321_s16, 8  ;;  %667 = vst [vmem:[#allocation3 + $0x90] sm:$0xf] %v12308_v0  ;;  %5451 = vmatpush.bf16.msra.mxu2 %v8519_v39  ;;  %v8533_v46 = vld [vmem:[%s12303_s3 + $0x70] sm:$0xff]  ;;  %v7712_v47 = vld [vmem:[%s12303_s3 + $0x38] sm:$0xff]  ;;  %v8544_v49 = vld [vmem:[%s12303_s3 + $0x68] sm:$0xff] }
  0x27   : > { %s8456_s20 = scalar_lea.vmem %s12300_s0, %s7552_s1  ;;  %668 = vst [vmem:[#allocation3 + $0x94] sm:$0xf] %v12308_v0  ;;  %543 = vmatpush.bf16.msra.mxu0 %v7559_v2  ;;  %7978 = vmatpush.bf16.msra.mxu3 %v7559_v2  ;;  %v7711_v50 = vld [vmem:[%s12303_s3 + $0x30] sm:$0xff]  ;;  %v738_v53 = vadd.s32 16, %v8538_v48  ;;  %vm8318_vm2 = vmmov 1   ;;  %v776_v54 = vand.u32 15, %v8538_v48 }
  0x28   : > { %669 = vst [vmem:[#allocation3 + $0x98] sm:$0xf] %v12308_v0  ;;  %v328_v3 = vld [vmem:[%s8456_s20] sm:$0xff]  ;;  %v329_v4 = vld [vmem:[%s8456_s20 + $0x8] sm:$0xff]  ;;  %v330_v5 = vld [vmem:[%s8456_s20 + $0x10] sm:$0xff]  ;;  %5362 = vmatpush.bf16.msra.mxu1 %v7712_v47  ;;  %s317_s15 = sand.u32 1, %s8301_s25  }
  0x29   : > { %361 = vst.msk [vmem:[#allocation2] sm:$0xff] %vm360_vm0, %v328_v3  ;;  %v331_v7 = vld [vmem:[%s8456_s20 + $0x18] sm:$0xff]  ;;  %v332_v11 = vld [vmem:[%s8456_s20 + $0x20] sm:$0xff]  ;;  %v333_v12 = vld [vmem:[%s8456_s20 + $0x28] sm:$0xff]  ;;  %v790_v56 = vand.u32 15, %v738_v53  ;;  %vm1204_vm4 = vcmp.gt.s32.totalorder %v776_v54, 0 }
  0x2a   : > { %362 = vst.msk [vmem:[#allocation2 + $0x8] sm:$0xff] %vm360_vm0, %v329_v4  ;;  %v334_v19 = vld [vmem:[%s8456_s20 + $0x30] sm:$0xff]  ;;  %v335_v20 = vld [vmem:[%s8456_s20 + $0x38] sm:$0xff]  ;;  %v336_v24 = vld [vmem:[%s8456_s20 + $0x40] sm:$0xff]  ;;  %5452 = vmatpush.bf16.msra.mxu2 %v8533_v46  ;;  %vm1349_vm8 = vsmask.f32 3328 }
  0x2b   : > { %394 = vst.msk [vmem:[#allocation2] sm:$0xff] %vm393_vm1, %v8317_v6  ;;  %544 = vmatpush.bf16.msra.mxu0 %v7558_v8  ;;  %7979 = vmatpush.bf16.msra.mxu3 %v7558_v8  ;;  %v337_v25 = vld [vmem:[%s8456_s20 + $0x48] sm:$0xff]  ;;  %v338_v29 = vld [vmem:[%s8456_s20 + $0x50] sm:$0xff]  ;;  %v339_v30 = vld [vmem:[%s8456_s20 + $0x58] sm:$0xff]  ;;  %vm8568_vm5 = vcmp.gt.s32.totalorder %v790_v56, 0  ;;  %s7785_s18 = sshll.u32 %s8382_s28, 7 }
  0x2c   : > { %395 = vst.msk [vmem:[#allocation2 + $0x8] sm:$0xff] %vm393_vm1, %v8317_v6  ;;  %v340_v34 = vld [vmem:[%s8456_s20 + $0x60] sm:$0xff]  ;;  %v341_v35 = vld [vmem:[%s8456_s20 + $0x68] sm:$0xff]  ;;  %v342_v40 = vld [vmem:[%s8456_s20 + $0x70] sm:$0xff]  ;;  %5363 = vmatpush.bf16.msra.mxu1 %v7711_v50  ;;  %vm1350_vm9 = vsmask.f32 7440  ;;  %s6508_s13 = scalar_lea.hbm %s12307_s7, %s7785_s18 }
  0x2d   : > { %363 = vst.msk [vmem:[#allocation2 + $0x10] sm:$0xff] %vm360_vm0, %v330_v5  ;;  %v343_v41 = vld [vmem:[%s8456_s20 + $0x78] sm:$0xff]  ;;  %v344_v51 = vld [vmem:[%s8456_s20 + $0x80] sm:$0xff]  ;;  %v345_v52 = vld [vmem:[%s8456_s20 + $0x88] sm:$0xff]  ;;  %vm2116_vm13 = vsmask.f32 256 }
  0x2e   : > { %364 = vst.msk [vmem:[#allocation2 + $0x18] sm:$0xff] %vm360_vm0, %v331_v7  ;;  %vm1278_vm3 = vmpackc.low %vm8318_vm2, %vm8318_vm2  ;;  %5453 = vmatpush.bf16.msra.mxu2 %v8544_v49  ;;  %v8558_v55 = vld [vmem:[%s12303_s3 + $0x60] sm:$0xff]  ;;  %vm2117_vm14 = vsmask.f32 4368  ;;  %s6511_s21 = sshll.u32 %s6508_s13, 4  ;;  %s6497_s28 = scalar_lea.sflag [#allocation7], %s317_s15  ;;  %s6512_s21 = int_to_ptr.hbm [resolvable:$true] %s6511_s21 }
  0x2f   : > { %396 = vst.msk [vmem:[#allocation2 + $0x10] sm:$0xff] %vm393_vm1, %v8317_v6  ;;  %545 = vmatpush.bf16.msra.mxu0 %v7557_v9  ;;  %7980 = vmatpush.bf16.msra.mxu3 %v7557_v9  ;;  %v8562_v57 = vsel %vm1278_vm3, 65537, %v12308_v0  ;;  %vm1277_vm6 = vmpackc.low %vm1204_vm4, %vm1204_vm4  ;;  %v7710_v9 = vld [vmem:[%s12303_s3 + $0x28] sm:$0xff]  ;;  %s8253_s22 = sshra.s32 %s6512_s21, 4  ;;  %s8259_s9 = scalar_lea.hbm %s12307_s7, 256  ;;  %s8254_s22 = int_to_ptr.hbm [resolvable:$true] %s8253_s22 }
  0x30   : > { %397 = vst.msk [vmem:[#allocation2 + $0x18] sm:$0xff] %vm393_vm1, %v8317_v6  ;;  %v1362_v61 = vshll.u32 %v8562_v57, 16  ;;  %v1366_v62 = vshrl.u32 %v8562_v57, 16  ;;  %v1313_v63 = vsel %vm1277_vm6, 65537, %v12308_v0  ;;  %vm1279_vm7 = vmpackc.low %vm8568_vm5, %vm8568_vm5  ;;  %5364 = vmatpush.bf16.msra.mxu1 %v7710_v9  ;;  %s8255_s23 = scalar_lea.hbm %s8254_s22, 128  ;;  %p8260_p3 = scmp.lt.s32.totalorder %s8254_s22, %s12307_s7 }
  0x31   : > { %365 = vst.msk [vmem:[#allocation2 + $0x20] sm:$0xff] %vm360_vm0, %v332_v11  ;;  %v1353_v1 = vshll.u32 %v1313_v63, 16  ;;  %v1356_v2 = vshrl.u32 %v1313_v63, 16  ;;  %v8592_v11 = vsel %vm1279_vm7, 65537, %v12308_v0  ;;  %vm8608_vm12 = vmor %vm1349_vm8, %vm1350_vm9  ;;  %p8256_p0 = scmp.ne.s32.totalorder %s8254_s22, %s8255_s23  ;;  %p8261_p4 = scmp.lt.s32.totalorder %s8259_s9, %s8255_s23 }
  0x32   : > { %366 = vst.msk [vmem:[#allocation2 + $0x28] sm:$0xff] %vm360_vm0, %v333_v12  ;;  %v426_v16 = vld [vmem:[#allocation2] sm:$0xff]  ;;  %5454 = vmatpush.bf16.msra.mxu2 %v8558_v55  ;;  %v8579_v4 = vrot.slane %v1362_v61, 5  ;;  %v1368_v5 = vrot.slane %v1366_v62, 4  ;;  %v737_v12 = vadd.s32 8, %v8538_v48  ;;  %vm8686_vm5 = vmor %vm2116_vm13, %vm2117_vm14 }
  0x33   : > { %546 = vmatpush.bf16.msra.mxu0 %v7556_v10  ;;  %7981 = vmatpush.bf16.msra.mxu3 %v7556_v10  ;;  %398 = vst.msk [vmem:[#allocation2 + $0x20] sm:$0xff] %vm393_vm1, %v8317_v6  ;;  %v427_v17 = vld [vmem:[#allocation2 + $0x8] sm:$0xff]  ;;  %v8581_v7 = vrot.slane %v1353_v1, 5  ;;  %v1358_v8 = vrot.slane %v1356_v2, 4  ;;  %v8589_v10 = vld [vmem:[%s12303_s3 + $0x58] sm:$0xff]  ;;  %p8257_p1 = pnand %p8256_p0, %p8399_p5  ;;  %p8262_p7 = por %p8261_p4, %p8260_p3 }
  0x34   : > { %399 = vst.msk [vmem:[#allocation2 + $0x28] sm:$0xff] %vm393_vm1, %v8317_v6  ;;  %v458_v18 = vpack.c.bf16 %v427_v17, %v426_v16  ;;  %v783_v16 = vand.u32 15, %v737_v12  ;;  %v1369_v17 = vor.u32 %v1368_v5, %v8579_v4  ;;  %v7706_v2 = vld [vmem:[%s12303_s3 + $0x8] sm:$0xff] }
  0x35   : > { %367 = vst.msk [vmem:[#allocation2 + $0x30] sm:$0xff] %vm360_vm0, %v334_v19  ;;  %p8258_p2 = pneg %p8257_p1 }
  0x36   : > { %368 = vst.msk [vmem:[#allocation2 + $0x38] sm:$0xff] %vm360_vm0, %v335_v20  ;;  %v428_v21 = vld [vmem:[#allocation2 + $0x10] sm:$0xff]  ;;  %5455 = vmatpush.bf16.msra.mxu2 %v8589_v10  ;;  %vm2008_vm10 = vcmp.lt.s32.totalorder %v783_v16, 15  ;;  %v12330_v20 = vmov 0  ;;  %v7705_v16 = vld [vmem:[%s12303_s3] sm:$0xff] }
  0x37   : > { %547 = vmatpush.bf16.msra.mxu0 %v7555_v13  ;;  %7982 = vmatpush.bf16.msra.mxu3 %v7555_v13  ;;  %400 = vst.msk [vmem:[#allocation2 + $0x30] sm:$0xff] %vm393_vm1, %v8317_v6  ;;  %v429_v22 = vld [vmem:[#allocation2 + $0x18] sm:$0xff]  ;;  %v1359_v13 = vor.u32 %v1358_v8, %v8581_v7  ;;  %vm2045_vm11 = vmpackc.low %vm2008_vm10, %vm2008_vm10  ;;  %v12331_v20 = vsel %vm8608_vm12, 4294967295, %v12330_v20  ;;  %v1240_v8 = vld [vmem:[#allocation3 + $0x4] sm:$0x8]  ;;  %p8263_p8 = pnand %p8262_p7, %p8258_p2 }
  0x38   : > { %401 = vst.msk [vmem:[#allocation2 + $0x38] sm:$0xff] %vm393_vm1, %v8317_v6  ;;  %v459_v23 = vpack.c.bf16 %v429_v22, %v428_v21  ;;  %v8612_v21 = vrot.slane %v1369_v17, 4 }
  0x39   : > { %369 = vst.msk [vmem:[#allocation2 + $0x40] sm:$0xff] %vm360_vm0, %v336_v24  ;;  %v1360_v19 = vrot.slane %v1359_v13, 4  ;;  %v1242_v13 = vld [vmem:[#allocation3 + $0xc] sm:$0xf] }
  0x3a   : > { %370 = vst.msk [vmem:[#allocation2 + $0x48] sm:$0xff] %vm360_vm0, %v337_v25  ;;  %v430_v26 = vld [vmem:[#allocation2 + $0x20] sm:$0xff]  ;;  %v3094_v25 = vld [vmem:[#allocation3 + $0x8] sm:$0xf] }
  0x3b   : > { %548 = vmatpush.bf16.msra.mxu0 %v7554_v14  ;;  %7983 = vmatpush.bf16.msra.mxu3 %v7554_v14  ;;  %402 = vst.msk [vmem:[#allocation2 + $0x40] sm:$0xff] %vm393_vm1, %v8317_v6  ;;  %v431_v27 = vld [vmem:[#allocation2 + $0x28] sm:$0xff]  ;;  %v7709_v14 = vld [vmem:[%s12303_s3 + $0x20] sm:$0xff] }
  0x3c   : > { %403 = vst.msk [vmem:[#allocation2 + $0x48] sm:$0xff] %vm393_vm1, %v8317_v6  ;;  %v460_v28 = vpack.c.bf16 %v431_v27, %v430_v26  ;;  %5365 = vmatpush.bf16.msra.mxu1 %v7709_v14  ;;  %v3095_v26 = vld [vmem:[#allocation3 + $0xc] sm:$0xf]  ;;  %v2122_v27 = vrot.slane %v1366_v62, 7 }
  0x3d   : > { %371 = vst.msk [vmem:[#allocation2 + $0x50] sm:$0xff] %vm360_vm0, %v338_v29 }
  0x3e   : > { %372 = vst.msk [vmem:[#allocation2 + $0x58] sm:$0xff] %vm360_vm0, %v339_v30  ;;  %v432_v31 = vld [vmem:[#allocation2 + $0x30] sm:$0xff]  ;;  %v7708_v30 = vld [vmem:[%s12303_s3 + $0x18] sm:$0xff] }
  0x3f   : > { %549 = vmatpush.bf16.msra.mxu0 %v7553_v15  ;;  %7984 = vmatpush.bf16.msra.mxu3 %v7553_v15  ;;  %404 = vst.msk [vmem:[#allocation2 + $0x50] sm:$0xff] %vm393_vm1, %v8317_v6  ;;  %v433_v32 = vld [vmem:[#allocation2 + $0x38] sm:$0xff]  ;;  %v8603_v15 = vld [vmem:[%s12303_s3 + $0x50] sm:$0xff] }
  0x40   : > { %405 = vst.msk [vmem:[#allocation2 + $0x58] sm:$0xff] %vm393_vm1, %v8317_v6  ;;  %v461_v33 = vpack.c.bf16 %v433_v32, %v432_v31  ;;  %5456 = vmatpush.bf16.msra.mxu2 %v8603_v15  ;;  %v8625_v31 = vld [vmem:[%s12303_s3 + $0x48] sm:$0xff]  ;;  %v346_v32 = vld [vmem:[%s8456_s20 + $0x90] sm:$0xff]  ;;  %5366 = vmatpush.bf16.msra.mxu1 %v7708_v30 }
  0x41   : > { %373 = vst.msk [vmem:[#allocation2 + $0x60] sm:$0xff] %vm360_vm0, %v340_v34  ;;  %v347_v34 = vld [vmem:[%s8456_s20 + $0x98] sm:$0xff] }
  0x42   : > { %550 = vmatmul.bf16.vlgmr.msra.gmra.mxu0 %v458_v18  ;;  %374 = vst.msk [vmem:[#allocation2 + $0x68] sm:$0xff] %vm360_vm0, %v341_v35  ;;  %v434_v36 = vld [vmem:[#allocation2 + $0x40] sm:$0xff]  ;;  %v1372_v18 = vshll.u32 %v8592_v11, 16 }
  0x43   : > { %406 = vst.msk [vmem:[#allocation2 + $0x60] sm:$0xff] %vm393_vm1, %v8317_v6  ;;  %v435_v37 = vld [vmem:[#allocation2 + $0x48] sm:$0xff]  ;;  %7985 = vmatpush.bf16.msrb.mxu3 %v7712_v47 }
  0x44   : > { %407 = vst.msk [vmem:[#allocation2 + $0x68] sm:$0xff] %vm393_vm1, %v8317_v6  ;;  %v462_v38 = vpack.c.bf16 %v435_v37, %v434_v36  ;;  %v8614_v22 = vrot.slane %v1372_v18, 5  ;;  %5457 = vmatpush.bf16.msra.mxu2 %v8625_v31 }
  0x45   : > { %375 = vst.msk [vmem:[#allocation2 + $0x70] sm:$0xff] %vm360_vm0, %v342_v40  ;;  %v8640_v40 = vunpack.c.h.b16 %v12308_v0 }
  0x46   : > { %376 = vst.msk [vmem:[#allocation2 + $0x78] sm:$0xff] %vm360_vm0, %v343_v41  ;;  %v436_v42 = vld [vmem:[#allocation2 + $0x50] sm:$0xff]  ;;  %v1375_v35 = vsel %vm8608_vm12, %v8612_v21, %v8614_v22  ;;  %v1711_v41 = vunpack.c.l.b16 %v8581_v7 }
  0x47   : > { %408 = vst.msk [vmem:[#allocation2 + $0x70] sm:$0xff] %vm393_vm1, %v8317_v6  ;;  %v437_v43 = vld [vmem:[#allocation2 + $0x58] sm:$0xff]  ;;  %7986 = vmatpush.bf16.msrb.mxu3 %v7711_v50  ;;  %v7707_v50 = vld [vmem:[%s12303_s3 + $0x10] sm:$0xff]  ;;  %v1726_v53 = vunpack.c.h.b16 %v1375_v35 }
  0x48   : > { %409 = vst.msk [vmem:[#allocation2 + $0x78] sm:$0xff] %vm393_vm1, %v8317_v6  ;;  %v463_v44 = vpack.c.bf16 %v437_v43, %v436_v42  ;;  %v1712_v42 = vunpack.c.h.b16 %v8581_v7  ;;  %v8645_v43 = vor.u32 %v2122_v27, %v1362_v61  ;;  %5367 = vmatpush.bf16.msra.mxu1 %v7707_v50  ;;  %v742_v61 = vadd.s32 48, %v8538_v48 }
  0x49   : > { %12327 = vst [vmem:[#allocation15_spill] sm:$0xff] %v8538_v48  ;;  %vm8699_vm7 = vcmp.ne.s32.totalorder %v1726_v53, %v8640_v40  ;;  %v352_v53 = vld [vmem:[%s8456_s20 + $0xc0] sm:$0xff] }
  0x4a   : > { %377 = vst.msk [vmem:[#allocation2 + $0x80] sm:$0xff] %vm360_vm0, %v344_v51  ;;  %v438_v58 = vld [vmem:[#allocation2 + $0x60] sm:$0xff]  ;;  %vm8669_vm2 = vcmp.ne.s32.totalorder %v1712_v42, %v8640_v40  ;;  %v349_v42 = vld [vmem:[%s8456_s20 + $0xa8] sm:$0xff] }
  0x4b   : > { %378 = vst.msk [vmem:[#allocation2 + $0x88] sm:$0xff] %vm360_vm0, %v345_v52  ;;  %v439_v59 = vld [vmem:[#allocation2 + $0x68] sm:$0xff]  ;;  %7987 = vmatpush.bf16.msrb.mxu3 %v7710_v9  ;;  %v8655_v51 = vld [vmem:[%s12303_s3 + $0x40] sm:$0xff]  ;;  %v1725_v52 = vunpack.c.l.b16 %v1375_v35 }
  0x4c   : > { %410 = vst.msk [vmem:[#allocation2 + $0x80] sm:$0xff] %vm393_vm1, %v8317_v6  ;;  %v464_v3 = vpack.c.bf16 %v439_v59, %v438_v58  ;;  %5458 = vmatpush.bf16.msra.mxu2 %v8655_v51  ;;  %v740_v58 = vadd.s32 32, %v8538_v48  ;;  %v8674_v59 = vrot.slane %v2122_v27, 4  ;;  %5368 = vmatpush.bf16.msra.mxu1 %v7706_v2  ;;  %v1241_v9 = vld [vmem:[#allocation3 + $0x8] sm:$0xf] }
  0x4d   : > { %411 = vst.msk [vmem:[#allocation2 + $0x88] sm:$0xff] %vm393_vm1, %v8317_v6 }
  0x4e   : > { %12332 = vst [vmem:[#allocation16_spill] sm:$0xff] %v12331_v20  ;;  %v440_v36 = vld [vmem:[#allocation2 + $0x70] sm:$0xff]  ;;  %v804_v12 = vand.u32 15, %v740_v58 }
  0x4f   : > { %7988 = vmatpush.bf16.msrb.mxu3 %v7709_v14  ;;  %3126 = vst [vmem:[#allocation4 + $0x4] sm:$0xf] %v3094_v25  ;;  %v441_v37 = vld [vmem:[#allocation2 + $0x78] sm:$0xff] }
  0x50   : > { %3127 = vst [vmem:[#allocation4 + $0x28] sm:$0xf] %v3095_v26  ;;  %v465_v54 = vpack.c.bf16 %v441_v37, %v440_v36  ;;  %5369 = vmatpush.bf16.msra.mxu1 %v7705_v16  ;;  %v1376_v26 = vshrl.u32 %v8592_v11, 16 }
  0x51   : > { %12333 = vst [vmem:[#allocation17_spill] sm:$0xff] %v8640_v40 }
  0x52   : > { %555 = vmatmul.bf16.gmra.mxu0 %v459_v23  ;;  %v2081_v23 = vsel %vm2045_vm11, 65537, %v12308_v0  ;;  %379 = vst.msk [vmem:[#allocation2 + $0x90] sm:$0xff] %vm360_vm0, %v346_v32  ;;  %vm8721_vm11 = vcmp.gt.s32.totalorder %v804_v12, 0 }
  0x53   : > { %v2128_v24 = vshrl.u32 %v2081_v23, 16  ;;  %v2131_v29 = vshll.u32 %v2081_v23, 16  ;;  %7989 = vmatpush.bf16.msrb.mxu3 %v7708_v30  ;;  %380 = vst.msk [vmem:[#allocation2 + $0x98] sm:$0xff] %vm360_vm0, %v347_v34 }
  0x54   : > { %412 = vst.msk [vmem:[#allocation2 + $0x90] sm:$0xff] %vm393_vm1, %v8317_v6  ;;  %v443_v34 = vld [vmem:[#allocation2 + $0x88] sm:$0xff] }
  0x55   : > { %413 = vst.msk [vmem:[#allocation2 + $0x98] sm:$0xff] %vm393_vm1, %v8317_v6 }
  0x56   : > { %12338 = vst [vmem:[#allocation18_spill] sm:$0xff] %v8674_v59  ;;  %v7561_v60 = vld [vmem:[#allocation4 + $0x4] sm:$0xf] }
  0x57   : > { %7990 = vmatpush.bf16.msrb.mxu3 %v7707_v50  ;;  %v6655_v1 = vld [vmem:[#allocation4 + $0x24] sm:$0xf0]  ;;  %382 = vst.msk [vmem:[#allocation2 + $0xa8] sm:$0xff] %vm360_vm0, %v349_v42 }
  0x58   : > { %v6658_v7 = vor.u32 %v7561_v60, %v6655_v1  ;;  %415 = vst.msk [vmem:[#allocation2 + $0xa8] sm:$0xff] %vm393_vm1, %v8317_v6 }
  0x59   : > { %385 = vst.msk [vmem:[#allocation2 + $0xc0] sm:$0xff] %vm360_vm0, %v352_v53 }
  0x5a   : > { %5459 = vmatmul.bf16.vlgmr.msra.gmra.mxu2 %v6658_v7  ;;  %v8769_v7 = vld [vmem:[%s12302_s2] ss:$0 sm:$0xff]  ;;  %418 = vst.msk [vmem:[#allocation2 + $0xc0] sm:$0xff] %vm393_vm1, %v8317_v6 }
  0x5b   : > { %7991 = vmatpush.bf16.msrb.mxu3 %v7706_v2 }
  0x5f   : > { %7992 = vmatpush.bf16.msrb.mxu3 %v7705_v16 }
  0x62   : > { %560 = vmatmul.bf16.gmra.mxu0 %v460_v28  ;;  %v8617_v28 = vrot.slane %v2128_v24, 7 }
  0x72   : > { %565 = vmatmul.bf16.gmra.mxu0 %v461_v33  ;;  %v1365_v33 = vsel %vm8608_vm12, %v1360_v19, %v8579_v4 }
  0x73   : > { %v1718_v45 = vunpack.c.l.b16 %v1365_v33  ;;  %v1719_v47 = vunpack.c.h.b16 %v1365_v33  ;;  %v442_v33 = vld [vmem:[#allocation2 + $0x80] sm:$0xff] }
  0x75   : > { %vm8682_vm4 = vcmp.ne.s32.totalorder %v1719_v47, %v8640_v40 }
  0x82   : > { %570 = vmatmul.bf16.gmra.mxu0 %v462_v38  ;;  %v8637_v38 = vunpack.c.l.b16 %v12308_v0 }
  0x84   : > { %vm8664_vm15 = vcmp.ne.s32.totalorder %v1711_v41, %v8637_v38  ;;  %vm8677_vm3 = vcmp.ne.s32.totalorder %v1718_v45, %v8637_v38  ;;  %vm8694_vm6 = vcmp.ne.s32.totalorder %v1725_v52, %v8637_v38  ;;  %v348_v41 = vld [vmem:[%s8456_s20 + $0xa0] sm:$0xff] }
  0x85   : > { %vm1717_vm8 = vmpackc.low %vm8669_vm2, %vm8664_vm15  ;;  %381 = vst.msk [vmem:[#allocation2 + $0xa0] sm:$0xff] %vm360_vm0, %v348_v41 }
  0x86   : > { %vm1724_vm9 = vmpackc.low %vm8682_vm4, %vm8677_vm3  ;;  %v1970_v17 = vsel %vm1717_vm8, %v1240_v8, 0  ;;  %414 = vst.msk [vmem:[#allocation2 + $0xa0] sm:$0xff] %vm393_vm1, %v8317_v6  ;;  %v818_v8 = vand.u32 15, %v742_v61 }
  0x87   : > { %vm1731_vm10 = vmpackc.low %vm8699_vm7, %vm8694_vm6  ;;  %v1971_v18 = vsel %vm1724_vm9, %v1241_v9, 0  ;;  %v2739_v30 = vshrl.u32 %v1970_v17, 16 }
  0x88   : > { %v1972_v19 = vsel %vm1731_vm10, %v1242_v13, 0  ;;  %v2744_v32 = vshrl.u32 %v1971_v18, 16  ;;  %v2747_v35 = vshll.u32 %v1971_v18, 16  ;;  %vm1281_vm15 = vmpackc.low %vm8721_vm11, %vm8721_vm11  ;;  %vm8780_vm3 = vcmp.gt.s32.totalorder %v818_v8, 0 }
  0x89   : > { %v2753_v36 = vshrl.u32 %v1972_v19, 16  ;;  %v2756_v37 = vshll.u32 %v1972_v19, 16  ;;  %v6650_v45 = vrot.slane %v2739_v30, 11  ;;  %v1317_v56 = vsel %vm1281_vm15, 65537, %v12308_v0  ;;  %vm1283_vm4 = vmpackc.low %vm8780_vm3, %vm8780_vm3  ;;  %v7735_v30 = vld [vmem:[%s12303_s3 + $0xf0] sm:$0xff] }
  0x8a   : > { %v2746_v11 = vrot.slane %v2744_v32, 7  ;;  %v1392_v5 = vshll.u32 %v1317_v56, 16  ;;  %v1396_v19 = vshrl.u32 %v1317_v56, 16 }
  0x8b   : > { %v8745_v47 = vrot.slane %v2753_v36, 7  ;;  %v450_v36 = vld [vmem:[#allocation2 + $0xc0] sm:$0xff] }
  0x8c   : > { %v2749_v52 = vor.u32 %v2747_v35, %v2746_v11  ;;  %v2751_v57 = vrot.slane %v2746_v11, 4  ;;  %v1394_v9 = vrot.slane %v1392_v5, 5  ;;  %v445_v35 = vld [vmem:[#allocation2 + $0x98] sm:$0xff]  ;;  %v1398_v42 = vrot.slane %v1396_v19, 4 }
  0x8d   : > { %v2758_v58 = vor.u32 %v2756_v37, %v8745_v47 }
  0x8e   : > { %v2750_v1 = vsel %vm8686_vm5, %v6650_v45, %v2749_v52  ;;  %v1319_v45 = vsel %vm1283_vm4, 65537, %v12308_v0  ;;  %v1399_v61 = vor.u32 %v1398_v42, %v1394_v9 }
  0x8f   : > { %v2759_v2 = vsel %vm8686_vm5, %v2751_v57, %v2758_v58  ;;  %3062 = vst [vmem:[#allocation4] sm:$0xf] %v2750_v1  ;;  %v350_v1 = vld [vmem:[%s8456_s20 + $0xb0] sm:$0xff]  ;;  %v2760_v58 = vrot.slane %v8745_v47, 4 }
  0x90   : > { %3063 = vst [vmem:[#allocation4 + $0x24] sm:$0xf] %v2759_v2  ;;  %v351_v2 = vld [vmem:[%s8456_s20 + $0xb8] sm:$0xff] }
  0x91   : > { %383 = vst.msk [vmem:[#allocation2 + $0xb0] sm:$0xff] %vm360_vm0, %v350_v1 }
  0x92   : > { %575 = vmatmul.bf16.gmra.mxu0 %v463_v44  ;;  %v2133_v44 = vor.u32 %v2131_v29, %v8617_v28  ;;  %384 = vst.msk [vmem:[#allocation2 + $0xb8] sm:$0xff] %vm360_vm0, %v351_v2 }
  0x93   : > { %416 = vst.msk [vmem:[#allocation2 + $0xb0] sm:$0xff] %vm393_vm1, %v8317_v6 }
  0x94   : > { %v2134_v14 = vsel %vm8686_vm5, %v8674_v59, %v2133_v44  ;;  %v1378_v44 = vrot.slane %v1376_v26, 4  ;;  %417 = vst.msk [vmem:[#allocation2 + $0xb8] sm:$0xff] %vm393_vm1, %v8317_v6 }
  0x95   : > { %v2449_v23 = vunpack.c.l.b16 %v2134_v14  ;;  %v2450_v24 = vunpack.c.h.b16 %v2134_v14 }
  0x96   : > { %v1379_v62 = vor.u32 %v1378_v44, %v8614_v22 }
  0x97   : > { %vm8727_vm13 = vcmp.ne.s32.totalorder %v2449_v23, %v8637_v38  ;;  %vm8732_vm14 = vcmp.ne.s32.totalorder %v2450_v24, %v8640_v40  ;;  %v6653_v23 = vld [vmem:[#allocation4] sm:$0xf]  ;;  %v1395_v24 = vsel %vm8608_vm12, %v8612_v21, %v1394_v9  ;;  %v7565_v25 = vld [vmem:[#allocation4 + $0x20] sm:$0xf0] }
  0x98   : > { %vm2455_vm2 = vmpackc.low %vm8732_vm14, %vm8727_vm13  ;;  %v1380_v22 = vrot.slane %v1379_v62, 4  ;;  %v6654_v29 = vor.u32 %v7565_v25, %v6653_v23  ;;  %v1739_v37 = vunpack.c.l.b16 %v1395_v24  ;;  %v1740_v41 = vunpack.c.h.b16 %v1395_v24 }
  0x99   : > { %v8748_v50 = vsel %vm2455_vm2, %v1242_v13, 0  ;;  %v7736_v13 = vld [vmem:[%s12303_s3 + $0xf8] sm:$0xff]  ;;  %v1412_v62 = vshll.u32 %v1319_v45, 16  ;;  %v1416_v25 = vshrl.u32 %v1319_v45, 16 }
  0x9a   : > { %v1385_v18 = vsel %vm8608_vm12, %v1380_v22, %v8579_v4  ;;  %5629 = vmatpush.bf16.msrb.mxu0 %v7736_v13  ;;  %5370 = vmatmul.bf16.vlgmr.msra.gmra.mxu1 %v6654_v29  ;;  %vm8809_vm8 = vcmp.ne.s32.totalorder %v1739_v37, %v8637_v38  ;;  %vm8814_vm9 = vcmp.ne.s32.totalorder %v1740_v41, %v8640_v40  ;;  %v446_v29 = vld [vmem:[#allocation2 + $0xa0] sm:$0xff] }
  0x9b   : > { %v1732_v32 = vunpack.c.l.b16 %v1385_v18  ;;  %vm1745_vm11 = vmpackc.low %vm8814_vm9, %vm8809_vm8  ;;  %v8830_v5 = vrot.slane %v1412_v62, 5  ;;  %v7729_v62 = vld [vmem:[%s12303_s3 + $0xc0] sm:$0xff] }
  0x9d   : > { %vm8799_vm6 = vcmp.ne.s32.totalorder %v1732_v32, %v8637_v38  ;;  %v1415_v24 = vsel %vm8608_vm12, %v8612_v21, %v8830_v5 }
  0x9e   : > { %5630 = vmatpush.bf16.msrb.mxu0 %v7735_v30  ;;  %v447_v30 = vld [vmem:[#allocation2 + $0xa8] sm:$0xff]  ;;  %v1753_v41 = vunpack.c.l.b16 %v1415_v24  ;;  %v1754_v45 = vunpack.c.h.b16 %v1415_v24 }
  0xa0   : > { %vm8877_vm2 = vcmp.ne.s32.totalorder %v1753_v41, %v8637_v38  ;;  %vm8884_vm3 = vcmp.ne.s32.totalorder %v1754_v45, %v8640_v40  ;;  %v448_v41 = vld [vmem:[#allocation2 + $0xb0] sm:$0xff] }
  0xa2   : > { %580 = vmatmul.bf16.gmra.mxu0 %v464_v3  ;;  %v353_v3 = vld [vmem:[%s8456_s20 + $0xc8] sm:$0xff] }
  0xa3   : > { %386 = vst.msk [vmem:[#allocation2 + $0xc8] sm:$0xff] %vm360_vm0, %v353_v3  ;;  %v1400_v3 = vrot.slane %v1399_v61, 4 }
  0xa4   : > { %419 = vst.msk [vmem:[#allocation2 + $0xc8] sm:$0xff] %vm393_vm1, %v8317_v6 }
  0xa5   : > { %v1405_v19 = vsel %vm8608_vm12, %v1400_v3, %v8579_v4 }
  0xa6   : > { %v1747_v37 = vunpack.c.h.b16 %v1405_v19 }
  0xa8   : > { %vm8872_vm15 = vcmp.ne.s32.totalorder %v1747_v37, %v8640_v40 }
  0xab   : > { %v451_v44 = vld [vmem:[#allocation2 + $0xc8] sm:$0xff] }
  0xac   : > { %v470_v52 = vpack.c.bf16 %v451_v44, %v450_v36  ;;  %v354_v36 = vld [vmem:[%s8456_s20 + $0xd0] sm:$0xff] }
  0xad   : > { %387 = vst.msk [vmem:[#allocation2 + $0xd0] sm:$0xff] %vm360_vm0, %v354_v36 }
  0xae   : > { %610 = vmatmul.bf16.vlgmr.msra.gmra.mxu3 %v470_v52  ;;  %v1418_v52 = vrot.slane %v1416_v25, 4  ;;  %420 = vst.msk [vmem:[#allocation2 + $0xd0] sm:$0xff] %vm393_vm1, %v8317_v6 }
  0xaf   : > { %7993 = vmatpush.bf16.msra.mxu3 %v8519_v39 }
  0xb2   : > { %585 = vmatmul.bf16.gmra.mxu0 %v465_v54  ;;  %v466_v54 = vpack.c.bf16 %v443_v34, %v442_v33  ;;  %v1733_v33 = vunpack.c.h.b16 %v1385_v18  ;;  %v444_v34 = vld [vmem:[#allocation2 + $0x90] sm:$0xff] }
  0xb3   : > { %v467_v53 = vpack.c.bf16 %v445_v35, %v444_v34  ;;  %7994 = vmatpush.bf16.msra.mxu3 %v8533_v46  ;;  %v1746_v35 = vunpack.c.l.b16 %v1405_v19 }
  0xb4   : > { %vm8804_vm7 = vcmp.ne.s32.totalorder %v1733_v33, %v8640_v40 }
  0xb5   : > { %vm1738_vm10 = vmpackc.low %vm8804_vm7, %vm8799_vm6  ;;  %vm8863_vm13 = vcmp.ne.s32.totalorder %v1746_v35, %v8637_v38 }
  0xb6   : > { %vm1752_vm6 = vmpackc.low %vm8872_vm15, %vm8863_vm13 }
  0xb7   : > { %7995 = vmatpush.bf16.msra.mxu3 %v8544_v49  ;;  %v7734_v49 = vld [vmem:[%s12303_s3 + $0xe8] sm:$0xff]  ;;  %vm1759_vm7 = vmpackc.low %vm8884_vm3, %vm8877_vm2 }
  0xb8   : > { %5631 = vmatpush.bf16.msrb.mxu0 %v7734_v49 }
  0xbb   : > { %7996 = vmatpush.bf16.msra.mxu3 %v8558_v55 }
  0xbf   : > { %v551_v60 = vpop.f32.mrf.mxu0  ;;  %7997 = vmatpush.bf16.msra.mxu3 %v8589_v10 }
  0xc0   : > { %v552_v12 = vadd.f32 %v8769_v7, %v551_v60 }
  0xc2   : > { %590 = vmatmul.bf16.gmra.mxu0 %v466_v54  ;;  %v631_v26 = vmax.f32 %v552_v12, 0.0  ;;  %v355_v54 = vld [vmem:[%s8456_s20 + $0xd8] sm:$0xff] }
  0xc3   : > { %388 = vst.msk [vmem:[#allocation2 + $0xd8] sm:$0xff] %vm360_vm0, %v355_v54  ;;  %7998 = vmatpush.bf16.msra.mxu3 %v8603_v15 }
  0xc4   : > { %421 = vst.msk [vmem:[#allocation2 + $0xd8] sm:$0xff] %vm393_vm1, %v8317_v6 }
  0xc7   : > { %v553_v14 = vpop.f32.mrf.mxu0  ;;  %7999 = vmatpush.bf16.msra.mxu3 %v8625_v31 }
  0xc8   : > { %v554_v17 = vadd.f32 %v8769_v7, %v553_v14  ;;  %v744_v14 = vadd.s32 64, %v8538_v48 }
  0xca   : > { %v632_v27 = vmax.f32 %v554_v17, 0.0  ;;  %v832_v32 = vand.u32 15, %v744_v14 }
  0xcb   : > { %8000 = vmatpush.bf16.msra.mxu3 %v8655_v51  ;;  %v453_v60 = vld [vmem:[#allocation2 + $0xd8] sm:$0xff] }
  0xcc   : > { %v7789_v11 = vpack.c.bf16 %v632_v27, %v631_v26  ;;  %vm8867_vm14 = vcmp.gt.s32.totalorder %v832_v32, 0  ;;  %v7730_v32 = vld [vmem:[%s12303_s3 + $0xc8] sm:$0xff] }
  0xcd   : > { %vm1285_vm4 = vmpackc.low %vm8867_vm14, %vm8867_vm14 }
  0xce   : > { %7946 = vst [vmem:[#allocation3 + $0x10] sm:$0xff] %v7789_v11  }
  0xcf   : > { %v556_v57 = vpop.f32.mrf.mxu0 }
  0xd0   : > { %v557_v16 = vadd.f32 %v8769_v7, %v556_v57  ;;  %v468_v57 = vpack.c.bf16 %v447_v30, %v446_v29 }
  0xd2   : > { %595 = vmatmul.bf16.gmra.mxu0 %v467_v53  ;;  %v633_v33 = vmax.f32 %v557_v16, 0.0  ;;  %v7733_v53 = vld [vmem:[%s12303_s3 + $0xe0] sm:$0xff]  ;;  %v1321_v16 = vsel %vm1285_vm4, 65537, %v12308_v0 }
  0xd3   : > { %5632 = vmatpush.bf16.msrb.mxu0 %v7733_v53  ;;  %v1432_v30 = vshll.u32 %v1321_v16, 16  ;;  %v1436_v49 = vshrl.u32 %v1321_v16, 16 }
  0xd5   : > { %v1243_v39 = vld [vmem:[#allocation3 + $0x10] sm:$0xf]  ;;  %v1244_v8 = vld [vmem:[#allocation3 + $0x14] sm:$0xf]  ;;  %v1434_v3 = vrot.slane %v1432_v30, 5 }
  0xd6   : > { %v3598_v22 = vld [vmem:[#allocation3 + $0x10] sm:$0xf]  ;;  %v1973_v9 = vsel %vm1738_vm10, %v1243_v39, 0  ;;  %v1974_v12 = vsel %vm1745_vm11, %v1244_v8, 0  ;;  %v3599_v13 = vld [vmem:[#allocation3 + $0x14] sm:$0xf]  ;;  %v1419_v8 = vor.u32 %v1418_v52, %v8830_v5 }
  0xd7   : > { %3630 = vst [vmem:[#allocation4 + $0x10] sm:$0xf] %v3598_v22  ;;  %v558_v17 = vpop.f32.mrf.mxu0  ;;  %v2762_v18 = vshrl.u32 %v1973_v9, 16  ;;  %v2771_v46 = vshrl.u32 %v1974_v12, 16  ;;  %v3096_v26 = vld [vmem:[#allocation3 + $0x10] sm:$0xf] }
  0xd8   : > { %3631 = vst [vmem:[#allocation4 + $0x34] sm:$0xf] %v3599_v13  ;;  %v559_v23 = vadd.f32 %v8769_v7, %v558_v17  ;;  %v3097_v27 = vld [vmem:[#allocation3 + $0x14] sm:$0xf]  ;;  %v2765_v56 = vshll.u32 %v1973_v9, 16  ;;  %v2774_v55 = vshll.u32 %v1974_v12, 16 }
  0xd9   : > { %3128 = vst [vmem:[#allocation4 + $0x4c] sm:$0xf] %v3096_v26  ;;  %v2764_v11 = vrot.slane %v2762_v18, 7  ;;  %v8852_v42 = vrot.slane %v2771_v46, 7  ;;  %v7732_v12 = vld [vmem:[%s12303_s3 + $0xd8] sm:$0xff]  ;;  %v1420_v17 = vrot.slane %v1419_v8, 4 }
  0xda   : > { %v634_v34 = vmax.f32 %v559_v23, 0.0  ;;  %3129 = vst [vmem:[#allocation4 + $0x70] sm:$0xf] %v3097_v27  ;;  %5633 = vmatpush.bf16.msrb.mxu0 %v7732_v12  ;;  %v7731_v18 = vld [vmem:[%s12303_s3 + $0xd0] sm:$0xff]  ;;  %v1438_v8 = vrot.slane %v1436_v49, 4  ;;  %v357_v12 = vld [vmem:[%s8456_s20 + $0xe8] sm:$0xff] }
  0xdb   : > { %v2767_v2 = vor.u32 %v2765_v56, %v2764_v11  ;;  %v2769_v22 = vrot.slane %v2764_v11, 4  ;;  %v2776_v9 = vor.u32 %v2774_v55, %v8852_v42  ;;  %v1425_v35 = vsel %vm8608_vm12, %v1420_v17, %v8579_v4  ;;  %v452_v56 = vld [vmem:[#allocation2 + $0xd0] sm:$0xff]  ;;  %390 = vst.msk [vmem:[#allocation2 + $0xe8] sm:$0xff] %vm360_vm0, %v357_v12  ;;  %v359_v12 = vld [vmem:[%s8456_s20 + $0xf8] sm:$0xff] }
  0xdc   : > { %v7794_v44 = vpack.c.bf16 %v634_v34, %v633_v33  ;;  %v1761_v55 = vunpack.c.h.b16 %v1425_v35  ;;  %423 = vst.msk [vmem:[#allocation2 + $0xe8] sm:$0xff] %vm393_vm1, %v8317_v6 }
  0xdd   : > { %v2768_v5 = vsel %vm8686_vm5, %v2760_v58, %v2767_v2  ;;  %v2777_v14 = vsel %vm8686_vm5, %v2769_v22, %v2776_v9  ;;  %v1760_v58 = vunpack.c.l.b16 %v1425_v35  ;;  %v471_v2 = vpack.c.bf16 %v453_v60, %v452_v56  ;;  %v356_v9 = vld [vmem:[%s8456_s20 + $0xe0] sm:$0xff]  ;;  %392 = vst.msk [vmem:[#allocation2 + $0xf8] sm:$0xff] %vm360_vm0, %v359_v12 }
  0xde   : > { %7947 = vst [vmem:[#allocation3 + $0x18] sm:$0xff] %v7794_v44   ;;  %5634 = vmatpush.bf16.msrb.mxu0 %v7731_v18  ;;  %v449_v44 = vld [vmem:[#allocation2 + $0xb8] sm:$0xff]  ;;  %vm8948_vm9 = vcmp.ne.s32.totalorder %v1761_v55, %v8640_v40  ;;  %v1439_v18 = vor.u32 %v1438_v8, %v1434_v3 }
  0xdf   : > { %v561_v61 = vpop.f32.mrf.mxu0  ;;  %3064 = vst [vmem:[#allocation4 + $0x48] sm:$0xf] %v2768_v5  ;;  %v469_v51 = vpack.c.bf16 %v449_v44, %v448_v41  ;;  %615 = vmatmul.bf16.gmra.mxu3 %v471_v2  ;;  %vm8943_vm8 = vcmp.ne.s32.totalorder %v1760_v58, %v8637_v38 }
  0xe0   : > { %v7570_v39 = vld [vmem:[#allocation4 + $0x4c] sm:$0xf]  ;;  %3065 = vst [vmem:[#allocation4 + $0x6c] sm:$0xf] %v2777_v14  ;;  %v562_v26 = vadd.f32 %v8769_v7, %v561_v61  ;;  %v746_v61 = vadd.s32 80, %v8538_v48  ;;  %vm1766_vm10 = vmpackc.low %vm8948_vm9, %vm8943_vm8 }
  0xe1   : > { %v6691_v10 = vld [vmem:[#allocation4 + $0x6c] sm:$0xf0]  ;;  %3566 = vst [vmem:[#allocation4 + $0xc] sm:$0xf] %v2768_v5 }
  0xe2   : > { %600 = vmatmul.bf16.gmra.mxu0 %v468_v57  ;;  %v6694_v13 = vor.u32 %v7570_v39, %v6691_v10  ;;  %3567 = vst [vmem:[#allocation4 + $0x30] sm:$0xf] %v2777_v14  ;;  %v635_v37 = vmax.f32 %v562_v26, 0.0  ;;  %v846_v5 = vand.u32 15, %v746_v61 }
  0xe3   : > { %5635 = vmatpush.bf16.msrb.mxu0 %v7730_v32  ;;  %389 = vst.msk [vmem:[#allocation2 + $0xe0] sm:$0xff] %vm360_vm0, %v356_v9 }
  0xe4   : > { %5464 = vmatmul.bf16.gmra.mxu2 %v6694_v13  ;;  %v2778_v13 = vrot.slane %v8852_v42, 4  ;;  %v1435_v42 = vsel %vm8608_vm12, %v8612_v21, %v1434_v3  ;;  %422 = vst.msk [vmem:[#allocation2 + $0xe0] sm:$0xff] %vm393_vm1, %v8317_v6  ;;  %vm8965_vm11 = vcmp.gt.s32.totalorder %v846_v5, 0  ;;  %v748_v5 = vadd.s32 96, %v8538_v48 }
  0xe5   : > { %v1245_v19 = vld [vmem:[#allocation3 + $0x18] sm:$0xf]  ;;  %v1246_v46 = vld [vmem:[#allocation3 + $0x1c] sm:$0xf]  ;;  %v1768_v26 = vunpack.c.h.b16 %v1435_v42  ;;  %vm1287_vm13 = vmpackc.low %vm8965_vm11, %vm8965_vm11  ;;  %425 = vst.msk [vmem:[#allocation2 + $0xf8] sm:$0xff] %vm393_vm1, %v8317_v6 }
  0xe6   : > { %v3768_v23 = vld [vmem:[#allocation3 + $0x18] sm:$0xf]  ;;  %v1975_v24 = vsel %vm1752_vm6, %v1245_v19, 0  ;;  %v1976_v15 = vsel %vm1759_vm7, %v1246_v46, 0  ;;  %v3769_v25 = vld [vmem:[#allocation3 + $0x1c] sm:$0xf] }
  0xe7   : > { %v563_v27 = vpop.f32.mrf.mxu0  ;;  %v2780_v29 = vshrl.u32 %v1975_v24, 16  ;;  %3800 = vst [vmem:[#allocation4 + $0x1c] sm:$0xf] %v3768_v23  ;;  %v2789_v33 = vshrl.u32 %v1976_v15, 16  ;;  %v6689_v36 = vld [vmem:[#allocation4 + $0x48] sm:$0xf]  ;;  %5636 = vmatpush.bf16.msrb.mxu0 %v7729_v62  ;;  %vm8981_vm15 = vcmp.ne.s32.totalorder %v1768_v26, %v8640_v40 }
  0xe8   : > { %3801 = vst [vmem:[#allocation4 + $0x40] sm:$0xf] %v3769_v25  ;;  %v564_v34 = vadd.f32 %v8769_v7, %v563_v27  ;;  %v7574_v31 = vld [vmem:[#allocation4 + $0x68] sm:$0xf0]  ;;  %v3098_v53 = vld [vmem:[#allocation3 + $0x18] sm:$0xf]  ;;  %v1767_v25 = vunpack.c.l.b16 %v1435_v42 }
  0xe9   : > { %v2782_v11 = vrot.slane %v2780_v29, 7  ;;  %v6690_v52 = vor.u32 %v7574_v31, %v6689_v36  ;;  %v3099_v54 = vld [vmem:[#allocation3 + $0x1c] sm:$0xf]  ;;  %v2783_v57 = vshll.u32 %v1975_v24, 16  ;;  %3130 = vst [vmem:[#allocation4 + $0x94] sm:$0xf] %v3098_v53 }
  0xea   : > { %v636_v45 = vmax.f32 %v564_v34, 0.0  ;;  %v8936_v1 = vrot.slane %v2789_v33, 7  ;;  %3131 = vst [vmem:[#allocation4 + $0xb8] sm:$0xf] %v3099_v54  ;;  %v2792_v10 = vshll.u32 %v1976_v15, 16  ;;  %v1440_v33 = vrot.slane %v1439_v18, 4 }
  0xeb   : > { %5375 = vmatmul.bf16.gmra.mxu1 %v6690_v52  ;;  %v2785_v22 = vor.u32 %v2783_v57, %v2782_v11  ;;  %v2787_v46 = vrot.slane %v2782_v11, 4  ;;  %vm8976_vm14 = vcmp.ne.s32.totalorder %v1767_v25, %v8637_v38  ;;  %v8987_v41 = vsel %vm1287_vm13, 65537, %v12308_v0  ;;  %v7562_v52 = vld [vmem:[#allocation4 + $0xc] sm:$0xf]  ;;  %v6663_v54 = vld [vmem:[#allocation4 + $0x2c] sm:$0xf0] }
  0xec   : > { %v7799_v47 = vpack.c.bf16 %v636_v45, %v635_v37  ;;  %v2794_v17 = vor.u32 %v2792_v10, %v8936_v1  ;;  %v1445_v44 = vsel %vm8608_vm12, %v1440_v33, %v8579_v4  ;;  %vm1773_vm2 = vmpackc.low %vm8981_vm15, %vm8976_vm14  ;;  %v1452_v55 = vshll.u32 %v8987_v41, 16  ;;  %v454_v42 = vld [vmem:[#allocation2 + $0xe0] sm:$0xff] }
  0xed   : > { %v2786_v19 = vsel %vm8686_vm5, %v2778_v13, %v2785_v22  ;;  %v1774_v60 = vunpack.c.l.b16 %v1445_v44  ;;  %v6666_v8 = vor.u32 %v7562_v52, %v6663_v54  ;;  %v358_v22 = vld [vmem:[%s8456_s20 + $0xf0] sm:$0xff]  ;;  %v860_v26 = vand.u32 15, %v748_v5  ;;  %s6615_s20 = sshll.u32 %s317_s15, 7 }
  0xee   : > { %7948 = vst [vmem:[#allocation3 + $0x20] sm:$0xff] %v7799_v47   ;;  %v2795_v29 = vsel %vm8686_vm5, %v2787_v46, %v2794_v17  ;;  %v9003_v10 = vrot.slane %v1452_v55, 5  ;;  %s12177_s17 = scalar_lea.vmem [#allocation11], %s6615_s20 }
  0xef   : > { %v566_v39 = vpop.f32.mrf.mxu0  ;;  %3066 = vst [vmem:[#allocation4 + $0x90] sm:$0xf] %v2786_v19  ;;  %vm9008_vm3 = vcmp.ne.s32.totalorder %v1774_v60, %v8637_v38  ;;  %s6509_s19 = sshll.u32 %s12177_s17, 4  ;;  %s6510_s19 = int_to_ptr.vmem [resolvable:$true] %s6509_s19 }
  0xf0   : > { %v7579_v23 = vld [vmem:[#allocation4 + $0x94] sm:$0xf]  ;;  %3736 = vst [vmem:[#allocation4 + $0x18] sm:$0xf] %v2786_v19  ;;  %v567_v35 = vadd.f32 %v8769_v7, %v566_v39  ;;  %v1455_v15 = vsel %vm8608_vm12, %v8612_v21, %v9003_v10 }
  0xf1   : > { %v6727_v24 = vld [vmem:[#allocation4 + $0xb4] sm:$0xf0]  ;;  %3568 = vst [vmem:[#allocation4 + $0x54] sm:$0xf] %v2786_v19  ;;  %v1782_v49 = vunpack.c.h.b16 %v1455_v15 }
  0xf2   : > { %605 = vmatmul.bf16.gmra.mxu0 %v469_v51  ;;  %v6730_v27 = vor.u32 %v7579_v23, %v6727_v24  ;;  %3067 = vst [vmem:[#allocation4 + $0xb4] sm:$0xf] %v2795_v29  ;;  %v637_v57 = vmax.f32 %v567_v35, 0.0  ;;  %v1775_v51 = vunpack.c.h.b16 %v1445_v44  ;;  %v455_v23 = vld [vmem:[#allocation2 + $0xe8] sm:$0xff]  ;;  %v2796_v24 = vrot.slane %v8936_v1, 4 }
  0xf3   : > { %3737 = vst [vmem:[#allocation4 + $0x3c] sm:$0xf] %v2795_v29  ;;  %v472_v25 = vpack.c.bf16 %v455_v23, %v454_v42  ;;  %v1781_v35 = vunpack.c.l.b16 %v1455_v15  ;;  %vm9056_vm7 = vcmp.ne.s32.totalorder %v1782_v49, %v8640_v40 }
  0xf4   : > { %5469 = vmatmul.bf16.gmra.mxu2 %v6730_v27  ;;  %3569 = vst [vmem:[#allocation4 + $0x78] sm:$0xf] %v2795_v29  ;;  %vm9013_vm4 = vcmp.ne.s32.totalorder %v1775_v51, %v8640_v40  ;;  %v1456_v29 = vshrl.u32 %v8987_v41, 16 }
  0xf5   : > { %v1247_v30 = vld [vmem:[#allocation3 + $0x20] sm:$0xf]  ;;  %v3101_v45 = vld [vmem:[#allocation3 + $0x24] sm:$0xf]  ;;  %391 = vst.msk [vmem:[#allocation2 + $0xf0] sm:$0xff] %vm360_vm0, %v358_v22  ;;  %vm1780_vm0 = vmpackc.low %vm9013_vm4, %vm9008_vm3  ;;  %620 = vmatmul.bf16.gmra.mxu3 %v472_v25  ;;  %vm9051_vm6 = vcmp.ne.s32.totalorder %v1781_v35, %v8637_v38 }
  0xf6   : > { %v1977_v34 = vsel %vm1766_vm10, %v1247_v30, 0  ;;  %v3100_v11 = vld [vmem:[#allocation3 + $0x20] sm:$0xf]  ;;  %v6725_v53 = vld [vmem:[#allocation4 + $0x90] sm:$0xf]  ;;  %424 = vst.msk [vmem:[#allocation2 + $0xf0] sm:$0xff] %vm393_vm1, %v8317_v6  ;;  %vm1787_vm9 = vmpackc.low %vm9056_vm7, %vm9051_vm6 }
  0xf7   : > { %v568_v32 = vpop.f32.mrf.mxu0  ;;  %v2798_v37 = vshrl.u32 %v1977_v34, 16  ;;  %3132 = vst [vmem:[#allocation4 + $0xdc] sm:$0xf] %v3100_v11  ;;  %v1248_v56 = vld [vmem:[#allocation3 + $0x24] sm:$0xf]  ;;  %v2801_v9 = vshll.u32 %v1977_v34, 16 }
  0xf8   : > { %v569_v31 = vadd.f32 %v8769_v7, %v568_v32  ;;  %3133 = vst [vmem:[#allocation4 + $0x100] sm:$0xf] %v3101_v45  ;;  %v1978_v39 = vsel %vm1773_vm2, %v1248_v56, 0  ;;  %vm9044_vm1 = vcmp.gt.s32.totalorder %v860_v26, 0 }
  0xf9   : > { %v7583_v61 = vld [vmem:[#allocation4 + $0xb0] sm:$0xf0]  ;;  %v8999_v62 = vrot.slane %v2798_v37, 7  ;;  %v2807_v13 = vshrl.u32 %v1978_v39, 16  ;;  %v2810_v34 = vshll.u32 %v1978_v39, 16  ;;  %v1458_v37 = vrot.slane %v1456_v29, 4  ;;  %vm1289_vm8 = vmpackc.low %vm9044_vm1, %vm9044_vm1 }
  0xfa   : > { %v638_v58 = vmax.f32 %v569_v31, 0.0  ;;  %v6726_v2 = vor.u32 %v7583_v61, %v6725_v53 }
  0xfb   : > { %v2803_v18 = vor.u32 %v2801_v9, %v8999_v62  ;;  %v9032_v27 = vrot.slane %v2807_v13, 7  ;;  %v2805_v31 = vrot.slane %v8999_v62, 4  ;;  %v1459_v55 = vor.u32 %v1458_v37, %v9003_v10  ;;  %v7571_v62 = vld [vmem:[#allocation4 + $0x54] sm:$0xf] }
  0xfc   : > { %v7804_v47 = vpack.c.bf16 %v638_v58, %v637_v57  ;;  %5380 = vmatmul.bf16.gmra.mxu1 %v6726_v2  ;;  %v750_v13 = vadd.s32 112, %v8538_v48 }
  0xfd   : > { %v2804_v6 = vsel %vm8686_vm5, %v2796_v24, %v2803_v18  ;;  %v2812_v41 = vor.u32 %v2810_v34, %v9032_v27  ;;  %v456_v39 = vld [vmem:[#allocation2 + $0xf0] sm:$0xff]  ;;  %v1460_v10 = vrot.slane %v1459_v55, 4 }
  0xfe   : > { %7949 = vst [vmem:[#allocation3 + $0x28] sm:$0xff] %v7804_v47   ;;  %v7588_v17 = vld [vmem:[#allocation4 + $0xdc] sm:$0xf]  ;;  %v6699_v47 = vld [vmem:[#allocation4 + $0x74] sm:$0xf0]  ;;  %v874_v23 = vand.u32 15, %v750_v13 }
  0xff   : > { %v571_v3 = vpop.f32.mrf.mxu0  ;;  %v6763_v19 = vld [vmem:[#allocation4 + $0xfc] sm:$0xf0]  ;;  %3068 = vst [vmem:[#allocation4 + $0xd8] sm:$0xf] %v2804_v6  ;;  %v2813_v60 = vsel %vm8686_vm5, %v2805_v31, %v2812_v41  ;;  %v6702_v9 = vor.u32 %v7571_v62, %v6699_v47  ;;  %v1465_v15 = vsel %vm8608_vm12, %v1460_v10, %v8579_v4 }
 0x100   : > { %v6766_v46 = vor.u32 %v7588_v17, %v6763_v19  ;;  %v572_v32 = vadd.f32 %v8769_v7, %v571_v3  ;;  %3570 = vst [vmem:[#allocation4 + $0x9c] sm:$0xf] %v2804_v6  ;;  %v1325_v3 = vsel %vm1289_vm8, 65537, %v12308_v0  ;;  %v2814_v17 = vrot.slane %v9032_v27, 4 }
 0x101   : > { %3738 = vst [vmem:[#allocation4 + $0x60] sm:$0xf] %v2804_v6  ;;  %v1472_v5 = vshll.u32 %v1325_v3, 16  ;;  %v1476_v26 = vshrl.u32 %v1325_v3, 16  ;;  %vm9084_vm10 = vcmp.gt.s32.totalorder %v874_v23, 0 }
 0x102   : > { %5637 = vmatmul.bf16.vlgmr.msrb.gmra.mxu0 %v6666_v8  ;;  %v639_v52 = vmax.f32 %v572_v32, 0.0  ;;  %3069 = vst [vmem:[#allocation4 + $0xfc] sm:$0xf] %v2813_v60  ;;  %v457_v8 = vld [vmem:[#allocation2 + $0xf8] sm:$0xff]  ;;  %v1788_v32 = vunpack.c.l.b16 %v1465_v15  ;;  %vm1291_vm11 = vmpackc.low %vm9084_vm10, %vm9084_vm10 }
 0x103   : > { %3571 = vst [vmem:[#allocation4 + $0xc0] sm:$0xf] %v2813_v60  ;;  %v473_v16 = vpack.c.bf16 %v457_v8, %v456_v39  ;;  %v1474_v25 = vrot.slane %v1472_v5, 5  ;;  %v1478_v11 = vrot.slane %v1476_v26, 4  ;;  %v9108_v62 = vsel %vm1291_vm11, 65537, %v12308_v0 }
 0x104   : > { %5474 = vmatmul.bf16.gmra.mxu2 %v6766_v46  ;;  %3739 = vst [vmem:[#allocation4 + $0x84] sm:$0xf] %v2813_v60  ;;  %vm9098_vm13 = vcmp.ne.s32.totalorder %v1788_v32, %v8637_v38 }
 0x105   : > { %v1249_v30 = vld [vmem:[#allocation3 + $0x28] sm:$0xf]  ;;  %v3103_v54 = vld [vmem:[#allocation3 + $0x2c] sm:$0xf]  ;;  %625 = vmatmul.bf16.gmra.mxu3 %v473_v16  ;;  %v1475_v35 = vsel %vm8608_vm12, %v8612_v21, %v1474_v25  ;;  %v1479_v60 = vor.u32 %v1478_v11, %v1474_v25  ;;  %v752_v25 = vadd.s32 128, %v8538_v48 }
 0x106   : > { %v1979_v36 = vsel %vm1780_vm0, %v1249_v30, 0  ;;  %v3102_v44 = vld [vmem:[#allocation3 + $0x28] sm:$0xf]  ;;  %3135 = vst [vmem:[#allocation4 + $0x148] sm:$0xf] %v3103_v54 }
 0x107   : > { %v573_v1 = vpop.f32.mrf.mxu0  ;;  %v2816_v45 = vshrl.u32 %v1979_v36, 16  ;;  %3134 = vst [vmem:[#allocation4 + $0x124] sm:$0xf] %v3102_v44  ;;  %v1250_v51 = vld [vmem:[#allocation3 + $0x2c] sm:$0xf]  ;;  %v2819_v22 = vshll.u32 %v1979_v36, 16 }
 0x108   : > { %v574_v33 = vadd.f32 %v8769_v7, %v573_v1  ;;  %v1980_v12 = vsel %vm1787_vm9, %v1250_v51, 0  ;;  %v6761_v1 = vld [vmem:[#allocation4 + $0xd8] sm:$0xf]  ;;  %v7580_v47 = vld [vmem:[#allocation4 + $0x9c] sm:$0xf] }
 0x109   : > { %v9070_v2 = vrot.slane %v2816_v45, 7  ;;  %v2825_v19 = vshrl.u32 %v1980_v12, 16  ;;  %v7592_v6 = vld [vmem:[#allocation4 + $0xf8] sm:$0xf0]  ;;  %v2828_v31 = vshll.u32 %v1980_v12, 16 }
 0x10a   : > { %v640_v53 = vmax.f32 %v574_v33, 0.0  ;;  %v1789_v33 = vunpack.c.h.b16 %v1465_v15  ;;  %v6762_v49 = vor.u32 %v7592_v6, %v6761_v1  ;;  %v6735_v51 = vld [vmem:[#allocation4 + $0xbc] sm:$0xf0] }
 0x10b   : > { %v2821_v42 = vor.u32 %v2819_v22, %v9070_v2  ;;  %v9082_v30 = vrot.slane %v2825_v19, 7  ;;  %v2823_v54 = vrot.slane %v9070_v2, 4  ;;  %v1480_v22 = vrot.slane %v1479_v60, 4 }
 0x10c   : > { %v7809_v58 = vpack.c.bf16 %v640_v53, %v639_v52  ;;  %5385 = vmatmul.bf16.gmra.mxu1 %v6762_v49  ;;  %v1795_v52 = vunpack.c.l.b16 %v1475_v35  ;;  %v1796_v53 = vunpack.c.h.b16 %v1475_v35  ;;  %vm9103_vm14 = vcmp.ne.s32.totalorder %v1789_v33, %v8640_v40 }
 0x10d   : > { %v6799_v18 = vld [vmem:[#allocation4 + $0x144] sm:$0xf0]  ;;  %v2822_v24 = vsel %vm8686_vm5, %v2814_v17, %v2821_v42  ;;  %v2830_v56 = vor.u32 %v2828_v31, %v9082_v30  ;;  %vm1794_vm15 = vmpackc.low %vm9103_vm14, %vm9098_vm13  ;;  %v6738_v12 = vor.u32 %v7580_v47, %v6735_v51  ;;  %v1485_v17 = vsel %vm8608_vm12, %v1480_v22, %v8579_v4 }
 0x10e   : > { %7950 = vst [vmem:[#allocation3 + $0x30] sm:$0xff] %v7809_v58   ;;  %v7597_v14 = vld [vmem:[#allocation4 + $0x124] sm:$0xf]  ;;  %vm9115_vm2 = vcmp.ne.s32.totalorder %v1795_v52, %v8637_v38  ;;  %vm9120_vm3 = vcmp.ne.s32.totalorder %v1796_v53, %v8640_v40  ;;  %v1803_v1 = vunpack.c.h.b16 %v1485_v17  ;;  %v1496_v49 = vshrl.u32 %v9108_v62, 16 }
 0x10f   : > { %v576_v61 = vpop.f32.mrf.mxu0  ;;  %v6802_v46 = vor.u32 %v7597_v14, %v6799_v18  ;;  %3070 = vst [vmem:[#allocation4 + $0x120] sm:$0xf] %v2822_v24  ;;  %v2831_v8 = vsel %vm8686_vm5, %v2823_v54, %v2830_v56  ;;  %vm1801_vm4 = vmpackc.low %vm9120_vm3, %vm9115_vm2  ;;  %v2832_v51 = vrot.slane %v9082_v30, 4 }
 0x110   : > { %v577_v27 = vadd.f32 %v8769_v7, %v576_v61  ;;  %3572 = vst [vmem:[#allocation4 + $0xe4] sm:$0xf] %v2822_v24  ;;  %vm9150_vm1 = vcmp.ne.s32.totalorder %v1803_v1, %v8640_v40  ;;  %v1498_v47 = vrot.slane %v1496_v49, 4 }
 0x111   : > { %3740 = vst [vmem:[#allocation4 + $0xa8] sm:$0xf] %v2822_v24 }
 0x112   : > { %5642 = vmatmul.bf16.gmra.mxu0 %v6702_v9  ;;  %v641_v44 = vmax.f32 %v577_v27, 0.0  ;;  %v1492_v9 = vshll.u32 %v9108_v62, 16  ;;  %3071 = vst [vmem:[#allocation4 + $0x144] sm:$0xf] %v2831_v8 }
 0x113   : > { %3573 = vst [vmem:[#allocation4 + $0x108] sm:$0xf] %v2831_v8 }
 0x114   : > { %5479 = vmatmul.bf16.gmra.mxu2 %v6802_v46  ;;  %3741 = vst [vmem:[#allocation4 + $0xcc] sm:$0xf] %v2831_v8  ;;  %v9134_v42 = vrot.slane %v1492_v9, 5 }
 0x115   : > { %v3104_v37 = vld [vmem:[#allocation3 + $0x30] sm:$0xf]  ;;  %v3105_v41 = vld [vmem:[#allocation3 + $0x34] sm:$0xf] }
 0x116   : > { %3136 = vst [vmem:[#allocation4 + $0x16c] sm:$0xf] %v3104_v37  ;;  %v1251_v2 = vld [vmem:[#allocation3 + $0x30] sm:$0xf]  ;;  %v1252_v10 = vld [vmem:[#allocation3 + $0x34] sm:$0xf]  ;;  %v1495_v32 = vsel %vm8608_vm12, %v8612_v21, %v9134_v42 }
 0x117   : > { %v578_v29 = vpop.f32.mrf.mxu0  ;;  %3137 = vst [vmem:[#allocation4 + $0x190] sm:$0xf] %v3105_v41  ;;  %v1981_v13 = vsel %vm1794_vm15, %v1251_v2, 0  ;;  %v1982_v19 = vsel %vm1801_vm4, %v1252_v10, 0  ;;  %v6797_v23 = vld [vmem:[#allocation4 + $0x120] sm:$0xf] }
 0x118   : > { %v579_v36 = vadd.f32 %v8769_v7, %v578_v29  ;;  %v2834_v46 = vshrl.u32 %v1981_v13, 16  ;;  %v1802_v29 = vunpack.c.l.b16 %v1485_v17  ;;  %v2843_v27 = vshrl.u32 %v1982_v19, 16  ;;  %v7589_v3 = vld [vmem:[#allocation4 + $0xe4] sm:$0xf] }
 0x119   : > { %v7601_v6 = vld [vmem:[#allocation4 + $0x140] sm:$0xf0]  ;;  %v888_v37 = vand.u32 15, %v752_v25  ;;  %v2837_v52 = vshll.u32 %v1981_v13, 16  ;;  %v2846_v57 = vshll.u32 %v1982_v19, 16 }
 0x11a   : > { %v642_v45 = vmax.f32 %v579_v36, 0.0  ;;  %v2836_v34 = vrot.slane %v2834_v46, 7  ;;  %v6798_v35 = vor.u32 %v7601_v6, %v6797_v23  ;;  %vm9145_vm0 = vcmp.ne.s32.totalorder %v1802_v29, %v8637_v38  ;;  %v6771_v10 = vld [vmem:[#allocation4 + $0x104] sm:$0xf0] }
 0x11b   : > { %v9154_v53 = vrot.slane %v2843_v27, 7  ;;  %vm1808_vm6 = vmpackc.low %vm9150_vm1, %vm9145_vm0  ;;  %vm9160_vm7 = vcmp.gt.s32.totalorder %v888_v37, 0  ;;  %v6774_v46 = vor.u32 %v7589_v3, %v6771_v10 }
 0x11c   : > { %v7814_v55 = vpack.c.bf16 %v642_v45, %v641_v44  ;;  %v1809_v44 = vunpack.c.l.b16 %v1495_v32  ;;  %v1810_v45 = vunpack.c.h.b16 %v1495_v32  ;;  %5390 = vmatmul.bf16.gmra.mxu1 %v6798_v35  ;;  %v2839_v60 = vor.u32 %v2837_v52, %v2836_v34  ;;  %vm1293_vm10 = vmpackc.low %vm9160_vm7, %vm9160_vm7 }
 0x11d   : > { %v7606_v5 = vld [vmem:[#allocation4 + $0x16c] sm:$0xf]  ;;  %v2848_v2 = vor.u32 %v2846_v57, %v9154_v53  ;;  %v2841_v30 = vrot.slane %v2836_v34, 4  ;;  %v2850_v57 = vrot.slane %v9154_v53, 4 }
 0x11e   : > { %7951 = vst [vmem:[#allocation3 + $0x38] sm:$0xff] %v7814_v55   ;;  %v6835_v14 = vld [vmem:[#allocation4 + $0x18c] sm:$0xf0]  ;;  %vm9165_vm8 = vcmp.ne.s32.totalorder %v1809_v44, %v8637_v38  ;;  %vm9170_vm9 = vcmp.ne.s32.totalorder %v1810_v45, %v8640_v40 }
 0x11f   : > { %v581_v61 = vpop.f32.mrf.mxu0  ;;  %v6838_v16 = vor.u32 %v7606_v5, %v6835_v14  ;;  %vm1815_vm11 = vmpackc.low %vm9170_vm9, %vm9165_vm8  ;;  %v1499_v5 = vor.u32 %v1498_v47, %v9134_v42  ;;  %v1329_v14 = vsel %vm1293_vm10, 65537, %v12308_v0 }
 0x120   : > { %v582_v24 = vadd.f32 %v8769_v7, %v581_v61 }
 0x121   : > { %v1500_v42 = vrot.slane %v1499_v5, 4 }
 0x122   : > { %5647 = vmatmul.bf16.gmra.mxu0 %v6738_v12  ;;  %v643_v36 = vmax.f32 %v582_v24, 0.0  ;;  %v2840_v12 = vsel %vm8686_vm5, %v2832_v51, %v2839_v60 }
 0x123   : > { %3072 = vst [vmem:[#allocation4 + $0x168] sm:$0xf] %v2840_v12  ;;  %v1505_v34 = vsel %vm8608_vm12, %v1500_v42, %v8579_v4 }
 0x124   : > { %5484 = vmatmul.bf16.gmra.mxu2 %v6838_v16  ;;  %v2849_v16 = vsel %vm8686_vm5, %v2841_v30, %v2848_v2  ;;  %3574 = vst [vmem:[#allocation4 + $0x12c] sm:$0xf] %v2840_v12  ;;  %v2442_v2 = vunpack.c.l.b16 %v8645_v43 }
 0x125   : > { %v3106_v26 = vld [vmem:[#allocation3 + $0x38] sm:$0xf]  ;;  %v3107_v33 = vld [vmem:[#allocation3 + $0x3c] sm:$0xf]  ;;  %3073 = vst [vmem:[#allocation4 + $0x18c] sm:$0xf] %v2849_v16 }
 0x126   : > { %3138 = vst [vmem:[#allocation4 + $0x1b4] sm:$0xf] %v3106_v26  ;;  %v1253_v58 = vld [vmem:[#allocation3 + $0x38] sm:$0xf]  ;;  %v1254_v9 = vld [vmem:[#allocation3 + $0x3c] sm:$0xf] }
 0x127   : > { %v583_v18 = vpop.f32.mrf.mxu0  ;;  %3139 = vst [vmem:[#allocation4 + $0x1d8] sm:$0xf] %v3107_v33  ;;  %v1983_v39 = vsel %vm1808_vm6, %v1253_v58, 0  ;;  %v1984_v19 = vsel %vm1815_vm11, %v1254_v9, 0  ;;  %v739_v58 = vadd.s32 24, %v8538_v48 }
 0x128   : > { %v584_v15 = vadd.f32 %v8769_v7, %v583_v18  ;;  %v2852_v13 = vshrl.u32 %v1983_v39, 16  ;;  %3575 = vst [vmem:[#allocation4 + $0x150] sm:$0xf] %v2849_v16  ;;  %v2861_v26 = vshrl.u32 %v1984_v19, 16  ;;  %v2855_v6 = vshll.u32 %v1983_v39, 16 }
 0x129   : > { %3742 = vst [vmem:[#allocation4 + $0xf0] sm:$0xf] %v2840_v12  ;;  %v2864_v52 = vshll.u32 %v1984_v19, 16 }
 0x12a   : > { %v644_v11 = vmax.f32 %v584_v15, 0.0  ;;  %v1512_v15 = vshll.u32 %v1329_v14, 16  ;;  %v2854_v25 = vrot.slane %v2852_v13, 7  ;;  %3743 = vst [vmem:[#allocation4 + $0x114] sm:$0xf] %v2849_v16  ;;  %v9195_v49 = vrot.slane %v2861_v26, 7 }
 0x12b   : > { %v6833_v27 = vld [vmem:[#allocation4 + $0x168] sm:$0xf]  ;;  %v7598_v3 = vld [vmem:[#allocation4 + $0x12c] sm:$0xf] }
 0x12c   : > { %v7819_v54 = vpack.c.bf16 %v644_v11, %v643_v36  ;;  %v1514_v35 = vrot.slane %v1512_v15, 5  ;;  %v1516_v36 = vshrl.u32 %v1329_v14, 16  ;;  %v7610_v11 = vld [vmem:[#allocation4 + $0x188] sm:$0xf0]  ;;  %v2857_v31 = vor.u32 %v2855_v6, %v2854_v25 }
 0x12d   : > { %v7615_v8 = vld [vmem:[#allocation4 + $0x1b4] sm:$0xf]  ;;  %v6834_v44 = vor.u32 %v7610_v11, %v6833_v27  ;;  %v2859_v47 = vrot.slane %v2854_v25, 4  ;;  %v2866_v51 = vor.u32 %v2864_v52, %v9195_v49 }
 0x12e   : > { %7952 = vst [vmem:[#allocation3 + $0x40] sm:$0xff] %v7819_v54   ;;  %v6871_v22 = vld [vmem:[#allocation4 + $0x1d4] sm:$0xf0]  ;;  %v1816_v54 = vunpack.c.l.b16 %v1505_v34  ;;  %v1515_v55 = vsel %vm8608_vm12, %v8612_v21, %v1514_v35  ;;  %v1518_v61 = vrot.slane %v1516_v36, 4  ;;  %v2858_v62 = vsel %vm8686_vm5, %v2850_v57, %v2857_v31 }
 0x12f   : > { %v586_v56 = vpop.f32.mrf.mxu0  ;;  %v6874_v17 = vor.u32 %v7615_v8, %v6871_v22  ;;  %5395 = vmatmul.bf16.gmra.mxu1 %v6834_v44  ;;  %3074 = vst [vmem:[#allocation4 + $0x1b0] sm:$0xf] %v2858_v62  ;;  %v6807_v39 = vld [vmem:[#allocation4 + $0x14c] sm:$0xf0]  ;;  %v797_v8 = vand.u32 15, %v739_v58  ;;  %v1823_v22 = vunpack.c.l.b16 %v1515_v55  ;;  %v1824_v12 = vunpack.c.h.b16 %v1515_v55 }
 0x130   : > { %v587_v23 = vadd.f32 %v8769_v7, %v586_v56  ;;  %v1817_v56 = vunpack.c.h.b16 %v1505_v34  ;;  %vm9210_vm14 = vcmp.ne.s32.totalorder %v1816_v54, %v8637_v38  ;;  %3576 = vst [vmem:[#allocation4 + $0x174] sm:$0xf] %v2858_v62  ;;  %v1519_v30 = vor.u32 %v1518_v61, %v1514_v35 }
 0x131   : > { %3744 = vst [vmem:[#allocation4 + $0x138] sm:$0xf] %v2858_v62  ;;  %v2867_v10 = vsel %vm8686_vm5, %v2859_v47, %v2866_v51  ;;  %vm9243_vm4 = vcmp.lt.s32.totalorder %v797_v8, 15  ;;  %vm9248_vm0 = vcmp.ne.s32.totalorder %v1823_v22, %v8637_v38  ;;  %vm9253_vm1 = vcmp.ne.s32.totalorder %v1824_v12, %v8640_v40 }
 0x132   : > { %5652 = vmatmul.bf16.gmra.mxu0 %v6774_v46  ;;  %v645_v32 = vmax.f32 %v587_v23, 0.0  ;;  %vm9215_vm15 = vcmp.ne.s32.totalorder %v1817_v56, %v8640_v40  ;;  %v6810_v46 = vor.u32 %v7598_v3, %v6807_v39  ;;  %3075 = vst [vmem:[#allocation4 + $0x1d4] sm:$0xf] %v2867_v10  ;;  %v1520_v26 = vrot.slane %v1519_v30, 4  ;;  %vm1829_vm6 = vmpackc.low %vm9253_vm1, %vm9248_vm0 }
 0x133   : > { %vm1822_vm3 = vmpackc.low %vm9215_vm15, %vm9210_vm14  ;;  %3577 = vst [vmem:[#allocation4 + $0x198] sm:$0xf] %v2867_v10  ;;  %v741_v62 = vadd.s32 40, %v8538_v48  ;;  %v2868_v22 = vrot.slane %v9195_v49, 4 }
 0x134   : > { %5489 = vmatmul.bf16.gmra.mxu2 %v6874_v17  ;;  %v9239_v17 = vld [vmem:[%s12302_s2] ss:$0 sm:$0xff]  ;;  %3745 = vst [vmem:[#allocation4 + $0x15c] sm:$0xf] %v2867_v10  ;;  %vm2047_vm7 = vmpackc.low %vm9243_vm4, %vm9243_vm4  ;;  %v1525_v36 = vsel %vm8608_vm12, %v1520_v26, %v8579_v4 }
 0x135   : > { %v3108_v29 = vld [vmem:[#allocation3 + $0x40] sm:$0xf]  ;;  %v3109_v1 = vld [vmem:[#allocation3 + $0x44] sm:$0xf]  ;;  %v1830_v52 = vunpack.c.l.b16 %v1525_v36  ;;  %v1831_v54 = vunpack.c.h.b16 %v1525_v36  ;;  %v811_v30 = vand.u32 15, %v741_v62 }
 0x136   : > { %3140 = vst [vmem:[#allocation4 + $0x1fc] sm:$0xf] %v3108_v29  ;;  %v1255_v14 = vld [vmem:[#allocation3 + $0x40] sm:$0xf]  ;;  %v6869_v34 = vld [vmem:[#allocation4 + $0x1b0] sm:$0xf] }
 0x137   : > { %v588_v18 = vpop.f32.mrf.mxu0  ;;  %3141 = vst [vmem:[#allocation4 + $0x220] sm:$0xf] %v3109_v1  ;;  %v1985_v25 = vsel %vm1822_vm3, %v1255_v14, 0  ;;  %vm9282_vm8 = vcmp.ne.s32.totalorder %v1830_v52, %v8637_v38  ;;  %vm9287_vm9 = vcmp.ne.s32.totalorder %v1831_v54, %v8640_v40  ;;  %v7607_v26 = vld [vmem:[#allocation4 + $0x174] sm:$0xf] }
 0x138   : > { %v589_v24 = vadd.f32 %v8769_v7, %v588_v18  ;;  %v754_v7 = vadd.s32 144, %v8538_v48  ;;  %v2873_v47 = vshll.u32 %v1985_v25, 16  ;;  %vm1836_vm11 = vmpackc.low %vm9287_vm9, %vm9282_vm8 }
 0x139   : > { %v7619_v31 = vld [vmem:[#allocation4 + $0x1d0] sm:$0xf0] }
 0x13a   : > { %v646_v33 = vmax.f32 %v589_v24, 0.0  ;;  %v902_v45 = vand.u32 15, %v754_v7  ;;  %v2870_v7 = vshrl.u32 %v1985_v25, 16  ;;  %v6870_v44 = vor.u32 %v7619_v31, %v6869_v34  ;;  %v7744_v24 = vld [vmem:[%s12303_s3 + $0x138] sm:$0xff] }
 0x13b   : > { %5718 = vmatpush.bf16.msrb.mxu1 %v7744_v24 }
 0x13c   : > { %v7824_v37 = vpack.c.bf16 %v646_v33, %v645_v32  ;;  %vm9202_vm13 = vcmp.gt.s32.totalorder %v902_v45, 0  ;;  %v1256_v33 = vld [vmem:[#allocation3 + $0x44] sm:$0xf]  ;;  %v9272_v45 = vsel %vm2047_vm7, 65537, %v12308_v0  ;;  %v2872_v56 = vrot.slane %v2870_v7, 7 }
 0x13d   : > { %vm1295_vm2 = vmpackc.low %vm9202_vm13, %vm9202_vm13  ;;  %v7624_v9 = vld [vmem:[#allocation4 + $0x1fc] sm:$0xf]  ;;  %v2146_v61 = vshrl.u32 %v9272_v45, 16  ;;  %v2149_v14 = vshll.u32 %v9272_v45, 16 }
 0x13e   : > { %7953 = vst [vmem:[#allocation3 + $0x48] sm:$0xff] %v7824_v37   ;;  %v6907_v5 = vld [vmem:[#allocation4 + $0x21c] sm:$0xf0]  ;;  %v9234_v16 = vsel %vm1295_vm2, 65537, %v12308_v0  ;;  %v756_v37 = vadd.s32 160, %v8538_v48  ;;  %v2877_v25 = vrot.slane %v2872_v56, 4 }
 0x13f   : > { %v591_v41 = vpop.f32.mrf.mxu0  ;;  %v6910_v19 = vor.u32 %v7624_v9, %v6907_v5  ;;  %v1532_v29 = vshll.u32 %v9234_v16, 16  ;;  %5400 = vmatmul.bf16.gmra.mxu1 %v6870_v44  ;;  %v1536_v51 = vshrl.u32 %v9234_v16, 16  ;;  %v2875_v9 = vor.u32 %v2873_v47, %v2872_v56 }
 0x140   : > { %v592_v18 = vadd.f32 %v9239_v17, %v591_v41  ;;  %v1986_v41 = vsel %vm1829_vm6, %v1256_v33, 0  ;;  %v916_v58 = vand.u32 15, %v756_v37  ;;  %vm9325_vm2 = vcmp.lt.s32.totalorder %v811_v30, 15 }
 0x141   : > { %v9268_v11 = vrot.slane %v1532_v29, 5  ;;  %v2879_v55 = vshrl.u32 %v1986_v41, 16  ;;  %v2876_v5 = vsel %vm8686_vm5, %v2868_v22, %v2875_v9  ;;  %v2882_v16 = vshll.u32 %v1986_v41, 16  ;;  %vm2049_vm4 = vmpackc.low %vm9325_vm2, %vm9325_vm2 }
 0x142   : > { %5657 = vmatmul.bf16.gmra.mxu0 %v6810_v46  ;;  %v647_v1 = vmax.f32 %v592_v18, 0.0  ;;  %vm9291_vm10 = vcmp.gt.s32.totalorder %v916_v58, 0  ;;  %v1538_v49 = vrot.slane %v1536_v51, 4  ;;  %3076 = vst [vmem:[#allocation4 + $0x1f8] sm:$0xf] %v2876_v5  ;;  %v2135_v18 = vrot.slane %v8617_v28, 4 }
 0x143   : > { %v1535_v57 = vsel %vm8608_vm12, %v8612_v21, %v9268_v11  ;;  %v9296_v12 = vrot.slane %v2879_v55, 7  ;;  %vm1297_vm13 = vmpackc.low %vm9291_vm10, %vm9291_vm10  ;;  %3578 = vst [vmem:[#allocation4 + $0x1bc] sm:$0xf] %v2876_v5  ;;  %v2085_v55 = vsel %vm2049_vm4, 65537, %v12308_v0  ;;  %vm9387_vm6 = vcmp.ne.s32.totalorder %v2442_v2, %v8637_v38 }
 0x144   : > { %5494 = vmatmul.bf16.gmra.mxu2 %v6910_v19  ;;  %v1837_v3 = vunpack.c.l.b16 %v1535_v57  ;;  %v1838_v39 = vunpack.c.h.b16 %v1535_v57  ;;  %3746 = vst [vmem:[#allocation4 + $0x180] sm:$0xf] %v2876_v5  ;;  %v2143_v7 = vsel %vm8686_vm5, %v2135_v18, %v8645_v43 }
 0x145   : > { %v3110_v27 = vld [vmem:[#allocation3 + $0x48] sm:$0xf]  ;;  %v3111_v32 = vld [vmem:[#allocation3 + $0x4c] sm:$0xf]  ;;  %v2884_v28 = vor.u32 %v2882_v16, %v9296_v12  ;;  %v2456_v54 = vunpack.c.l.b16 %v2143_v7  ;;  %v2457_v58 = vunpack.c.h.b16 %v2143_v7  ;;  %v2443_v16 = vunpack.c.h.b16 %v8645_v43 }
 0x146   : > { %3142 = vst [vmem:[#allocation4 + $0x244] sm:$0xf] %v3110_v27  ;;  %v1257_v10 = vld [vmem:[#allocation3 + $0x48] sm:$0xf]  ;;  %vm9312_vm14 = vcmp.ne.s32.totalorder %v1837_v3, %v8637_v38  ;;  %vm9317_vm15 = vcmp.ne.s32.totalorder %v1838_v39, %v8640_v40  ;;  %v1258_v42 = vld [vmem:[#allocation3 + $0x4c] sm:$0xf] }
 0x147   : > { %v593_v13 = vpop.f32.mrf.mxu0  ;;  %3143 = vst [vmem:[#allocation4 + $0x268] sm:$0xf] %v3111_v32  ;;  %v1987_v15 = vsel %vm1836_vm11, %v1257_v10, 0  ;;  %v6843_v27 = vld [vmem:[#allocation4 + $0x194] sm:$0xf0]  ;;  %vm1843_vm3 = vmpackc.low %vm9317_vm15, %vm9312_vm14  ;;  %v1539_v32 = vor.u32 %v1538_v49, %v9268_v11  ;;  %v2885_v31 = vsel %vm8686_vm5, %v2877_v25, %v2884_v28  ;;  %v2164_v3 = vshrl.u32 %v2085_v55, 16 }
 0x148   : > { %v594_v23 = vadd.f32 %v9239_v17, %v593_v13  ;;  %v9304_v13 = vrot.slane %v2146_v61, 7  ;;  %v2888_v36 = vshrl.u32 %v1987_v15, 16  ;;  %v1988_v41 = vsel %vm1843_vm3, %v1258_v42, 0  ;;  %3077 = vst [vmem:[#allocation4 + $0x21c] sm:$0xf] %v2885_v31 }
 0x149   : > { %v6846_v45 = vor.u32 %v7607_v26, %v6843_v27  ;;  %v1540_v56 = vrot.slane %v1539_v32, 4  ;;  %3579 = vst [vmem:[#allocation4 + $0x1e0] sm:$0xf] %v2885_v31  ;;  %v743_v61 = vadd.s32 56, %v8538_v48  ;;  %v2891_v39 = vshll.u32 %v1987_v15, 16 }
 0x14a   : > { %v648_v6 = vmax.f32 %v594_v23, 0.0  ;;  %v2151_v52 = vor.u32 %v2149_v14, %v9304_v13  ;;  %v2890_v62 = vrot.slane %v2888_v36, 7  ;;  %3747 = vst [vmem:[#allocation4 + $0x1a4] sm:$0xf] %v2885_v31  ;;  %v6905_v22 = vld [vmem:[#allocation4 + $0x1f8] sm:$0xf]  ;;  %vm9368_vm0 = vcmp.ne.s32.totalorder %v2456_v54, %v8637_v38  ;;  %v9431_v54 = vpop.f32.mrf.mxu1 }
 0x14b   : > { %v1545_v8 = vsel %vm8608_vm12, %v1540_v56, %v8579_v4  ;;  %vm9373_vm1 = vcmp.ne.s32.totalorder %v2457_v58, %v8640_v40  ;;  %v825_v14 = vand.u32 15, %v743_v61  ;;  %v9395_v28 = vrot.slane %v2164_v3, 7 }
 0x14c   : > { %v7829_v35 = vpack.c.bf16 %v648_v6, %v647_v1  ;;  %v9335_v6 = vsel %vm1297_vm13, 65537, %v12308_v0  ;;  %v9365_v30 = vsel %vm8686_vm5, %v8674_v59, %v2151_v52  ;;  %v2893_v46 = vor.u32 %v2891_v39, %v2890_v62  ;;  %vm2462_vm7 = vmpackc.low %vm9373_vm1, %vm9368_vm0 }
 0x14d   : > { %v7633_v33 = vld [vmem:[#allocation4 + $0x244] sm:$0xf]  ;;  %v1552_v37 = vshll.u32 %v9335_v6, 16  ;;  %v1844_v42 = vunpack.c.l.b16 %v1545_v8  ;;  %v1845_v15 = vunpack.c.h.b16 %v1545_v8  ;;  %v2900_v26 = vshll.u32 %v1988_v41, 16 }
 0x14e   : > { %7954 = vst [vmem:[#allocation3 + $0x50] sm:$0xff] %v7829_v35   ;;  %v6943_v34 = vld [vmem:[#allocation4 + $0x264] sm:$0xf0]  ;;  %v2895_v1 = vrot.slane %v2890_v62, 4  ;;  %v2167_v27 = vshll.u32 %v2085_v55, 16  ;;  %vm9398_vm8 = vcmp.lt.s32.totalorder %v825_v14, 15  ;;  %vm9404_vm9 = vcmp.ne.s32.totalorder %v2443_v16, %v8640_v40 }
 0x14f   : > { %v596_v60 = vpop.f32.mrf.mxu0  ;;  %v6946_v44 = vor.u32 %v7633_v33, %v6943_v34  ;;  %v9356_v47 = vrot.slane %v1552_v37, 5  ;;  %v7628_v19 = vld [vmem:[#allocation4 + $0x218] sm:$0xf0]  ;;  %vm9417_vm10 = vcmp.ne.s32.totalorder %v1844_v42, %v8637_v38  ;;  %vm9422_vm11 = vcmp.ne.s32.totalorder %v1845_v15, %v8640_v40  ;;  %vm2051_vm13 = vmpackc.low %vm9398_vm8, %vm9398_vm8  ;;  %v8083_v14 = vld [vmem:[#allocation3 + $0x8] sm:$0xf] }
 0x150   : > { %v597_v11 = vadd.f32 %v9239_v17, %v596_v60  ;;  %v2897_v60 = vshrl.u32 %v1988_v41, 16  ;;  %v6906_v25 = vor.u32 %v7628_v19, %v6905_v22  ;;  %v2464_v52 = vunpack.c.h.b16 %v9365_v30  ;;  %v6879_v58 = vld [vmem:[#allocation4 + $0x1dc] sm:$0xf0]  ;;  %vm2448_vm14 = vmpackc.low %vm9404_vm9, %vm9387_vm6 }
 0x151   : > { %v1555_v18 = vsel %vm8608_vm12, %v8612_v21, %v9356_v47  ;;  %v2169_v55 = vor.u32 %v2167_v27, %v9395_v28  ;;  %vm1850_vm3 = vmpackc.low %vm9422_vm11, %vm9417_vm10  ;;  %v9463_v39 = vsel %vm2051_vm13, 65537, %v12308_v0  ;;  %v9487_v16 = vsel %vm2448_vm14, %v8083_v14, 0 }
 0x152   : > { %5662 = vmatmul.bf16.gmra.mxu0 %v6846_v45  ;;  %v649_v51 = vmax.f32 %v597_v11, 0.0  ;;  %v9378_v49 = vrot.slane %v2897_v60, 7  ;;  %v1851_v33 = vunpack.c.l.b16 %v1555_v18  ;;  %v1852_v34 = vunpack.c.h.b16 %v1555_v18  ;;  %5405 = vmatmul.bf16.gmra.mxu1 %v6906_v25  ;;  %v8082_v11 = vld [vmem:[#allocation3 + $0x10] sm:$0xf] }
 0x153   : > { %v2703_v41 = vsel %vm2462_vm7, %v8082_v11, 0  ;;  %v2463_v45 = vunpack.c.l.b16 %v9365_v30  ;;  %vm9475_vm1 = vcmp.ne.s32.totalorder %v2464_v52, %v8640_v40  ;;  %v2170_v5 = vsel %vm8686_vm5, %v8674_v59, %v2169_v55  ;;  %v9516_v11 = vpop.f32.mrf.mxu1 }
 0x154   : > { %5499 = vmatmul.bf16.gmra.mxu2 %v6946_v44  ;;  %vm9441_vm15 = vcmp.ne.s32.totalorder %v1851_v33, %v8637_v38  ;;  %vm9446_vm2 = vcmp.ne.s32.totalorder %v1852_v34, %v8640_v40  ;;  %v3178_v2 = vshll.u32 %v2703_v41, 16  ;;  %v3182_v3 = vshrl.u32 %v2703_v41, 16  ;;  %12463 = vst [vmem:[#allocation19_spill] sm:$0xff] %v9516_v11 }
 0x155   : > { %v3112_v23 = vld [vmem:[#allocation3 + $0x50] sm:$0xf]  ;;  %v3113_v29 = vld [vmem:[#allocation3 + $0x54] sm:$0xf]  ;;  %vm9466_vm4 = vcmp.ne.s32.totalorder %v2463_v45, %v8637_v38  ;;  %vm1857_vm0 = vmpackc.low %vm9446_vm2, %vm9441_vm15  ;;  %v2182_v42 = vshrl.u32 %v9463_v39, 16  ;;  %v745_v32 = vadd.s32 72, %v8538_v48 }
 0x156   : > { %3144 = vst [vmem:[#allocation4 + $0x28c] sm:$0xf] %v3112_v23  ;;  %v9497_v24 = vrot.slane %v3178_v2, 5  ;;  %vm2469_vm6 = vmpackc.low %vm9475_vm1, %vm9466_vm4  ;;  %v3159_v7 = vshrl.u32 %v9487_v16, 16  ;;  %v2171_v2 = vrot.slane %v9395_v28, 4 }
 0x157   : > { %v598_v35 = vpop.f32.mrf.mxu0  ;;  %3145 = vst [vmem:[#allocation4 + $0x2b0] sm:$0xf] %v3113_v29  ;;  %v2886_v29 = vrot.slane %v9296_v12, 4  ;;  %v2902_v12 = vor.u32 %v2900_v26, %v9378_v49  ;;  %v3184_v26 = vrot.slane %v3182_v3, 4  ;;  %v9524_v52 = vrot.slane %v2182_v42, 7  ;;  %v7752_v42 = vld [vmem:[%s12303_s3 + $0x178] sm:$0xff] }
 0x158   : > { %v599_v57 = vadd.f32 %v9239_v17, %v598_v35  ;;  %v2153_v35 = vrot.slane %v9304_v13, 4  ;;  %v839_v55 = vand.u32 15, %v745_v32  ;;  %v758_v3 = vadd.s32 176, %v8538_v48  ;;  %5807 = vmatpush.bf16.msrb.mxu2 %v7752_v42 }
 0x159   : > { %v2894_v36 = vsel %vm8686_vm5, %v2886_v29, %v2893_v46  ;;  %v2903_v56 = vsel %vm8686_vm5, %v2895_v1, %v2902_v12  ;;  %v3185_v44 = vor.u32 %v3184_v26, %v9497_v24  ;;  %v9554_v10 = vrot.slane %v3159_v7, 4 }
 0x15a   : > { %v650_v53 = vmax.f32 %v599_v57, 0.0  ;;  %3078 = vst [vmem:[#allocation4 + $0x240] sm:$0xf] %v2894_v36  ;;  %v7616_v57 = vld [vmem:[#allocation4 + $0x1bc] sm:$0xf]  ;;  %vm9561_vm14 = vcmp.lt.s32.totalorder %v839_v55, 15 }
 0x15b   : > { %3580 = vst [vmem:[#allocation4 + $0x204] sm:$0xf] %v2894_v36  ;;  %v6882_v8 = vor.u32 %v7616_v57, %v6879_v58  ;;  %v8084_v57 = vld [vmem:[#allocation3 + $0x14] sm:$0xf]  ;;  %vm2053_vm15 = vmpackc.low %vm9561_vm14, %vm9561_vm14  ;;  %v747_v42 = vadd.s32 88, %v8538_v48 }
 0x15c   : > { %v7834_v9 = vpack.c.bf16 %v650_v53, %v649_v51  ;;  %3079 = vst [vmem:[#allocation4 + $0x264] sm:$0xf] %v2903_v56  ;;  %v2161_v51 = vsel %vm8686_vm5, %v2153_v35, %v8645_v43  ;;  %v1259_v53 = vld [vmem:[#allocation3 + $0x50] sm:$0xf]  ;;  %v2478_v35 = vunpack.c.h.b16 %v2170_v5  ;;  %v9532_v58 = vsel %vm2469_vm6, %v8084_v57, 0 }
 0x15d   : > { %v7642_v37 = vld [vmem:[#allocation4 + $0x28c] sm:$0xf]  ;;  %3581 = vst [vmem:[#allocation4 + $0x228] sm:$0xf] %v2903_v56  ;;  %v1989_v18 = vsel %vm1850_vm3, %v1259_v53, 0  ;;  %v2470_v19 = vunpack.c.l.b16 %v2161_v51  ;;  %v2471_v46 = vunpack.c.h.b16 %v2161_v51  ;;  %v7751_v53 = vld [vmem:[%s12303_s3 + $0x170] sm:$0xff] }
 0x15e   : > { %7955 = vst [vmem:[#allocation3 + $0x58] sm:$0xff] %v7834_v9   ;;  %v6979_v31 = vld [vmem:[#allocation4 + $0x2ac] sm:$0xf0]  ;;  %v1260_v9 = vld [vmem:[#allocation3 + $0x54] sm:$0xf]  ;;  %v2906_v33 = vshrl.u32 %v1989_v18, 16  ;;  %vm9540_vm10 = vcmp.ne.s32.totalorder %v2478_v35, %v8640_v40  ;;  %5808 = vmatpush.bf16.msrb.mxu2 %v7751_v53 }
 0x15f   : > { %v9384_v23 = vpop.f32.mrf.mxu0  ;;  %v6982_v60 = vor.u32 %v7642_v37, %v6979_v31  ;;  %3748 = vst [vmem:[#allocation4 + $0x1c8] sm:$0xf] %v2894_v36  ;;  %v1990_v29 = vsel %vm1857_vm0, %v1260_v9, 0  ;;  %vm9512_vm7 = vcmp.ne.s32.totalorder %v2470_v19, %v8637_v38  ;;  %vm9520_vm8 = vcmp.ne.s32.totalorder %v2471_v46, %v8640_v40 }
 0x160   : > { %3749 = vst [vmem:[#allocation4 + $0x1ec] sm:$0xf] %v2903_v56  ;;  %v602_v25 = vadd.f32 %v9239_v17, %v9384_v23  ;;  %v2477_v23 = vunpack.c.l.b16 %v2170_v5  ;;  %v2915_v31 = vshrl.u32 %v1990_v29, 16  ;;  %v2185_v56 = vshll.u32 %v9463_v39, 16  ;;  %vm2476_vm11 = vmpackc.low %vm9520_vm8, %vm9512_vm7 }
 0x161   : > { %v6941_v15 = vld [vmem:[#allocation4 + $0x240] sm:$0xf]  ;;  %v2908_v61 = vrot.slane %v2906_v33, 7  ;;  %v3162_v39 = vshll.u32 %v9487_v16, 16  ;;  %v3186_v9 = vrot.slane %v3185_v44, 4  ;;  %v2918_v14 = vshll.u32 %v1990_v29, 16 }
 0x162   : > { %5667 = vmatmul.bf16.gmra.mxu0 %v6882_v8  ;;  %v651_v41 = vmax.f32 %v602_v25, 0.0  ;;  %vm9535_vm9 = vcmp.ne.s32.totalorder %v2477_v23, %v8637_v38  ;;  %v2909_v8 = vshll.u32 %v1989_v18, 16  ;;  %v9547_v22 = vrot.slane %v2915_v31, 7  ;;  %v8086_v31 = vld [vmem:[#allocation3 + $0x1c] sm:$0xf] }
 0x163   : > { %v7637_v34 = vld [vmem:[#allocation4 + $0x260] sm:$0xf0]  ;;  %v2187_v28 = vor.u32 %v2185_v56, %v9524_v52  ;;  %vm2483_vm13 = vmpackc.low %vm9540_vm10, %vm9535_vm9  ;;  %v2904_v16 = vrot.slane %v9378_v49, 4  ;;  %v2179_v19 = vsel %vm8686_vm5, %v2171_v2, %v8645_v43  ;;  %v930_v46 = vand.u32 15, %v758_v3 }
 0x164   : > { %5504 = vmatmul.bf16.gmra.mxu2 %v6982_v60  ;;  %v6942_v36 = vor.u32 %v7637_v34, %v6941_v15  ;;  %v611_v60 = vpop.f32.mrf.mxu3  ;;  %v2911_v18 = vor.u32 %v2909_v8, %v2908_v61  ;;  %v7625_v15 = vld [vmem:[#allocation4 + $0x204] sm:$0xf]  ;;  %v6915_v25 = vld [vmem:[#allocation4 + $0x224] sm:$0xf0]  ;;  %v9572_v26 = vrot.slane %v3162_v39, 5  ;;  %v2913_v29 = vrot.slane %v2908_v61, 4 }
 0x165   : > { %v3114_v27 = vld [vmem:[#allocation3 + $0x58] sm:$0xf]  ;;  %v3115_v12 = vld [vmem:[#allocation3 + $0x5c] sm:$0xf]  ;;  %v2920_v49 = vor.u32 %v2918_v14, %v9547_v22  ;;  %v3192_v34 = vshrl.u32 %v9532_v58, 16  ;;  %v9583_v23 = vsel %vm8686_vm5, %v8674_v59, %v2187_v28  ;;  %v1556_v35 = vshrl.u32 %v9335_v6, 16 }
 0x166   : > { %3146 = vst [vmem:[#allocation4 + $0x2d4] sm:$0xf] %v3114_v27  ;;  %5410 = vmatmul.bf16.gmra.mxu1 %v6942_v36  ;;  %v8085_v36 = vld [vmem:[#allocation3 + $0x18] sm:$0xf]  ;;  %vm9605_vm2 = vcmp.gt.s32.totalorder %v930_v46, 0  ;;  %v6918_v56 = vor.u32 %v7625_v15, %v6915_v25  ;;  %v2491_v55 = vunpack.c.l.b16 %v9583_v23  ;;  %v2089_v61 = vsel %vm2053_vm15, 65537, %v12308_v0 }
 0x167   : > { %v603_v30 = vpop.f32.mrf.mxu0  ;;  %3147 = vst [vmem:[#allocation4 + $0x2f8] sm:$0xf] %v3115_v12  ;;  %v2705_v12 = vsel %vm2476_vm11, %v8085_v36, 0  ;;  %v2921_v44 = vsel %vm8686_vm5, %v2913_v29, %v2920_v49  ;;  %v9623_v2 = vrot.slane %v3192_v34, 4  ;;  %v3168_v3 = vshll.u32 %v8748_v50, 16  ;;  %vm1299_vm3 = vmpackc.low %vm9605_vm2, %vm9605_vm2 }
 0x168   : > { %v604_v1 = vadd.f32 %v9239_v17, %v603_v30  ;;  %v3188_v30 = vshll.u32 %v9532_v58, 16  ;;  %v9601_v6 = vpop.f32.mrf.mxu1  ;;  %3081 = vst [vmem:[#allocation4 + $0x2ac] sm:$0xf] %v2921_v44  ;;  %v2485_v58 = vunpack.c.h.b16 %v2179_v19  ;;  %v1558_v39 = vrot.slane %v1556_v35, 4 }
 0x169   : > { %12472 = vst [vmem:[#allocation20_spill] sm:$0xff] %v9601_v6  ;;  %v2492_v14 = vunpack.c.h.b16 %v9583_v23  ;;  %vm9643_vm1 = vcmp.ne.s32.totalorder %v2491_v55, %v8637_v38  ;;  %v760_v29 = vadd.s32 192, %v8538_v48  ;;  %v3165_v53 = vor.u32 %v9572_v26, %v9554_v10 }
 0x16a   : > { %v652_v13 = vmax.f32 %v604_v1, 0.0  ;;  %v2912_v1 = vsel %vm8686_vm5, %v2904_v16, %v2911_v18  ;;  %v9577_v33 = vrot.slane %v3188_v30, 5  ;;  %3583 = vst [vmem:[#allocation4 + $0x270] sm:$0xf] %v2921_v44  ;;  %v3202_v30 = vshrl.u32 %v2705_v12, 16 }
 0x16b   : > { %3080 = vst [vmem:[#allocation4 + $0x288] sm:$0xf] %v2912_v1  ;;  %v2189_v16 = vrot.slane %v9524_v52, 4  ;;  %v2200_v18 = vshrl.u32 %v2089_v61, 16  ;;  %vm9638_vm0 = vcmp.ne.s32.totalorder %v2485_v58, %v8640_v40  ;;  %v1559_v52 = vor.u32 %v1558_v39, %v9356_v47 }
 0x16c   : > { %v7839_v62 = vpack.c.bf16 %v652_v13, %v651_v41  ;;  %v2706_v41 = vsel %vm2483_vm13, %v8086_v31, 0  ;;  %v2484_v13 = vunpack.c.l.b16 %v2179_v19  ;;  %3582 = vst [vmem:[#allocation4 + $0x24c] sm:$0xf] %v2912_v1  ;;  %v3191_v57 = vsel %vm8608_vm12, %v3186_v9, %v9577_v33  ;;  %v613_v51 = vpop.f32.mrf.mxu3 }
 0x16d   : > { %v7651_v27 = vld [vmem:[#allocation4 + $0x2d4] sm:$0xf]  ;;  %3750 = vst [vmem:[#allocation4 + $0x210] sm:$0xf] %v2912_v1  ;;  %v614_v8 = vadd.f32 %v9239_v17, %v613_v51  ;;  %v3198_v9 = vshll.u32 %v2705_v12, 16  ;;  %v3208_v28 = vshll.u32 %v2706_v41, 16  ;;  %v2197_v36 = vsel %vm8686_vm5, %v2189_v16, %v8645_v43 }
 0x16e   : > { %7956 = vst [vmem:[#allocation3 + $0x60] sm:$0xff] %v7839_v62   ;;  %v7015_v32 = vld [vmem:[#allocation4 + $0x2f4] sm:$0xf0]  ;;  %v612_v62 = vadd.f32 %v9239_v17, %v611_v60  ;;  %v3212_v60 = vshrl.u32 %v2706_v41, 16  ;;  %vm9631_vm4 = vcmp.ne.s32.totalorder %v2484_v13, %v8637_v38  ;;  %v1335_v1 = vsel %vm1299_vm3, 65537, %v12308_v0 }
 0x16f   : > { %v9589_v7 = vpop.f32.mrf.mxu0  ;;  %v7018_v37 = vor.u32 %v7651_v27, %v7015_v32  ;;  %3751 = vst [vmem:[#allocation4 + $0x234] sm:$0xf] %v2921_v44  ;;  %v656_v49 = vmax.f32 %v614_v8, 0.0  ;;  %v9651_v27 = vrot.slane %v3198_v9, 5  ;;  %v3204_v32 = vrot.slane %v3202_v30, 4  ;;  %vm2490_vm7 = vmpackc.low %vm9638_vm0, %vm9631_vm4 }
 0x170   : > { %3684 = vst [vmem:[#allocation4 + $0x14] sm:$0xf] %v3191_v57  ;;  %v655_v15 = vmax.f32 %v612_v62, 0.0  ;;  %v9653_v34 = vrot.slane %v3208_v28, 5  ;;  %v3214_v23 = vrot.slane %v3212_v60, 4  ;;  %v9658_v12 = vrot.slane %v2200_v18, 7  ;;  %v9660_v45 = vpop.f32.mrf.mxu1 }
 0x171   : > { %3516 = vst [vmem:[#allocation4 + $0x50] sm:$0xf] %v3191_v57  ;;  %v7646_v35 = vld [vmem:[#allocation4 + $0x2a8] sm:$0xf0]  ;;  %v2203_v31 = vshll.u32 %v2089_v61, 16  ;;  %v853_v47 = vand.u32 15, %v747_v42  ;;  %vm9665_vm6 = vcmp.ne.s32.totalorder %v2492_v14, %v8640_v40  ;;  %v3195_v61 = vor.u32 %v9623_v2, %v9577_v33 }
 0x172   : > { %5672 = vmatmul.bf16.gmra.mxu0 %v6918_v56  ;;  %v6977_v25 = vld [vmem:[#allocation4 + $0x288] sm:$0xf]  ;;  %v1572_v44 = vshll.u32 %v1335_v1, 16  ;;  %12481 = vst [vmem:[#allocation21_spill] sm:$0xff] %v9660_v45  ;;  %v7849_v56 = vpack.c.bf16 %v656_v49, %v655_v15  ;;  %v1560_v58 = vrot.slane %v1559_v52, 4  ;;  %v1576_v55 = vshrl.u32 %v1335_v1, 16  ;;  %vm2497_vm8 = vmpackc.low %vm9665_vm6, %vm9643_vm1 }
 0x173   : > { %v6978_v41 = vor.u32 %v7646_v35, %v6977_v25  ;;  %v944_v62 = vand.u32 15, %v760_v29  ;;  %v3205_v51 = vor.u32 %v3204_v32, %v9651_v27  ;;  %v3215_v39 = vor.u32 %v3214_v23, %v9653_v34  ;;  %v8087_v28 = vld [vmem:[#allocation3 + $0x20] sm:$0xf]  ;;  %v8088_v52 = vld [vmem:[#allocation3 + $0x24] sm:$0xf] }
 0x174   : > { %5509 = vmatmul.bf16.gmra.mxu2 %v7018_v37  ;;  %v607_v37 = vadd.f32 %v9239_v17, %v9589_v7  ;;  %7958 = vst [vmem:[#allocation3 + $0x70] sm:$0xff] %v7849_v56   ;;  %v2205_v8 = vor.u32 %v2203_v31, %v9658_v12  ;;  %v2498_v9 = vunpack.c.l.b16 %v2197_v36  ;;  %v2499_v30 = vunpack.c.h.b16 %v2197_v36 }
 0x175   : > { %vm9685_vm9 = vcmp.lt.s32.totalorder %v853_v47, 15  ;;  %v1574_v26 = vrot.slane %v1572_v44, 5  ;;  %v2707_v60 = vsel %vm2490_vm7, %v8087_v28, 0  ;;  %v1565_v5 = vsel %vm8608_vm12, %v1560_v58, %v8579_v4 }
 0x176   : > { %5415 = vmatmul.bf16.gmra.mxu1 %v6978_v41  ;;  %v653_v33 = vmax.f32 %v607_v37, 0.0  ;;  %vm9692_vm10 = vcmp.gt.s32.totalorder %v944_v62, 0  ;;  %v1578_v16 = vrot.slane %v1576_v55, 4  ;;  %v9696_v18 = vrot.slane %v3195_v61, 4  ;;  %vm2055_vm11 = vmpackc.low %vm9685_vm9, %vm9685_vm9 }
 0x177   : > { %v608_v13 = vpop.f32.mrf.mxu0  ;;  %v9698_v19 = vrot.slane %v3165_v53, 4  ;;  %v9702_v42 = vrot.slane %v3168_v3, 5  ;;  %v9704_v25 = vrot.slane %v3205_v51, 4  ;;  %v9706_v1 = vrot.slane %v3215_v39, 4  ;;  %v9721_v3 = vpop.f32.mrf.mxu2  ;;  %vm1301_vm13 = vmpackc.low %vm9692_vm10, %vm9692_vm10 }
 0x178   : > { %v609_v7 = vadd.f32 %v9239_v17, %v608_v13  ;;  %v9713_v29 = vsel %vm2497_vm8, %v8088_v52, 0  ;;  %v2206_v49 = vsel %vm8686_vm5, %v8674_v59, %v2205_v8  ;;  %12488 = vst [vmem:[#allocation22_spill] sm:$0xff] %v9721_v3  ;;  %v3218_v32 = vshll.u32 %v2707_v60, 16 }
 0x179   : > { %v1575_v23 = vsel %vm8608_vm12, %v8612_v21, %v1574_v26  ;;  %v1858_v35 = vunpack.c.l.b16 %v1565_v5  ;;  %v1859_v46 = vunpack.c.h.b16 %v1565_v5  ;;  %v3222_v36 = vshrl.u32 %v2707_v60, 16  ;;  %v9741_v57 = vpop.f32.mrf.mxu1 }
 0x17a   : > { %v654_v2 = vmax.f32 %v609_v7, 0.0  ;;  %vm9730_vm14 = vcmp.ne.s32.totalorder %v2498_v9, %v8637_v38  ;;  %vm9735_vm15 = vcmp.ne.s32.totalorder %v2499_v30, %v8640_v40  ;;  %v1579_v13 = vor.u32 %v1578_v16, %v1574_v26  ;;  %12493 = vst [vmem:[#allocation23_spill] sm:$0xff] %v9741_v57  ;;  %v7750_v26 = vld [vmem:[%s12303_s3 + $0x168] sm:$0xff]  ;;  %v7739_v16 = vld [vmem:[%s12303_s3 + $0x110] sm:$0xff] }
 0x17b   : > { %v3228_v47 = vshll.u32 %v9713_v29, 16  ;;  %v2505_v44 = vunpack.c.l.b16 %v2206_v49  ;;  %v2506_v37 = vunpack.c.h.b16 %v2206_v49  ;;  %v2091_v56 = vsel %vm2055_vm11, 65537, %v12308_v0  ;;  %vm2504_vm4 = vmpackc.low %vm9735_vm15, %vm9730_vm14  ;;  %5809 = vmatpush.bf16.msrb.mxu2 %v7750_v26  ;;  %v1261_v49 = vld [vmem:[#allocation3 + $0x58] sm:$0xf] }
 0x17c   : > { %v7844_v15 = vpack.c.bf16 %v654_v2, %v653_v33  ;;  %v1865_v58 = vunpack.c.l.b16 %v1575_v23  ;;  %v1866_v55 = vunpack.c.h.b16 %v1575_v23  ;;  %v1337_v62 = vsel %vm1301_vm13, 65537, %v12308_v0  ;;  %v7743_v33 = vld [vmem:[%s12303_s3 + $0x130] sm:$0xff] }
 0x17d   : > { %v762_v61 = vadd.s32 208, %v8538_v48  ;;  %v9745_v51 = vrot.slane %v3218_v32, 5  ;;  %v3232_v53 = vshrl.u32 %v9713_v29, 16  ;;  %vm9749_vm2 = vcmp.ne.s32.totalorder %v1858_v35, %v8637_v38  ;;  %5719 = vmatpush.bf16.msrb.mxu1 %v7743_v33  ;;  %v7749_v29 = vld [vmem:[%s12303_s3 + $0x160] sm:$0xff] }
 0x17e   : > { %7957 = vst [vmem:[#allocation3 + $0x68] sm:$0xff] %v7844_v15   ;;  %vm9754_vm3 = vcmp.ne.s32.totalorder %v1859_v46, %v8640_v40  ;;  %v3224_v8 = vrot.slane %v3222_v36, 4  ;;  %v2218_v9 = vshrl.u32 %v2091_v56, 16  ;;  %v749_v30 = vadd.s32 104, %v8538_v48 }
 0x17f   : > { %v1580_v10 = vrot.slane %v1579_v13, 4  ;;  %vm9770_vm0 = vcmp.ne.s32.totalorder %v2505_v44, %v8637_v38  ;;  %vm9775_vm1 = vcmp.ne.s32.totalorder %v2506_v37, %v8640_v40  ;;  %v2207_v60 = vrot.slane %v9658_v12, 4  ;;  %vm1864_vm6 = vmpackc.low %vm9754_vm3, %vm9749_vm2  ;;  %v9796_v12 = vpop.f32.mrf.mxu3  ;;  %v9807_v13 = vpop.f32.mrf.mxu2  ;;  %v1262_v37 = vld [vmem:[#allocation3 + $0x5c] sm:$0xf]  ;;  %5810 = vmatpush.bf16.msrb.mxu2 %v7749_v29 }
 0x180   : > { %v1592_v5 = vshll.u32 %v1337_v62, 16  ;;  %v9780_v14 = vrot.slane %v3228_v47, 5  ;;  %vm9787_vm7 = vcmp.ne.s32.totalorder %v1865_v58, %v8637_v38  ;;  %vm9792_vm8 = vcmp.ne.s32.totalorder %v1866_v55, %v8640_v40  ;;  %vm2511_vm9 = vmpackc.low %vm9775_vm1, %vm9770_vm0  ;;  %12506 = vst [vmem:[#allocation24_spill] sm:$0xff] %v9807_v13  ;;  %v10043_v6 = vpop.f32.mrf.mxu0 }
 0x181   : > { %v958_v52 = vand.u32 15, %v762_v61  ;;  %v9805_v35 = vrot.slane %v2218_v9, 7  ;;  %v2221_v46 = vshll.u32 %v2091_v56, 16  ;;  %v867_v36 = vand.u32 15, %v749_v30  ;;  %vm1871_vm10 = vmpackc.low %vm9792_vm8, %vm9787_vm7  ;;  %v8089_v61 = vld [vmem:[#allocation3 + $0x28] sm:$0xf]  ;;  %v9847_v39 = vpop.f32.mrf.mxu1 }
 0x182   : > { %v1585_v47 = vsel %vm8608_vm12, %v1580_v10, %v8579_v4  ;;  %v2215_v44 = vsel %vm8686_vm5, %v2207_v60, %v8645_v43  ;;  %v9819_v58 = vrot.slane %v1592_v5, 5  ;;  %v1596_v56 = vshrl.u32 %v1337_v62, 16  ;;  %12509 = vst [vmem:[#allocation25_spill] sm:$0xff] %v9847_v39  ;;  %v7742_v10 = vld [vmem:[%s12303_s3 + $0x128] sm:$0xff] }
 0x183   : > { %v3225_v55 = vor.u32 %v3224_v8, %v9745_v51  ;;  %v2709_v9 = vsel %vm2504_vm4, %v8089_v61, 0  ;;  %v9832_v30 = vsel %vm1864_vm6, %v1261_v49, 0  ;;  %vm9834_vm11 = vcmp.gt.s32.totalorder %v958_v52, 0  ;;  %v8090_v8 = vld [vmem:[#allocation3 + $0x2c] sm:$0xf]  ;;  %5720 = vmatpush.bf16.msrb.mxu1 %v7742_v10  ;;  %12531 = vst [vmem:[#allocation29_spill] sm:$0xff] %v10043_v6 }
 0x184   : > { %v9838_v62 = vrot.slane %v3232_v53, 4  ;;  %v9845_v31 = vsel %vm2511_vm9, %v8090_v8, 0  ;;  %v1872_v41 = vunpack.c.l.b16 %v1585_v47  ;;  %v1873_v7 = vunpack.c.h.b16 %v1585_v47  ;;  %vm1303_vm14 = vmpackc.low %vm9834_vm11, %vm9834_vm11  ;;  %v3116_v47 = vld [vmem:[#allocation3 + $0x60] sm:$0xf] }
 0x185   : > { %v3118_v32 = vld [vmem:[#allocation3 + $0x68] sm:$0xf]  ;;  %v3119_v23 = vld [vmem:[#allocation3 + $0x6c] sm:$0xf]  ;;  %v2223_v26 = vor.u32 %v2221_v46, %v9805_v35  ;;  %v2512_v33 = vunpack.c.l.b16 %v2215_v44  ;;  %vm9850_vm13 = vcmp.lt.s32.totalorder %v867_v36, 15  ;;  %v9859_v53 = vsel %vm1871_vm10, %v1262_v37, 0 }
 0x186   : > { %3150 = vst [vmem:[#allocation4 + $0x364] sm:$0xf] %v3118_v32  ;;  %v3238_v2 = vshll.u32 %v2709_v9, 16  ;;  %v2924_v28 = vshrl.u32 %v9832_v30, 16  ;;  %v1595_v5 = vsel %vm8608_vm12, %v8612_v21, %v9819_v58  ;;  %v1598_v52 = vrot.slane %v1596_v56, 4  ;;  %vm2057_vm15 = vmpackc.low %vm9850_vm13, %vm9850_vm13  ;;  %v7740_v46 = vld [vmem:[%s12303_s3 + $0x118] sm:$0xff] }
 0x187   : > { %3151 = vst [vmem:[#allocation4 + $0x388] sm:$0xf] %v3119_v23  ;;  %v9869_v29 = vrot.slane %v3225_v55, 4  ;;  %v3242_v15 = vshrl.u32 %v2709_v9, 16  ;;  %v2513_v49 = vunpack.c.h.b16 %v2215_v44  ;;  %v2933_v23 = vshrl.u32 %v9859_v53, 16  ;;  %v618_v9 = vpop.f32.mrf.mxu3  ;;  %v7746_v36 = vld [vmem:[%s12303_s3 + $0x148] sm:$0xff] }
 0x188   : > { %vm9878_vm2 = vcmp.ne.s32.totalorder %v1872_v41, %v8637_v38  ;;  %vm9883_vm3 = vcmp.ne.s32.totalorder %v1873_v7, %v8640_v40  ;;  %v3117_v44 = vld [vmem:[#allocation3 + $0x64] sm:$0xf]  ;;  %v2224_v37 = vsel %vm8686_vm5, %v8674_v59, %v2223_v26  ;;  %v1879_v56 = vunpack.c.l.b16 %v1595_v5  ;;  %3148 = vst [vmem:[#allocation4 + $0x31c] sm:$0xf] %v3116_v47 }
 0x189   : > { %v1880_v55 = vunpack.c.h.b16 %v1595_v5  ;;  %v9896_v61 = vsel %vm1303_vm14, 65537, %v12308_v0  ;;  %v9898_v8 = vrot.slane %v3238_v2, 5  ;;  %vm9901_vm4 = vcmp.ne.s32.totalorder %v2512_v33, %v8637_v38  ;;  %3149 = vst [vmem:[#allocation4 + $0x340] sm:$0xf] %v3117_v44  ;;  %v7748_v5 = vld [vmem:[%s12303_s3 + $0x158] sm:$0xff]  ;;  %vm1878_vm1 = vmpackc.low %vm9883_vm3, %vm9878_vm2  ;;  %v9958_v13 = vpop.f32.mrf.mxu1 }
 0x18a   : > { %v2926_v7 = vrot.slane %v2924_v28, 7  ;;  %v1599_v26 = vor.u32 %v1598_v52, %v9819_v58  ;;  %v9912_v47 = vrot.slane %v3242_v15, 4  ;;  %vm9915_vm0 = vcmp.ne.s32.totalorder %v2513_v49, %v8640_v40  ;;  %v9928_v28 = vpop.f32.mrf.mxu2  ;;  %v1263_v49 = vld [vmem:[#allocation3 + $0x60] sm:$0xf]  ;;  %5811 = vmatpush.bf16.msrb.mxu2 %v7748_v5  ;;  %12525 = vst [vmem:[#allocation27_spill] sm:$0xff] %v9958_v13 }
 0x18b   : > { %v9925_v58 = vsel %vm2057_vm15, 65537, %v12308_v0  ;;  %v2927_v2 = vshll.u32 %v9832_v30, 16  ;;  %12520 = vst [vmem:[#allocation26_spill] sm:$0xff] %v9928_v28  ;;  %v2519_v52 = vunpack.c.l.b16 %v2224_v37  ;;  %v9934_v15 = vrot.slane %v2933_v23, 7  ;;  %v7741_v30 = vld [vmem:[%s12303_s3 + $0x120] sm:$0xff]  ;;  %v7747_v0 = vld [vmem:[%s12303_s3 + $0x150] sm:$0xff]  ;;  %vm2518_vm11 = vmpackc.low %vm9915_vm0, %vm9901_vm4 }
 0x18c   : > { %v1612_v44 = vshll.u32 %v9896_v61, 16  ;;  %v617_v60 = vadd.f32 %v9239_v17, %v9796_v12  ;;  %v2520_v32 = vunpack.c.h.b16 %v2224_v37  ;;  %vm9947_vm6 = vcmp.ne.s32.totalorder %v1879_v56, %v8637_v38  ;;  %v1264_v23 = vld [vmem:[#allocation3 + $0x64] sm:$0xf]  ;;  %5721 = vmatpush.bf16.msrb.mxu1 %v7741_v30 }
 0x18d   : > { %vm9952_vm7 = vcmp.ne.s32.totalorder %v1880_v55, %v8640_v40  ;;  %v2936_v10 = vshll.u32 %v9859_v53, 16  ;;  %v1600_v5 = vrot.slane %v1599_v26, 4  ;;  %v2922_v39 = vrot.slane %v9547_v22, 4 }
 0x18e   : > { %v2929_v45 = vor.u32 %v2927_v2, %v2926_v7  ;;  %v2236_v37 = vshrl.u32 %v9925_v58, 16  ;;  %v9967_v55 = vsel %vm1878_vm1, %v1263_v49, 0  ;;  %v2931_v11 = vrot.slane %v2926_v7, 4  ;;  %vm1885_vm8 = vmpackc.low %vm9952_vm7, %vm9947_vm6  ;;  %5812 = vmatpush.bf16.msrb.mxu2 %v7747_v0 }
 0x18f   : > { %v9973_v22 = vrot.slane %v1612_v44, 5  ;;  %v657_v53 = vmax.f32 %v617_v60, 0.0  ;;  %v2938_v2 = vor.u32 %v2936_v10, %v9934_v15  ;;  %v3235_v7 = vor.u32 %v9838_v62, %v9780_v14  ;;  %v7660_v44 = vld [vmem:[#allocation4 + $0x31c] sm:$0xf]  ;;  %v10019_v10 = vpop.f32.mrf.mxu3 }
 0x190   : > { %v2930_v26 = vsel %vm8686_vm5, %v2922_v39, %v2929_v45  ;;  %v619_v49 = vadd.f32 %v9239_v17, %v618_v9  ;;  %v7051_v45 = vld [vmem:[#allocation4 + $0x33c] sm:$0xf0]  ;;  %vm9988_vm9 = vcmp.ne.s32.totalorder %v2519_v52, %v8637_v38  ;;  %vm9993_vm10 = vcmp.ne.s32.totalorder %v2520_v32, %v8640_v40  ;;  %v7634_v17 = vld [vmem:[#allocation4 + $0x24c] sm:$0xf]  ;;  %v6951_v9 = vld [vmem:[#allocation4 + $0x26c] sm:$0xf0]  ;;  %5722 = vmatpush.bf16.msrb.mxu1 %v7740_v46 }
 0x191   : > { %3082 = vst [vmem:[#allocation4 + $0x2d0] sm:$0xf] %v2930_v26  ;;  %v1605_v60 = vsel %vm8608_vm12, %v1600_v5, %v8579_v4  ;;  %v2939_v62 = vsel %vm8686_vm5, %v2931_v11, %v2938_v2  ;;  %v10006_v52 = vrot.slane %v2236_v37, 7  ;;  %v10013_v32 = vsel %vm1885_vm8, %v1264_v23, 0  ;;  %v7745_v23 = vld [vmem:[%s12303_s3 + $0x140] sm:$0xff]  ;;  %vm2525_vm13 = vmpackc.low %vm9993_vm10, %vm9988_vm9 }
 0x192   : > { %3584 = vst [vmem:[#allocation4 + $0x294] sm:$0xf] %v2930_v26  ;;  %v1615_v11 = vsel %vm8608_vm12, %v8612_v21, %v9973_v22  ;;  %v658_v30 = vmax.f32 %v619_v49, 0.0  ;;  %v2942_v5 = vshrl.u32 %v9967_v55, 16  ;;  %v10023_v37 = vadd.s32 224, %v8538_v48  ;;  %5813 = vmatpush.bf16.msrb.mxu2 %v7746_v36  ;;  %v10035_v2 = vpop.f32.mrf.mxu2 }
 0x193   : > { %3083 = vst [vmem:[#allocation4 + $0x2f4] sm:$0xf] %v2939_v62  ;;  %v7054_v12 = vor.u32 %v7660_v44, %v7051_v45  ;;  %v1886_v49 = vunpack.c.l.b16 %v1605_v60  ;;  %v1887_v56 = vunpack.c.h.b16 %v1605_v60  ;;  %v6954_v36 = vor.u32 %v7634_v17, %v6951_v9  ;;  %v8091_v44 = vld [vmem:[#allocation3 + $0x30] sm:$0xf]  ;;  %v8092_v9 = vld [vmem:[#allocation3 + $0x34] sm:$0xf] }
 0x194   : > { %3585 = vst [vmem:[#allocation4 + $0x2b8] sm:$0xf] %v2939_v62  ;;  %v7854_v46 = vpack.c.bf16 %v658_v30, %v657_v53  ;;  %v2711_v45 = vsel %vm2518_vm11, %v8091_v44, 0  ;;  %v2951_v13 = vshrl.u32 %v10013_v32, 16  ;;  %v1893_v57 = vunpack.c.l.b16 %v1615_v11  ;;  %v10070_v44 = vpop.f32.mrf.mxu1  ;;  %5723 = vmatpush.bf16.msrb.mxu1 %v7739_v16 }
 0x195   : > { %12530 = vst [vmem:[#allocation28_spill] sm:$0xff] %v10035_v2  ;;  %v1894_v28 = vunpack.c.h.b16 %v1615_v11  ;;  %5514 = vmatmul.bf16.gmra.mxu2 %v7054_v12  ;;  %v3600_v2 = vld [vmem:[#allocation3 + $0x18] sm:$0xf]  ;;  %v10045_v60 = vrot.slane %v3235_v7, 4  ;;  %v12532_v33 = vshll.u32 %v9845_v31, 16  ;;  %v12533_v41 = vshrl.u32 %v9845_v31, 16  ;;  %5677 = vmatmul.bf16.gmra.mxu0 %v6954_v36 }
 0x196   : > { %3752 = vst [vmem:[#allocation4 + $0x258] sm:$0xf] %v2930_v26  ;;  %v2712_v7 = vsel %vm2525_vm13, %v8092_v9, 0  ;;  %v12534_v11 = vrot.slane %v9805_v35, 4  ;;  %v12535_v31 = vshll.u32 %v9925_v58, 16  ;;  %5814 = vmatpush.bf16.msrb.mxu2 %v7745_v23  ;;  %v3258_v0 = vshll.u32 %v2711_v45, 16  ;;  %v10149_v35 = vpop.f32.mrf.mxu0 }
 0x197   : > { %3753 = vst [vmem:[#allocation4 + $0x27c] sm:$0xf] %v2939_v62  ;;  %v10051_v26 = vrot.slane %v12532_v33, 5  ;;  %v10055_v17 = vrot.slane %v12533_v41, 4  ;;  %v3601_v62 = vld [vmem:[#allocation3 + $0x1c] sm:$0xf]  ;;  %vm10074_vm14 = vcmp.ne.s32.totalorder %v1886_v49, %v8637_v38  ;;  %vm10079_vm15 = vcmp.ne.s32.totalorder %v1887_v56, %v8640_v40 }
 0x198   : > { %7959 = vst [vmem:[#allocation3 + $0x78] sm:$0xff] %v7854_v46   ;;  %v2233_v30 = vsel %vm8686_vm5, %v12534_v11, %v8645_v43  ;;  %v2241_v12 = vor.u32 %v12535_v31, %v10006_v52  ;;  %v2944_v46 = vrot.slane %v2942_v5, 7  ;;  %v7013_v36 = vld [vmem:[#allocation4 + $0x2d0] sm:$0xf]  ;;  %v972_v39 = vand.u32 15, %v10023_v37  ;;  %vm1892_vm4 = vmpackc.low %vm10079_vm15, %vm10074_vm14 }
 0x199   : > { %12536 = vst [vmem:[#allocation30_spill] sm:$0xff] %v10070_v44  ;;  %v2945_v58 = vshll.u32 %v9967_v55, 16  ;;  %v10084_v5 = vrot.slane %v2951_v13, 7  ;;  %vm10087_vm2 = vcmp.ne.s32.totalorder %v1893_v57, %v8637_v38  ;;  %vm10092_vm3 = vcmp.ne.s32.totalorder %v1894_v28, %v8640_v40  ;;  %v1265_v55 = vld [vmem:[#allocation3 + $0x68] sm:$0xf] }
 0x19a   : > { %3632 = vst [vmem:[#allocation4 + $0x58] sm:$0xf] %v3600_v2  ;;  %v7655_v23 = vld [vmem:[#allocation4 + $0x2f0] sm:$0xf0]  ;;  %v3262_v56 = vshrl.u32 %v2711_v45, 16  ;;  %v2526_v49 = vunpack.c.l.b16 %v2233_v30  ;;  %v2527_v41 = vunpack.c.h.b16 %v2233_v30  ;;  %v2242_v13 = vsel %vm8686_vm5, %v8674_v59, %v2241_v12  ;;  %vm1899_vm1 = vmpackc.low %vm10092_vm3, %vm10087_vm2 }
 0x19b   : > { %3633 = vst [vmem:[#allocation4 + $0x7c] sm:$0xf] %v3601_v62  ;;  %v7014_v2 = vor.u32 %v7655_v23, %v7013_v36  ;;  %v2954_v57 = vshll.u32 %v10013_v32, 16  ;;  %v2940_v28 = vrot.slane %v9934_v15, 4  ;;  %v2947_v9 = vor.u32 %v2945_v58, %v2944_v46  ;;  %v1266_v31 = vld [vmem:[#allocation3 + $0x6c] sm:$0xf]  ;;  %v623_v32 = vpop.f32.mrf.mxu3 }
 0x19c   : > { %v10105_v62 = vrot.slane %v3258_v0, 5  ;;  %v3268_v45 = vshll.u32 %v2712_v7, 16  ;;  %v3272_v11 = vshrl.u32 %v2712_v7, 16  ;;  %vm10107_vm0 = vcmp.gt.s32.totalorder %v972_v39, 0  ;;  %v10118_v15 = vld [vmem:[%s12302_s2] ss:$0 sm:$0xff] }
 0x19d   : > { %5420 = vmatmul.bf16.gmra.mxu1 %v7014_v2  ;;  %v622_v7 = vadd.f32 %v10118_v15, %v10019_v10  ;;  %v2948_v12 = vsel %vm8686_vm5, %v2940_v28, %v2947_v9  ;;  %v2949_v36 = vrot.slane %v2944_v46, 4  ;;  %v2956_v0 = vor.u32 %v2954_v57, %v10084_v5  ;;  %v10128_v2 = vpop.f32.mrf.mxu2  ;;  %vm1305_vm6 = vmpackc.low %vm10107_vm0, %vm10107_vm0  ;;  %12548 = vst [vmem:[#allocation32_spill] sm:$0xff] %v10149_v35  ;;  %v7643_v44 = vld [vmem:[#allocation4 + $0x294] sm:$0xf]  ;;  %v6987_v30 = vld [vmem:[#allocation4 + $0x2b4] sm:$0xf0] }
 0x19e   : > { %v10125_v39 = vrot.slane %v3262_v56, 4  ;;  %v2533_v58 = vunpack.c.l.b16 %v2242_v13  ;;  %v751_v23 = vadd.s32 120, %v8538_v48  ;;  %12547 = vst [vmem:[#allocation31_spill] sm:$0xff] %v10128_v2  ;;  %v10135_v53 = vsel %vm1892_vm4, %v1265_v55, 0  ;;  %v10244_v16 = vpop.f32.mrf.mxu0 }
 0x19f   : > { %3084 = vst [vmem:[#allocation4 + $0x318] sm:$0xf] %v2948_v12  ;;  %v2534_v10 = vunpack.c.h.b16 %v2242_v13  ;;  %v1616_v46 = vshrl.u32 %v9896_v61, 16  ;;  %v10146_v56 = vsel %vm1899_vm1, %v1266_v31, 0  ;;  %v766_v33 = vadd.s32 240, %v8538_v48  ;;  %v7738_v13 = vld [vmem:[%s12303_s3 + $0x108] sm:$0xff] }
 0x1a0   : > { %3586 = vst [vmem:[#allocation4 + $0x2dc] sm:$0xf] %v2948_v12  ;;  %v10154_v57 = vrot.slane %v3268_v45, 5  ;;  %v10156_v55 = vrot.slane %v3272_v11, 4  ;;  %vm10159_vm7 = vcmp.ne.s32.totalorder %v2526_v49, %v8637_v38  ;;  %vm10164_vm8 = vcmp.ne.s32.totalorder %v2527_v41, %v8640_v40  ;;  %5724 = vmatpush.bf16.msrb.mxu1 %v7738_v13  ;;  %v10172_v11 = vpop.f32.mrf.mxu1  ;;  %v7737_v49 = vld [vmem:[%s12303_s3 + $0x100] sm:$0xff] }
 0x1a1   : > { %3754 = vst [vmem:[#allocation4 + $0x2a0] sm:$0xf] %v2948_v12  ;;  %v2960_v37 = vshrl.u32 %v10135_v53, 16  ;;  %v659_v28 = vmax.f32 %v622_v7, 0.0  ;;  %v2957_v9 = vsel %vm8686_vm5, %v2949_v36, %v2956_v0  ;;  %v624_v45 = vadd.f32 %v10118_v15, %v623_v32  ;;  %vm2532_vm11 = vmpackc.low %vm10164_vm8, %vm10159_vm7 }
 0x1a2   : > { %12553 = vst [vmem:[#allocation33_spill] sm:$0xff] %v10172_v11  ;;  %vm10178_vm9 = vcmp.ne.s32.totalorder %v2533_v58, %v8637_v38  ;;  %v881_v31 = vand.u32 15, %v751_v23  ;;  %v12556_v12 = vmov 0   ;;  %v2969_v7 = vshrl.u32 %v10146_v56, 16  ;;  %v8094_v11 = vld [vmem:[#allocation3 + $0x38] sm:$0xf] }
 0x1a3   : > { %v1341_v32 = vsel %vm1305_vm6, 65537, %v12556_v12  ;;  %3085 = vst [vmem:[#allocation4 + $0x33c] sm:$0xf] %v2957_v9  ;;  %vm10190_vm10 = vcmp.ne.s32.totalorder %v2534_v10, %v8640_v40  ;;  %v1618_v0 = vrot.slane %v1616_v46, 4  ;;  %v986_v58 = vand.u32 15, %v766_v33 }
 0x1a4   : > { %3587 = vst [vmem:[#allocation4 + $0x300] sm:$0xf] %v2957_v9  ;;  %v660_v13 = vmax.f32 %v624_v45, 0.0  ;;  %v3255_v23 = vor.u32 %v10055_v17, %v10051_v26  ;;  %v12559_v35 = vor.u32 %v9912_v47, %v9898_v8  ;;  %v1632_v10 = vshll.u32 %v1341_v32, 16  ;;  %5725 = vmatpush.bf16.msrb.mxu1 %v7737_v49  ;;  %vm2539_vm13 = vmpackc.low %vm10190_vm10, %vm10178_vm9  ;;  %v626_v45 = vpop.f32.mrf.mxu3 }
 0x1a5   : > { %3755 = vst [vmem:[#allocation4 + $0x2c4] sm:$0xf] %v2957_v9  ;;  %v2962_v46 = vrot.slane %v2960_v37, 7  ;;  %v3265_v17 = vor.u32 %v10125_v39, %v10105_v62  ;;  %vm10211_vm14 = vcmp.lt.s32.totalorder %v881_v31, 15  ;;  %v10215_v9 = vrot.slane %v2969_v7, 7 }
 0x1a6   : > { %v10199_v6 = vrot.slane %v12559_v35, 4  ;;  %v7859_v33 = vpack.c.bf16 %v660_v13, %v659_v28  ;;  %v1636_v35 = vshrl.u32 %v1341_v32, 16  ;;  %v1619_v37 = vor.u32 %v1618_v0, %v9973_v22  ;;  %v7049_v49 = vld [vmem:[#allocation4 + $0x318] sm:$0xf]  ;;  %v10231_v32 = vpop.f32.mrf.mxu2  ;;  %12565 = vst [vmem:[#allocation35_spill] sm:$0xff] %v10244_v16  ;;  %vm2059_vm2 = vmpackc.low %vm10211_vm14, %vm10211_vm14 }
 0x1a7   : > { %v2963_v28 = vshll.u32 %v10135_v53, 16  ;;  %v3201_v39 = vsel %vm8608_vm12, %v9696_v18, %v9651_v27  ;;  %v6990_v13 = vor.u32 %v7643_v44, %v6987_v30  ;;  %v3275_v31 = vor.u32 %v10156_v55, %v10154_v57  ;;  %12562 = vst [vmem:[#allocation34_spill] sm:$0xff] %v10231_v32  ;;  %v8095_v27 = vld [vmem:[#allocation3 + $0x3c] sm:$0xf] }
 0x1a8   : > { %7960 = vst [vmem:[#allocation3 + $0x80] sm:$0xff] %v7859_v33   ;;  %v2713_v22 = vsel %vm2532_vm11, %v8094_v11, 0  ;;  %v2972_v53 = vshll.u32 %v10146_v56, 16  ;;  %vm10233_vm15 = vcmp.gt.s32.totalorder %v986_v58, 0  ;;  %v10242_v18 = vsel %vm2539_vm13, %v8095_v27, 0  ;;  %v10258_v33 = vpop.f32.mrf.mxu1 }
 0x1a9   : > { %3685 = vst [vmem:[#allocation4 + $0x38] sm:$0xf] %v3201_v39  ;;  %v1634_v44 = vrot.slane %v1632_v10, 5  ;;  %v2965_v55 = vor.u32 %v2963_v28, %v2962_v46  ;;  %5682 = vmatmul.bf16.gmra.mxu0 %v6990_v13  ;;  %v2967_v56 = vrot.slane %v2962_v46, 4  ;;  %v1638_v36 = vrot.slane %v1636_v35, 4  ;;  %vm1307_vm3 = vmpackc.low %vm10233_vm15, %vm10233_vm15 }
 0x1aa   : > { %v7664_v61 = vld [vmem:[#allocation4 + $0x338] sm:$0xf0]  ;;  %3517 = vst [vmem:[#allocation4 + $0x74] sm:$0xf] %v3201_v39  ;;  %v2974_v11 = vor.u32 %v2972_v53, %v10215_v9  ;;  %v10250_v41 = vrot.slane %v3255_v23, 4  ;;  %v10252_v58 = vrot.slane %v3265_v17, 4  ;;  %v627_v27 = vadd.f32 %v10118_v15, %v626_v45 }
 0x1ab   : > { %v7050_v0 = vor.u32 %v7664_v61, %v7049_v49  ;;  %v1620_v30 = vrot.slane %v1619_v37, 4  ;;  %v768_v10 = vadd.s32 256, %v8538_v48  ;;  %12566 = vst [vmem:[#allocation36_spill] sm:$0xff] %v10258_v33  ;;  %v10260_v28 = vrot.slane %v3275_v31, 4 }
 0x1ac   : > { %v3278_v46 = vshll.u32 %v2713_v22, 16  ;;  %v2243_v39 = vrot.slane %v10006_v52, 4  ;;  %v2958_v35 = vrot.slane %v10084_v5, 4  ;;  %v3282_v23 = vshrl.u32 %v2713_v22, 16 }
 0x1ad   : > { %5425 = vmatmul.bf16.gmra.mxu1 %v7050_v0  ;;  %v3288_v17 = vshll.u32 %v10242_v18, 16  ;;  %v2095_v37 = vsel %vm2059_vm2, 65537, %v12556_v12  ;;  %v1635_v49 = vsel %vm8608_vm12, %v8612_v21, %v1634_v44  ;;  %v1343_v13 = vsel %vm1307_vm3, 65537, %v12556_v12 }
 0x1ae   : > { %v1639_v52 = vor.u32 %v1638_v36, %v1634_v44  ;;  %v2966_v5 = vsel %vm8686_vm5, %v2958_v35, %v2965_v55  ;;  %v2975_v31 = vsel %vm8686_vm5, %v2967_v56, %v2974_v11  ;;  %v1625_v47 = vsel %vm8608_vm12, %v1620_v30, %v8579_v4  ;;  %v7563_v44 = vld [vmem:[#allocation4 + $0x14] sm:$0xf]  ;;  %v628_v36 = vpop.f32.mrf.mxu3 }
 0x1af   : > { %v1000_v53 = vand.u32 15, %v768_v10  ;;  %v10284_v61 = vrot.slane %v3278_v46, 5  ;;  %v2254_v0 = vshrl.u32 %v2095_v37, 16  ;;  %3086 = vst [vmem:[#allocation4 + $0x360] sm:$0xf] %v2966_v5  ;;  %v10286_v55 = vrot.slane %v3282_v23, 4  ;;  %v10288_v10 = vpop.f32.mrf.mxu2  ;;  %v10294_v23 = vpop.f32.mrf.mxu0 }
 0x1b0   : > { %v6671_v7 = vld [vmem:[#allocation4 + $0x34] sm:$0xf0]  ;;  %v1907_v35 = vunpack.c.l.b16 %v1635_v49  ;;  %v1652_v56 = vshll.u32 %v1343_v13, 16  ;;  %3087 = vst [vmem:[#allocation4 + $0x384] sm:$0xf] %v2975_v31  ;;  %v1900_v22 = vunpack.c.l.b16 %v1625_v47  ;;  %v1908_v33 = vunpack.c.h.b16 %v1635_v49 }
 0x1b1   : > { %v6674_v11 = vor.u32 %v7563_v44, %v6671_v7  ;;  %v1640_v32 = vrot.slane %v1639_v52, 4  ;;  %v1656_v30 = vshrl.u32 %v1343_v13, 16  ;;  %12567 = vst [vmem:[#allocation37_spill] sm:$0xff] %v10288_v10  ;;  %v1901_v45 = vunpack.c.h.b16 %v1625_v47  ;;  %v3602_v44 = vld [vmem:[#allocation3 + $0x20] sm:$0xf] }
 0x1b2   : > { %3588 = vst [vmem:[#allocation4 + $0x324] sm:$0xf] %v2966_v5  ;;  %vm10290_vm4 = vcmp.gt.s32.totalorder %v1000_v53, 0  ;;  %v661_v16 = vmax.f32 %v627_v27, 0.0  ;;  %v629_v7 = vadd.f32 %v10118_v15, %v628_v36  ;;  %v10297_v2 = vrot.slane %v3288_v17, 5 }
 0x1b3   : > { %5815 = vmatmul.bf16.vlgmr.msrb.gmra.mxu2 %v6674_v11  ;;  %12570 = vst [vmem:[#allocation38_spill] sm:$0xff] %v10294_v23  ;;  %v10299_v49 = vrot.slane %v2254_v0, 7  ;;  %v2257_v13 = vshll.u32 %v2095_v37, 16  ;;  %v10302_v52 = vadd.s32 136, %v8538_v48  ;;  %v2251_v47 = vsel %vm8686_vm5, %v2243_v39, %v8645_v43  ;;  %v6669_v27 = vld [vmem:[#allocation4 + $0x10] sm:$0xf]  ;;  %v10307_v23 = vpop.f32.mrf.mxu1  ;;  %vm1309_vm7 = vmpackc.low %vm10290_vm4, %vm10290_vm4 }
 0x1b4   : > { %3589 = vst [vmem:[#allocation4 + $0x348] sm:$0xf] %v2975_v31  ;;  %v1654_v53 = vrot.slane %v1652_v56, 5  ;;  %v662_v11 = vmax.f32 %v629_v7, 0.0  ;;  %vm10310_vm0 = vcmp.ne.s32.totalorder %v1900_v22, %v8637_v38  ;;  %vm10315_vm1 = vcmp.ne.s32.totalorder %v1907_v35, %v8637_v38  ;;  %v7567_v39 = vld [vmem:[#allocation4 + $0x30] sm:$0xf0] }
 0x1b5   : > { %3756 = vst [vmem:[#allocation4 + $0x2e8] sm:$0xf] %v2966_v5  ;;  %vm10320_vm6 = vcmp.ne.s32.totalorder %v1908_v33, %v8640_v40  ;;  %v770_v5 = vadd.s32 272, %v8538_v48  ;;  %vm10329_vm8 = vcmp.ne.s32.totalorder %v1901_v45, %v8640_v40  ;;  %v1645_v33 = vsel %vm8608_vm12, %v1640_v32, %v8579_v4  ;;  %v3603_v35 = vld [vmem:[#allocation3 + $0x24] sm:$0xf] }
 0x1b6   : > { %3757 = vst [vmem:[#allocation4 + $0x30c] sm:$0xf] %v2975_v31  ;;  %v1658_v22 = vrot.slane %v1656_v30, 4  ;;  %v7085_v0 = vld [vmem:[#allocation4 + $0x360] sm:$0xf]  ;;  %v7864_v36 = vpack.c.bf16 %v662_v11, %v661_v16  ;;  %v2259_v56 = vor.u32 %v2257_v13, %v10299_v49  ;;  %v2540_v7 = vunpack.c.l.b16 %v2251_v47  ;;  %vm1913_vm9 = vmpackc.low %vm10320_vm6, %vm10315_vm1 }
 0x1b7   : > { %12571 = vst [vmem:[#allocation39_spill] sm:$0xff] %v10307_v23  ;;  %v2541_v23 = vunpack.c.h.b16 %v2251_v47  ;;  %v7673_v10 = vld [vmem:[#allocation4 + $0x380] sm:$0xf0]  ;;  %v1014_v3 = vand.u32 15, %v770_v5  ;;  %v1655_v32 = vsel %vm8608_vm12, %v8612_v21, %v1654_v53  ;;  %v10351_v16 = vsel %vm1309_vm7, 65537, %v12556_v12  ;;  %vm1906_vm10 = vmpackc.low %vm10329_vm8, %vm10310_vm0 }
 0x1b8   : > { %3634 = vst [vmem:[#allocation4 + $0xa0] sm:$0xf] %v3602_v44  ;;  %v895_v44 = vand.u32 15, %v10302_v52  ;;  %v7086_v30 = vor.u32 %v7673_v10, %v7085_v0  ;;  %v1914_v45 = vunpack.c.l.b16 %v1645_v33  ;;  %v6670_v13 = vor.u32 %v7567_v39, %v6669_v27  ;;  %v1267_v47 = vld [vmem:[#allocation3 + $0x70] sm:$0xf]  ;;  %v10368_v39 = vpop.f32.mrf.mxu2 }
 0x1b9   : > { %7961 = vst [vmem:[#allocation3 + $0x88] sm:$0xff] %v7864_v36   ;;  %vm10357_vm11 = vcmp.gt.s32.totalorder %v1014_v3, 0  ;;  %v3211_v46 = vsel %vm8608_vm12, %v9704_v25, %v9653_v34  ;;  %v1268_v10 = vld [vmem:[#allocation3 + $0x74] sm:$0xf]  ;;  %v1915_v11 = vunpack.c.h.b16 %v1645_v33  ;;  %v1659_v5 = vor.u32 %v1658_v22, %v1654_v53  ;;  %v3770_v25 = vld [vmem:[#allocation3 + $0x20] sm:$0xf] }
 0x1ba   : > { %3635 = vst [vmem:[#allocation4 + $0xc4] sm:$0xf] %v3603_v35  ;;  %5430 = vmatmul.bf16.vlgmr.msrb.gmra.mxu3 %v7086_v30  ;;  %vm1311_vm13 = vmpackc.low %vm10357_vm11, %vm10357_vm11  ;;  %v1921_v3 = vunpack.c.l.b16 %v1655_v32  ;;  %v1922_v27 = vunpack.c.h.b16 %v1655_v32  ;;  %v1672_v0 = vshll.u32 %v10351_v16, 16  ;;  %vm10373_vm14 = vcmp.ne.s32.totalorder %v2540_v7, %v8637_v38  ;;  %v10382_v35 = vpop.f32.mrf.mxu0  ;;  %v8096_v31 = vld [vmem:[#allocation3 + $0x40] sm:$0xf] }
 0x1bb   : > { %3686 = vst [vmem:[#allocation4 + $0x5c] sm:$0xf] %v3211_v46  ;;  %v1347_v34 = vsel %vm1311_vm13, 65537, %v12556_v12  ;;  %vm10378_vm15 = vcmp.ne.s32.totalorder %v2541_v23, %v8640_v40  ;;  %v2260_v32 = vsel %vm8686_vm5, %v8674_v59, %v2259_v56  ;;  %v10392_v7 = vsel %vm1906_vm10, %v1267_v47, 0  ;;  %v3771_v56 = vld [vmem:[#allocation3 + $0x24] sm:$0xf]  ;;  %v10415_v17 = vpop.f32.mrf.mxu1 }
 0x1bc   : > { %12582 = vst [vmem:[#allocation40_spill] sm:$0xff] %v10368_v39  ;;  %v1692_v22 = vshll.u32 %v1347_v34, 16  ;;  %v1696_v36 = vshrl.u32 %v1347_v34, 16  ;;  %v10399_v23 = vsel %vm1913_vm9, %v1268_v10, 0  ;;  %vm10402_vm2 = vcmp.ne.s32.totalorder %v1914_v45, %v8637_v38  ;;  %vm2546_vm6 = vmpackc.low %vm10378_vm15, %vm10373_vm14 }
 0x1bd   : > { %5726 = vmatmul.bf16.vlgmr.msrb.gmra.mxu1 %v6670_v13  ;;  %3854 = vst [vmem:[#allocation4 + $0x20] sm:$0xf] %v3211_v46  ;;  %vm10407_vm3 = vcmp.ne.s32.totalorder %v1915_v11, %v8640_v40  ;;  %v1660_v15 = vrot.slane %v1659_v5, 4  ;;  %vm10417_vm4 = vcmp.lt.s32.totalorder %v895_v44, 15  ;;  %vm10422_vm0 = vcmp.ne.s32.totalorder %v1921_v3, %v8637_v38  ;;  %v1269_v11 = vld [vmem:[#allocation3 + $0x78] sm:$0xf] }
 0x1be   : > { %12587 = vst [vmem:[#allocation41_spill] sm:$0xff] %v10382_v35  ;;  %v10411_v13 = vrot.slane %v1692_v22, 5  ;;  %v10413_v37 = vrot.slane %v1696_v36, 4  ;;  %vm10427_vm1 = vcmp.ne.s32.totalorder %v1922_v27, %v8640_v40  ;;  %v10431_v47 = vrot.slane %v1672_v0, 5  ;;  %v1270_v27 = vld [vmem:[#allocation3 + $0x7c] sm:$0xf]  ;;  %vm1920_vm7 = vmpackc.low %vm10407_vm3, %vm10402_vm2 }
 0x1bf   : > { %3518 = vst [vmem:[#allocation4 + $0x98] sm:$0xf] %v3211_v46  ;;  %v2978_v44 = vshrl.u32 %v10392_v7, 16  ;;  %v2987_v10 = vshrl.u32 %v10399_v23, 16  ;;  %v3221_v3 = vsel %vm8608_vm12, %v9706_v1, %v9745_v51  ;;  %v7652_v0 = vld [vmem:[#allocation4 + $0x2dc] sm:$0xf]  ;;  %vm1927_vm8 = vmpackc.low %vm10427_vm1, %vm10422_vm0  ;;  %v1665_v34 = vsel %vm8608_vm12, %v1660_v15, %v8579_v4 }
 0x1c0   : > { %12592 = vst [vmem:[#allocation42_spill] sm:$0xff] %v10413_v37  ;;  %v7023_v1 = vld [vmem:[#allocation4 + $0x2fc] sm:$0xf0]  ;;  %v3604_v51 = vld [vmem:[#allocation3 + $0x28] sm:$0xf]  ;;  %v2548_v22 = vunpack.c.h.b16 %v2260_v32  ;;  %vm2061_vm9 = vmpackc.low %vm10417_vm4, %vm10417_vm4  ;;  %v2990_v36 = vshll.u32 %v10399_v23, 16 }
 0x1c1   : > { %12593 = vst [vmem:[#allocation43_spill] sm:$0xff] %v10415_v17  ;;  %v3605_v5 = vld [vmem:[#allocation3 + $0x2c] sm:$0xf]  ;;  %v2980_v17 = vrot.slane %v2978_v44, 7  ;;  %v2981_v15 = vshll.u32 %v10392_v7, 16  ;;  %v10465_v39 = vrot.slane %v2987_v10, 7  ;;  %v1928_v44 = vunpack.c.l.b16 %v1665_v34  ;;  %v10481_v7 = vpop.f32.mrf.mxu2 }
 0x1c2   : > { %3802 = vst [vmem:[#allocation4 + $0x64] sm:$0xf] %v3770_v25  ;;  %v2547_v25 = vunpack.c.l.b16 %v2260_v32  ;;  %v10472_v32 = vsel %vm1920_vm7, %v1269_v11, 0  ;;  %v10479_v23 = vsel %vm1927_vm8, %v1270_v27, 0  ;;  %v7026_v10 = vor.u32 %v7652_v0, %v7023_v1  ;;  %v10498_v27 = vpop.f32.mrf.mxu0  ;;  %v6705_v0 = vld [vmem:[#allocation4 + $0x58] sm:$0xf] }
 0x1c3   : > { %3803 = vst [vmem:[#allocation4 + $0x88] sm:$0xf] %v3771_v56  ;;  %v1675_v56 = vsel %vm8608_vm12, %v8612_v21, %v10431_v47  ;;  %v10488_v30 = vsel %vm2546_vm6, %v8096_v31, 0  ;;  %v10496_v45 = vsel %vm2061_vm9, 65537, %v12556_v12  ;;  %v2996_v53 = vshrl.u32 %v10472_v32, 16 }
 0x1c4   : > { %3687 = vst [vmem:[#allocation4 + $0x80] sm:$0xf] %v3221_v3  ;;  %v1935_v46 = vunpack.c.l.b16 %v1675_v56  ;;  %v1936_v11 = vunpack.c.h.b16 %v1675_v56  ;;  %vm10501_vm10 = vcmp.ne.s32.totalorder %v2547_v25, %v8637_v38  ;;  %5687 = vmatmul.bf16.gmra.mxu0 %v7026_v10  ;;  %vm10508_vm11 = vcmp.ne.s32.totalorder %v2548_v22, %v8640_v40  ;;  %v8097_v37 = vld [vmem:[#allocation3 + $0x44] sm:$0xf]  ;;  %v3610_v10 = vld [vmem:[#allocation3 + $0x40] sm:$0xf] }
 0x1c5   : > { %3855 = vst [vmem:[#allocation4 + $0x44] sm:$0xf] %v3221_v3  ;;  %v3005_v1 = vshrl.u32 %v10479_v23, 16  ;;  %v2983_v25 = vor.u32 %v2981_v15, %v2980_v17  ;;  %v2985_v31 = vrot.slane %v2980_v17, 4  ;;  %vm10516_vm13 = vcmp.ne.s32.totalorder %v1928_v44, %v8637_v38  ;;  %vm2553_vm3 = vmpackc.low %vm10508_vm11, %vm10501_vm10  ;;  %v7059_v17 = vld [vmem:[#allocation4 + $0x344] sm:$0xf0] }
 0x1c6   : > { %3519 = vst [vmem:[#allocation4 + $0xbc] sm:$0xf] %v3221_v3  ;;  %v1929_v3 = vunpack.c.h.b16 %v1665_v34  ;;  %v7576_v34 = vld [vmem:[#allocation4 + $0x78] sm:$0xf0]  ;;  %v2992_v35 = vor.u32 %v2990_v36, %v10465_v39  ;;  %vm10527_vm15 = vcmp.ne.s32.totalorder %v1935_v46, %v8637_v38  ;;  %vm10532_vm2 = vcmp.ne.s32.totalorder %v1936_v11, %v8640_v40 }
 0x1c7   : > { %3636 = vst [vmem:[#allocation4 + $0xe8] sm:$0xf] %v3604_v51  ;;  %v7572_v51 = vld [vmem:[#allocation4 + $0x5c] sm:$0xf]  ;;  %v6706_v44 = vor.u32 %v7576_v34, %v6705_v0  ;;  %v2998_v36 = vrot.slane %v2996_v53, 7  ;;  %v3231_v11 = vsel %vm8608_vm12, %v9869_v29, %v9780_v14  ;;  %v3008_v0 = vshll.u32 %v10479_v23, 16  ;;  %vm1941_vm0 = vmpackc.low %vm10532_vm2, %vm10527_vm15 }
 0x1c8   : > { %3637 = vst [vmem:[#allocation4 + $0x10c] sm:$0xf] %v3605_v5  ;;  %v2976_v5 = vrot.slane %v10215_v9, 4  ;;  %vm10521_vm14 = vcmp.ne.s32.totalorder %v1929_v3, %v8640_v40  ;;  %v2999_v3 = vshll.u32 %v10472_v32, 16  ;;  %v2993_v46 = vsel %vm8686_vm5, %v2985_v31, %v2992_v35  ;;  %v1271_v32 = vld [vmem:[#allocation3 + $0x80] sm:$0xf] }
 0x1c9   : > { %12600 = vst [vmem:[#allocation44_spill] sm:$0xff] %v10498_v27  ;;  %v10513_v27 = vpop.f32.mrf.mxu1  ;;  %v1676_v34 = vshrl.u32 %v10351_v16, 16  ;;  %vm1934_vm4 = vmpackc.low %vm10521_vm14, %vm10516_vm13  ;;  %v3241_v35 = vsel %vm8608_vm12, %v10045_v60, %v9898_v8  ;;  %v1272_v14 = vld [vmem:[#allocation3 + $0x84] sm:$0xf]  ;;  %v12613_v29 = vshrl.u32 %v10242_v18, 16  ;;  %v2261_v23 = vrot.slane %v10299_v49, 4 }
 0x1ca   : > { %v2984_v15 = vsel %vm8686_vm5, %v2976_v5, %v2983_v25  ;;  %v10549_v5 = vrot.slane %v3005_v1, 7  ;;  %3089 = vst [vmem:[#allocation4 + $0x3cc] sm:$0xf] %v2993_v46  ;;  %v10574_v8 = vsel %vm8608_vm12, %v10199_v6, %v10051_v26  ;;  %v10580_v60 = vsel %vm8608_vm12, %v10250_v41, %v10105_v62  ;;  %v10592_v26 = vpop.f32.mrf.mxu2  ;;  %v10603_v33 = vpop.f32.mrf.mxu0 }
 0x1cb   : > { %v6707_v56 = vld [vmem:[#allocation4 + $0x7c] sm:$0xf0]  ;;  %3088 = vst [vmem:[#allocation4 + $0x3a8] sm:$0xf] %v2984_v15  ;;  %v10567_v16 = vrot.slane %v12613_v29, 4  ;;  %v10587_v18 = vsel %vm2553_vm3, %v8097_v37, 0  ;;  %v3001_v1 = vor.u32 %v2999_v3, %v2998_v36  ;;  %v2269_v9 = vsel %vm8686_vm5, %v2261_v23, %v8645_v43 }
 0x1cc   : > { %v6710_v22 = vor.u32 %v7572_v51, %v6707_v56  ;;  %3590 = vst [vmem:[#allocation4 + $0x36c] sm:$0xf] %v2984_v15  ;;  %v3298_v49 = vshll.u32 %v10488_v30, 16  ;;  %v2272_v53 = vshrl.u32 %v10496_v45, 16  ;;  %v755_v6 = vadd.s32 152, %v8538_v48 }
 0x1cd   : > { %5731 = vmatmul.bf16.gmra.mxu1 %v6706_v44  ;;  %3591 = vst [vmem:[#allocation4 + $0x390] sm:$0xf] %v2993_v46  ;;  %v10599_v62 = vsel %vm1934_vm4, %v1271_v32, 0  ;;  %v10601_v41 = vsel %vm1941_vm0, %v1272_v14, 0  ;;  %v2994_v52 = vrot.slane %v10465_v39, 4  ;;  %v1678_v51 = vrot.slane %v1676_v34, 4 }
 0x1ce   : > { %5820 = vmatmul.bf16.gmra.mxu2 %v6710_v22  ;;  %12614 = vst [vmem:[#allocation45_spill] sm:$0xff] %v10592_v26  ;;  %v7661_v56 = vld [vmem:[#allocation4 + $0x324] sm:$0xf]  ;;  %v3003_v25 = vrot.slane %v2998_v36, 4  ;;  %v3010_v31 = vor.u32 %v3008_v0, %v10549_v5  ;;  %v2275_v44 = vshll.u32 %v10496_v45, 16  ;;  %v3014_v3 = vshrl.u32 %v10599_v62, 16 }
 0x1cf   : > { %3758 = vst [vmem:[#allocation4 + $0x330] sm:$0xf] %v2984_v15  ;;  %v10616_v15 = vrot.slane %v2272_v53, 7  ;;  %v3002_v34 = vsel %vm8686_vm5, %v2994_v52, %v3001_v1  ;;  %v2554_v32 = vunpack.c.l.b16 %v2269_v9  ;;  %v2555_v14 = vunpack.c.h.b16 %v2269_v9 }
 0x1d0   : > { %3759 = vst [vmem:[#allocation4 + $0x354] sm:$0xf] %v2993_v46  ;;  %v3023_v46 = vshrl.u32 %v10601_v41, 16  ;;  %v7062_v29 = vor.u32 %v7661_v56, %v7059_v17  ;;  %v3011_v23 = vsel %vm8686_vm5, %v3003_v25, %v3010_v31  ;;  %v909_v37 = vand.u32 15, %v755_v6  ;;  %v6741_v6 = vld [vmem:[#allocation4 + $0xa0] sm:$0xf] }
 0x1d1   : > { %12615 = vst [vmem:[#allocation46_spill] sm:$0xff] %v10603_v33  ;;  %v10614_v39 = vpop.f32.mrf.mxu1  ;;  %v7682_v36 = vld [vmem:[#allocation4 + $0x3c8] sm:$0xf0]  ;;  %v1679_v45 = vor.u32 %v1678_v51, %v10431_v47  ;;  %v10630_v53 = vsel %vm8608_vm12, %v10252_v58, %v10154_v57  ;;  %v2277_v52 = vor.u32 %v2275_v44, %v10616_v15  ;;  %v7585_v47 = vld [vmem:[#allocation4 + $0xc0] sm:$0xf0]  ;;  %v3016_v1 = vrot.slane %v3014_v3, 7 }
 0x1d2   : > { %3688 = vst [vmem:[#allocation4 + $0xa4] sm:$0xf] %v3231_v11  ;;  %v7121_v22 = vld [vmem:[#allocation4 + $0x3a8] sm:$0xf]  ;;  %v10640_v51 = vrot.slane %v3023_v46, 7  ;;  %v3026_v57 = vshll.u32 %v10601_v41, 16  ;;  %v3285_v58 = vor.u32 %v10286_v55, %v10284_v61  ;;  %vm10648_vm1 = vcmp.ne.s32.totalorder %v2554_v32, %v8637_v38  ;;  %v10663_v9 = vpop.f32.mrf.mxu0 }
 0x1d3   : > { %3689 = vst [vmem:[#allocation4 + $0xc8] sm:$0xf] %v3241_v35  ;;  %v7122_v0 = vor.u32 %v7682_v36, %v7121_v22  ;;  %vm10653_vm6 = vcmp.ne.s32.totalorder %v2555_v14, %v8640_v40  ;;  %vm10659_vm7 = vcmp.lt.s32.totalorder %v909_v37, 15  ;;  %v1680_v55 = vrot.slane %v1679_v45, 4 }
 0x1d4   : > { %12616 = vst [vmem:[#allocation47_spill] sm:$0xff] %v10614_v39  ;;  %5692 = vmatmul.bf16.gmra.mxu0 %v7062_v29  ;;  %v6742_v22 = vor.u32 %v7585_v47, %v6741_v6  ;;  %v3302_v17 = vshrl.u32 %v10488_v30, 16  ;;  %v3308_v44 = vshll.u32 %v10587_v18, 16  ;;  %v2278_v36 = vsel %vm8686_vm5, %v8674_v59, %v2277_v52  ;;  %vm2560_vm8 = vmpackc.low %vm10653_vm6, %vm10648_vm1 }
 0x1d5   : > { %3520 = vst [vmem:[#allocation4 + $0xe0] sm:$0xf] %v3231_v11  ;;  %5435 = vmatmul.bf16.gmra.mxu3 %v7122_v0  ;;  %v2279_v3 = vrot.slane %v10616_v15, 4  ;;  %v3012_v0 = vrot.slane %v10549_v5, 4  ;;  %vm2063_vm9 = vmpackc.low %vm10659_vm7, %vm10659_vm7  ;;  %v3021_v29 = vrot.slane %v3016_v1, 4  ;;  %v3028_v37 = vor.u32 %v3026_v57, %v10640_v51 }
 0x1d6   : > { %3521 = vst [vmem:[#allocation4 + $0x104] sm:$0xf] %v3241_v35  ;;  %v10685_v15 = vrot.slane %v3298_v49, 5  ;;  %v1685_v5 = vsel %vm8608_vm12, %v1680_v55, %v8579_v4  ;;  %v1695_v45 = vsel %vm8608_vm12, %v8612_v21, %v10411_v13  ;;  %v10696_v52 = vrot.slane %v3302_v17, 4  ;;  %v7670_v55 = vld [vmem:[#allocation4 + $0x36c] sm:$0xf] }
 0x1d7   : > { %3856 = vst [vmem:[#allocation4 + $0x68] sm:$0xf] %v3231_v11  ;;  %v10636_v11 = vsel %vm8608_vm12, %v10260_v28, %v10284_v61  ;;  %v3295_v28 = vor.u32 %v10567_v16, %v10297_v2  ;;  %v10698_v6 = vrot.slane %v3308_v44, 5  ;;  %v2561_v30 = vunpack.c.l.b16 %v2278_v36  ;;  %v3606_v17 = vld [vmem:[#allocation3 + $0x30] sm:$0xf]  ;;  %v7768_v44 = vld [vmem:[%s12303_s3 + $0x1f8] sm:$0xff] }
 0x1d8   : > { %3857 = vst [vmem:[#allocation4 + $0x8c] sm:$0xf] %v3241_v35  ;;  %v3017_v35 = vshll.u32 %v10599_v62, 16  ;;  %v10657_v62 = vpop.f32.mrf.mxu2  ;;  %v2562_v49 = vunpack.c.h.b16 %v2278_v36  ;;  %v1949_v56 = vunpack.c.l.b16 %v1695_v45  ;;  %v1950_v61 = vunpack.c.h.b16 %v1695_v45  ;;  %5985 = vmatpush.bf16.msra.mxu0 %v7768_v44  ;;  %v3608_v44 = vld [vmem:[#allocation3 + $0x38] sm:$0xf] }
 0x1d9   : > { %3090 = vst [vmem:[#allocation4 + $0x3f0] sm:$0xf] %v3002_v34  ;;  %v7581_v41 = vld [vmem:[#allocation4 + $0xa4] sm:$0xf]  ;;  %v10675_v46 = vpop.f32.mrf.mxu1  ;;  %v3296_v14 = vrot.slane %v3295_v28, 4  ;;  %v1943_v28 = vunpack.c.h.b16 %v1685_v5  ;;  %vm10729_vm10 = vcmp.ne.s32.totalorder %v2561_v30, %v8637_v38  ;;  %v10760_v30 = vadd.s32 168, %v8538_v48 }
 0x1da   : > { %3091 = vst [vmem:[#allocation4 + $0x414] sm:$0xf] %v3011_v23  ;;  %v6743_v31 = vld [vmem:[#allocation4 + $0xc4] sm:$0xf0]  ;;  %v3019_v32 = vor.u32 %v3017_v35, %v3016_v1  ;;  %v10714_v1 = vsel %vm2063_vm9, 65537, %v12556_v12  ;;  %v2287_v35 = vsel %vm8686_vm5, %v2279_v3, %v8645_v43  ;;  %vm10734_vm11 = vcmp.ne.s32.totalorder %v2562_v49, %v8640_v40 }
 0x1db   : > { %3592 = vst [vmem:[#allocation4 + $0x3b4] sm:$0xf] %v3002_v34  ;;  %v6746_v16 = vor.u32 %v7581_v41, %v6743_v31  ;;  %v3029_v31 = vsel %vm8686_vm5, %v3021_v29, %v3028_v37  ;;  %v2568_v3 = vunpack.c.l.b16 %v2287_v35  ;;  %v10742_v29 = vpop.f32.mrf.mxu0  ;;  %vm10750_vm14 = vcmp.ne.s32.totalorder %v1943_v28, %v8640_v40  ;;  %vm2567_vm3 = vmpackc.low %vm10734_vm11, %vm10729_vm10 }
 0x1dc   : > { %12623 = vst [vmem:[#allocation48_spill] sm:$0xff] %v10663_v9  ;;  %v3020_v57 = vsel %vm8686_vm5, %v3012_v0, %v3019_v32  ;;  %v2569_v0 = vunpack.c.h.b16 %v2287_v35  ;;  %vm10755_vm15 = vcmp.ne.s32.totalorder %v1949_v56, %v8637_v38  ;;  %vm10763_vm2 = vcmp.ne.s32.totalorder %v1950_v61, %v8640_v40  ;;  %v1273_v61 = vld [vmem:[#allocation3 + $0x88] sm:$0xf] }
 0x1dd   : > { %3593 = vst [vmem:[#allocation4 + $0x3d8] sm:$0xf] %v3011_v23  ;;  %5736 = vmatmul.bf16.gmra.mxu1 %v6742_v22  ;;  %v10780_v56 = vsel %vm8608_vm12, %v3296_v14, %v10685_v15  ;;  %v2293_v14 = vshll.u32 %v10714_v1, 16  ;;  %vm10796_vm0 = vcmp.ne.s32.totalorder %v2568_v3, %v8637_v38  ;;  %vm1955_vm1 = vmpackc.low %vm10763_vm2, %vm10755_vm15  ;;  %v8099_v3 = vld [vmem:[#allocation3 + $0x4c] sm:$0xf] }
 0x1de   : > { %3760 = vst [vmem:[#allocation4 + $0x378] sm:$0xf] %v3002_v34  ;;  %5825 = vmatmul.bf16.gmra.mxu2 %v6746_v16  ;;  %v3286_v34 = vrot.slane %v3285_v58, 4  ;;  %v1942_v58 = vunpack.c.l.b16 %v1685_v5  ;;  %v7095_v16 = vld [vmem:[#allocation4 + $0x38c] sm:$0xf0]  ;;  %vm10811_vm6 = vcmp.ne.s32.totalorder %v2569_v0, %v8640_v40  ;;  %v923_v5 = vand.u32 15, %v10760_v30 }
 0x1df   : > { %3761 = vst [vmem:[#allocation4 + $0x39c] sm:$0xf] %v3011_v23  ;;  %v3312_v23 = vshrl.u32 %v10587_v18, 16  ;;  %v8098_v18 = vld [vmem:[#allocation3 + $0x48] sm:$0xf]  ;;  %v7098_v45 = vor.u32 %v7670_v55, %v7095_v16  ;;  %vm2574_vm7 = vmpackc.low %vm10811_vm6, %vm10796_vm0 }
 0x1e0   : > { %3690 = vst [vmem:[#allocation4 + $0xec] sm:$0xf] %v10574_v8  ;;  %v10706_v47 = vsel %vm2560_vm8, %v8098_v18, 0  ;;  %v7157_v25 = vld [vmem:[#allocation4 + $0x3f0] sm:$0xf]  ;;  %v10739_v36 = vpop.f32.mrf.mxu2  ;;  %vm10745_vm13 = vcmp.ne.s32.totalorder %v1942_v58, %v8637_v38  ;;  %v7728_v58 = vld [vmem:[%s12303_s3 + $0xb8] sm:$0xff]  ;;  %v10775_v28 = vsel %vm8608_vm12, %v3286_v34, %v10297_v2  ;;  %v3305_v2 = vor.u32 %v10696_v52, %v10685_v15 }
 0x1e1   : > { %3691 = vst [vmem:[#allocation4 + $0x110] sm:$0xf] %v10580_v60  ;;  %v7691_v41 = vld [vmem:[#allocation4 + $0x410] sm:$0xf0]  ;;  %v10726_v22 = vrot.slane %v3312_v23, 4  ;;  %v10767_v35 = vpop.f32.mrf.mxu1  ;;  %vm1948_vm4 = vmpackc.low %vm10750_vm14, %vm10745_vm13  ;;  %5540 = vmatpush.bf16.msrb.mxu3 %v7728_v58  ;;  %vm10870_vm8 = vcmp.lt.s32.totalorder %v923_v5, 15 }
 0x1e2   : > { %3522 = vst [vmem:[#allocation4 + $0x128] sm:$0xf] %v10574_v8  ;;  %v7158_v32 = vor.u32 %v7691_v41, %v7157_v25  ;;  %v6777_v18 = vld [vmem:[#allocation4 + $0xe8] sm:$0xf]  ;;  %v7594_v41 = vld [vmem:[#allocation4 + $0x108] sm:$0xf0]  ;;  %vm2065_vm9 = vmpackc.low %vm10870_vm8, %vm10870_vm8 }
 0x1e3   : > { %3523 = vst [vmem:[#allocation4 + $0x14c] sm:$0xf] %v10580_v60  ;;  %v1274_v55 = vld [vmem:[#allocation3 + $0x8c] sm:$0xf]  ;;  %v3315_v34 = vor.u32 %v10726_v22, %v10698_v6  ;;  %v7727_v15 = vld [vmem:[%s12303_s3 + $0xb0] sm:$0xff]  ;;  %v6778_v22 = vor.u32 %v7594_v41, %v6777_v18  ;;  %v10830_v0 = vsel %vm1948_vm4, %v1273_v61, 0 }
 0x1e4   : > { %3858 = vst [vmem:[#allocation4 + $0xb0] sm:$0xf] %v10574_v8  ;;  %v3318_v8 = vshll.u32 %v10706_v47, 16  ;;  %5697 = vmatmul.bf16.gmra.mxu0 %v7098_v45  ;;  %v10833_v45 = vsel %vm1955_vm1, %v1274_v55, 0  ;;  %v3607_v23 = vld [vmem:[#allocation3 + $0x34] sm:$0xf] }
 0x1e5   : > { %3859 = vst [vmem:[#allocation4 + $0xd4] sm:$0xf] %v10580_v60  ;;  %v2290_v60 = vshrl.u32 %v10714_v1, 16  ;;  %5440 = vmatmul.bf16.gmra.mxu3 %v7158_v32  ;;  %v10821_v32 = vsel %vm2567_vm3, %v8099_v3, 0  ;;  %v3306_v30 = vrot.slane %v3305_v2, 4  ;;  %v3316_v49 = vrot.slane %v3315_v34, 4 }
 0x1e6   : > { %12628 = vst [vmem:[#allocation49_spill] sm:$0xff] %v10739_v36  ;;  %5541 = vmatpush.bf16.msrb.mxu3 %v7727_v15  ;;  %v10848_v18 = vrot.slane %v3318_v8, 5  ;;  %v7767_v41 = vld [vmem:[%s12303_s3 + $0x1f0] sm:$0xff]  ;;  %v3328_v61 = vshll.u32 %v10821_v32, 16  ;;  %v3548_v55 = vshrl.u32 %v10830_v0, 16  ;;  %v3332_v8 = vshrl.u32 %v10821_v32, 16 }
 0x1e7   : > { %3092 = vst [vmem:[#allocation4 + $0x438] sm:$0xf] %v3020_v57  ;;  %v10808_v52 = vrot.slane %v2290_v60, 7  ;;  %v3322_v60 = vshrl.u32 %v10706_v47, 16  ;;  %v3557_v47 = vshrl.u32 %v10833_v45, 16  ;;  %5986 = vmatpush.bf16.msra.mxu0 %v7767_v41 }
 0x1e8   : > { %12629 = vst [vmem:[#allocation50_spill] sm:$0xff] %v10742_v29  ;;  %v6779_v25 = vld [vmem:[#allocation4 + $0x10c] sm:$0xf0]  ;;  %v10843_v37 = vpop.f32.mrf.mxu2  ;;  %v7679_v1 = vld [vmem:[#allocation4 + $0x3b4] sm:$0xf]  ;;  %v10882_v3 = vrot.slane %v3548_v55, 7 }
 0x1e9   : > { %3093 = vst [vmem:[#allocation4 + $0x45c] sm:$0xf] %v3029_v31  ;;  %v2295_v58 = vor.u32 %v2293_v14, %v10808_v52  ;;  %v8100_v2 = vld [vmem:[#allocation3 + $0x50] sm:$0xf]  ;;  %v2297_v14 = vrot.slane %v10808_v52, 4  ;;  %v3551_v52 = vshll.u32 %v10830_v0, 16 }
 0x1ea   : > { %3594 = vst [vmem:[#allocation4 + $0x3fc] sm:$0xf] %v3020_v57  ;;  %v10885_v32 = vrot.slane %v3557_v47, 7  ;;  %v3121_v0 = vld [vmem:[#allocation3 + $0x74] sm:$0xf]  ;;  %v7726_v47 = vld [vmem:[%s12303_s3 + $0xa8] sm:$0xff] }
 0x1eb   : > { %3595 = vst [vmem:[#allocation4 + $0x420] sm:$0xf] %v3029_v31  ;;  %v3609_v55 = vld [vmem:[#allocation3 + $0x3c] sm:$0xf]  ;;  %5542 = vmatpush.bf16.msrb.mxu3 %v7726_v47  ;;  %v3621_v29 = vld [vmem:[#allocation3 + $0x6c] sm:$0xf] }
 0x1ec   : > { %12638 = vst [vmem:[#allocation51_spill] sm:$0xff] %v10767_v35 }
 0x1ed   : > { %3762 = vst [vmem:[#allocation4 + $0x3c0] sm:$0xf] %v3020_v57  ;;  %5741 = vmatmul.bf16.gmra.mxu1 %v6778_v22  ;;  %v2296_v57 = vsel %vm8686_vm5, %v8674_v59, %v2295_v58  ;;  %v7131_v22 = vld [vmem:[#allocation4 + $0x3d4] sm:$0xf0] }
 0x1ee   : > { %3763 = vst [vmem:[#allocation4 + $0x3e4] sm:$0xf] %v3029_v31  ;;  %v7590_v31 = vld [vmem:[#allocation4 + $0xec] sm:$0xf]  ;;  %v7193_v15 = vld [vmem:[#allocation4 + $0x438] sm:$0xf]  ;;  %v2576_v58 = vunpack.c.h.b16 %v2296_v57  ;;  %v7134_v41 = vor.u32 %v7679_v1, %v7131_v22 }
 0x1ef   : > { %3692 = vst [vmem:[#allocation4 + $0x134] sm:$0xf] %v10630_v53  ;;  %v6782_v16 = vor.u32 %v7590_v31, %v6779_v25  ;;  %v10851_v25 = vpop.f32.mrf.mxu0  ;;  %v10875_v31 = vpop.f32.mrf.mxu1  ;;  %v10909_v1 = vrot.slane %v3328_v61, 5  ;;  %v10911_v22 = vrot.slane %v3332_v8, 4  ;;  %v7763_v61 = vld [vmem:[%s12303_s3 + $0x1d0] sm:$0xff] }
 0x1f0   : > { %3693 = vst [vmem:[#allocation4 + $0x158] sm:$0xf] %v10636_v11  ;;  %vm10931_vm11 = vcmp.ne.s32.totalorder %v2576_v58, %v8640_v40 }
 0x1f1   : > { %3524 = vst [vmem:[#allocation4 + $0x170] sm:$0xf] %v10630_v53  ;;  %5830 = vmatmul.bf16.gmra.mxu2 %v6782_v16  ;;  %v7700_v16 = vld [vmem:[#allocation4 + $0x458] sm:$0xf0] }
 0x1f2   : > { %3525 = vst [vmem:[#allocation4 + $0x194] sm:$0xf] %v10636_v11  ;;  %v7194_v5 = vor.u32 %v7700_v16, %v7193_v15  ;;  %v3311_v15 = vsel %vm8608_vm12, %v3306_v30, %v10698_v6  ;;  %v10907_v16 = vpop.f32.mrf.mxu2  ;;  %v10919_v6 = vsel %vm2065_vm9, 65537, %v12556_v12  ;;  %v7688_v8 = vld [vmem:[#allocation4 + $0x3fc] sm:$0xf] }
 0x1f3   : > { %3860 = vst [vmem:[#allocation4 + $0xf8] sm:$0xf] %v10630_v53  ;;  %v10857_v53 = vrot.slane %v3322_v60, 4  ;;  %v3560_v60 = vshll.u32 %v10833_v45, 16 }
 0x1f4   : > { %12643 = vst [vmem:[#allocation52_spill] sm:$0xff] %v10851_v25  ;;  %5702 = vmatmul.bf16.gmra.mxu0 %v7134_v41 }
 0x1f5   : > { %3861 = vst [vmem:[#allocation4 + $0x11c] sm:$0xf] %v10636_v11  ;;  %v10868_v11 = vsel %vm2574_vm7, %v8100_v2, 0  ;;  %5445 = vmatmul.bf16.gmra.mxu3 %v7194_v5  ;;  %v7766_v2 = vld [vmem:[%s12303_s3 + $0x1e8] sm:$0xff]  ;;  %v7765_v5 = vld [vmem:[%s12303_s3 + $0x1e0] sm:$0xff]  ;;  %v3562_v47 = vor.u32 %v3560_v60, %v10885_v32  ;;  %v759_v60 = vadd.s32 184, %v8538_v48 }
 0x1f6   : > { %3638 = vst [vmem:[#allocation4 + $0x130] sm:$0xf] %v3606_v17  ;;  %v3120_v17 = vld [vmem:[#allocation3 + $0x70] sm:$0xf]  ;;  %5987 = vmatpush.bf16.msra.mxu0 %v7766_v2  ;;  %v7599_v34 = vld [vmem:[#allocation4 + $0x134] sm:$0xf]  ;;  %v3335_v2 = vor.u32 %v10911_v22, %v10909_v1 }
 0x1f7   : > { %3639 = vst [vmem:[#allocation4 + $0x154] sm:$0xf] %v3607_v23  ;;  %v2575_v23 = vunpack.c.l.b16 %v2296_v57  ;;  %v6815_v45 = vld [vmem:[#allocation4 + $0x154] sm:$0xf0]  ;;  %v10921_v30 = vpop.f32.mrf.mxu0  ;;  %v10943_v58 = vpop.f32.mrf.mxu1 }
 0x1f8   : > { %3694 = vst [vmem:[#allocation4 + $0x17c] sm:$0xf] %v10775_v28 }
 0x1f9   : > { %3695 = vst [vmem:[#allocation4 + $0x1a0] sm:$0xf] %v10780_v56  ;;  %vm10926_vm10 = vcmp.ne.s32.totalorder %v2575_v23, %v8637_v38  ;;  %v6818_v23 = vor.u32 %v7599_v34, %v6815_v45  ;;  %v3172_v45 = vshrl.u32 %v8748_v50, 16 }
 0x1fa   : > { %3526 = vst [vmem:[#allocation4 + $0x1b8] sm:$0xf] %v10775_v28  ;;  %vm2581_vm13 = vmpackc.low %vm10931_vm11, %vm10926_vm10  ;;  %5988 = vmatpush.bf16.msra.mxu0 %v7765_v5  ;;  %v2311_v5 = vshll.u32 %v10919_v6, 16 }
 0x1fb   : > { %3527 = vst [vmem:[#allocation4 + $0x1dc] sm:$0xf] %v10780_v56 }
 0x1fc   : > { %3862 = vst [vmem:[#allocation4 + $0x140] sm:$0xf] %v10775_v28  ;;  %v3321_v28 = vsel %vm8608_vm12, %v3316_v49, %v10848_v18  ;;  %v3325_v49 = vor.u32 %v10857_v53, %v10848_v18  ;;  %v7725_v18 = vld [vmem:[%s12303_s3 + $0xa0] sm:$0xff]  ;;  %v3338_v53 = vshll.u32 %v10868_v11, 16 }
 0x1fd   : > { %3863 = vst [vmem:[#allocation4 + $0x164] sm:$0xf] %v10780_v56  ;;  %v6813_v56 = vld [vmem:[#allocation4 + $0x130] sm:$0xf]  ;;  %5543 = vmatpush.bf16.msrb.mxu3 %v7725_v18 }
 0x1fe   : > { %12646 = vst [vmem:[#allocation53_spill] sm:$0xff] %v10907_v16  ;;  %v7603_v57 = vld [vmem:[#allocation4 + $0x150] sm:$0xf0] }
 0x1ff   : > { %3152 = vst [vmem:[#allocation4 + $0x3ac] sm:$0xf] %v3120_v17  ;;  %v3553_v17 = vor.u32 %v3551_v52, %v10882_v3  ;;  %v6814_v41 = vor.u32 %v7603_v57, %v6813_v56  ;;  %v3546_v52 = vrot.slane %v10640_v51, 4  ;;  %v7764_v56 = vld [vmem:[%s12303_s3 + $0x1d8] sm:$0xff]  ;;  %v10963_v57 = vrot.slane %v3338_v53, 5 }
 0x200   : > { %12647 = vst [vmem:[#allocation54_spill] sm:$0xff] %v10921_v30  ;;  %v7669_v53 = vld [vmem:[#allocation4 + $0x364] sm:$0xf]  ;;  %5989 = vmatpush.bf16.msra.mxu0 %v7764_v56  ;;  %v6697_v30 = vld [vmem:[#allocation4 + $0x50] sm:$0xf] }
 0x201   : > { %3153 = vst [vmem:[#allocation4 + $0x3d0] sm:$0xf] %v3121_v0  ;;  %v2308_v0 = vshrl.u32 %v10919_v6, 16  ;;  %5835 = vmatmul.bf16.gmra.mxu2 %v6818_v23  ;;  %5746 = vmatmul.bf16.gmra.mxu1 %v6814_v41  ;;  %v3554_v50 = vsel %vm8686_vm5, %v3546_v52, %v3553_v17  ;;  %v7087_v23 = vld [vmem:[#allocation4 + $0x384] sm:$0xf0]  ;;  %v937_v17 = vand.u32 15, %v759_v60  ;;  %v10979_v41 = vpop.f32.mrf.mxu2 }
 0x202   : > { %3640 = vst [vmem:[#allocation4 + $0x178] sm:$0xf] %v3608_v44  ;;  %v2305_v44 = vsel %vm8686_vm5, %v2297_v14, %v8645_v43  ;;  %v3326_v14 = vrot.slane %v3325_v49, 4  ;;  %v3336_v52 = vrot.slane %v3335_v2, 4  ;;  %v3342_v60 = vshrl.u32 %v10868_v11, 16  ;;  %v7723_v6 = vld [vmem:[%s12303_s3 + $0x90] sm:$0xff] }
 0x203   : > { %12652 = vst [vmem:[#allocation55_spill] sm:$0xff] %v10943_v58  ;;  %v2582_v51 = vunpack.c.l.b16 %v2305_v44  ;;  %v2583_v34 = vunpack.c.h.b16 %v2305_v44  ;;  %v10974_v49 = vrot.slane %v2308_v0, 7  ;;  %v7167_v44 = vld [vmem:[#allocation4 + $0x41c] sm:$0xf0]  ;;  %v3122_v0 = vld [vmem:[#allocation3 + $0x78] sm:$0xf] }
 0x204   : > { %3641 = vst [vmem:[#allocation4 + $0x19c] sm:$0xf] %v3609_v55  ;;  %v3555_v55 = vrot.slane %v10882_v3, 4  ;;  %v8101_v3 = vld [vmem:[#allocation3 + $0x54] sm:$0xf]  ;;  %vm11006_vm3 = vcmp.lt.s32.totalorder %v937_v17, 15  ;;  %v7170_v11 = vor.u32 %v7688_v8, %v7167_v44  ;;  %5990 = vmatpush.bf16.msra.mxu0 %v7763_v61 }
 0x205   : > { %3696 = vst [vmem:[#allocation4 + $0x1c4] sm:$0xf] %v3311_v15  ;;  %v10972_v22 = vsel %vm2581_vm13, %v8101_v3, 0  ;;  %vm10985_vm14 = vcmp.ne.s32.totalorder %v2582_v51, %v8637_v38  ;;  %vm10990_vm15 = vcmp.ne.s32.totalorder %v2583_v34, %v8640_v40  ;;  %v2313_v51 = vor.u32 %v2311_v5, %v10974_v49  ;;  %v10999_v34 = vpop.f32.mrf.mxu1  ;;  %v3611_v2 = vld [vmem:[#allocation3 + $0x44] sm:$0xf]  ;;  %v7762_v5 = vld [vmem:[%s12303_s3 + $0x1c8] sm:$0xff]  ;;  %vm2067_vm4 = vmpackc.low %vm11006_vm3, %vm11006_vm3 }
 0x206   : > { %3697 = vst [vmem:[#allocation4 + $0x1e8] sm:$0xf] %v3321_v28  ;;  %v3563_v18 = vsel %vm8686_vm5, %v3555_v55, %v3562_v47  ;;  %v3174_v47 = vrot.slane %v3172_v45, 4  ;;  %v3123_v55 = vld [vmem:[#allocation3 + $0x7c] sm:$0xf]  ;;  %v3348_v56 = vshll.u32 %v10972_v22, 16  ;;  %v7090_v3 = vor.u32 %v7669_v53, %v7087_v23  ;;  %vm2588_vm2 = vmpackc.low %vm10990_vm15, %vm10985_vm14  ;;  %5707 = vmatmul.bf16.gmra.mxu0 %v7170_v11 }
 0x207   : > { %3528 = vst [vmem:[#allocation4 + $0x200] sm:$0xf] %v3311_v15  ;;  %v3352_v58 = vshrl.u32 %v10972_v22, 16  ;;  %v7724_v22 = vld [vmem:[%s12303_s3 + $0x98] sm:$0xff]  ;;  %v3341_v53 = vsel %vm8608_vm12, %v3336_v52, %v10963_v57  ;;  %v3344_v8 = vrot.slane %v3342_v60, 4  ;;  %v2314_v61 = vsel %vm8686_vm5, %v8674_v59, %v2313_v51 }
 0x208   : > { %3529 = vst [vmem:[#allocation4 + $0x224] sm:$0xf] %v3321_v28  ;;  %5519 = vmatmul.bf16.vlgmr.msra.gmra.mxu3 %v7090_v3  ;;  %v8102_v44 = vld [vmem:[#allocation3 + $0x58] sm:$0xf]  ;;  %5991 = vmatpush.bf16.msra.mxu0 %v7762_v5  ;;  %v11043_v52 = vrot.slane %v3348_v56, 5  ;;  %v2590_v11 = vunpack.c.h.b16 %v2314_v61 }
 0x209   : > { %3864 = vst [vmem:[#allocation4 + $0x188] sm:$0xf] %v3311_v15  ;;  %v6849_v23 = vld [vmem:[#allocation4 + $0x178] sm:$0xf]  ;;  %5544 = vmatpush.bf16.msrb.mxu3 %v7724_v22  ;;  %v7761_v15 = vld [vmem:[%s12303_s3 + $0x1c0] sm:$0xff]  ;;  %v3354_v3 = vrot.slane %v3352_v58, 4  ;;  %v11047_v22 = vpop.f32.mrf.mxu2  ;;  %v3345_v5 = vor.u32 %v3344_v8, %v10963_v57 }
 0x20a   : > { %3865 = vst [vmem:[#allocation4 + $0x1ac] sm:$0xf] %v3321_v28  ;;  %v10994_v28 = vpop.f32.mrf.mxu0  ;;  %v3124_v58 = vld [vmem:[#allocation3 + $0x80] sm:$0xf]  ;;  %v3612_v45 = vld [vmem:[#allocation3 + $0x48] sm:$0xf]  ;;  %vm11069_vm1 = vcmp.ne.s32.totalorder %v2590_v11, %v8640_v40 }
 0x20b   : > { %3596 = vst [vmem:[#allocation4 + $0x444] sm:$0xf] %v3554_v50  ;;  %v7612_v17 = vld [vmem:[#allocation4 + $0x198] sm:$0xf0] }
 0x20c   : > { %12657 = vst [vmem:[#allocation56_spill] sm:$0xff] %v10994_v28  ;;  %v6850_v51 = vor.u32 %v7612_v17, %v6849_v23  ;;  %5992 = vmatpush.bf16.msra.mxu0 %v7761_v15  ;;  %v3125_v17 = vld [vmem:[#allocation3 + $0x84] sm:$0xf] }
 0x20d   : > { %3597 = vst [vmem:[#allocation4 + $0x468] sm:$0xf] %v3563_v18  ;;  %5545 = vmatpush.bf16.msrb.mxu3 %v7723_v6  ;;  %v11061_v8 = vpop.f32.mrf.mxu1 }
 0x20e   : > { %3764 = vst [vmem:[#allocation4 + $0x408] sm:$0xf] %v3554_v50  ;;  %v6851_v50 = vld [vmem:[#allocation4 + $0x19c] sm:$0xf0] }
 0x20f   : > { %3765 = vst [vmem:[#allocation4 + $0x42c] sm:$0xf] %v3563_v18  ;;  %v3331_v18 = vsel %vm8608_vm12, %v3326_v14, %v10909_v1  ;;  %v11030_v1 = vsel %vm2588_vm2, %v8102_v44, 0  ;;  %v761_v14 = vadd.s32 200, %v8538_v48  ;;  %v6887_v44 = vld [vmem:[#allocation4 + $0x1e4] sm:$0xf0] }
 0x210   : > { %3154 = vst [vmem:[#allocation4 + $0x3f4] sm:$0xf] %v3122_v0  ;;  %v7608_v0 = vld [vmem:[#allocation4 + $0x17c] sm:$0xf] }
 0x211   : > { %3155 = vst [vmem:[#allocation4 + $0x418] sm:$0xf] %v3123_v55  ;;  %v2315_v55 = vrot.slane %v10974_v49, 4  ;;  %v6854_v60 = vor.u32 %v7608_v0, %v6851_v50  ;;  %v2103_v49 = vsel %vm2067_vm4, 65537, %v12556_v12  ;;  %v951_v56 = vand.u32 15, %v761_v14  ;;  %5751 = vmatmul.bf16.gmra.mxu1 %v6850_v51 }
 0x212   : > { %3642 = vst [vmem:[#allocation4 + $0x1c0] sm:$0xf] %v3610_v10  ;;  %v3175_v10 = vor.u32 %v3174_v47, %v9702_v42  ;;  %v2589_v47 = vunpack.c.l.b16 %v2314_v61  ;;  %v11056_v50 = vpop.f32.mrf.mxu0  ;;  %v3613_v14 = vld [vmem:[#allocation3 + $0x4c] sm:$0xf]  ;;  %v3355_v0 = vor.u32 %v3354_v3, %v11043_v52  ;;  %v7123_v51 = vld [vmem:[#allocation4 + $0x3cc] sm:$0xf0] }
 0x213   : > { %3643 = vst [vmem:[#allocation4 + $0x1e4] sm:$0xf] %v3611_v2  ;;  %v3358_v2 = vshll.u32 %v11030_v1, 16  ;;  %5840 = vmatmul.bf16.gmra.mxu2 %v6854_v60  ;;  %v2323_v57 = vsel %vm8686_vm5, %v2315_v55, %v8645_v43  ;;  %vm11076_vm6 = vcmp.lt.s32.totalorder %v951_v56, 15  ;;  %v7678_v60 = vld [vmem:[#allocation4 + $0x3ac] sm:$0xf]  ;;  %v12669_v56 = vsel %vm8608_vm12, %v9698_v19, %v9702_v42  ;;  %v11109_v19 = vpop.f32.mrf.mxu2 }
 0x214   : > { %3698 = vst [vmem:[#allocation4 + $0x20c] sm:$0xf] %v3331_v18  ;;  %v3176_v23 = vrot.slane %v3175_v10, 4  ;;  %vm11064_vm0 = vcmp.ne.s32.totalorder %v2589_v47, %v8637_v38  ;;  %v3346_v10 = vrot.slane %v3345_v5, 4  ;;  %v2596_v6 = vunpack.c.l.b16 %v2323_v57  ;;  %v7697_v3 = vld [vmem:[#allocation4 + $0x444] sm:$0xf]  ;;  %vm2069_vm10 = vmpackc.low %vm11076_vm6, %vm11076_vm6 }
 0x215   : > { %3699 = vst [vmem:[#allocation4 + $0x230] sm:$0xf] %v3341_v53  ;;  %v11074_v15 = vrot.slane %v3358_v2, 5  ;;  %v2597_v55 = vunpack.c.h.b16 %v2323_v57  ;;  %vm2595_vm7 = vmpackc.low %vm11069_vm1, %vm11064_vm0  ;;  %v7203_v11 = vld [vmem:[#allocation4 + $0x464] sm:$0xf0]  ;;  %v2329_v5 = vshll.u32 %v2103_v49, 16 }
 0x216   : > { %12660 = vst [vmem:[#allocation57_spill] sm:$0xff] %v11047_v22  ;;  %v3181_v47 = vsel %vm8608_vm12, %v3176_v23, %v9497_v24  ;;  %v3362_v24 = vshrl.u32 %v11030_v1, 16  ;;  %v763_v23 = vadd.s32 216, %v8538_v48  ;;  %v8103_v57 = vld [vmem:[#allocation3 + $0x5c] sm:$0xf]  ;;  %vm11097_vm8 = vcmp.ne.s32.totalorder %v2596_v6, %v8637_v38 }
 0x217   : > { %3530 = vst [vmem:[#allocation4 + $0x248] sm:$0xf] %v3331_v18  ;;  %vm11102_vm9 = vcmp.ne.s32.totalorder %v2597_v55, %v8640_v40  ;;  %v7206_v42 = vor.u32 %v7697_v3, %v7203_v11  ;;  %v3614_v22 = vld [vmem:[#allocation3 + $0x50] sm:$0xf] }
 0x218   : > { %12661 = vst [vmem:[#allocation58_spill] sm:$0xff] %v11056_v50  ;;  %vm2602_vm11 = vmpackc.low %vm11102_vm9, %vm11097_vm8  ;;  %v965_v3 = vand.u32 15, %v763_v23  ;;  %v3364_v11 = vrot.slane %v3362_v24, 4  ;;  %v3617_v50 = vld [vmem:[#allocation3 + $0x5c] sm:$0xf] }
 0x219   : > { %3531 = vst [vmem:[#allocation4 + $0x26c] sm:$0xf] %v3341_v53  ;;  %5712 = vmatmul.bf16.gmra.mxu0 %v7206_v42  ;;  %v6885_v55 = vld [vmem:[#allocation4 + $0x1c0] sm:$0xf] }
 0x21a   : > { %3866 = vst [vmem:[#allocation4 + $0x1d0] sm:$0xf] %v3331_v18  ;;  %v2326_v18 = vshrl.u32 %v2103_v49, 16  ;;  %v11111_v1 = vpop.f32.mrf.mxu0  ;;  %vm11143_vm13 = vcmp.lt.s32.totalorder %v965_v3, 15  ;;  %v3365_v42 = vor.u32 %v3364_v11, %v11074_v15 }
 0x21b   : > { %12662 = vst [vmem:[#allocation59_spill] sm:$0xff] %v11061_v8  ;;  %vm2071_vm14 = vmpackc.low %vm11143_vm13, %vm11143_vm13 }
 0x21c   : > { %3867 = vst [vmem:[#allocation4 + $0x1f4] sm:$0xf] %v3341_v53  ;;  %v11087_v2 = vrot.slane %v2326_v18, 7  ;;  %v7722_v18 = vld [vmem:[%s12303_s3 + $0x88] sm:$0xff]  ;;  %v3366_v11 = vrot.slane %v3365_v42, 4 }
 0x21d   : > { %3156 = vst [vmem:[#allocation4 + $0x43c] sm:$0xf] %v3124_v58  ;;  %v3356_v58 = vrot.slane %v3355_v0, 4  ;;  %5546 = vmatpush.bf16.msrb.mxu3 %v7722_v18  ;;  %v3772_v18 = vld [vmem:[#allocation3 + $0x28] sm:$0xf] }
 0x21e   : > { %3157 = vst [vmem:[#allocation4 + $0x460] sm:$0xf] %v3125_v17  ;;  %v7126_v17 = vor.u32 %v7678_v60, %v7123_v51  ;;  %v2331_v6 = vor.u32 %v2329_v5, %v11087_v2  ;;  %v7621_v60 = vld [vmem:[#allocation4 + $0x1e0] sm:$0xf0] }
 0x21f   : > { %3644 = vst [vmem:[#allocation4 + $0x208] sm:$0xf] %v3612_v45  ;;  %v2722_v45 = vsel %vm2595_vm7, %v8103_v57, 0  ;;  %v3361_v0 = vsel %vm8608_vm12, %v3356_v58, %v11074_v15  ;;  %v7617_v5 = vld [vmem:[#allocation4 + $0x1c4] sm:$0xf]  ;;  %v6886_v23 = vor.u32 %v7621_v60, %v6885_v55 }
 0x220   : > { %3645 = vst [vmem:[#allocation4 + $0x22c] sm:$0xf] %v3613_v14  ;;  %5524 = vmatmul.bf16.gmra.mxu3 %v7126_v17  ;;  %v3351_v14 = vsel %vm8608_vm12, %v3346_v10, %v11043_v52  ;;  %v3368_v51 = vshll.u32 %v2722_v45, 16  ;;  %v2105_v52 = vsel %vm2069_vm10, 65537, %v12556_v12  ;;  %v11133_v10 = vpop.f32.mrf.mxu1  ;;  %v6890_v58 = vor.u32 %v7617_v5, %v6887_v44  ;;  %v8104_v17 = vld [vmem:[#allocation3 + $0x60] sm:$0xf] }
 0x221   : > { %3514 = vst [vmem:[#allocation4 + $0x8] sm:$0xf] %v12669_v56  ;;  %v7721_v56 = vld [vmem:[%s12303_s3 + $0x80] sm:$0xff]  ;;  %v2332_v53 = vsel %vm8686_vm5, %v8674_v59, %v2331_v6  ;;  %v11141_v57 = vsel %vm2602_vm11, %v8104_v17, 0  ;;  %5756 = vmatmul.bf16.gmra.mxu1 %v6886_v23  ;;  %v2333_v44 = vrot.slane %v11087_v2, 4  ;;  %v2107_v17 = vsel %vm2071_vm14, 65537, %v12556_v12 }
 0x222   : > { %3515 = vst [vmem:[#allocation4 + $0x2c] sm:$0xf] %v3181_v47  ;;  %v3372_v47 = vshrl.u32 %v2722_v45, 16  ;;  %v2344_v45 = vshrl.u32 %v2105_v52, 16  ;;  %v3370_v61 = vrot.slane %v3368_v51, 5  ;;  %5547 = vmatpush.bf16.msrb.mxu3 %v7721_v56  ;;  %v2603_v55 = vunpack.c.l.b16 %v2332_v53  ;;  %v11157_v2 = vpop.f32.mrf.mxu0 }
 0x223   : > { %12674 = vst [vmem:[#allocation60_spill] sm:$0xff] %v11111_v1  ;;  %5845 = vmatmul.bf16.gmra.mxu2 %v6890_v58  ;;  %v3773_v6 = vld [vmem:[#allocation3 + $0x2c] sm:$0xf]  ;;  %v2604_v60 = vunpack.c.h.b16 %v2332_v53  ;;  %v2341_v5 = vsel %vm8686_vm5, %v2333_v44, %v8645_v43  ;;  %v7687_v56 = vld [vmem:[#allocation4 + $0x3f4] sm:$0xf] }
 0x224   : > { %3700 = vst [vmem:[#allocation4 + $0x254] sm:$0xf] %v3351_v14  ;;  %v3374_v24 = vrot.slane %v3372_v47, 4  ;;  %v11153_v51 = vrot.slane %v2344_v45, 7  ;;  %v2347_v47 = vshll.u32 %v2105_v52, 16  ;;  %vm11165_vm15 = vcmp.ne.s32.totalorder %v2603_v55, %v8637_v38 }
 0x225   : > { %3701 = vst [vmem:[#allocation4 + $0x278] sm:$0xf] %v3361_v0  ;;  %v7159_v58 = vld [vmem:[#allocation4 + $0x414] sm:$0xf0]  ;;  %vm11170_vm2 = vcmp.ne.s32.totalorder %v2604_v60, %v8640_v40  ;;  %v7564_v45 = vld [vmem:[#allocation4 + $0x1c] sm:$0xf]  ;;  %v2610_v44 = vunpack.c.l.b16 %v2341_v5 }
 0x226   : > { %3532 = vst [vmem:[#allocation4 + $0x290] sm:$0xf] %v3351_v14  ;;  %v3375_v15 = vor.u32 %v3374_v24, %v3370_v61  ;;  %v6679_v24 = vld [vmem:[#allocation4 + $0x3c] sm:$0xf0]  ;;  %v2349_v49 = vor.u32 %v2347_v47, %v11153_v51  ;;  %vm2609_vm3 = vmpackc.low %vm11170_vm2, %vm11165_vm15  ;;  %v3382_v55 = vshrl.u32 %v11141_v57, 16  ;;  %v2362_v60 = vshrl.u32 %v2107_v17, 16 }
 0x227   : > { %3533 = vst [vmem:[#allocation4 + $0x2b4] sm:$0xf] %v3361_v0  ;;  %v6682_v8 = vor.u32 %v7564_v45, %v6679_v24  ;;  %v7760_v47 = vld [vmem:[%s12303_s3 + $0x1b8] sm:$0xff]  ;;  %v8105_v45 = vld [vmem:[#allocation3 + $0x64] sm:$0xf]  ;;  %vm11201_vm4 = vcmp.ne.s32.totalorder %v2610_v44, %v8637_v38  ;;  %v2365_v52 = vshll.u32 %v2107_v17, 16 }
 0x228   : > { %3868 = vst [vmem:[#allocation4 + $0x218] sm:$0xf] %v3351_v14  ;;  %v3378_v14 = vshll.u32 %v11141_v57, 16  ;;  %v11159_v3 = vpop.f32.mrf.mxu1  ;;  %v3376_v42 = vrot.slane %v3375_v15, 4  ;;  %v3371_v15 = vsel %vm8608_vm12, %v3366_v11, %v3370_v61  ;;  %v2350_v57 = vsel %vm8686_vm5, %v8674_v59, %v2349_v49  ;;  %5896 = vmatpush.bf16.msra.mxu3 %v7760_v47  ;;  %v7626_v23 = vld [vmem:[#allocation4 + $0x20c] sm:$0xf] }
 0x229   : > { %3869 = vst [vmem:[#allocation4 + $0x23c] sm:$0xf] %v3361_v0  ;;  %v11155_v0 = vpop.f32.mrf.mxu2  ;;  %5993 = vmatmul.bf16.vlgmr.msra.gmra.mxu0 %v6682_v8  ;;  %v2724_v24 = vsel %vm2609_vm3, %v8105_v45, 0  ;;  %v2617_v49 = vunpack.c.l.b16 %v2350_v57  ;;  %v3384_v35 = vrot.slane %v3382_v55, 4  ;;  %v2351_v47 = vrot.slane %v11153_v51, 4 }
 0x22a   : > { %3804 = vst [vmem:[#allocation4 + $0xac] sm:$0xf] %v3772_v18  ;;  %v11174_v53 = vrot.slane %v3378_v14, 5  ;;  %v2611_v18 = vunpack.c.h.b16 %v2341_v5  ;;  %v6923_v14 = vld [vmem:[#allocation4 + $0x22c] sm:$0xf0]  ;;  %v3388_v17 = vshll.u32 %v2724_v24, 16 }
 0x22b   : > { %12677 = vst [vmem:[#allocation61_spill] sm:$0xff] %v11155_v0  ;;  %v765_v0 = vadd.s32 232, %v8538_v48  ;;  %v6926_v45 = vor.u32 %v7626_v23, %v6923_v14  ;;  %v7776_v14 = vld [vmem:[%s12303_s3 + $0x238] sm:$0xff]  ;;  %vm11228_vm6 = vcmp.ne.s32.totalorder %v2617_v49, %v8637_v38  ;;  %v2359_v11 = vsel %vm8686_vm5, %v2351_v47, %v8645_v43  ;;  %v7195_v61 = vld [vmem:[#allocation4 + $0x45c] sm:$0xf0] }
 0x22c   : > { %3805 = vst [vmem:[#allocation4 + $0xd0] sm:$0xf] %v3773_v6  ;;  %v7162_v6 = vor.u32 %v7687_v56, %v7159_v58  ;;  %v3381_v5 = vsel %vm8608_vm12, %v3376_v42, %v11174_v53  ;;  %v6921_v56 = vld [vmem:[#allocation4 + $0x208] sm:$0xf]  ;;  %v7630_v58 = vld [vmem:[#allocation4 + $0x228] sm:$0xf0]  ;;  %vm11206_vm0 = vcmp.ne.s32.totalorder %v2611_v18, %v8640_v40  ;;  %v2618_v42 = vunpack.c.h.b16 %v2350_v57  ;;  %6074 = vmatpush.bf16.msra.mxu1 %v7776_v14 }
 0x22d   : > { %12678 = vst [vmem:[#allocation62_spill] sm:$0xff] %v11157_v2  ;;  %v3615_v2 = vld [vmem:[#allocation3 + $0x54] sm:$0xf]  ;;  %v6922_v18 = vor.u32 %v7630_v58, %v6921_v56  ;;  %vm2616_vm1 = vmpackc.low %vm11206_vm0, %vm11201_vm4  ;;  %v3774_v57 = vld [vmem:[#allocation3 + $0x30] sm:$0xf]  ;;  %v3390_v23 = vrot.slane %v3388_v17, 5  ;;  %v2624_v17 = vunpack.c.l.b16 %v2359_v11 }
 0x22e   : > { %3646 = vst [vmem:[#allocation4 + $0x250] sm:$0xf] %v3614_v22  ;;  %v11212_v22 = vrot.slane %v2362_v60, 7  ;;  %v3392_v60 = vshrl.u32 %v2724_v24, 16  ;;  %v3775_v56 = vld [vmem:[#allocation3 + $0x34] sm:$0xf]  ;;  %vm11233_vm7 = vcmp.ne.s32.totalorder %v2618_v42, %v8640_v40 }
 0x22f   : > { %3647 = vst [vmem:[#allocation4 + $0x274] sm:$0xf] %v3615_v2  ;;  %v979_v2 = vand.u32 15, %v765_v0  ;;  %v8106_v58 = vld [vmem:[#allocation3 + $0x68] sm:$0xf]  ;;  %vm2623_vm9 = vmpackc.low %vm11233_vm7, %vm11228_vm6  ;;  %vm11278_vm11 = vcmp.ne.s32.totalorder %v2624_v17, %v8637_v38 }
 0x230   : > { %5529 = vmatmul.bf16.gmra.mxu3 %v7162_v6  ;;  %v11210_v8 = vpop.f32.mrf.mxu1  ;;  %3702 = vst [vmem:[#allocation4 + $0x29c] sm:$0xf] %v3371_v15  ;;  %v11216_v6 = vpop.f32.mrf.mxu0  ;;  %v2367_v55 = vor.u32 %v2365_v52, %v11212_v22  ;;  %v11242_v24 = vsel %vm2616_vm1, %v8106_v58, 0  ;;  %v3394_v49 = vrot.slane %v3392_v60, 4  ;;  %v2625_v60 = vunpack.c.h.b16 %v2359_v11 }
 0x231   : > { %v11214_v44 = vpop.f32.mrf.mxu2  ;;  %12687 = vst [vmem:[#allocation63_spill] sm:$0xff] %v11216_v6  ;;  %5761 = vmatmul.bf16.gmra.mxu1 %v6922_v18  ;;  %vm11245_vm8 = vcmp.lt.s32.totalorder %v979_v2, 15  ;;  %v6715_v18 = vld [vmem:[#allocation4 + $0x84] sm:$0xf0]  ;;  %v8107_v6 = vld [vmem:[#allocation3 + $0x6c] sm:$0xf] }
 0x232   : > { %3703 = vst [vmem:[#allocation4 + $0x2c0] sm:$0xf] %v3381_v5  ;;  %vm2073_vm10 = vmpackc.low %vm11245_vm8, %vm11245_vm8  ;;  %v3395_v47 = vor.u32 %v3394_v49, %v3390_v23  ;;  %v2726_v52 = vsel %vm2623_vm9, %v8107_v6, 0  ;;  %v6959_v49 = vld [vmem:[#allocation4 + $0x274] sm:$0xf0]  ;;  %vm11283_vm13 = vcmp.ne.s32.totalorder %v2625_v60, %v8640_v40  ;;  %v3402_v17 = vshrl.u32 %v11242_v24, 16 }
 0x233   : > { %3534 = vst [vmem:[#allocation4 + $0x2d8] sm:$0xf] %v3371_v15  ;;  %5850 = vmatmul.bf16.gmra.mxu2 %v6926_v45  ;;  %v7573_v45 = vld [vmem:[#allocation4 + $0x64] sm:$0xf]  ;;  %v3408_v60 = vshll.u32 %v2726_v52, 16  ;;  %vm2630_vm2 = vmpackc.low %vm11283_vm13, %vm11278_vm11 }
 0x234   : > { %3535 = vst [vmem:[#allocation4 + $0x2fc] sm:$0xf] %v3381_v5  ;;  %v6718_v11 = vor.u32 %v7573_v45, %v6715_v18  ;;  %v767_v45 = vadd.s32 248, %v8538_v48 }
 0x235   : > { %3870 = vst [vmem:[#allocation4 + $0x260] sm:$0xf] %v3371_v15  ;;  %v3385_v15 = vor.u32 %v3384_v35, %v11174_v53  ;;  %v3398_v35 = vshll.u32 %v11242_v24, 16  ;;  %v7696_v53 = vld [vmem:[#allocation4 + $0x43c] sm:$0xf]  ;;  %v2369_v24 = vrot.slane %v11212_v22, 4 }
 0x236   : > { %3871 = vst [vmem:[#allocation4 + $0x284] sm:$0xf] %v3381_v5  ;;  %v2368_v5 = vsel %vm8686_vm5, %v8674_v59, %v2367_v55  ;;  %v7198_v58 = vor.u32 %v7696_v53, %v7195_v61  ;;  %v6957_v6 = vld [vmem:[#allocation4 + $0x250] sm:$0xf]  ;;  %v7639_v0 = vld [vmem:[#allocation4 + $0x270] sm:$0xf0] }
 0x237   : > { %3806 = vst [vmem:[#allocation4 + $0xf4] sm:$0xf] %v3774_v57  ;;  %v3386_v2 = vrot.slane %v3385_v15, 4  ;;  %v2631_v14 = vunpack.c.l.b16 %v2368_v5  ;;  %v2632_v55 = vunpack.c.h.b16 %v2368_v5  ;;  %v11274_v1 = vrot.slane %v3398_v35, 5  ;;  %v3616_v5 = vld [vmem:[#allocation3 + $0x58] sm:$0xf] }
 0x238   : > { %v11252_v42 = vpop.f32.mrf.mxu1  ;;  %3807 = vst [vmem:[#allocation4 + $0x118] sm:$0xf] %v3775_v56  ;;  %v11267_v56 = vpop.f32.mrf.mxu0  ;;  %v2109_v15 = vsel %vm2073_vm10, 65537, %v12556_v12  ;;  %v3396_v35 = vrot.slane %v3395_v47, 4  ;;  %v6661_v61 = vld [vmem:[#allocation4 + $0x8] sm:$0xf] }
 0x239   : > { %v11265_v57 = vpop.f32.mrf.mxu2  ;;  %12695 = vst [vmem:[#allocation65_spill] sm:$0xff] %v11267_v56  ;;  %5998 = vmatmul.bf16.gmra.mxu0 %v6718_v11  ;;  %vm11288_vm14 = vcmp.ne.s32.totalorder %v2631_v14, %v8637_v38  ;;  %vm11293_vm15 = vcmp.ne.s32.totalorder %v2632_v55, %v8640_v40  ;;  %v2380_v47 = vshrl.u32 %v2109_v15, 16  ;;  %v7635_v11 = vld [vmem:[#allocation4 + $0x254] sm:$0xf]  ;;  %v6958_v55 = vor.u32 %v7639_v0, %v6957_v6 }
 0x23a   : > { %12694 = vst [vmem:[#allocation64_spill] sm:$0xff] %v11265_v57  ;;  %v6962_v14 = vor.u32 %v7635_v11, %v6959_v49  ;;  %vm2637_vm3 = vmpackc.low %vm11293_vm15, %vm11288_vm14  ;;  %v8108_v57 = vld [vmem:[#allocation3 + $0x70] sm:$0xf]  ;;  %v2383_v22 = vshll.u32 %v2109_v15, 16  ;;  %v3777_v11 = vld [vmem:[#allocation3 + $0x3c] sm:$0xf]  ;;  %v2377_v15 = vsel %vm8686_vm5, %v2369_v24, %v8645_v43 }
 0x23b   : > { %3648 = vst [vmem:[#allocation4 + $0x298] sm:$0xf] %v3616_v5  ;;  %v3391_v5 = vsel %vm8608_vm12, %v3386_v2, %v3390_v23  ;;  %v11315_v49 = vsel %vm2630_vm2, %v8108_v57, 0  ;;  %v3404_v23 = vrot.slane %v3402_v17, 4  ;;  %v11317_v2 = vrot.slane %v3408_v60, 5 }
 0x23c   : > { %3649 = vst [vmem:[#allocation4 + $0x2bc] sm:$0xf] %v3617_v50  ;;  %v3401_v50 = vsel %vm8608_vm12, %v3396_v35, %v11274_v1  ;;  %v11319_v6 = vrot.slane %v2380_v47, 7  ;;  %v3418_v60 = vshll.u32 %v11315_v49, 16  ;;  %v2638_v24 = vunpack.c.l.b16 %v2377_v15 }
 0x23d   : > { %3704 = vst [vmem:[#allocation4 + $0x2e4] sm:$0xf] %v3391_v5  ;;  %v3422_v56 = vshrl.u32 %v11315_v49, 16  ;;  %v3618_v49 = vld [vmem:[#allocation3 + $0x60] sm:$0xf] }
 0x23e   : > { %3705 = vst [vmem:[#allocation4 + $0x308] sm:$0xf] %v3401_v50  ;;  %v2385_v57 = vor.u32 %v2383_v22, %v11319_v6  ;;  %v11344_v28 = vrot.slane %v3418_v60, 5  ;;  %vm11358_vm1 = vcmp.ne.s32.totalorder %v2638_v24, %v8637_v38  ;;  %v7644_v24 = vld [vmem:[#allocation4 + $0x29c] sm:$0xf] }
 0x23f   : > { %3536 = vst [vmem:[#allocation4 + $0x320] sm:$0xf] %v3391_v5  ;;  %v8110_v60 = vld [vmem:[#allocation3 + $0x78] sm:$0xf] }
 0x240   : > { %5534 = vmatmul.bf16.gmra.mxu3 %v7198_v58  ;;  %v11298_v18 = vpop.f32.mrf.mxu1  ;;  %v3412_v58 = vshrl.u32 %v2726_v52, 16  ;;  %v993_v52 = vand.u32 15, %v767_v45  ;;  %v11323_v35 = vpop.f32.mrf.mxu0  ;;  %3537 = vst [vmem:[#allocation4 + $0x344] sm:$0xf] %v3401_v50  ;;  %v3776_v45 = vld [vmem:[#allocation3 + $0x38] sm:$0xf] }
 0x241   : > { %5766 = vmatmul.bf16.gmra.mxu1 %v6958_v55  ;;  %v11321_v0 = vpop.f32.mrf.mxu2  ;;  %12704 = vst [vmem:[#allocation66_spill] sm:$0xff] %v11323_v35  ;;  %v3405_v55 = vor.u32 %v3404_v23, %v11274_v1  ;;  %v6751_v35 = vld [vmem:[#allocation4 + $0xcc] sm:$0xf0]  ;;  %v11349_v23 = vpop.f32.mrf.mxu3 }
 0x242   : > { %v3414_v51 = vrot.slane %v3412_v58, 4  ;;  %3872 = vst [vmem:[#allocation4 + $0x2a8] sm:$0xf] %v3391_v5  ;;  %vm11334_vm4 = vcmp.lt.s32.totalorder %v993_v52, 15  ;;  %v7566_v5 = vld [vmem:[#allocation4 + $0x28] sm:$0xf0]  ;;  %v2639_v52 = vunpack.c.h.b16 %v2377_v15 }
 0x243   : > { %5855 = vmatmul.bf16.gmra.mxu2 %v6962_v14  ;;  %v8109_v14 = vld [vmem:[#allocation3 + $0x74] sm:$0xf]  ;;  %3873 = vst [vmem:[#allocation4 + $0x2cc] sm:$0xf] %v3401_v50  ;;  %v6662_v39 = vor.u32 %v7566_v5, %v6661_v61  ;;  %v3406_v1 = vrot.slane %v3405_v55, 4  ;;  %vm2075_vm0 = vmpackc.low %vm11334_vm4, %vm11334_vm4 }
 0x244   : > { %v2728_v17 = vsel %vm2637_vm3, %v8109_v14, 0  ;;  %3808 = vst [vmem:[#allocation4 + $0x13c] sm:$0xf] %v3776_v45  ;;  %v3415_v53 = vor.u32 %v3414_v51, %v11317_v2  ;;  %v7582_v14 = vld [vmem:[#allocation4 + $0xac] sm:$0xf]  ;;  %vm11363_vm6 = vcmp.ne.s32.totalorder %v2639_v52, %v8640_v40 }
 0x245   : > { %3809 = vst [vmem:[#allocation4 + $0x160] sm:$0xf] %v3777_v11  ;;  %v3428_v16 = vshll.u32 %v2728_v17, 16  ;;  %v3432_v50 = vshrl.u32 %v2728_v17, 16  ;;  %v6995_v51 = vld [vmem:[#allocation4 + $0x2bc] sm:$0xf0]  ;;  %v6754_v22 = vor.u32 %v7582_v14, %v6751_v35  ;;  %v2386_v11 = vsel %vm8686_vm5, %v8674_v59, %v2385_v57  ;;  %vm2644_vm7 = vmpackc.low %vm11363_vm6, %vm11358_vm1 }
 0x246   : > { %v3416_v45 = vrot.slane %v3415_v53, 4  ;;  %v3619_v15 = vld [vmem:[#allocation3 + $0x64] sm:$0xf]  ;;  %v7759_v17 = vld [vmem:[%s12303_s3 + $0x1b0] sm:$0xff]  ;;  %v6993_v55 = vld [vmem:[#allocation4 + $0x298] sm:$0xf]  ;;  %v2645_v53 = vunpack.c.l.b16 %v2386_v11  ;;  %v2646_v57 = vunpack.c.h.b16 %v2386_v11  ;;  %v3411_v11 = vsel %vm8608_vm12, %v3406_v1, %v11317_v2 }
 0x247   : > { %v7648_v61 = vld [vmem:[#allocation4 + $0x2b8] sm:$0xf0]  ;;  %3650 = vst [vmem:[#allocation4 + $0x2e0] sm:$0xf] %v3618_v49  ;;  %5897 = vmatpush.bf16.msra.mxu3 %v7759_v17  ;;  %v2111_v14 = vsel %vm2075_vm0, 65537, %v12556_v12  ;;  %v11389_v17 = vrot.slane %v3428_v16, 5 }
 0x248   : > { %v11338_v47 = vpop.f32.mrf.mxu1  ;;  %v11369_v5 = vpop.f32.mrf.mxu0  ;;  %3651 = vst [vmem:[#allocation4 + $0x304] sm:$0xf] %v3619_v15  ;;  %v6994_v49 = vor.u32 %v7648_v61, %v6993_v55  ;;  %v3421_v58 = vsel %vm8608_vm12, %v3416_v45, %v11344_v28  ;;  %v3424_v15 = vrot.slane %v3422_v56, 4  ;;  %v11394_v35 = vsel %vm2644_vm7, %v8110_v60, 0  ;;  %v3779_v61 = vld [vmem:[#allocation3 + $0x44] sm:$0xf] }
 0x249   : > { %6003 = vmatmul.bf16.gmra.mxu0 %v6754_v22  ;;  %12711 = vst [vmem:[#allocation67_spill] sm:$0xff] %v11369_v5  ;;  %v6998_v22 = vor.u32 %v7644_v24, %v6995_v51  ;;  %v3434_v5 = vrot.slane %v3432_v50, 4  ;;  %v7775_v51 = vld [vmem:[%s12303_s3 + $0x230] sm:$0xff]  ;;  %v2387_v2 = vrot.slane %v11319_v6, 4  ;;  %v2398_v1 = vshrl.u32 %v2111_v14, 16  ;;  %v11409_v6 = vpop.f32.mrf.mxu3 }
 0x24a   : > { %3706 = vst [vmem:[#allocation4 + $0x32c] sm:$0xf] %v3411_v11  ;;  %vm11398_vm8 = vcmp.ne.s32.totalorder %v2645_v53, %v8637_v38  ;;  %vm11403_vm9 = vcmp.ne.s32.totalorder %v2646_v57, %v8640_v40  ;;  %6075 = vmatpush.bf16.msra.mxu1 %v7775_v51  ;;  %v3778_v50 = vld [vmem:[#allocation3 + $0x40] sm:$0xf]  ;;  %v3425_v45 = vor.u32 %v3424_v15, %v11344_v28  ;;  %v3438_v53 = vshll.u32 %v11394_v35, 16 }
 0x24b   : > { %3707 = vst [vmem:[#allocation4 + $0x350] sm:$0xf] %v3421_v58  ;;  %v3435_v55 = vor.u32 %v3434_v5, %v11389_v17  ;;  %vm2651_vm10 = vmpackc.low %vm11403_vm9, %vm11398_vm8  ;;  %v2395_v57 = vsel %vm8686_vm5, %v2387_v2, %v8645_v43  ;;  %v11419_v24 = vrot.slane %v2398_v1, 7  ;;  %v2401_v28 = vshll.u32 %v2111_v14, 16  ;;  %v7575_v5 = vld [vmem:[#allocation4 + $0x70] sm:$0xf0] }
 0x24c   : > { %3538 = vst [vmem:[#allocation4 + $0x368] sm:$0xf] %v3411_v11  ;;  %v6787_v15 = vld [vmem:[#allocation4 + $0x114] sm:$0xf0]  ;;  %v3426_v51 = vrot.slane %v3425_v45, 4  ;;  %v3442_v36 = vshrl.u32 %v11394_v35, 16  ;;  %v2652_v1 = vunpack.c.l.b16 %v2395_v57  ;;  %v6698_v25 = vor.u32 %v7575_v5, %v6697_v30 }
 0x24d   : > { %3539 = vst [vmem:[#allocation4 + $0x38c] sm:$0xf] %v3421_v58  ;;  %v3436_v60 = vrot.slane %v3435_v55, 4  ;;  %v8111_v2 = vld [vmem:[#allocation3 + $0x7c] sm:$0xf]  ;;  %v3440_v26 = vrot.slane %v3438_v53, 5 }
 0x24e   : > { %3874 = vst [vmem:[#allocation4 + $0x2f0] sm:$0xf] %v3411_v11  ;;  %v2730_v14 = vsel %vm2651_vm10, %v8111_v2, 0  ;;  %v7031_v55 = vld [vmem:[#allocation4 + $0x304] sm:$0xf0]  ;;  %vm11436_vm11 = vcmp.ne.s32.totalorder %v2652_v1, %v8637_v38  ;;  %v3431_v2 = vsel %vm8608_vm12, %v3426_v51, %v11389_v17  ;;  %v3444_v1 = vrot.slane %v3442_v36, 4 }
 0x24f   : > { %3875 = vst [vmem:[#allocation4 + $0x314] sm:$0xf] %v3421_v58  ;;  %v7591_v58 = vld [vmem:[#allocation4 + $0xf4] sm:$0xf]  ;;  %v3620_v35 = vld [vmem:[#allocation3 + $0x68] sm:$0xf] }
 0x250   : > { %5548 = vmatmul.bf16.vlgmr.msrb.gmra.mxu3 %v6662_v39  ;;  %v11367_v39 = vpop.f32.mrf.mxu2  ;;  %v11377_v52 = vpop.f32.mrf.mxu1  ;;  %3810 = vst [vmem:[#allocation4 + $0x184] sm:$0xf] %v3778_v50  ;;  %v2653_v50 = vunpack.c.h.b16 %v2395_v57  ;;  %v6790_v45 = vor.u32 %v7591_v58, %v6787_v15  ;;  %v7029_v9 = vld [vmem:[#allocation4 + $0x2e0] sm:$0xf]  ;;  %v7657_v56 = vld [vmem:[#allocation4 + $0x300] sm:$0xf0] }
 0x251   : > { %12712 = vst [vmem:[#allocation68_spill] sm:$0xff] %v11377_v52  ;;  %5771 = vmatmul.bf16.gmra.mxu1 %v6994_v49  ;;  %v11425_v11 = vpop.f32.mrf.mxu0  ;;  %v3448_v16 = vshll.u32 %v2730_v14, 16  ;;  %v3452_v33 = vshrl.u32 %v2730_v14, 16  ;;  %v7030_v15 = vor.u32 %v7657_v56, %v7029_v9  ;;  %v3441_v14 = vsel %vm8608_vm12, %v3436_v60, %v3440_v26  ;;  %v8112_v17 = vld [vmem:[#allocation3 + $0x80] sm:$0xf] }
 0x252   : > { %12718 = vst [vmem:[#allocation70_spill] sm:$0xff] %v11425_v11  ;;  %v2403_v11 = vor.u32 %v2401_v28, %v11419_v24  ;;  %vm11441_vm13 = vcmp.ne.s32.totalorder %v2653_v50, %v8640_v40  ;;  %v7653_v28 = vld [vmem:[#allocation4 + $0x2e4] sm:$0xf]  ;;  %v2405_v36 = vrot.slane %v11419_v24, 4  ;;  %v3780_v60 = vld [vmem:[#allocation3 + $0x48] sm:$0xf] }
 0x253   : > { %5860 = vmatmul.bf16.gmra.mxu2 %v6998_v22  ;;  %3811 = vst [vmem:[#allocation4 + $0x1a8] sm:$0xf] %v3779_v61  ;;  %v769_v61 = vadd.s32 264, %v8538_v48  ;;  %v7034_v58 = vor.u32 %v7653_v28, %v7031_v55  ;;  %vm2658_vm14 = vmpackc.low %vm11441_vm13, %vm11436_vm11  ;;  %v3454_v50 = vrot.slane %v3452_v33, 4  ;;  %v3781_v56 = vld [vmem:[#allocation3 + $0x4c] sm:$0xf] }
 0x254   : > { %3652 = vst [vmem:[#allocation4 + $0x328] sm:$0xf] %v3620_v35  ;;  %v11468_v51 = vsel %vm2658_vm14, %v8112_v17, 0  ;;  %v2413_v30 = vsel %vm8686_vm5, %v2405_v36, %v8645_v43  ;;  %v7584_v28 = vld [vmem:[#allocation4 + $0xb8] sm:$0xf0] }
 0x255   : > { %3653 = vst [vmem:[#allocation4 + $0x34c] sm:$0xf] %v3621_v29  ;;  %v1007_v29 = vand.u32 15, %v769_v61  ;;  %v3445_v61 = vor.u32 %v3444_v1, %v3440_v26  ;;  %v3458_v26 = vshll.u32 %v11468_v51, 16  ;;  %v6733_v1 = vld [vmem:[#allocation4 + $0x98] sm:$0xf] }
 0x256   : > { %3708 = vst [vmem:[#allocation4 + $0x374] sm:$0xf] %v3431_v2  ;;  %v7067_v33 = vld [vmem:[#allocation4 + $0x34c] sm:$0xf0]  ;;  %v8113_v48 = vld [vmem:[#allocation3 + $0x84] sm:$0xf] }
 0x257   : > { %3709 = vst [vmem:[#allocation4 + $0x398] sm:$0xf] %v3441_v14  ;;  %vm11470_vm15 = vcmp.lt.s32.totalorder %v1007_v29, 15  ;;  %v11500_v36 = vrot.slane %v3458_v26, 5  ;;  %v3622_v24 = vld [vmem:[#allocation3 + $0x70] sm:$0xf] }
 0x258   : > { %v11421_v22 = vpop.f32.mrf.mxu1  ;;  %v11423_v49 = vpop.f32.mrf.mxu2  ;;  %3540 = vst [vmem:[#allocation4 + $0x3b0] sm:$0xf] %v3431_v2  ;;  %vm2077_vm4 = vmpackc.low %vm11470_vm15, %vm11470_vm15 }
 0x259   : > { %12717 = vst [vmem:[#allocation69_spill] sm:$0xff] %v11421_v22  ;;  %6008 = vmatmul.bf16.gmra.mxu0 %v6790_v45  ;;  %v11448_v53 = vpop.f32.mrf.mxu3  ;;  %v11465_v35 = vpop.f32.mrf.mxu0  ;;  %v2113_v17 = vsel %vm2077_vm4, 65537, %v12556_v12 }
 0x25a   : > { %12724 = vst [vmem:[#allocation72_spill] sm:$0xff] %v11465_v35 }
 0x25b   : > { %3541 = vst [vmem:[#allocation4 + $0x3d4] sm:$0xf] %v3441_v14  ;;  %v7065_v26 = vld [vmem:[#allocation4 + $0x328] sm:$0xf] }
 0x25c   : > { %3876 = vst [vmem:[#allocation4 + $0x338] sm:$0xf] %v3431_v2  ;;  %v6823_v2 = vld [vmem:[#allocation4 + $0x15c] sm:$0xf0] }
 0x25d   : > { %3877 = vst [vmem:[#allocation4 + $0x35c] sm:$0xf] %v3441_v14  ;;  %v3446_v14 = vrot.slane %v3445_v61, 4 }
 0x25e   : > { %3812 = vst [vmem:[#allocation4 + $0x1cc] sm:$0xf] %v3780_v60  ;;  %v7662_v60 = vld [vmem:[#allocation4 + $0x32c] sm:$0xf] }
 0x25f   : > { %3813 = vst [vmem:[#allocation4 + $0x1f0] sm:$0xf] %v3781_v56 }
 0x260   : > { %5553 = vmatmul.bf16.gmra.mxu3 %v6698_v25  ;;  %v2404_v25 = vsel %vm8686_vm5, %v8674_v59, %v2403_v11  ;;  %v11450_v5 = vpop.f32.mrf.mxu1  ;;  %v11461_v11 = vrot.slane %v3448_v16, 5  ;;  %v11463_v55 = vpop.f32.mrf.mxu2  ;;  %3654 = vst [vmem:[#allocation4 + $0x370] sm:$0xf] %v3622_v24 }
 0x261   : > { %12723 = vst [vmem:[#allocation71_spill] sm:$0xff] %v11450_v5  ;;  %v2659_v45 = vunpack.c.l.b16 %v2404_v25  ;;  %v2660_v9 = vunpack.c.h.b16 %v2404_v25  ;;  %5776 = vmatmul.bf16.gmra.mxu1 %v7030_v15  ;;  %v11489_v25 = vpop.f32.mrf.mxu3  ;;  %v7600_v15 = vld [vmem:[#allocation4 + $0x13c] sm:$0xf]  ;;  %v11505_v57 = vpop.f32.mrf.mxu0  ;;  %v3624_v5 = vld [vmem:[#allocation3 + $0x78] sm:$0xf] }
 0x262   : > { %v3455_v16 = vor.u32 %v3454_v50, %v11461_v11  ;;  %v2666_v50 = vunpack.c.l.b16 %v2413_v30  ;;  %v6826_v35 = vor.u32 %v7600_v15, %v6823_v2  ;;  %12732 = vst [vmem:[#allocation74_spill] sm:$0xff] %v11505_v57  ;;  %v3462_v2 = vshrl.u32 %v11468_v51, 16 }
 0x263   : > { %5865 = vmatmul.bf16.gmra.mxu2 %v7034_v58  ;;  %vm11476_vm2 = vcmp.ne.s32.totalorder %v2659_v45, %v8637_v38  ;;  %vm11481_vm3 = vcmp.ne.s32.totalorder %v2660_v9, %v8640_v40  ;;  %v2667_v45 = vunpack.c.h.b16 %v2413_v30  ;;  %v6734_v9 = vor.u32 %v7584_v28, %v6733_v1  ;;  %v7666_v30 = vld [vmem:[#allocation4 + $0x348] sm:$0xf0]  ;;  %3656 = vst [vmem:[#allocation4 + $0x3b8] sm:$0xf] %v3624_v5 }
 0x264   : > { %vm2665_vm0 = vmpackc.low %vm11481_vm3, %vm11476_vm2  ;;  %v3456_v29 = vrot.slane %v3455_v16, 4  ;;  %v7758_v16 = vld [vmem:[%s12303_s3 + $0x1a8] sm:$0xff]  ;;  %v2416_v28 = vshrl.u32 %v2113_v17, 16  ;;  %vm11511_vm1 = vcmp.ne.s32.totalorder %v2666_v50, %v8637_v38  ;;  %v7070_v57 = vor.u32 %v7662_v60, %v7067_v33 }
 0x265   : > { %v2732_v56 = vsel %vm2665_vm0, %v8113_v48, 0  ;;  %vm11516_vm6 = vcmp.ne.s32.totalorder %v2667_v45, %v8640_v40  ;;  %5898 = vmatpush.bf16.msra.mxu3 %v7758_v16  ;;  %v7066_v50 = vor.u32 %v7666_v30, %v7065_v26  ;;  %v3451_v12 = vsel %vm8608_vm12, %v3446_v14, %v11461_v11  ;;  %v7774_v11 = vld [vmem:[%s12303_s3 + $0x228] sm:$0xff]  ;;  %v3782_v16 = vld [vmem:[#allocation3 + $0x50] sm:$0xf]  ;;  %v3783_v26 = vld [vmem:[#allocation3 + $0x54] sm:$0xf] }
 0x266   : > { %v3468_v1 = vshll.u32 %v2732_v56, 16  ;;  %v3461_v45 = vsel %vm8608_vm12, %v3456_v29, %v11500_v36  ;;  %vm2672_vm7 = vmpackc.low %vm11516_vm6, %vm11511_vm1  ;;  %3710 = vst [vmem:[#allocation4 + $0x3bc] sm:$0xf] %v3451_v12  ;;  %v11535_v51 = vrot.slane %v2416_v28, 7  ;;  %v3464_v14 = vrot.slane %v3462_v2, 4  ;;  %6076 = vmatpush.bf16.msra.mxu1 %v7774_v11 }
 0x267   : > { %3711 = vst [vmem:[#allocation4 + $0x3e0] sm:$0xf] %v3461_v45  ;;  %v8114_v29 = vld [vmem:[#allocation3 + $0x88] sm:$0xf] }
 0x268   : > { %v11491_v58 = vpop.f32.mrf.mxu1  ;;  %v11503_v61 = vpop.f32.mrf.mxu2  ;;  %v3470_v60 = vrot.slane %v3468_v1, 5  ;;  %3542 = vst [vmem:[#allocation4 + $0x3f8] sm:$0xf] %v3451_v12  ;;  %v3465_v28 = vor.u32 %v3464_v14, %v11500_v36  ;;  %v7593_v1 = vld [vmem:[#allocation4 + $0x100] sm:$0xf0] }
 0x269   : > { %12731 = vst [vmem:[#allocation73_spill] sm:$0xff] %v11491_v58  ;;  %v3623_v58 = vld [vmem:[#allocation3 + $0x74] sm:$0xf]  ;;  %6013 = vmatmul.bf16.gmra.mxu0 %v6826_v35  ;;  %v3472_v35 = vshrl.u32 %v2732_v56, 16  ;;  %v11540_v56 = vsel %vm2672_vm7, %v8114_v29, 0  ;;  %v11545_v30 = vpop.f32.mrf.mxu0 }
 0x26a   : > { %3655 = vst [vmem:[#allocation4 + $0x394] sm:$0xf] %v3623_v58  ;;  %v2419_v58 = vshll.u32 %v2113_v17, 16  ;;  %v3478_v48 = vshll.u32 %v11540_v56, 16  ;;  %v3466_v29 = vrot.slane %v3465_v28, 4 }
 0x26b   : > { %v3474_v33 = vrot.slane %v3472_v35, 4  ;;  %3543 = vst [vmem:[#allocation4 + $0x41c] sm:$0xf] %v3461_v45 }
 0x26c   : > { %3878 = vst [vmem:[#allocation4 + $0x380] sm:$0xf] %v3451_v12  ;;  %v2421_v17 = vor.u32 %v2419_v58, %v11535_v51  ;;  %v7609_v12 = vld [vmem:[#allocation4 + $0x184] sm:$0xf]  ;;  %v6769_v58 = vld [vmem:[#allocation4 + $0xe0] sm:$0xf] }
 0x26d   : > { %12739 = vst [vmem:[#allocation77_spill] sm:$0xff] %v11545_v30  ;;  %v3475_v15 = vor.u32 %v3474_v33, %v3470_v60  ;;  %v11556_v14 = vrot.slane %v3478_v48, 5  ;;  %v7671_v33 = vld [vmem:[#allocation4 + $0x374] sm:$0xf] }
 0x26e   : > { %3879 = vst [vmem:[#allocation4 + $0x3a4] sm:$0xf] %v3461_v45  ;;  %v2422_v11 = vsel %vm8686_vm5, %v8674_v59, %v2421_v17  ;;  %v6770_v45 = vor.u32 %v7593_v1, %v6769_v58  ;;  %v3471_v1 = vsel %vm8608_vm12, %v3466_v29, %v3470_v60  ;;  %v3784_v60 = vld [vmem:[#allocation3 + $0x58] sm:$0xf]  ;;  %v7618_v29 = vld [vmem:[#allocation4 + $0x1cc] sm:$0xf] }
 0x26f   : > { %3814 = vst [vmem:[#allocation4 + $0x214] sm:$0xf] %v3782_v16  ;;  %v3476_v36 = vrot.slane %v3475_v15, 4  ;;  %v2673_v16 = vunpack.c.l.b16 %v2422_v11  ;;  %v2674_v22 = vunpack.c.h.b16 %v2422_v11  ;;  %v7139_v5 = vld [vmem:[#allocation4 + $0x3dc] sm:$0xf0] }
 0x270   : > { %5558 = vmatmul.bf16.gmra.mxu3 %v6734_v9  ;;  %v11521_v9 = vpop.f32.mrf.mxu3  ;;  %v11523_v24 = vpop.f32.mrf.mxu1  ;;  %3815 = vst [vmem:[#allocation4 + $0x238] sm:$0xf] %v3783_v26  ;;  %v7101_v26 = vld [vmem:[#allocation4 + $0x370] sm:$0xf] }
 0x271   : > { %12737 = vst [vmem:[#allocation75_spill] sm:$0xff] %v11523_v24  ;;  %5781 = vmatmul.bf16.gmra.mxu1 %v7066_v50  ;;  %v6859_v50 = vld [vmem:[#allocation4 + $0x1a4] sm:$0xf0]  ;;  %v7103_v24 = vld [vmem:[#allocation4 + $0x394] sm:$0xf0]  ;;  %vm11570_vm8 = vcmp.ne.s32.totalorder %v2673_v16, %v8637_v38  ;;  %vm11575_vm9 = vcmp.ne.s32.totalorder %v2674_v22, %v8640_v40 }
 0x272   : > { %v6862_v30 = vor.u32 %v7609_v12, %v6859_v50  ;;  %v7675_v52 = vld [vmem:[#allocation4 + $0x390] sm:$0xf0]  ;;  %v7106_v28 = vor.u32 %v7671_v33, %v7103_v24  ;;  %v3481_v12 = vsel %vm8608_vm12, %v3476_v36, %v11556_v14  ;;  %v11579_v24 = vpop.f32.mrf.mxu0  ;;  %3712 = vst [vmem:[#allocation4 + $0x404] sm:$0xf] %v3471_v1  ;;  %vm2679_vm10 = vmpackc.low %vm11575_vm9, %vm11570_vm8  ;;  %v3785_v22 = vld [vmem:[#allocation3 + $0x5c] sm:$0xf] }
 0x273   : > { %5870 = vmatmul.bf16.gmra.mxu2 %v7070_v57  ;;  %v11543_v57 = vpop.f32.mrf.mxu2  ;;  %v7102_v48 = vor.u32 %v7675_v52, %v7101_v26  ;;  %12746 = vst [vmem:[#allocation80_spill] sm:$0xff] %v11579_v24  ;;  %v3662_v52 = vshrl.u32 %v11540_v56, 16  ;;  %v6895_v56 = vld [vmem:[#allocation4 + $0x1ec] sm:$0xf0]  ;;  %v6805_v36 = vld [vmem:[#allocation4 + $0x128] sm:$0xf] }
 0x274   : > { %12738 = vst [vmem:[#allocation76_spill] sm:$0xff] %v11543_v57 }
 0x275   : > { %3713 = vst [vmem:[#allocation4 + $0x428] sm:$0xf] %v3481_v12  ;;  %v3664_v58 = vrot.slane %v3662_v52, 4  ;;  %v6898_v52 = vor.u32 %v7618_v29, %v6895_v56 }
 0x276   : > { %3544 = vst [vmem:[#allocation4 + $0x440] sm:$0xf] %v3471_v1 }
 0x277   : > { %3545 = vst [vmem:[#allocation4 + $0x464] sm:$0xf] %v3481_v12 }
 0x278   : > { %v11549_v2 = vpop.f32.mrf.mxu3  ;;  %v11551_v35 = vpop.f32.mrf.mxu1  ;;  %3880 = vst [vmem:[#allocation4 + $0x3c8] sm:$0xf] %v3471_v1  ;;  %v11595_v1 = vld [vmem:[%s12304_s4] ss:$0 sm:$0xff] }
 0x279   : > { %12740 = vst [vmem:[#allocation78_spill] sm:$0xff] %v11551_v35  ;;  %v3625_v35 = vld [vmem:[#allocation3 + $0x7c] sm:$0xf]  ;;  %6018 = vmatmul.bf16.gmra.mxu0 %v6862_v30  ;;  %v5432_v29 = vadd.f32 %v11595_v1, %v11349_v23 }
 0x27a   : > { %3657 = vst [vmem:[#allocation4 + $0x3dc] sm:$0xf] %v3625_v35  ;;  %v8115_v35 = vld [vmem:[#allocation3 + $0x8c] sm:$0xf]  ;;  %v7680_v30 = vld [vmem:[#allocation4 + $0x3bc] sm:$0xf] }
 0x27b   : > { %v11560_v17 = vpop.f32.mrf.mxu2  ;;  %3881 = vst [vmem:[#allocation4 + $0x3ec] sm:$0xf] %v3481_v12  ;;  %v2734_v50 = vsel %vm2679_vm10, %v8115_v35, 0  ;;  %v11597_v12 = vpop.f32.mrf.mxu0  ;;  %v3626_v35 = vld [vmem:[#allocation3 + $0x80] sm:$0xf] }
 0x27c   : > { %3816 = vst [vmem:[#allocation4 + $0x25c] sm:$0xf] %v3784_v60  ;;  %v3668_v33 = vshll.u32 %v2734_v50, 16  ;;  %v3672_v16 = vshrl.u32 %v2734_v50, 16  ;;  %v2423_v60 = vrot.slane %v11535_v51, 4 }
 0x27d   : > { %3817 = vst [vmem:[#allocation4 + $0x280] sm:$0xf] %v3785_v22  ;;  %v3665_v22 = vor.u32 %v3664_v58, %v11556_v14  ;;  %v3627_v50 = vld [vmem:[#allocation3 + $0x84] sm:$0xf]  ;;  %v7142_v14 = vor.u32 %v7680_v30, %v7139_v5 }
 0x27e   : > { %12749 = vst [vmem:[#allocation83_spill] sm:$0xff] %v11597_v12  ;;  %v3670_v59 = vrot.slane %v3668_v33, 5  ;;  %v3674_v12 = vrot.slane %v3672_v16, 4  ;;  %v11611_v33 = vld [vmem:[#allocation3 + $0x90] sm:$0xf]  ;;  %v7773_v16 = vld [vmem:[%s12303_s3 + $0x220] sm:$0xff] }
 0x27f   : > { %3658 = vst [vmem:[#allocation4 + $0x400] sm:$0xf] %v3626_v35  ;;  %6077 = vmatpush.bf16.msra.mxu1 %v7773_v16  ;;  %v3628_v16 = vld [vmem:[#allocation3 + $0x88] sm:$0xf] }
 0x280   : > { %5563 = vmatmul.bf16.gmra.mxu3 %v6770_v45  ;;  %v11558_v57 = vpop.f32.mrf.mxu3  ;;  %v11562_v15 = vpop.f32.mrf.mxu1  ;;  %v7602_v45 = vld [vmem:[#allocation4 + $0x148] sm:$0xf0]  ;;  %3659 = vst [vmem:[#allocation4 + $0x424] sm:$0xf] %v3627_v50  ;;  %v3675_v35 = vor.u32 %v3674_v12, %v3670_v59  ;;  %v7611_v50 = vld [vmem:[#allocation4 + $0x190] sm:$0xf0] }
 0x281   : > { %12741 = vst [vmem:[#allocation79_spill] sm:$0xff] %v11562_v15  ;;  %5786 = vmatmul.bf16.gmra.mxu1 %v7102_v48  ;;  %v7684_v24 = vld [vmem:[#allocation4 + $0x3d8] sm:$0xf0] }
 0x282   : > { %3660 = vst [vmem:[#allocation4 + $0x448] sm:$0xf] %v3628_v16  ;;  %v3789_v16 = vld [vmem:[#allocation3 + $0x6c] sm:$0xf] }
 0x283   : > { %5875 = vmatmul.bf16.gmra.mxu2 %v7106_v28  ;;  %v11588_v26 = vpop.f32.mrf.mxu2  ;;  %v6806_v28 = vor.u32 %v7602_v45, %v6805_v36  ;;  %v7757_v45 = vld [vmem:[%s12303_s3 + $0x1a0] sm:$0xff]  ;;  %v7137_v36 = vld [vmem:[#allocation4 + $0x3b8] sm:$0xf]  ;;  %v11624_v5 = vpop.f32.mrf.mxu0  ;;  %3821 = vst [vmem:[#allocation4 + $0x310] sm:$0xf] %v3789_v16 }
 0x284   : > { %12747 = vst [vmem:[#allocation81_spill] sm:$0xff] %v11588_v26  ;;  %5899 = vmatpush.bf16.msra.mxu3 %v7757_v45  ;;  %v7138_v56 = vor.u32 %v7684_v24, %v7137_v36  ;;  %v3787_v24 = vld [vmem:[#allocation3 + $0x64] sm:$0xf]  ;;  %v7627_v36 = vld [vmem:[#allocation4 + $0x214] sm:$0xf] }
 0x285   : > { %12752 = vst [vmem:[#allocation86_spill] sm:$0xff] %v11624_v5 }
 0x286   : > { %3819 = vst [vmem:[#allocation4 + $0x2c8] sm:$0xf] %v3787_v24 }
 0x287   : > { %v7693_v24 = vld [vmem:[#allocation4 + $0x420] sm:$0xf0] }
 0x288   : > { %v11586_v11 = vpop.f32.mrf.mxu3  ;;  %v11590_v48 = vpop.f32.mrf.mxu1 }
 0x289   : > { %12748 = vst [vmem:[#allocation82_spill] sm:$0xff] %v11590_v48  ;;  %6023 = vmatmul.bf16.gmra.mxu0 %v6898_v52  ;;  %v3666_v52 = vrot.slane %v3665_v22, 4  ;;  %v7209_v5 = vld [vmem:[#allocation4 + $0x448] sm:$0xf] }
 0x28b   : > { %v3671_v23 = vsel %vm8608_vm12, %v3666_v52, %v3670_v59  ;;  %v11620_v30 = vpop.f32.mrf.mxu2  ;;  %v7689_v52 = vld [vmem:[#allocation4 + $0x404] sm:$0xf] }
 0x28c   : > { %3714 = vst [vmem:[#allocation4 + $0x44c] sm:$0xf] %v3671_v23 }
 0x28d   : > { %12750 = vst [vmem:[#allocation84_spill] sm:$0xff] %v11620_v30 }
 0x28e   : > { %3882 = vst [vmem:[#allocation4 + $0x410] sm:$0xf] %v3671_v23  ;;  %v7173_v23 = vld [vmem:[#allocation4 + $0x400] sm:$0xf] }
 0x290   : > { %5568 = vmatmul.bf16.gmra.mxu3 %v6806_v28  ;;  %v5520_v51 = vpop.f32.mrf.mxu3  ;;  %v2431_v28 = vsel %vm8686_vm5, %v2423_v60, %v8645_v43  ;;  %v3786_v43 = vld [vmem:[#allocation3 + $0x60] sm:$0xf]  ;;  %v11622_v12 = vpop.f32.mrf.mxu1 }
 0x291   : > { %v11606_v58 = vadd.f32 %v5520_v51, %v5432_v29  ;;  %v2680_v48 = vunpack.c.l.b16 %v2431_v28  ;;  %v2681_v15 = vunpack.c.h.b16 %v2431_v28  ;;  %5791 = vmatmul.bf16.gmra.mxu1 %v7138_v56  ;;  %12751 = vst [vmem:[#allocation85_spill] sm:$0xff] %v11622_v12  ;;  %v6931_v29 = vld [vmem:[#allocation4 + $0x234] sm:$0xf0] }
 0x292   : > { %3818 = vst [vmem:[#allocation4 + $0x2a4] sm:$0xf] %v3786_v43  ;;  %v3629_v43 = vld [vmem:[#allocation3 + $0x8c] sm:$0xf] }
 0x293   : > { %5880 = vmatmul.bf16.gmra.mxu2 %v7142_v14  ;;  %vm2684_vm11 = vcmp.ne.s32.totalorder %v2680_v48, %v8637_v38  ;;  %vm2685_vm13 = vcmp.ne.s32.totalorder %v2681_v15, %v8640_v40  ;;  %v5434_v48 = vadd.f32 %v11595_v1, %v11409_v6  ;;  %v3676_v15 = vrot.slane %v3675_v35, 4  ;;  %v6841_v14 = vld [vmem:[#allocation4 + $0x170] sm:$0xf]  ;;  %v7175_v6 = vld [vmem:[#allocation4 + $0x424] sm:$0xf0] }
 0x294   : > { %vm2686_vm14 = vmpackc.low %vm2685_vm13, %vm2684_vm11  ;;  %v6842_v56 = vor.u32 %v7611_v50, %v6841_v14  ;;  %v6934_v35 = vor.u32 %v7627_v36, %v6931_v29  ;;  %3661 = vst [vmem:[#allocation4 + $0x46c] sm:$0xf] %v3629_v43  ;;  %v11648_v50 = vpop.f32.mrf.mxu0  ;;  %v7178_v14 = vor.u32 %v7689_v52, %v7175_v6  ;;  %v5439_v43 = vadd.f32 %v11595_v1, %v11489_v25  ;;  %v7620_v6 = vld [vmem:[#allocation4 + $0x1d8] sm:$0xf0]  ;;  %v7698_v25 = vld [vmem:[#allocation4 + $0x44c] sm:$0xf] }
 0x295   : > { %v11627_v59 = vsel %vm2686_vm14, %v11611_v33, 0  ;;  %12757 = vst [vmem:[#allocation91_spill] sm:$0xff] %v11648_v50  ;;  %v3791_v50 = vld [vmem:[#allocation3 + $0x74] sm:$0xf] }
 0x296   : > { %12753 = vst [vmem:[#allocation87_spill] sm:$0xff] %v11627_v59  ;;  %v3678_v60 = vshll.u32 %v11627_v59, 16 }
 0x297   : > { %3823 = vst [vmem:[#allocation4 + $0x358] sm:$0xf] %v3791_v50  ;;  %v5444_v50 = vadd.f32 %v11595_v1, %v11549_v2  ;;  %v5447_v2 = vadd.f32 %v11595_v1, %v11558_v57 }
 0x298   : > { %v5522_v22 = vpop.f32.mrf.mxu3  ;;  %v11634_v51 = vrot.slane %v3678_v60, 5  ;;  %v5437_v60 = vadd.f32 %v11595_v1, %v11448_v53  ;;  %v7770_v53 = vld [vmem:[%s12303_s3 + $0x208] sm:$0xff] }
 0x299   : > { %v11632_v45 = vadd.f32 %v5522_v22, %v5434_v48  ;;  %6028 = vmatmul.bf16.gmra.mxu0 %v6934_v35  ;;  %v7772_v48 = vld [vmem:[%s12303_s3 + $0x218] sm:$0xff]  ;;  %v11646_v22 = vpop.f32.mrf.mxu1  ;;  %v3788_v35 = vld [vmem:[#allocation3 + $0x68] sm:$0xf] }
 0x29a   : > { %12754 = vst [vmem:[#allocation88_spill] sm:$0xff] %v11634_v51  ;;  %v3681_v28 = vsel %vm8608_vm12, %v3676_v15, %v11634_v51  ;;  %v11644_v15 = vpop.f32.mrf.mxu2  ;;  %6078 = vmatpush.bf16.msra.mxu1 %v7772_v48 }
 0x29b   : > { %3715 = vst [vmem:[#allocation4 + $0x470] sm:$0xf] %v3681_v28  ;;  %v7702_v51 = vld [vmem:[#allocation4 + $0x468] sm:$0xf0] }
 0x29c   : > { %3883 = vst [vmem:[#allocation4 + $0x434] sm:$0xf] %v3681_v28  ;;  %v7771_v28 = vld [vmem:[%s12303_s3 + $0x210] sm:$0xff] }
 0x29d   : > { %12755 = vst [vmem:[#allocation89_spill] sm:$0xff] %v11644_v15  ;;  %v6793_v15 = vld [vmem:[#allocation4 + $0xf8] sm:$0xf] }
 0x29e   : > { %12756 = vst [vmem:[#allocation90_spill] sm:$0xff] %v11646_v22  ;;  %6079 = vmatpush.bf16.msra.mxu1 %v7771_v28  ;;  %v6877_v28 = vld [vmem:[#allocation4 + $0x1b8] sm:$0xf] }
 0x29f   : > { %3820 = vst [vmem:[#allocation4 + $0x2ec] sm:$0xf] %v3788_v35  ;;  %v6878_v35 = vor.u32 %v7620_v6, %v6877_v28 }
 0x2a0   : > { %5573 = vmatmul.bf16.gmra.mxu3 %v6842_v56  ;;  %v7174_v56 = vor.u32 %v7693_v24, %v7173_v23 }
 0x2a1   : > { %v11664_v48 = vpop.f32.mrf.mxu1  ;;  %v12871_v63 = vld [vmem:[#allocation88_spill] sm:$0xff] }
 0x2a2   : > { %5796 = vmatmul.bf16.gmra.mxu1 %v7174_v56  ;;  %v11660_v23 = vpop.f32.mrf.mxu2  ;;  %12759 = vst [vmem:[#allocation93_spill] sm:$0xff] %v11664_v48  ;;  %v11669_v56 = vpop.f32.mrf.mxu0  ;;  %v7629_v48 = vld [vmem:[#allocation4 + $0x220] sm:$0xf0] }
 0x2a3   : > { %v5525_v36 = vpop.f32.mrf.mxu3  ;;  %5885 = vmatmul.bf16.gmra.mxu2 %v7178_v14  ;;  %6080 = vmatpush.bf16.msra.mxu1 %v7770_v53  ;;  %12758 = vst [vmem:[#allocation92_spill] sm:$0xff] %v11660_v23  ;;  %v7769_v14 = vld [vmem:[%s12303_s3 + $0x200] sm:$0xff]  ;;  %v3790_v53 = vld [vmem:[#allocation3 + $0x70] sm:$0xf] }
 0x2a4   : > { %v11650_v29 = vadd.f32 %v5525_v36, %v5437_v60  ;;  %v7636_v60 = vld [vmem:[#allocation4 + $0x25c] sm:$0xf]  ;;  %v6967_v36 = vld [vmem:[#allocation4 + $0x27c] sm:$0xf0]  ;;  %12760 = vst [vmem:[#allocation94_spill] sm:$0xff] %v11669_v56  ;;  %v5442_v56 = vadd.f32 %v11595_v1, %v11521_v9 }
 0x2a5   : > { %v6970_v16 = vor.u32 %v7636_v60, %v6967_v36  ;;  %3822 = vst [vmem:[#allocation4 + $0x334] sm:$0xf] %v3790_v53 }
 0x2a6   : > { %v7654_v57 = vld [vmem:[#allocation4 + $0x2ec] sm:$0xf] }
 0x2a7   : > { %6081 = vmatpush.bf16.msra.mxu1 %v7769_v14  ;;  %v7210_v14 = vor.u32 %v7702_v51, %v7209_v5  ;;  %v3792_v51 = vld [vmem:[#allocation3 + $0x78] sm:$0xf] }
 0x2a8   : > { %3824 = vst [vmem:[#allocation4 + $0x37c] sm:$0xf] %v3792_v51  ;;  %v7638_v51 = vld [vmem:[#allocation4 + $0x268] sm:$0xf0] }
 0x2a9   : > { %6033 = vmatmul.bf16.gmra.mxu0 %v6970_v16 }
 0x2aa   : > { %v11678_v28 = vpop.f32.mrf.mxu2  ;;  %v11682_v53 = vpop.f32.mrf.mxu0 }
 0x2ab   : > { %v5527_v52 = vpop.f32.mrf.mxu3  ;;  %12761 = vst [vmem:[#allocation95_spill] sm:$0xff] %v11678_v28  ;;  %v7783_v28 = vld [vmem:[#allocation8 + $0x30] sm:$0xff] }
 0x2ac   : > { %v11662_v24 = vadd.f32 %v5527_v52, %v5439_v43  ;;  %v7211_v43 = vld [vmem:[#allocation4 + $0x46c] sm:$0xf0]  ;;  %v7756_v52 = vld [vmem:[%s12303_s3 + $0x198] sm:$0xff]  ;;  %12763 = vst [vmem:[#allocation97_spill] sm:$0xff] %v11682_v53 }
 0x2ad   : > { %5900 = vmatpush.bf16.msra.mxu3 %v7756_v52  ;;  %v7214_v36 = vor.u32 %v7698_v25, %v7211_v43  ;;  %v7645_v52 = vld [vmem:[#allocation4 + $0x2a4] sm:$0xf]  ;;  %v3793_v43 = vld [vmem:[#allocation3 + $0x7c] sm:$0xf] }
 0x2ae   : > { %3825 = vst [vmem:[#allocation4 + $0x3a0] sm:$0xf] %v3793_v43 }
 0x2b0   : > { %5578 = vmatmul.bf16.gmra.mxu3 %v6878_v35  ;;  %v11680_v35 = vpop.f32.mrf.mxu1 }
 0x2b1   : > { %12762 = vst [vmem:[#allocation96_spill] sm:$0xff] %v11680_v35 }
 0x2b2   : > { %5801 = vmatmul.bf16.gmra.mxu1 %v7210_v14  ;;  %v7569_v14 = vld [vmem:[#allocation4 + $0x40] sm:$0xf0] }
 0x2b3   : > { %v5530_v6 = vpop.f32.mrf.mxu3  ;;  %5890 = vmatmul.bf16.gmra.mxu2 %v7214_v36  ;;  %v11690_v36 = vpop.f32.mrf.mxu0 }
 0x2b4   : > { %v11676_v60 = vadd.f32 %v5530_v6, %v5442_v56  ;;  %v7003_v56 = vld [vmem:[#allocation4 + $0x2c4] sm:$0xf0]  ;;  %v6913_v6 = vld [vmem:[#allocation4 + $0x200] sm:$0xf]  ;;  %12765 = vst [vmem:[#allocation99_spill] sm:$0xff] %v11690_v36 }
 0x2b5   : > { %v6914_v25 = vor.u32 %v7629_v48, %v6913_v6  ;;  %v7006_v5 = vor.u32 %v7645_v52, %v7003_v56  ;;  %v7784_v52 = vld [vmem:[#allocation8 + $0x38] sm:$0xff]  ;;  %v5449_v56 = vadd.f32 %v11595_v1, %v11586_v11  ;;  %v7039_v36 = vld [vmem:[#allocation4 + $0x30c] sm:$0xf0] }
 0x2b6   : > { %6279 = vmatpush.bf16.msra.mxu2 %v7784_v52  ;;  %v7755_v11 = vld [vmem:[%s12303_s3 + $0x190] sm:$0xff]  ;;  %v7578_v52 = vld [vmem:[#allocation4 + $0x88] sm:$0xf0] }
 0x2b7   : > { %5901 = vmatpush.bf16.msra.mxu3 %v7755_v11 }
 0x2b8   : > { %v11688_v59 = vpop.f32.mrf.mxu1 }
 0x2b9   : > { %12764 = vst [vmem:[#allocation98_spill] sm:$0xff] %v11688_v59  ;;  %6038 = vmatmul.bf16.gmra.mxu0 %v7006_v5  ;;  %v6949_v59 = vld [vmem:[#allocation4 + $0x248] sm:$0xf] }
 0x2ba   : > { %6280 = vmatpush.bf16.msra.mxu2 %v7783_v28  ;;  %v7596_v28 = vld [vmem:[#allocation4 + $0x118] sm:$0xf0] }
 0x2bb   : > { %v5532_v16 = vpop.f32.mrf.mxu3 }
 0x2bc   : > { %v11686_v9 = vadd.f32 %v5532_v16, %v5444_v50  ;;  %v6685_v16 = vld [vmem:[#allocation4 + $0x20] sm:$0xf] }
 0x2bd   : > { %v6686_v48 = vor.u32 %v7569_v14, %v6685_v16  ;;  %v5372_v14 = vadd.f32 %v11595_v1, %v9431_v54  ;;  %v3794_v16 = vld [vmem:[#allocation3 + $0x80] sm:$0xf] }
 0x2be   : > { %3826 = vst [vmem:[#allocation4 + $0x3c4] sm:$0xf] %v3794_v16  ;;  %v6985_v16 = vld [vmem:[#allocation4 + $0x290] sm:$0xf] }
 0x2c0   : > { %5583 = vmatmul.bf16.gmra.mxu3 %v6914_v25  ;;  %v11698_v6 = vpop.f32.mrf.mxu1  ;;  %v11700_v25 = vpop.f32.mrf.mxu0 }
 0x2c1   : > { %12766 = vst [vmem:[#allocation100_spill] sm:$0xff] %v11698_v6  ;;  %v6721_v6 = vld [vmem:[#allocation4 + $0x68] sm:$0xf] }
 0x2c2   : > { %6082 = vmatmul.bf16.vlgmr.msra.gmra.mxu1 %v6686_v48  ;;  %12767 = vst [vmem:[#allocation101_spill] sm:$0xff] %v11700_v25  ;;  %v3795_v48 = vld [vmem:[#allocation3 + $0x84] sm:$0xf] }
 0x2c3   : > { %v5535_v50 = vpop.f32.mrf.mxu3  ;;  %3827 = vst [vmem:[#allocation4 + $0x3e8] sm:$0xf] %v3795_v48  ;;  %v12771_v48 = vld [vmem:[#allocation20_spill] sm:$0xff] }
 0x2c4   : > { %v11694_v53 = vadd.f32 %v5535_v50, %v5447_v2  ;;  %v6950_v2 = vor.u32 %v7638_v51, %v6949_v59  ;;  %v7042_v50 = vor.u32 %v7654_v57, %v7039_v36  ;;  %v6722_v59 = vor.u32 %v7578_v52, %v6721_v6  ;;  %v7647_v57 = vld [vmem:[#allocation4 + $0x2b0] sm:$0xf0]  ;;  %v12773_v52 = vld [vmem:[#allocation26_spill] sm:$0xff] }
 0x2c5   : > { %v7587_v6 = vld [vmem:[#allocation4 + $0xd0] sm:$0xf0] }
 0x2c8   : > { %v11710_v35 = vpop.f32.mrf.mxu1  ;;  %v11714_v36 = vpop.f32.mrf.mxu0 }
 0x2c9   : > { %6043 = vmatmul.bf16.gmra.mxu0 %v7042_v50  ;;  %12770 = vst [vmem:[#allocation102_spill] sm:$0xff] %v11714_v36  ;;  %v7075_v50 = vld [vmem:[#allocation4 + $0x354] sm:$0xf0]  ;;  %v6757_v36 = vld [vmem:[#allocation4 + $0xb0] sm:$0xf] }
 0x2ca   : > { %v6758_v12 = vor.u32 %v7587_v6, %v6757_v36  ;;  %v12777_v6 = vld [vmem:[#allocation31_spill] sm:$0xff] }
 0x2cb   : > { %v5537_v5 = vpop.f32.mrf.mxu3 }
 0x2cc   : > { %v11702_v43 = vadd.f32 %v5537_v5, %v5449_v56  ;;  %v12768_v56 = vld [vmem:[#allocation22_spill] sm:$0xff] }
 0x2cd   : > { %v5461_v5 = vadd.f32 %v12768_v56, %v5372_v14  ;;  %12769 = vst [vmem:[#allocation22_spill] sm:$0xff] %v11710_v35  ;;  %v5377_v14 = vadd.f32 %v11595_v1, %v12771_v48  ;;  %v6986_v56 = vor.u32 %v7647_v57, %v6985_v16  ;;  %v7111_v16 = vld [vmem:[#allocation4 + $0x39c] sm:$0xf0] }
 0x2d0   : > { %5588 = vmatmul.bf16.gmra.mxu3 %v6950_v2  ;;  %v7663_v2 = vld [vmem:[#allocation4 + $0x334] sm:$0xf]  ;;  %v11720_v11 = vpop.f32.mrf.mxu1  ;;  %v11722_v22 = vpop.f32.mrf.mxu0 }
 0x2d1   : > { %12772 = vst [vmem:[#allocation20_spill] sm:$0xff] %v11720_v11 }
 0x2d2   : > { %6087 = vmatmul.bf16.gmra.mxu1 %v6722_v59 }
 0x2d3   : > { %v5549_v25 = vpop.f32.mrf.mxu3 }
 0x2d4   : > { %v11712_v54 = vadd.f32 %v5549_v25, %v5461_v5  ;;  %v7078_v25 = vor.u32 %v7663_v2, %v7075_v50  ;;  %v5466_v5 = vadd.f32 %v12773_v52, %v5377_v14  ;;  %v7656_v2 = vld [vmem:[#allocation4 + $0x2f8] sm:$0xf0] }
 0x2d5   : > { %v7672_v50 = vld [vmem:[#allocation4 + $0x37c] sm:$0xf] }
 0x2d8   : > { %v11727_v23 = vpop.f32.mrf.mxu1  ;;  %v11729_v48 = vpop.f32.mrf.mxu0 }
 0x2d9   : > { %6048 = vmatmul.bf16.gmra.mxu0 %v7078_v25  ;;  %12774 = vst [vmem:[#allocation26_spill] sm:$0xff] %v11727_v23  ;;  %v12775_v25 = vld [vmem:[#allocation23_spill] sm:$0xff] }
 0x2da   : > { %v5382_v14 = vadd.f32 %v11595_v1, %v12775_v25  ;;  %v7665_v25 = vld [vmem:[#allocation4 + $0x340] sm:$0xf0] }
 0x2db   : > { %v11716_v51 = vpop.f32.mrf.mxu3 }
 0x2e0   : > { %5593 = vmatmul.bf16.gmra.mxu3 %v6986_v56  ;;  %v7021_v56 = vld [vmem:[#allocation4 + $0x2d8] sm:$0xf]  ;;  %v11738_v36 = vpop.f32.mrf.mxu1  ;;  %v11741_v23 = vpop.f32.mrf.mxu0 }
 0x2e1   : > { %v7022_v52 = vor.u32 %v7656_v2, %v7021_v56  ;;  %12776 = vst [vmem:[#allocation23_spill] sm:$0xff] %v11738_v36  ;;  %v6794_v2 = vor.u32 %v7596_v28, %v6793_v15  ;;  %v12783_v36 = vld [vmem:[#allocation27_spill] sm:$0xff] }
 0x2e2   : > { %6092 = vmatmul.bf16.gmra.mxu1 %v6758_v12  ;;  %v7754_v12 = vld [vmem:[%s12303_s3 + $0x188] sm:$0xff]  ;;  %12778 = vst [vmem:[#allocation31_spill] sm:$0xff] %v11741_v23  ;;  %v7605_v28 = vld [vmem:[#allocation4 + $0x160] sm:$0xf0] }
 0x2e3   : > { %v5554_v59 = vpop.f32.mrf.mxu3  ;;  %5902 = vmatpush.bf16.msra.mxu3 %v7754_v12 }
 0x2e4   : > { %v11725_v35 = vadd.f32 %v5554_v59, %v5466_v5  ;;  %v7114_v5 = vor.u32 %v7672_v50, %v7111_v16  ;;  %v5471_v59 = vadd.f32 %v12777_v6, %v5382_v14  ;;  %v3796_v50 = vld [vmem:[#allocation3 + $0x88] sm:$0xf]  ;;  %v3797_v16 = vld [vmem:[#allocation3 + $0x8c] sm:$0xf]  ;;  %v7057_v6 = vld [vmem:[#allocation4 + $0x320] sm:$0xf] }
 0x2e5   : > { %3828 = vst [vmem:[#allocation4 + $0x40c] sm:$0xf] %v3796_v50  ;;  %v7147_v14 = vld [vmem:[#allocation4 + $0x3e4] sm:$0xf0] }
 0x2e6   : > { %3829 = vst [vmem:[#allocation4 + $0x430] sm:$0xf] %v3797_v16 }
 0x2e8   : > { %v11749_v12 = vpop.f32.mrf.mxu0 }
 0x2e9   : > { %6053 = vmatmul.bf16.gmra.mxu0 %v7114_v5  ;;  %v7681_v5 = vld [vmem:[#allocation4 + $0x3c4] sm:$0xf]  ;;  %12782 = vst [vmem:[#allocation106_spill] sm:$0xff] %v11749_v12  ;;  %v7782_v12 = vld [vmem:[#allocation8 + $0x28] sm:$0xff] }
 0x2ea   : > { %v7150_v15 = vor.u32 %v7681_v5, %v7147_v14  ;;  %6281 = vmatpush.bf16.msra.mxu2 %v7782_v12  ;;  %v7674_v5 = vld [vmem:[#allocation4 + $0x388] sm:$0xf0] }
 0x2eb   : > { %v11731_v57 = vpop.f32.mrf.mxu3  ;;  %v7614_v12 = vld [vmem:[#allocation4 + $0x1a8] sm:$0xf0] }
 0x2ec   : > { %v7690_v14 = vld [vmem:[#allocation4 + $0x40c] sm:$0xf] }
 0x2f0   : > { %5598 = vmatmul.bf16.gmra.mxu3 %v7022_v52  ;;  %v11747_v52 = vpop.f32.mrf.mxu1  ;;  %v11758_v23 = vpop.f32.mrf.mxu0 }
 0x2f1   : > { %12781 = vst [vmem:[#allocation105_spill] sm:$0xff] %v11747_v52 }
 0x2f2   : > { %6097 = vmatmul.bf16.gmra.mxu1 %v6794_v2  ;;  %v12784_v2 = vld [vmem:[#allocation37_spill] sm:$0xff] }
 0x2f3   : > { %v5559_v11 = vpop.f32.mrf.mxu3 }
 0x2f4   : > { %v11743_v30 = vadd.f32 %v5559_v11, %v5471_v59  ;;  %v5387_v11 = vadd.f32 %v11595_v1, %v12783_v36  ;;  %v7058_v59 = vor.u32 %v7665_v25, %v7057_v6  ;;  %v7093_v25 = vld [vmem:[#allocation4 + $0x368] sm:$0xf]  ;;  %v7183_v6 = vld [vmem:[#allocation4 + $0x42c] sm:$0xf0] }
 0x2f6   : > { %12779 = vst [vmem:[#allocation103_spill] sm:$0xff] %v11743_v30  ;;  %v5476_v50 = vadd.f32 %v12784_v2, %v5387_v11  ;;  %v7186_v2 = vor.u32 %v7690_v14, %v7183_v6  ;;  %v7129_v6 = vld [vmem:[#allocation4 + $0x3b0] sm:$0xf] }
 0x2f8   : > { %v11756_v26 = vpop.f32.mrf.mxu1 }
 0x2f9   : > { %6058 = vmatmul.bf16.gmra.mxu0 %v7150_v15  ;;  %12785 = vst [vmem:[#allocation27_spill] sm:$0xff] %v11756_v26  ;;  %v7094_v15 = vor.u32 %v7674_v5, %v7093_v25  ;;  %v6865_v26 = vld [vmem:[#allocation4 + $0x188] sm:$0xf] }
 0x2fa   : > { %v6866_v25 = vor.u32 %v7614_v12, %v6865_v26 }
 0x2fb   : > { %v11745_v56 = vpop.f32.mrf.mxu3 }
 0x2fc   : > { %12780 = vst [vmem:[#allocation104_spill] sm:$0xff] %v11745_v56  ;;  %v6829_v56 = vld [vmem:[#allocation4 + $0x140] sm:$0xf] }
 0x2fd   : > { %v6830_v52 = vor.u32 %v7605_v28, %v6829_v56  ;;  %v7753_v56 = vld [vmem:[%s12303_s3 + $0x180] sm:$0xff] }
 0x2fe   : > { %5903 = vmatpush.bf16.msra.mxu3 %v7753_v56  ;;  %v6901_v56 = vld [vmem:[#allocation4 + $0x1d0] sm:$0xf] }
 0x300   : > { %5603 = vmatmul.bf16.gmra.mxu3 %v7058_v59  ;;  %v12787_v59 = vld [vmem:[#allocation33_spill] sm:$0xff] }
 0x301   : > { %v5392_v11 = vadd.f32 %v11595_v1, %v12787_v59  ;;  %v7683_v59 = vld [vmem:[#allocation4 + $0x3d0] sm:$0xf0] }
 0x302   : > { %6102 = vmatmul.bf16.gmra.mxu1 %v6830_v52  ;;  %v11769_v52 = vpop.f32.mrf.mxu0 }
 0x303   : > { %v5564_v16 = vpop.f32.mrf.mxu3  ;;  %12789 = vst [vmem:[#allocation107_spill] sm:$0xff] %v11769_v52  ;;  %v5481_v28 = vadd.f32 %v10481_v7, %v5392_v11  ;;  %v7623_v52 = vld [vmem:[#allocation4 + $0x1f0] sm:$0xf0] }
 0x304   : > { %v11754_v30 = vadd.f32 %v5564_v16, %v5476_v50  ;;  %v11764_v50 = vpop.f32.mrf.mxu1  ;;  %v6902_v12 = vor.u32 %v7623_v52, %v6901_v56  ;;  %v6937_v56 = vld [vmem:[#allocation4 + $0x218] sm:$0xf] }
 0x305   : > { %12788 = vst [vmem:[#allocation33_spill] sm:$0xff] %v11764_v50 }
 0x309   : > { %6063 = vmatmul.bf16.gmra.mxu0 %v7186_v2  ;;  %v7130_v2 = vor.u32 %v7683_v59, %v7129_v6  ;;  %v5402_v6 = vadd.f32 %v11595_v1, %v10513_v27 }
 0x30b   : > { %v11760_v36 = vpop.f32.mrf.mxu3 }
 0x30c   : > { %12786 = vst [vmem:[#allocation37_spill] sm:$0xff] %v11760_v36  ;;  %v11774_v5 = vpop.f32.mrf.mxu1 }
 0x30d   : > { %12790 = vst [vmem:[#allocation108_spill] sm:$0xff] %v11774_v5  ;;  %v7165_v5 = vld [vmem:[#allocation4 + $0x3f8] sm:$0xf] }
 0x310   : > { %5608 = vmatmul.bf16.gmra.mxu3 %v7094_v15  ;;  %v12792_v15 = vld [vmem:[#allocation39_spill] sm:$0xff] }
 0x311   : > { %v5397_v50 = vadd.f32 %v11595_v1, %v12792_v15  ;;  %v5491_v15 = vadd.f32 %v10843_v37, %v5402_v6  ;;  %v1963_v37 = vunpack.c.l.b16 %v8612_v21  ;;  %v1964_v6 = vunpack.c.h.b16 %v8612_v21 }
 0x312   : > { %6107 = vmatmul.bf16.gmra.mxu1 %v6866_v25 }
 0x313   : > { %v5569_v16 = vpop.f32.mrf.mxu3  ;;  %v5486_v7 = vadd.f32 %v10657_v62, %v5397_v50  ;;  %v7632_v50 = vld [vmem:[#allocation4 + $0x238] sm:$0xf0]  ;;  %vm1967_vm3 = vcmp.ne.s32.totalorder %v1963_v37, %v8637_v38  ;;  %vm1968_vm4 = vcmp.ne.s32.totalorder %v1964_v6, %v8640_v40  ;;  %v3716_v37 = vrot.slane %v10885_v32, 4 }
 0x314   : > { %v11772_v36 = vadd.f32 %v5569_v16, %v5481_v28  ;;  %v11781_v28 = vpop.f32.mrf.mxu1  ;;  %v7781_v16 = vld [vmem:[#allocation8 + $0x20] sm:$0xff]  ;;  %vm1969_vm1 = vmpackc.low %vm1968_vm4, %vm1967_vm3  ;;  %v7780_v32 = vld [vmem:[#allocation8 + $0x18] sm:$0xff] }
 0x315   : > { %12793 = vst [vmem:[#allocation39_spill] sm:$0xff] %v11781_v28  ;;  %6282 = vmatpush.bf16.msra.mxu2 %v7781_v16  ;;  %v6938_v16 = vor.u32 %v7632_v50, %v6937_v56  ;;  %v11810_v50 = vld [vmem:[#allocation3 + $0x94] sm:$0xf] }
 0x316   : > { %12798 = vst [vmem:[#allocation111_spill] sm:$0xff] %v11810_v50  ;;  %v2006_v21 = vsel %vm1969_vm1, %v11810_v50, 0 }
 0x319   : > { %6283 = vmatpush.bf16.msra.mxu2 %v7780_v32 }
 0x31b   : > { %v11776_v14 = vpop.f32.mrf.mxu3 }
 0x31c   : > { %12791 = vst [vmem:[#allocation109_spill] sm:$0xff] %v11776_v14  ;;  %v7692_v14 = vld [vmem:[#allocation4 + $0x418] sm:$0xf0]  ;;  %v11789_v59 = vpop.f32.mrf.mxu1 }
 0x31d   : > { %12794 = vst [vmem:[#allocation110_spill] sm:$0xff] %v11789_v59  ;;  %v7166_v62 = vor.u32 %v7692_v14, %v7165_v5 }
 0x320   : > { %5613 = vmatmul.bf16.gmra.mxu3 %v7130_v2  ;;  %v12795_v2 = vld [vmem:[#allocation42_spill] sm:$0xff] }
 0x321   : > { %v12796_v52 = vor.u32 %v12795_v2, %v10411_v13  ;;  %v7201_v13 = vld [vmem:[#allocation4 + $0x440] sm:$0xf] }
 0x322   : > { %6112 = vmatmul.bf16.gmra.mxu1 %v6902_v12 }
 0x323   : > { %v5574_v11 = vpop.f32.mrf.mxu3 }
 0x324   : > { %v11783_v26 = vadd.f32 %v5574_v11, %v5486_v7  ;;  %v1700_v7 = vrot.slane %v12796_v52, 4  ;;  %v11800_v59 = vpop.f32.mrf.mxu1  ;;  %v5407_v52 = vadd.f32 %v11595_v1, %v10675_v46 }
 0x325   : > { %12797 = vst [vmem:[#allocation42_spill] sm:$0xff] %v11800_v59 }
 0x326   : > { %v1705_v27 = vsel %vm8608_vm12, %v1700_v7, %v8579_v4  ;;  %v7701_v4 = vld [vmem:[#allocation4 + $0x460] sm:$0xf0] }
 0x327   : > { %v1956_v5 = vunpack.c.l.b16 %v1705_v27  ;;  %v1957_v14 = vunpack.c.h.b16 %v1705_v27  ;;  %v7202_v7 = vor.u32 %v7701_v4, %v7201_v13  ;;  %v3730_v27 = vshll.u32 %v2006_v21, 16 }
 0x329   : > { %vm1960_vm15 = vcmp.ne.s32.totalorder %v1956_v5, %v8637_v38  ;;  %vm1961_vm2 = vcmp.ne.s32.totalorder %v1957_v14, %v8640_v40  ;;  %v7641_v14 = vld [vmem:[#allocation4 + $0x280] sm:$0xf0]  ;;  %v6973_v40 = vld [vmem:[#allocation4 + $0x260] sm:$0xf] }
 0x32a   : > { %vm1962_vm0 = vmpackc.low %vm1961_vm2, %vm1960_vm15  ;;  %v6974_v4 = vor.u32 %v7641_v14, %v6973_v40  ;;  %v7650_v40 = vld [vmem:[#allocation4 + $0x2c8] sm:$0xf0]  ;;  %v6713_v14 = vld [vmem:[#allocation4 + $0x60] sm:$0xf] }
 0x32b   : > { %v11785_v25 = vpop.f32.mrf.mxu3 }
 0x32c   : > { %v11817_v28 = vpop.f32.mrf.mxu1 }
 0x32d   : > { %12799 = vst [vmem:[#allocation112_spill] sm:$0xff] %v11817_v28 }
 0x330   : > { %5618 = vmatmul.bf16.gmra.mxu3 %v7166_v62 }
 0x332   : > { %6117 = vmatmul.bf16.gmra.mxu1 %v6938_v16 }
 0x333   : > { %v5579_v11 = vpop.f32.mrf.mxu3 }
 0x334   : > { %v11795_v12 = vadd.f32 %v5579_v11, %v5491_v15  ;;  %v2005_v15 = vsel %vm1962_vm0, %v11611_v33, 0  ;;  %v3727_v11 = vshrl.u32 %v2006_v21, 16  ;;  %v5496_v33 = vadd.f32 %v10979_v41, %v5407_v52  ;;  %v6677_v41 = vld [vmem:[#allocation4 + $0x18] sm:$0xf]  ;;  %v11828_v52 = vpop.f32.mrf.mxu1 }
 0x335   : > { %v3718_v2 = vshrl.u32 %v2005_v15, 16  ;;  %v3721_v16 = vshll.u32 %v2005_v15, 16  ;;  %12800 = vst [vmem:[#allocation113_spill] sm:$0xff] %v11828_v52 }
 0x336   : > { %v3729_v5 = vrot.slane %v3727_v11, 7 }
 0x337   : > { %v3720_v56 = vrot.slane %v3718_v2, 7  ;;  %v7568_v2 = vld [vmem:[#allocation4 + $0x38] sm:$0xf0] }
 0x338   : > { %v3732_v20 = vor.u32 %v3730_v27, %v3729_v5 }
 0x339   : > { %v3723_v6 = vor.u32 %v3721_v16, %v3720_v56  ;;  %v3725_v59 = vrot.slane %v3720_v56, 4 }
 0x33b   : > { %v11808_v62 = vpop.f32.mrf.mxu3  ;;  %v3724_v46 = vsel %vm8686_vm5, %v3716_v37, %v3723_v6  ;;  %v3733_v15 = vsel %vm8686_vm5, %v3725_v59, %v3732_v20  ;;  %v7009_v59 = vld [vmem:[#allocation4 + $0x2a8] sm:$0xf]  ;;  %v7577_v37 = vld [vmem:[#allocation4 + $0x80] sm:$0xf0] }
 0x33c   : > { %3766 = vst [vmem:[#allocation4 + $0x450] sm:$0xf] %v3724_v46  ;;  %v7010_v16 = vor.u32 %v7650_v40, %v7009_v59  ;;  %v11835_v27 = vpop.f32.mrf.mxu1  ;;  %v6714_v6 = vor.u32 %v7577_v37, %v6713_v14  ;;  %v7659_v46 = vld [vmem:[#allocation4 + $0x310] sm:$0xf0]  ;;  %v7586_v40 = vld [vmem:[#allocation4 + $0xc8] sm:$0xf0] }
 0x33d   : > { %3767 = vst [vmem:[#allocation4 + $0x474] sm:$0xf] %v3733_v15  ;;  %v7081_v59 = vld [vmem:[#allocation4 + $0x338] sm:$0xf] }
 0x33e   : > { %12801 = vst [vmem:[#allocation114_spill] sm:$0xff] %v11835_v27  ;;  %v6893_v27 = vld [vmem:[#allocation4 + $0x1c8] sm:$0xf] }
 0x340   : > { %5623 = vmatmul.bf16.gmra.mxu3 %v7202_v7  ;;  %v5412_v7 = vadd.f32 %v11595_v1, %v10875_v31  ;;  %v5417_v31 = vadd.f32 %v11595_v1, %v10999_v34  ;;  %v6749_v34 = vld [vmem:[#allocation4 + $0xa8] sm:$0xf] }
 0x342   : > { %6122 = vmatmul.bf16.gmra.mxu1 %v6974_v4  ;;  %v5501_v11 = vadd.f32 %v11109_v19, %v5412_v7  ;;  %v7045_v19 = vld [vmem:[#allocation4 + $0x2f0] sm:$0xf]  ;;  %v5506_v4 = vadd.f32 %v11214_v44, %v5417_v31  ;;  %v7668_v44 = vld [vmem:[#allocation4 + $0x358] sm:$0xf0] }
 0x343   : > { %v5584_v50 = vpop.f32.mrf.mxu3 }
 0x344   : > { %v11822_v13 = vadd.f32 %v5584_v50, %v5496_v33  ;;  %v6678_v50 = vor.u32 %v7568_v2, %v6677_v41  ;;  %v11841_v33 = vpop.f32.mrf.mxu1  ;;  %v7046_v41 = vor.u32 %v7659_v46, %v7045_v19  ;;  %v7779_v2 = vld [vmem:[#allocation8 + $0x10] sm:$0xff]  ;;  %v5424_v19 = vadd.f32 %v11595_v1, %v11159_v3  ;;  %v11859_v46 = vpop.f32.mrf.mxu2 }
 0x345   : > { %12802 = vst [vmem:[#allocation115_spill] sm:$0xff] %v11841_v33  ;;  %6284 = vmatpush.bf16.msra.mxu2 %v7779_v2 }
 0x34b   : > { %v11826_v21 = vpop.f32.mrf.mxu3 }
 0x34c   : > { %v11846_v7 = vpop.f32.mrf.mxu1 }
 0x34d   : > { %12803 = vst [vmem:[#allocation116_spill] sm:$0xff] %v11846_v7 }
 0x350   : > { %5904 = vmatmul.bf16.vlgmr.msra.gmra.mxu3 %v6678_v50 }
 0x352   : > { %6127 = vmatmul.bf16.gmra.mxu1 %v7010_v16 }
 0x353   : > { %v5589_v20 = vpop.f32.mrf.mxu3 }
 0x354   : > { %v11833_v56 = vadd.f32 %v5589_v20, %v5501_v11  ;;  %v5422_v11 = vadd.f32 %v11595_v1, %v11133_v10  ;;  %v6750_v20 = vor.u32 %v7586_v40, %v6749_v34  ;;  %v11853_v37 = vpop.f32.mrf.mxu1  ;;  %v5513_v10 = vadd.f32 %v11367_v39, %v5424_v19 }
 0x356   : > { %v5511_v16 = vadd.f32 %v11321_v0, %v5422_v11  ;;  %v5427_v0 = vadd.f32 %v11595_v1, %v11210_v8  ;;  %v7117_v11 = vld [vmem:[#allocation4 + $0x380] sm:$0xf] }
 0x358   : > { %v5516_v3 = vadd.f32 %v11423_v49, %v5427_v0 }
 0x35b   : > { %v11837_v5 = vpop.f32.mrf.mxu3 }
 0x35c   : > { %v11866_v34 = vpop.f32.mrf.mxu1 }
 0x360   : > { %5909 = vmatmul.bf16.gmra.mxu3 %v6714_v6  ;;  %v7082_v6 = vor.u32 %v7668_v44, %v7081_v59  ;;  %v11869_v44 = vpop.f32.mrf.mxu2 }
 0x362   : > { %6132 = vmatmul.bf16.gmra.mxu1 %v7046_v41  ;;  %v7595_v41 = vld [vmem:[#allocation4 + $0x110] sm:$0xf0] }
 0x363   : > { %v5594_v15 = vpop.f32.mrf.mxu3 }
 0x364   : > { %v11844_v32 = vadd.f32 %v5594_v15, %v5506_v4  ;;  %v6785_v15 = vld [vmem:[#allocation4 + $0xf0] sm:$0xf]  ;;  %v11875_v8 = vpop.f32.mrf.mxu1 }
 0x365   : > { %v6786_v40 = vor.u32 %v7595_v41, %v6785_v15  ;;  %v7604_v15 = vld [vmem:[#allocation4 + $0x158] sm:$0xf0] }
 0x368   : > { %v11880_v41 = vpop.f32.mrf.mxu2 }
 0x36b   : > { %v11848_v50 = vpop.f32.mrf.mxu3 }
 0x370   : > { %5914 = vmatmul.bf16.gmra.mxu3 %v6750_v20  ;;  %v7677_v20 = vld [vmem:[#allocation4 + $0x3a0] sm:$0xf0] }
 0x372   : > { %6137 = vmatmul.bf16.gmra.mxu1 %v7082_v6  ;;  %v7778_v6 = vld [vmem:[#allocation8 + $0x8] sm:$0xff] }
 0x373   : > { %v5599_v14 = vpop.f32.mrf.mxu3  ;;  %6285 = vmatpush.bf16.msra.mxu2 %v7778_v6  ;;  %v7613_v6 = vld [vmem:[#allocation4 + $0x1a0] sm:$0xf0] }
 0x374   : > { %v11855_v31 = vadd.f32 %v5599_v14, %v5511_v16  ;;  %v7118_v16 = vor.u32 %v7677_v20, %v7117_v11  ;;  %v5429_v14 = vadd.f32 %v11595_v1, %v11252_v42  ;;  %v7686_v11 = vld [vmem:[#allocation4 + $0x3e8] sm:$0xf0]  ;;  %v11882_v20 = vpop.f32.mrf.mxu1 }
 0x376   : > { %v5518_v19 = vadd.f32 %v11463_v55, %v5429_v14  ;;  %v11887_v55 = vpop.f32.mrf.mxu2  ;;  %v6857_v14 = vld [vmem:[#allocation4 + $0x180] sm:$0xf] }
 0x37b   : > { %v5601_v4 = vpop.f32.mrf.mxu3 }
 0x37c   : > { %v11862_v2 = vadd.f32 %v5601_v4, %v5513_v10  ;;  %v6821_v4 = vld [vmem:[#allocation4 + $0x138] sm:$0xf] }
 0x37d   : > { %v6822_v0 = vor.u32 %v7604_v15, %v6821_v4  ;;  %v6858_v4 = vor.u32 %v7613_v6, %v6857_v14  ;;  %v7189_v15 = vld [vmem:[#allocation4 + $0x410] sm:$0xf] }
 0x37e   : > { %v11894_v7 = vpop.f32.mrf.mxu2 }
 0x380   : > { %5919 = vmatmul.bf16.gmra.mxu3 %v6786_v40  ;;  %v7153_v40 = vld [vmem:[#allocation4 + $0x3c8] sm:$0xf] }
 0x382   : > { %6142 = vmatmul.bf16.gmra.mxu1 %v7118_v16 }
 0x383   : > { %v5604_v59 = vpop.f32.mrf.mxu3 }
 0x384   : > { %v11871_v39 = vadd.f32 %v5604_v59, %v5516_v3  ;;  %v7154_v59 = vor.u32 %v7686_v11, %v7153_v40 }
 0x386   : > { %12804 = vst [vmem:[#allocation117_spill] sm:$0xff] %v11871_v39 }
 0x38b   : > { %v5606_v10 = vpop.f32.mrf.mxu3 }
 0x38c   : > { %v11878_v49 = vadd.f32 %v5606_v10, %v5518_v19  ;;  %v11889_v19 = vpop.f32.mrf.mxu1 }
 0x38e   : > { %12805 = vst [vmem:[#allocation118_spill] sm:$0xff] %v11878_v49  ;;  %v12834_v49 = vld [vmem:[#allocation44_spill] sm:$0xff] }
 0x390   : > { %5924 = vmatmul.bf16.gmra.mxu3 %v6822_v0  ;;  %v7695_v0 = vld [vmem:[#allocation4 + $0x430] sm:$0xf0] }
 0x391   : > { %v7190_v11 = vor.u32 %v7695_v0, %v7189_v15 }
 0x392   : > { %6147 = vmatmul.bf16.gmra.mxu1 %v7154_v59  ;;  %v7777_v59 = vld [vmem:[#allocation8] sm:$0xff] }
 0x393   : > { %v5609_v42 = vpop.f32.mrf.mxu3  ;;  %6286 = vmatpush.bf16.msra.mxu2 %v7777_v59 }
 0x394   : > { %v11885_v3 = vadd.f32 %v5609_v42, %v11606_v58  ;;  %v11899_v42 = vpop.f32.mrf.mxu1 }
 0x396   : > { %12806 = vst [vmem:[#allocation119_spill] sm:$0xff] %v11885_v3  ;;  %v11935_v3 = vpop.f32.mrf.mxu0 }
 0x39b   : > { %v5611_v16 = vpop.f32.mrf.mxu3 }
 0x39c   : > { %v11892_v10 = vadd.f32 %v5611_v16, %v11632_v45  ;;  %v7622_v45 = vld [vmem:[#allocation4 + $0x1e8] sm:$0xf0]  ;;  %v11901_v16 = vpop.f32.mrf.mxu2 }
 0x39d   : > { %v6894_v6 = vor.u32 %v7622_v45, %v6893_v27 }
 0x39e   : > { %12807 = vst [vmem:[#allocation120_spill] sm:$0xff] %v11892_v10 }
 0x3a0   : > { %5929 = vmatmul.bf16.gmra.mxu3 %v6858_v4 }
 0x3a2   : > { %6152 = vmatmul.bf16.gmra.mxu1 %v7190_v11  ;;  %v7631_v11 = vld [vmem:[#allocation4 + $0x230] sm:$0xf0] }
 0x3a3   : > { %v5614_v58 = vpop.f32.mrf.mxu3 }
 0x3a4   : > { %v11897_v40 = vadd.f32 %v5614_v58, %v11650_v29  ;;  %v11909_v15 = vpop.f32.mrf.mxu2  ;;  %v6929_v58 = vld [vmem:[#allocation4 + $0x210] sm:$0xf] }
 0x3a5   : > { %v6930_v52 = vor.u32 %v7631_v11, %v6929_v58 }
 0x3a6   : > { %12808 = vst [vmem:[#allocation121_spill] sm:$0xff] %v11897_v40 }
 0x3ab   : > { %v5616_v33 = vpop.f32.mrf.mxu3 }
 0x3ac   : > { %v11904_v14 = vadd.f32 %v5616_v33, %v11662_v24  ;;  %v11914_v28 = vpop.f32.mrf.mxu2  ;;  %v12813_v33 = vld [vmem:[#allocation19_spill] sm:$0xff] }
 0x3ae   : > { %12809 = vst [vmem:[#allocation122_spill] sm:$0xff] %v11904_v14  ;;  %v12814_v14 = vld [vmem:[#allocation29_spill] sm:$0xff] }
 0x3b0   : > { %5934 = vmatmul.bf16.gmra.mxu3 %v6894_v6 }
 0x3b3   : > { %v5619_v4 = vpop.f32.mrf.mxu3 }
 0x3b4   : > { %v11907_v29 = vadd.f32 %v5619_v4, %v11676_v60  ;;  %v5374_v60 = vadd.f32 %v11595_v1, %v12813_v33  ;;  %v11921_v45 = vpop.f32.mrf.mxu2  ;;  %v6965_v4 = vld [vmem:[#allocation4 + $0x258] sm:$0xf]  ;;  %v12817_v33 = vld [vmem:[#allocation32_spill] sm:$0xff] }
 0x3b6   : > { %12810 = vst [vmem:[#allocation123_spill] sm:$0xff] %v11907_v29  ;;  %v7640_v29 = vld [vmem:[#allocation4 + $0x278] sm:$0xf0] }
 0x3bb   : > { %v5621_v0 = vpop.f32.mrf.mxu3 }
 0x3bc   : > { %v11912_v59 = vadd.f32 %v5621_v0, %v11686_v9  ;;  %v5639_v9 = vadd.f32 %v12814_v14, %v11712_v54  ;;  %v12815_v0 = vld [vmem:[#allocation24_spill] sm:$0xff]  ;;  %v11932_v40 = vpop.f32.mrf.mxu2 }
 0x3bd   : > { %v5463_v58 = vadd.f32 %v12815_v0, %v5374_v60  ;;  %v12818_v60 = vld [vmem:[#allocation21_spill] sm:$0xff]  ;;  %v7649_v0 = vld [vmem:[#allocation4 + $0x2c0] sm:$0xf0] }
 0x3be   : > { %12811 = vst [vmem:[#allocation124_spill] sm:$0xff] %v11912_v59 }
 0x3c0   : > { %5939 = vmatmul.bf16.gmra.mxu3 %v6930_v52  ;;  %v5552_v52 = vadd.f32 %v11716_v51, %v5463_v58  ;;  %v5379_v51 = vadd.f32 %v11595_v1, %v12818_v60  ;;  %v12820_v58 = vld [vmem:[#allocation35_spill] sm:$0xff]  ;;  %v12823_v60 = vld [vmem:[#allocation38_spill] sm:$0xff] }
 0x3c3   : > { %v5624_v24 = vpop.f32.mrf.mxu3 }
 0x3c4   : > { %v11917_v27 = vadd.f32 %v5624_v24, %v11694_v53  ;;  %v6966_v53 = vor.u32 %v7640_v29, %v6965_v4  ;;  %v5728_v24 = vadd.f32 %v11298_v18, %v5639_v9  ;;  %v12819_v18 = vld [vmem:[#allocation76_spill] sm:$0xff]  ;;  %v7001_v9 = vld [vmem:[#allocation4 + $0x2a0] sm:$0xf] }
 0x3c6   : > { %12812 = vst [vmem:[#allocation125_spill] sm:$0xff] %v11917_v27  ;;  %v5641_v27 = vadd.f32 %v12817_v33, %v5552_v52  ;;  %v5817_v10 = vadd.f32 %v11503_v61, %v5728_v24  ;;  %v5644_v61 = vadd.f32 %v12820_v58, %v11725_v35  ;;  %v12821_v52 = vld [vmem:[#allocation28_spill] sm:$0xff]  ;;  %v11952_v24 = vpop.f32.mrf.mxu0 }
 0x3c8   : > { %v5730_v14 = vadd.f32 %v11338_v47, %v5641_v27 }
 0x3cb   : > { %v5626_v6 = vpop.f32.mrf.mxu3 }
 0x3cc   : > { %v11927_v11 = vadd.f32 %v5626_v6, %v11702_v43  ;;  %v11938_v43 = vpop.f32.mrf.mxu1  ;;  %v5819_v6 = vadd.f32 %v12819_v18, %v5730_v14 }
 0x3ce   : > { %12816 = vst [vmem:[#allocation19_spill] sm:$0xff] %v11927_v11 }
 0x3d0   : > { %5944 = vmatmul.bf16.gmra.mxu3 %v6966_v53  ;;  %v5468_v53 = vadd.f32 %v12821_v52, %v5379_v51  ;;  %v11970_v52 = vpop.f32.mrf.mxu0 }
 0x3d2   : > { %v5557_v47 = vadd.f32 %v11731_v57, %v5468_v53  ;;  %v12826_v53 = vld [vmem:[#allocation31_spill] sm:$0xff] }
 0x3d3   : > { %v5905_v59 = vpop.f32.mrf.mxu3 }
 0x3d4   : > { %v5906_v54 = vadd.f32 %v5905_v59, %v5817_v10  ;;  %v11947_v59 = vpop.f32.mrf.mxu2  ;;  %v11956_v35 = vpop.f32.mrf.mxu1  ;;  %v5646_v51 = vadd.f32 %v12823_v60, %v5557_v47  ;;  %v12827_v47 = vld [vmem:[#allocation81_spill] sm:$0xff] }
 0x3d6   : > { %v5995_v29 = vadd.f32 %v11722_v22, %v5906_v54  ;;  %v7002_v22 = vor.u32 %v7649_v0, %v7001_v9  ;;  %v12822_v54 = vld [vmem:[#allocation68_spill] sm:$0xff]  ;;  %v12825_v0 = vld [vmem:[#allocation25_spill] sm:$0xff] }
 0x3d7   : > { %v5733_v14 = vadd.f32 %v12822_v54, %v5644_v61  ;;  %v12828_v54 = vld [vmem:[#allocation103_spill] sm:$0xff] }
 0x3d8   : > { %v6084_v27 = vadd.f32 %v11853_v37, %v5995_v29 }
 0x3d9   : > { %v5822_v37 = vadd.f32 %v11560_v17, %v5733_v14  ;;  %v12829_v14 = vld [vmem:[#allocation41_spill] sm:$0xff] }
 0x3da   : > { %v6163_v18 = vmax.f32 %v6084_v27, 0.0  ;;  %v5649_v60 = vadd.f32 %v12829_v14, %v12828_v54 }
 0x3db   : > { %v5907_v4 = vpop.f32.mrf.mxu3 }
 0x3dc   : > { %v5908_v10 = vadd.f32 %v5907_v4, %v5819_v6  ;;  %v11968_v61 = vpop.f32.mrf.mxu2  ;;  %v11974_v27 = vpop.f32.mrf.mxu1 }
 0x3de   : > { %v5997_v1 = vadd.f32 %v11729_v48, %v5908_v10  ;;  %v12824_v48 = vld [vmem:[#allocation69_spill] sm:$0xff] }
 0x3df   : > { %v5735_v9 = vadd.f32 %v12824_v48, %v5646_v51  ;;  %v12830_v51 = vld [vmem:[#allocation34_spill] sm:$0xff] }
 0x3e0   : > { %v6086_v33 = vadd.f32 %v11866_v34, %v5997_v1  ;;  %5949 = vmatmul.bf16.gmra.mxu3 %v7002_v22  ;;  %v11964_v34 = vld [vmem:[%s12304_s4] ss:$0 sm:$0xff]  ;;  %v7037_v22 = vld [vmem:[#allocation4 + $0x2e8] sm:$0xf] }
 0x3e1   : > { %v5384_v58 = vadd.f32 %v11964_v34, %v12825_v0  ;;  %v5824_v17 = vadd.f32 %v12827_v47, %v5735_v9  ;;  %v12832_v48 = vld [vmem:[#allocation106_spill] sm:$0xff] }
 0x3e2   : > { %v6164_v6 = vmax.f32 %v6086_v33, 0.0  ;;  %v7658_v33 = vld [vmem:[#allocation4 + $0x308] sm:$0xf0] }
 0x3e3   : > { %v5910_v4 = vpop.f32.mrf.mxu3 }
 0x3e4   : > { %v6195_v57 = vpack.c.bf16 %v6164_v6, %v6163_v18  ;;  %v5911_v29 = vadd.f32 %v5910_v4, %v5822_v37  ;;  %v5473_v18 = vadd.f32 %v12830_v51, %v5384_v58  ;;  %v12831_v4 = vld [vmem:[#allocation104_spill] sm:$0xff]  ;;  %v11984_v11 = vpop.f32.mrf.mxu2  ;;  %v11987_v58 = vpop.f32.mrf.mxu0 }
 0x3e6   : > { %6287 = vmatmul.bf16.vlgmr.msra.gmra.mxu2 %v6195_v57  ;;  %v6000_v10 = vadd.f32 %v12826_v53, %v5911_v29  ;;  %v5562_v57 = vadd.f32 %v12831_v4, %v5473_v18  ;;  %v7038_v29 = vor.u32 %v7658_v33, %v7037_v22  ;;  %v12833_v53 = vld [vmem:[#allocation71_spill] sm:$0xff]  ;;  %v12837_v18 = vld [vmem:[#allocation30_spill] sm:$0xff] }
 0x3e7   : > { %v5738_v47 = vadd.f32 %v12833_v53, %v5649_v60  ;;  %v5389_v60 = vadd.f32 %v11964_v34, %v12837_v18  ;;  %v12840_v53 = vld [vmem:[#allocation40_spill] sm:$0xff] }
 0x3e8   : > { %v6089_v37 = vadd.f32 %v11875_v8, %v6000_v10  ;;  %v5651_v39 = vadd.f32 %v12834_v49, %v5562_v57  ;;  %v11990_v10 = vpop.f32.mrf.mxu1  ;;  %v12838_v49 = vld [vmem:[#allocation89_spill] sm:$0xff] }
 0x3ea   : > { %v6165_v54 = vmax.f32 %v6089_v37, 0.0  ;;  %v7073_v37 = vld [vmem:[#allocation4 + $0x330] sm:$0xf] }
 0x3eb   : > { %v5912_v1 = vpop.f32.mrf.mxu3 }
 0x3ec   : > { %v5913_v6 = vadd.f32 %v5912_v1, %v5824_v17  ;;  %v12835_v1 = vld [vmem:[#allocation84_spill] sm:$0xff] }
 0x3ed   : > { %v5827_v51 = vadd.f32 %v12835_v1, %v5738_v47  ;;  %v5478_v47 = vadd.f32 %v12840_v53, %v5389_v60 }
 0x3ee   : > { %v6002_v0 = vadd.f32 %v12832_v48, %v5913_v6  ;;  %v7667_v48 = vld [vmem:[#allocation4 + $0x350] sm:$0xf0] }
 0x3f0   : > { %v6091_v9 = vadd.f32 %v11882_v20, %v6002_v0  ;;  %5954 = vmatmul.bf16.gmra.mxu3 %v7038_v29  ;;  %v12836_v20 = vld [vmem:[#allocation73_spill] sm:$0xff]  ;;  %v11997_v0 = vpop.f32.mrf.mxu2  ;;  %v12839_v29 = vld [vmem:[#allocation46_spill] sm:$0xff] }
 0x3f1   : > { %v5740_v33 = vadd.f32 %v12836_v20, %v5651_v39  ;;  %v12841_v39 = vld [vmem:[#allocation37_spill] sm:$0xff] }
 0x3f2   : > { %v6166_v14 = vmax.f32 %v6091_v9, 0.0  ;;  %v5654_v9 = vadd.f32 %v12839_v29, %v11754_v30  ;;  %v12844_v30 = vld [vmem:[#allocation48_spill] sm:$0xff] }
 0x3f3   : > { %v5915_v17 = vpop.f32.mrf.mxu3  ;;  %v5829_v4 = vadd.f32 %v12838_v49, %v5740_v33  ;;  %v12843_v33 = vld [vmem:[#allocation75_spill] sm:$0xff]  ;;  %v12845_v29 = vld [vmem:[#allocation92_spill] sm:$0xff] }
 0x3f4   : > { %v6196_v8 = vpack.c.bf16 %v6166_v14, %v6165_v54  ;;  %v5916_v22 = vadd.f32 %v5915_v17, %v5827_v51  ;;  %v12002_v14 = vpop.f32.mrf.mxu0  ;;  %v5567_v17 = vadd.f32 %v12841_v39, %v5478_v47  ;;  %v5743_v18 = vadd.f32 %v12843_v33, %v5654_v9  ;;  %v7109_v33 = vld [vmem:[#allocation4 + $0x378] sm:$0xf] }
 0x3f6   : > { %6292 = vmatmul.bf16.gmra.mxu2 %v6196_v8  ;;  %v6005_v6 = vadd.f32 %v11758_v23, %v5916_v22  ;;  %v12842_v23 = vld [vmem:[#allocation107_spill] sm:$0xff]  ;;  %v7074_v8 = vor.u32 %v7667_v48, %v7073_v37  ;;  %v12007_v22 = vpop.f32.mrf.mxu1  ;;  %v5656_v49 = vadd.f32 %v12844_v30, %v5567_v17  ;;  %v5832_v53 = vadd.f32 %v12845_v29, %v5743_v18  ;;  %v7676_v18 = vld [vmem:[#allocation4 + $0x398] sm:$0xf0]  ;;  %v12850_v30 = vld [vmem:[#allocation45_spill] sm:$0xff] }
 0x3f8   : > { %v6094_v1 = vadd.f32 %v11889_v19, %v6005_v6  ;;  %v12013_v39 = vpop.f32.mrf.mxu2  ;;  %v12846_v6 = vld [vmem:[#allocation78_spill] sm:$0xff] }
 0x3f9   : > { %v5745_v37 = vadd.f32 %v12846_v6, %v5656_v49  ;;  %v12852_v6 = vld [vmem:[#allocation79_spill] sm:$0xff] }
 0x3fa   : > { %v6167_v60 = vmax.f32 %v6094_v1, 0.0  ;;  %v12848_v1 = vld [vmem:[#allocation95_spill] sm:$0xff] }
 0x3fb   : > { %v5917_v57 = vpop.f32.mrf.mxu3 }
 0x3fc   : > { %v5918_v54 = vadd.f32 %v5917_v57, %v5829_v4  ;;  %v12016_v48 = vpop.f32.mrf.mxu0 }
 0x3fe   : > { %v6007_v51 = vadd.f32 %v12842_v23, %v5918_v54  ;;  %v12020_v9 = vpop.f32.mrf.mxu1  ;;  %v5834_v23 = vadd.f32 %v12848_v1, %v5745_v37 }
 0x400   : > { %v6096_v20 = vadd.f32 %v11899_v42, %v6007_v51  ;;  %5959 = vmatmul.bf16.gmra.mxu3 %v7074_v8  ;;  %v12847_v42 = vld [vmem:[#allocation36_spill] sm:$0xff]  ;;  %v12849_v51 = vld [vmem:[#allocation50_spill] sm:$0xff] }
 0x401   : > { %v5394_v54 = vadd.f32 %v11964_v34, %v12847_v42  ;;  %v5659_v8 = vadd.f32 %v12849_v51, %v11772_v36  ;;  %v12853_v42 = vld [vmem:[#allocation52_spill] sm:$0xff] }
 0x402   : > { %v6168_v4 = vmax.f32 %v6096_v20, 0.0 }
 0x403   : > { %v5920_v57 = vpop.f32.mrf.mxu3 }
 0x404   : > { %v6197_v47 = vpack.c.bf16 %v6168_v4, %v6167_v60  ;;  %v5921_v19 = vadd.f32 %v5920_v57, %v5832_v53  ;;  %v5483_v60 = vadd.f32 %v12850_v30, %v5394_v54  ;;  %v12851_v4 = vld [vmem:[#allocation109_spill] sm:$0xff]  ;;  %v12034_v36 = vpop.f32.mrf.mxu0 }
 0x406   : > { %6297 = vmatmul.bf16.gmra.mxu2 %v6197_v47  ;;  %v6010_v17 = vadd.f32 %v11935_v3, %v5921_v19  ;;  %v5572_v57 = vadd.f32 %v12851_v4, %v5483_v60  ;;  %v7110_v47 = vor.u32 %v7676_v18, %v7109_v33  ;;  %v5748_v3 = vadd.f32 %v12852_v6, %v5659_v8  ;;  %v12031_v19 = vpop.f32.mrf.mxu2  ;;  %v12037_v51 = vpop.f32.mrf.mxu1  ;;  %v12854_v8 = vld [vmem:[#allocation82_spill] sm:$0xff]  ;;  %v12855_v18 = vld [vmem:[#allocation43_spill] sm:$0xff]  ;;  %v12857_v6 = vld [vmem:[#allocation49_spill] sm:$0xff] }
 0x408   : > { %v6099_v29 = vadd.f32 %v11938_v43, %v6010_v17  ;;  %v5661_v1 = vadd.f32 %v12853_v42, %v5572_v57  ;;  %v5837_v43 = vadd.f32 %v11859_v46, %v5748_v3  ;;  %v7685_v46 = vld [vmem:[#allocation4 + $0x3e0] sm:$0xf0] }
 0x40a   : > { %v6169_v54 = vmax.f32 %v6099_v29, 0.0  ;;  %v5750_v33 = vadd.f32 %v12854_v8, %v5661_v1  ;;  %v7145_v29 = vld [vmem:[#allocation4 + $0x3c0] sm:$0xf] }
 0x40b   : > { %v5922_v20 = vpop.f32.mrf.mxu3 }
 0x40c   : > { %v5923_v49 = vadd.f32 %v5922_v20, %v5834_v23  ;;  %v12047_v4 = vpop.f32.mrf.mxu0 }
 0x40e   : > { %v6012_v53 = vadd.f32 %v11952_v24, %v5923_v49  ;;  %v12044_v60 = vpop.f32.mrf.mxu2  ;;  %v5839_v49 = vadd.f32 %v11869_v44, %v5750_v33  ;;  %v12052_v42 = vpop.f32.mrf.mxu1  ;;  %v7146_v44 = vor.u32 %v7685_v46, %v7145_v29  ;;  %v3798_v33 = vld [vmem:[#allocation3 + $0x90] sm:$0xf]  ;;  %v12861_v46 = vld [vmem:[#allocation90_spill] sm:$0xff] }
 0x40f   : > { %3830 = vst [vmem:[#allocation4 + $0x454] sm:$0xf] %v3798_v33  ;;  %v7694_v33 = vld [vmem:[#allocation4 + $0x428] sm:$0xf0] }
 0x410   : > { %v6101_v37 = vadd.f32 %v11956_v35, %v6012_v53  ;;  %5964 = vmatmul.bf16.gmra.mxu3 %v7110_v47  ;;  %v5399_v35 = vadd.f32 %v11964_v34, %v12855_v18  ;;  %v12856_v53 = vld [vmem:[#allocation54_spill] sm:$0xff]  ;;  %v3799_v18 = vld [vmem:[#allocation3 + $0x94] sm:$0xf] }
 0x411   : > { %v5664_v47 = vadd.f32 %v12856_v53, %v11783_v26  ;;  %3831 = vst [vmem:[#allocation4 + $0x478] sm:$0xf] %v3799_v18 }
 0x412   : > { %v6170_v23 = vmax.f32 %v6101_v37, 0.0  ;;  %v5488_v3 = vadd.f32 %v12857_v6, %v5399_v35  ;;  %v12860_v35 = vld [vmem:[#allocation15_spill] sm:$0xff] }
 0x413   : > { %v5925_v17 = vpop.f32.mrf.mxu3 }
 0x414   : > { %v6198_v24 = vpack.c.bf16 %v6170_v23, %v6169_v54  ;;  %v5926_v20 = vadd.f32 %v5925_v17, %v5837_v43  ;;  %v12858_v43 = vld [vmem:[#allocation85_spill] sm:$0xff] }
 0x415   : > { %v5753_v17 = vadd.f32 %v12858_v43, %v5664_v47  ;;  %v12862_v47 = vld [vmem:[#allocation47_spill] sm:$0xff] }
 0x416   : > { %6302 = vmatmul.bf16.gmra.mxu2 %v6198_v24  ;;  %v6015_v30 = vadd.f32 %v11970_v52, %v5926_v20  ;;  %v5577_v52 = vadd.f32 %v11785_v25, %v5488_v3  ;;  %v12859_v20 = vld [vmem:[#allocation56_spill] sm:$0xff]  ;;  %v5404_v6 = vadd.f32 %v11964_v34, %v12862_v47  ;;  %v12069_v3 = vpop.f32.mrf.mxu1 }
 0x417   : > { %v5842_v25 = vadd.f32 %v11880_v41, %v5753_v17  ;;  %v7181_v17 = vld [vmem:[#allocation4 + $0x408] sm:$0xf] }
 0x418   : > { %v6104_v1 = vadd.f32 %v11974_v27, %v6015_v30  ;;  %v5666_v26 = vadd.f32 %v12859_v20, %v5577_v52  ;;  %v12061_v27 = vpop.f32.mrf.mxu2  ;;  %v12064_v30 = vpop.f32.mrf.mxu0  ;;  %v12864_v52 = vld [vmem:[#allocation87_spill] sm:$0xff]  ;;  %v12865_v20 = vld [vmem:[#allocation53_spill] sm:$0xff] }
 0x419   : > { %v3832_v41 = vshrl.u32 %v12864_v52, 16  ;;  %v7219_v18 = vld [vmem:[#allocation4 + $0x474] sm:$0xf0] }
 0x41a   : > { %v6171_v24 = vmax.f32 %v6104_v1, 0.0  ;;  %v5755_v53 = vadd.f32 %v12861_v46, %v5666_v26  ;;  %v5493_v26 = vadd.f32 %v12865_v20, %v5404_v6  ;;  %v7182_v6 = vor.u32 %v7694_v33, %v7181_v17  ;;  %v12870_v20 = vld [vmem:[#allocation17_spill] sm:$0xff] }
 0x41b   : > { %v5927_v57 = vpop.f32.mrf.mxu3 }
 0x41c   : > { %v5928_v37 = vadd.f32 %v5927_v57, %v5839_v49  ;;  %v771_v49 = vadd.s32 280, %v12860_v35  ;;  %v5844_v43 = vadd.f32 %v11887_v55, %v5755_v53 }
 0x41e   : > { %v6017_v54 = vadd.f32 %v11987_v58, %v5928_v37  ;;  %v12863_v37 = vmov 0   ;;  %v12091_v17 = vpop.f32.mrf.mxu1 }
 0x420   : > { %v6106_v23 = vadd.f32 %v11990_v10, %v6017_v54  ;;  %5969 = vmatmul.bf16.gmra.mxu3 %v7146_v44  ;;  %v1021_v10 = vand.u32 15, %v771_v49  ;;  %v12866_v49 = vld [vmem:[#allocation58_spill] sm:$0xff] }
 0x422   : > { %v6172_v8 = vmax.f32 %v6106_v23, 0.0  ;;  %vm2042_vm6 = vcmp.lt.s32.totalorder %v1021_v10, 15  ;;  %v5582_v10 = vadd.f32 %v11808_v62, %v5493_v26 }
 0x423   : > { %v5930_v57 = vpop.f32.mrf.mxu3  ;;  %vm2079_vm7 = vmpackc.low %vm2042_vm6, %vm2042_vm6 }
 0x424   : > { %v6199_v58 = vpack.c.bf16 %v6172_v8, %v6171_v24  ;;  %v5931_v29 = vadd.f32 %v5930_v57, %v5842_v25  ;;  %v2115_v1 = vsel %vm2079_vm7, 65537, %v12863_v37  ;;  %v7699_v24 = vld [vmem:[#allocation4 + $0x454] sm:$0xf]  ;;  %v5669_v57 = vadd.f32 %v12866_v49, %v11795_v12  ;;  %v12083_v37 = vpop.f32.mrf.mxu0 }
 0x425   : > { %v2434_v54 = vshrl.u32 %v2115_v1, 16  ;;  %v2437_v44 = vshll.u32 %v2115_v1, 16  ;;  %v12867_v1 = vld [vmem:[#allocation18_spill] sm:$0xff] }
 0x426   : > { %6307 = vmatmul.bf16.gmra.mxu2 %v6199_v58  ;;  %v6020_v23 = vadd.f32 %v12002_v14, %v5931_v29  ;;  %v7222_v58 = vor.u32 %v7699_v24, %v7219_v18  ;;  %v3834_v14 = vrot.slane %v3832_v41, 4  ;;  %v12079_v29 = vpop.f32.mrf.mxu2  ;;  %v12868_v41 = vld [vmem:[#allocation93_spill] sm:$0xff] }
 0x427   : > { %v2436_v35 = vrot.slane %v2434_v54, 7 }
 0x428   : > { %v6109_v55 = vadd.f32 %v12007_v22, %v6020_v23  ;;  %6068 = vmatmul.bf16.gmra.mxu0 %v7222_v58  ;;  %v12869_v23 = vld [vmem:[#allocation60_spill] sm:$0xff]  ;;  %v3835_v26 = vor.u32 %v3834_v14, %v12871_v63 }
 0x429   : > { %v2439_v46 = vor.u32 %v2437_v44, %v2436_v35  ;;  %v2441_v47 = vrot.slane %v2436_v35, 4  ;;  %v5758_v44 = vadd.f32 %v12868_v41, %v5669_v57  ;;  %v12872_v57 = vld [vmem:[#allocation111_spill] sm:$0xff] }
 0x42a   : > { %v3836_v58 = vrot.slane %v3835_v26, 4  ;;  %v12876_v26 = vld [vmem:[#allocation62_spill] sm:$0xff] }
 0x42b   : > { %v5932_v8 = vpop.f32.mrf.mxu3  ;;  %v2440_v12 = vsel %vm8686_vm5, %v12867_v1, %v2439_v46  ;;  %v2694_v52 = vunpack.c.l.b16 %v2441_v47  ;;  %v2695_v54 = vunpack.c.h.b16 %v2441_v47  ;;  %v5847_v35 = vadd.f32 %v11894_v7, %v5758_v44  ;;  %v12874_v1 = vld [vmem:[#allocation51_spill] sm:$0xff] }
 0x42c   : > { %v5933_v25 = vadd.f32 %v5932_v8, %v5844_v43  ;;  %v2043_v43 = vld [vmem:[#allocation3 + $0x98] sm:$0x1]  ;;  %v2687_v24 = vunpack.c.l.b16 %v2440_v12  ;;  %v2688_v22 = vunpack.c.h.b16 %v2440_v12  ;;  %v6173_v8 = vmax.f32 %v6109_v55, 0.0  ;;  %v12873_v55 = vld [vmem:[#allocation96_spill] sm:$0xff] }
 0x42d   : > { %vm2698_vm8 = vcmp.ne.s32.totalorder %v2694_v52, %v8637_v38  ;;  %vm2699_vm9 = vcmp.ne.s32.totalorder %v2695_v54, %v12870_v20  ;;  %v5409_v12 = vadd.f32 %v11964_v34, %v12874_v1  ;;  %v12105_v54 = vpop.f32.mrf.mxu0 }
 0x42e   : > { %v6022_v53 = vadd.f32 %v12016_v48, %v5933_v25  ;;  %v5671_v48 = vadd.f32 %v12869_v23, %v5582_v10  ;;  %vm2691_vm5 = vcmp.ne.s32.totalorder %v2687_v24, %v8637_v38  ;;  %vm2692_vm10 = vcmp.ne.s32.totalorder %v2688_v22, %v12870_v20  ;;  %vm2700_vm11 = vmpackc.low %vm2699_vm9, %vm2698_vm8  ;;  %v12103_v52 = vpop.f32.mrf.mxu2  ;;  %v12111_v22 = vpop.f32.mrf.mxu1  ;;  %v7703_v20 = vld [vmem:[#allocation4 + $0x470] sm:$0xf0] }
 0x42f   : > { %vm2693_vm13 = vmpackc.low %vm2692_vm10, %vm2691_vm5  ;;  %v2737_v18 = vsel %vm2700_vm11, %v2043_v43, 0 }
 0x430   : > { %v6111_v62 = vadd.f32 %v12020_v9, %v6022_v53  ;;  %5974 = vmatmul.bf16.gmra.mxu3 %v7182_v6  ;;  %v2736_v25 = vsel %vm2693_vm13, %v12872_v57, 0  ;;  %v3848_v47 = vshll.u32 %v2737_v18, 16  ;;  %v5760_v53 = vadd.f32 %v12873_v55, %v5671_v48  ;;  %v7217_v48 = vld [vmem:[#allocation4 + $0x450] sm:$0xf] }
 0x431   : > { %v3838_v10 = vshll.u32 %v2736_v25, 16  ;;  %v3842_v46 = vshrl.u32 %v2736_v25, 16  ;;  %v7218_v57 = vor.u32 %v7703_v20, %v7217_v48  ;;  %v12882_v48 = vld [vmem:[#allocation65_spill] sm:$0xff] }
 0x432   : > { %v6174_v33 = vmax.f32 %v6111_v62, 0.0  ;;  %v3850_v44 = vrot.slane %v3848_v47, 5  ;;  %v5849_v24 = vadd.f32 %v11901_v16, %v5760_v53  ;;  %v12883_v20 = vld [vmem:[#allocation61_spill] sm:$0xff] }
 0x433   : > { %v5935_v9 = vpop.f32.mrf.mxu3  ;;  %v3840_v38 = vrot.slane %v3838_v10, 5  ;;  %v3844_v6 = vrot.slane %v3842_v46, 4  ;;  %v12879_v46 = vld [vmem:[#allocation63_spill] sm:$0xff] }
 0x434   : > { %v6200_v49 = vpack.c.bf16 %v6174_v33, %v6173_v8  ;;  %v5936_v14 = vadd.f32 %v5935_v9, %v5847_v35  ;;  %v5674_v8 = vadd.f32 %v12876_v26, %v11822_v13  ;;  %v12877_v33 = vld [vmem:[#allocation57_spill] sm:$0xff] }
 0x435   : > { %v3841_v62 = vsel %vm8608_vm12, %v3836_v58, %v3840_v38  ;;  %v3845_v41 = vor.u32 %v3844_v6, %v3840_v38  ;;  %v5498_v9 = vadd.f32 %v12877_v33, %v5409_v12  ;;  %v12878_v58 = vld [vmem:[#allocation98_spill] sm:$0xff]  ;;  %v6036_v53 = vpop.f32.mrf.mxu0 }
 0x436   : > { %6312 = vmatmul.bf16.gmra.mxu2 %v6200_v49  ;;  %v6025_v43 = vadd.f32 %v12034_v36, %v5936_v14  ;;  %3884 = vst [vmem:[#allocation4 + $0x458] sm:$0xf] %v3841_v62  ;;  %v5763_v10 = vadd.f32 %v12878_v58, %v5674_v8  ;;  %v12123_v13 = vpop.f32.mrf.mxu2 }
 0x437   : > { %v3846_v63 = vrot.slane %v3845_v41, 4  ;;  %v5587_v36 = vadd.f32 %v11826_v21, %v5498_v9  ;;  %v12881_v41 = vld [vmem:[#allocation55_spill] sm:$0xff] }
 0x438   : > { %v6114_v16 = vadd.f32 %v12037_v51, %v6025_v43  ;;  %v5852_v51 = vadd.f32 %v11909_v15, %v5763_v10  ;;  %v5679_v15 = vadd.f32 %v12882_v48, %v11833_v56  ;;  %v12891_v48 = vld [vmem:[#allocation70_spill] sm:$0xff] }
 0x439   : > { %v3851_v35 = vsel %vm8608_vm12, %v3846_v63, %v3850_v44  ;;  %v5676_v47 = vadd.f32 %v12879_v46, %v5587_v36  ;;  %v5414_v44 = vadd.f32 %v11964_v34, %v12881_v41 }
 0x43a   : > { %3885 = vst [vmem:[#allocation4 + $0x47c] sm:$0xf] %v3851_v35  ;;  %v6175_v14 = vmax.f32 %v6114_v16, 0.0 }
 0x43b   : > { %v5937_v23 = vpop.f32.mrf.mxu3  ;;  %v5503_v63 = vadd.f32 %v12883_v20, %v5414_v44 }
 0x43c   : > { %v5938_v18 = vadd.f32 %v5937_v23, %v5849_v24 }
 0x43d   : > { %v7225_v38 = vld [vmem:[#allocation4 + $0x458] sm:$0xf]  ;;  %v6039_v33 = vpop.f32.mrf.mxu0  ;;  %v5592_v9 = vadd.f32 %v11837_v5, %v5503_v63  ;;  %v12886_v5 = vld [vmem:[#allocation20_spill] sm:$0xff] }
 0x43e   : > { %v6027_v49 = vadd.f32 %v12047_v4, %v5938_v18  ;;  %v6125_v4 = vpop.f32.mrf.mxu1  ;;  %v12135_v8 = vpop.f32.mrf.mxu2 }
 0x440   : > { %v6116_v25 = vadd.f32 %v12052_v42, %v6027_v49  ;;  %5979 = vmatmul.bf16.gmra.mxu3 %v7218_v57  ;;  %v12880_v42 = vld [vmem:[#allocation100_spill] sm:$0xff]  ;;  %v12885_v49 = vld [vmem:[#allocation66_spill] sm:$0xff] }
 0x441   : > { %v7704_v1 = vld [vmem:[#allocation4 + $0x478] sm:$0xf0]  ;;  %v5765_v62 = vadd.f32 %v12880_v42, %v5676_v47  ;;  %v5681_v57 = vadd.f32 %v12885_v49, %v5592_v9  ;;  %v12893_v49 = vld [vmem:[#allocation72_spill] sm:$0xff] }
 0x442   : > { %v6176_v55 = vmax.f32 %v6116_v25, 0.0  ;;  %v7226_v12 = vor.u32 %v7704_v1, %v7225_v38  ;;  %v12888_v1 = vld [vmem:[#allocation67_spill] sm:$0xff] }
 0x443   : > { %v5940_v21 = vpop.f32.mrf.mxu3  ;;  %v5854_v24 = vadd.f32 %v11914_v28, %v5765_v62  ;;  %v12884_v28 = vld [vmem:[#allocation22_spill] sm:$0xff] }
 0x444   : > { %v6201_v6 = vpack.c.bf16 %v6176_v55, %v6175_v14  ;;  %v5941_v7 = vadd.f32 %v5940_v21, %v5852_v51  ;;  %6157 = vmatmul.bf16.gmra.mxu1 %v7226_v12  ;;  %v5768_v16 = vadd.f32 %v12884_v28, %v5679_v15  ;;  %v5770_v14 = vadd.f32 %v12886_v5, %v5681_v57  ;;  %v12887_v55 = vld [vmem:[#allocation59_spill] sm:$0xff]  ;;  %v12889_v12 = vld [vmem:[#allocation64_spill] sm:$0xff] }
 0x445   : > { %v5689_v57 = vadd.f32 %v12893_v49, %v11855_v31 }
 0x446   : > { %6317 = vmatmul.bf16.gmra.mxu2 %v6201_v6  ;;  %v6030_v43 = vadd.f32 %v12064_v30, %v5941_v7  ;;  %v6128_v36 = vpop.f32.mrf.mxu1  ;;  %v5857_v10 = vadd.f32 %v11921_v45, %v5768_v16  ;;  %v5859_v51 = vadd.f32 %v11932_v40, %v5770_v14  ;;  %v5684_v45 = vadd.f32 %v12888_v1, %v11844_v32 }
 0x448   : > { %v6119_v18 = vadd.f32 %v12069_v3, %v6030_v43  ;;  %v12145_v3 = vpop.f32.mrf.mxu2 }
 0x44a   : > { %v6177_v56 = vmax.f32 %v6119_v18, 0.0 }
 0x44b   : > { %v5942_v23 = vpop.f32.mrf.mxu3 }
 0x44c   : > { %v5943_v26 = vadd.f32 %v5942_v23, %v5854_v24  ;;  %v12890_v24 = vld [vmem:[#allocation26_spill] sm:$0xff] }
 0x44e   : > { %v6032_v35 = vadd.f32 %v12083_v37, %v5943_v26  ;;  %v6041_v37 = vpop.f32.mrf.mxu0  ;;  %v6130_v38 = vpop.f32.mrf.mxu1 }
 0x450   : > { %v6121_v30 = vadd.f32 %v12091_v17, %v6032_v35  ;;  %v5419_v17 = vadd.f32 %v11964_v34, %v12887_v55  ;;  %v5773_v34 = vadd.f32 %v12890_v24, %v5684_v45  ;;  %v12157_v23 = vpop.f32.mrf.mxu2  ;;  %v12162_v35 = vld [vmem:[#allocation10] ss:$0 sm:$0xff] }
 0x452   : > { %v6178_v25 = vmax.f32 %v6121_v30, 0.0  ;;  %v5508_v7 = vadd.f32 %v12889_v12, %v5419_v17  ;;  %v5862_v26 = vadd.f32 %v11947_v59, %v5773_v34  ;;  %v8117_v17 = vld [vmem:[#allocation2] sm:$0xff] }
 0x453   : > { %v5945_v58 = vpop.f32.mrf.mxu3 }
 0x454   : > { %v6202_v46 = vpack.c.bf16 %v6178_v25, %v6177_v56  ;;  %v5946_v47 = vadd.f32 %v5945_v58, %v5857_v10  ;;  %v5597_v62 = vadd.f32 %v11848_v50, %v5508_v7  ;;  %v12892_v50 = vld [vmem:[#allocation23_spill] sm:$0xff] }
 0x456   : > { %6322 = vmatmul.bf16.gmra.mxu2 %v6202_v46  ;;  %v6035_v21 = vadd.f32 %v12105_v54, %v5946_v47  ;;  %v6044_v54 = vpop.f32.mrf.mxu0  ;;  %v5686_v40 = vadd.f32 %v12891_v48, %v5597_v62  ;;  %v6133_v63 = vpop.f32.mrf.mxu1  ;;  %v12894_v47 = vld [vmem:[#allocation105_spill] sm:$0xff] }
 0x457   : > { %v5778_v5 = vadd.f32 %v12894_v47, %v5689_v57 }
 0x458   : > { %v6124_v41 = vadd.f32 %v12111_v22, %v6035_v21  ;;  %v5775_v22 = vadd.f32 %v12892_v50, %v5686_v40  ;;  %v12898_v40 = vld [vmem:[#allocation77_spill] sm:$0xff] }
 0x45a   : > { %v6179_v15 = vmax.f32 %v6124_v41, 0.0  ;;  %v5864_v30 = vadd.f32 %v11968_v61, %v5775_v22  ;;  %v12899_v22 = vld [vmem:[#allocation33_spill] sm:$0xff] }
 0x45b   : > { %v5947_v6 = vpop.f32.mrf.mxu3 }
 0x45c   : > { %v5948_v42 = vadd.f32 %v5947_v6, %v5859_v51 }
 0x45e   : > { %v6037_v44 = vadd.f32 %v6036_v53, %v5948_v42  ;;  %v6046_v28 = vpop.f32.mrf.mxu0  ;;  %v6135_v59 = vpop.f32.mrf.mxu1  ;;  %v12896_v42 = vld [vmem:[#allocation27_spill] sm:$0xff] }
 0x460   : > { %v6126_v43 = vadd.f32 %v6125_v4, %v6037_v44 }
 0x462   : > { %v6180_v20 = vmax.f32 %v6126_v43, 0.0 }
 0x463   : > { %v5950_v32 = vpop.f32.mrf.mxu3 }
 0x464   : > { %v6203_v9 = vpack.c.bf16 %v6180_v20, %v6179_v15  ;;  %v5951_v18 = vadd.f32 %v5950_v32, %v5862_v26 }
 0x466   : > { %6327 = vmatmul.bf16.gmra.mxu2 %v6203_v9  ;;  %v6040_v4 = vadd.f32 %v6039_v33, %v5951_v18  ;;  %v12895_v33 = vld [vmem:[#allocation74_spill] sm:$0xff]  ;;  %v6049_v45 = vpop.f32.mrf.mxu0  ;;  %v6138_v41 = vpop.f32.mrf.mxu1 }
 0x467   : > { %v5691_v14 = vadd.f32 %v12895_v33, %v11862_v2 }
 0x468   : > { %v6129_v25 = vadd.f32 %v6128_v36, %v6040_v4  ;;  %v8118_v36 = vld [vmem:[#allocation2 + $0x8] sm:$0xff]  ;;  %v12900_v4 = vld [vmem:[#allocation118_spill] sm:$0xff] }
 0x469   : > { %v6288_v53 = vpop.f32.mrf.mxu2  ;;  %v5780_v62 = vadd.f32 %v12896_v42, %v5691_v14  ;;  %v12902_v14 = vld [vmem:[#allocation108_spill] sm:$0xff] }
 0x46a   : > { %v6289_v58 = vadd.f32 %v12162_v35, %v6288_v53  ;;  %v6181_v55 = vmax.f32 %v6129_v25, 0.0 }
 0x46b   : > { %v5952_v16 = vpop.f32.mrf.mxu3  ;;  %v5869_v34 = vadd.f32 %v11997_v0, %v5780_v62  ;;  %v8119_v0 = vld [vmem:[#allocation2 + $0x10] sm:$0xff]  ;;  %v12905_v62 = vld [vmem:[#allocation39_spill] sm:$0xff] }
 0x46c   : > { %v5953_v56 = vadd.f32 %v5952_v16, %v5864_v30  ;;  %v6368_v21 = vadd.f32 %v8117_v17, %v6289_v58  ;;  %v12901_v30 = vld [vmem:[#allocation80_spill] sm:$0xff] }
 0x46d   : > { %v5696_v16 = vadd.f32 %v12901_v30, %v12900_v4  ;;  %v12908_v30 = vld [vmem:[#allocation110_spill] sm:$0xff] }
 0x46e   : > { %v6042_v10 = vadd.f32 %v6041_v37, %v5953_v56  ;;  %v5867_v37 = vadd.f32 %v11984_v11, %v5778_v5  ;;  %v6400_v12 = vmax.f32 %v6368_v21, 0.0  ;;  %v12897_v11 = vld [vmem:[#allocation117_spill] sm:$0xff]  ;;  %v6051_v18 = vpop.f32.mrf.mxu0  ;;  %v6140_v49 = vpop.f32.mrf.mxu1 }
 0x46f   : > { %v5694_v15 = vadd.f32 %v12898_v40, %v12897_v11  ;;  %v8121_v11 = vld [vmem:[#allocation2 + $0x20] sm:$0xff] }
 0x470   : > { %v6131_v46 = vadd.f32 %v6130_v38, %v6042_v10  ;;  %v8120_v10 = vld [vmem:[#allocation2 + $0x18] sm:$0xff] }
 0x471   : > { %v6290_v61 = vpop.f32.mrf.mxu2  ;;  %v5783_v53 = vadd.f32 %v12899_v22, %v5694_v15 }
 0x472   : > { %v6182_v51 = vmax.f32 %v6131_v46, 0.0  ;;  %v6291_v31 = vadd.f32 %v12162_v35, %v6290_v61  ;;  %v5785_v61 = vadd.f32 %v12902_v14, %v5696_v16 }
 0x473   : > { %v5955_v6 = vpop.f32.mrf.mxu3 }
 0x474   : > { %v6369_v1 = vadd.f32 %v8118_v36, %v6291_v31  ;;  %v6204_v38 = vpack.c.bf16 %v6182_v51, %v6181_v55  ;;  %v5956_v2 = vadd.f32 %v5955_v6, %v5867_v37  ;;  %v5874_v31 = vadd.f32 %v12031_v19, %v5785_v61  ;;  %v12904_v37 = vld [vmem:[#allocation83_spill] sm:$0xff]  ;;  %v12912_v61 = vld [vmem:[#allocation122_spill] sm:$0xff] }
 0x476   : > { %v6401_v7 = vmax.f32 %v6369_v1, 0.0  ;;  %6332 = vmatmul.bf16.gmra.mxu2 %v6204_v38  ;;  %v6045_v24 = vadd.f32 %v6044_v54, %v5956_v2  ;;  %v6054_v17 = vpop.f32.mrf.mxu0  ;;  %v6143_v6 = vpop.f32.mrf.mxu1  ;;  %v12903_v1 = vld [vmem:[#allocation119_spill] sm:$0xff] }
 0x477   : > { %v5699_v38 = vadd.f32 %v12904_v37, %v12903_v1 }
 0x478   : > { %v7869_v44 = vpack.c.bf16 %v6401_v7, %v6400_v12  ;;  %v6134_v32 = vadd.f32 %v6133_v63, %v6045_v24  ;;  %v12907_v24 = vld [vmem:[#allocation86_spill] sm:$0xff] }
 0x479   : > { %v6293_v43 = vpop.f32.mrf.mxu2 }
 0x47a   : > { %7870 = vst [vmem:[%s12177_s17] sm:$0xff] %v7869_v44   ;;  %v6294_v26 = vadd.f32 %v12162_v35, %v6293_v43  ;;  %v6183_v57 = vmax.f32 %v6134_v32, 0.0  ;;  %v5788_v44 = vadd.f32 %v12905_v62, %v5699_v38  ;;  %v12906_v43 = vld [vmem:[#allocation120_spill] sm:$0xff] }
 0x47b   : > { %v5957_v48 = vpop.f32.mrf.mxu3  ;;  %v12914_v62 = vld [vmem:[#allocation112_spill] sm:$0xff] }
 0x47c   : > { %v5958_v20 = vadd.f32 %v5957_v48, %v5869_v34  ;;  %v6370_v56 = vadd.f32 %v8119_v0, %v6294_v26  ;;  %v5701_v34 = vadd.f32 %v12907_v24, %v12906_v43 }
 0x47e   : > { %v6047_v9 = vadd.f32 %v6046_v28, %v5958_v20  ;;  %v5872_v28 = vadd.f32 %v12013_v39, %v5783_v53  ;;  %v6402_v47 = vmax.f32 %v6370_v56, 0.0  ;;  %v6056_v20 = vpop.f32.mrf.mxu0  ;;  %v5790_v16 = vadd.f32 %v12908_v30, %v5701_v34 }
 0x480   : > { %v6136_v50 = vadd.f32 %v6135_v59, %v6047_v9  ;;  %v5877_v9 = vadd.f32 %v12044_v60, %v5788_v44  ;;  %v5879_v0 = vadd.f32 %v12061_v27, %v5790_v16  ;;  %v8123_v27 = vld [vmem:[#allocation2 + $0x30] sm:$0xff] }
 0x481   : > { %v6295_v54 = vpop.f32.mrf.mxu2 }
 0x482   : > { %v6184_v25 = vmax.f32 %v6136_v50, 0.0  ;;  %v6296_v58 = vadd.f32 %v12162_v35, %v6295_v54  ;;  %v6145_v50 = vpop.f32.mrf.mxu1 }
 0x483   : > { %v5960_v63 = vpop.f32.mrf.mxu3 }
 0x484   : > { %v6371_v46 = vadd.f32 %v8120_v10, %v6296_v58  ;;  %v6205_v59 = vpack.c.bf16 %v6184_v25, %v6183_v57  ;;  %v5961_v33 = vadd.f32 %v5960_v63, %v5872_v28  ;;  %v12909_v25 = vld [vmem:[#allocation121_spill] sm:$0xff]  ;;  %v12910_v58 = vld [vmem:[#allocation91_spill] sm:$0xff] }
 0x485   : > { %v5704_v63 = vadd.f32 %v12910_v58, %v12909_v25  ;;  %v8126_v58 = vld [vmem:[#allocation2 + $0x48] sm:$0xff] }
 0x486   : > { %v6403_v5 = vmax.f32 %v6371_v46, 0.0  ;;  %6337 = vmatmul.bf16.gmra.mxu2 %v6205_v59  ;;  %v6050_v51 = vadd.f32 %v6049_v45, %v5961_v33  ;;  %v6059_v60 = vpop.f32.mrf.mxu0  ;;  %v12911_v33 = vld [vmem:[#allocation42_spill] sm:$0xff] }
 0x487   : > { %v5793_v14 = vadd.f32 %v12911_v33, %v5704_v63 }
 0x488   : > { %v7874_v55 = vpack.c.bf16 %v6403_v5, %v6402_v47  ;;  %v6139_v12 = vadd.f32 %v6138_v41, %v6050_v51  ;;  %v8122_v41 = vld [vmem:[#allocation2 + $0x28] sm:$0xff] }
 0x489   : > { %v6298_v21 = vpop.f32.mrf.mxu2 }
 0x48a   : > { %7962 = vst [vmem:[%s12177_s17 + $0x8] sm:$0xff] %v7874_v55   ;;  %v6299_v7 = vadd.f32 %v12162_v35, %v6298_v21  ;;  %v6185_v45 = vmax.f32 %v6139_v12, 0.0  ;;  %v6148_v47 = vpop.f32.mrf.mxu1  ;;  %v12913_v55 = vld [vmem:[#allocation94_spill] sm:$0xff] }
 0x48b   : > { %v5962_v36 = vpop.f32.mrf.mxu3  ;;  %v5706_v21 = vadd.f32 %v12913_v55, %v12912_v61 }
 0x48c   : > { %v5963_v39 = vadd.f32 %v5962_v36, %v5874_v31  ;;  %v6372_v19 = vadd.f32 %v8121_v11, %v6299_v7 }
 0x48d   : > { %v5795_v44 = vadd.f32 %v12914_v62, %v5706_v21 }
 0x48e   : > { %v6052_v2 = vadd.f32 %v6051_v18, %v5963_v39  ;;  %v6404_v22 = vmax.f32 %v6372_v19, 0.0  ;;  %v5882_v39 = vadd.f32 %v12079_v29, %v5793_v14  ;;  %v6061_v43 = vpop.f32.mrf.mxu0 }
 0x48f   : > { %v5884_v11 = vadd.f32 %v12103_v52, %v5795_v44 }
 0x490   : > { %v6141_v42 = vadd.f32 %v6140_v49, %v6052_v2 }
 0x491   : > { %v6300_v48 = vpop.f32.mrf.mxu2 }
 0x492   : > { %v6186_v40 = vmax.f32 %v6141_v42, 0.0  ;;  %v6301_v15 = vadd.f32 %v12162_v35, %v6300_v48  ;;  %v6150_v34 = vpop.f32.mrf.mxu1 }
 0x493   : > { %v5965_v32 = vpop.f32.mrf.mxu3 }
 0x494   : > { %v6373_v26 = vadd.f32 %v8122_v41, %v6301_v15  ;;  %v6206_v18 = vpack.c.bf16 %v6186_v40, %v6185_v45  ;;  %v5966_v4 = vadd.f32 %v5965_v32, %v5877_v9  ;;  %v12915_v40 = vld [vmem:[#allocation123_spill] sm:$0xff]  ;;  %v12916_v15 = vld [vmem:[#allocation97_spill] sm:$0xff] }
 0x496   : > { %v6405_v53 = vmax.f32 %v6373_v26, 0.0  ;;  %6342 = vmatmul.bf16.gmra.mxu2 %v6206_v18  ;;  %v6055_v57 = vadd.f32 %v6054_v17, %v5966_v4  ;;  %v12917_v18 = vld [vmem:[#allocation113_spill] sm:$0xff]  ;;  %v12919_v4 = vld [vmem:[#allocation99_spill] sm:$0xff] }
 0x498   : > { %v7879_v49 = vpack.c.bf16 %v6405_v53, %v6404_v22  ;;  %v6144_v46 = vadd.f32 %v6143_v6, %v6055_v57  ;;  %v8124_v6 = vld [vmem:[#allocation2 + $0x38] sm:$0xff]  ;;  %v6064_v22 = vpop.f32.mrf.mxu0  ;;  %v12918_v53 = vld [vmem:[#allocation124_spill] sm:$0xff] }
 0x499   : > { %v6303_v54 = vpop.f32.mrf.mxu2  ;;  %v5711_v30 = vadd.f32 %v12919_v4, %v12918_v53 }
 0x49a   : > { %7963 = vst [vmem:[%s12177_s17 + $0x10] sm:$0xff] %v7879_v49   ;;  %v6304_v28 = vadd.f32 %v12162_v35, %v6303_v54  ;;  %v6187_v51 = vmax.f32 %v6144_v46, 0.0  ;;  %v8125_v54 = vld [vmem:[#allocation2 + $0x40] sm:$0xff] }
 0x49b   : > { %v5967_v56 = vpop.f32.mrf.mxu3 }
 0x49c   : > { %v5968_v10 = vadd.f32 %v5967_v56, %v5879_v0  ;;  %v6374_v31 = vadd.f32 %v8123_v27, %v6304_v28  ;;  %v6153_v56 = vpop.f32.mrf.mxu1  ;;  %v12922_v27 = vld [vmem:[#allocation101_spill] sm:$0xff] }
 0x49e   : > { %v6057_v59 = vadd.f32 %v6056_v20, %v5968_v10  ;;  %v6406_v7 = vmax.f32 %v6374_v31, 0.0  ;;  %v5709_v20 = vadd.f32 %v12916_v15, %v12915_v40 }
 0x4a0   : > { %v6146_v5 = vadd.f32 %v6145_v50, %v6057_v59  ;;  %v5798_v50 = vadd.f32 %v12917_v18, %v5709_v20  ;;  %v6066_v21 = vpop.f32.mrf.mxu0 }
 0x4a1   : > { %v6305_v17 = vpop.f32.mrf.mxu2 }
 0x4a2   : > { %v6188_v36 = vmax.f32 %v6146_v5, 0.0  ;;  %v6306_v1 = vadd.f32 %v12162_v35, %v6305_v17  ;;  %v5887_v10 = vadd.f32 %v12123_v13, %v5798_v50 }
 0x4a3   : > { %v5970_v37 = vpop.f32.mrf.mxu3 }
 0x4a4   : > { %v6375_v38 = vadd.f32 %v8124_v6, %v6306_v1  ;;  %v6207_v12 = vpack.c.bf16 %v6188_v36, %v6187_v51  ;;  %v5971_v42 = vadd.f32 %v5970_v37, %v5882_v39  ;;  %v12921_v51 = vld [vmem:[#allocation125_spill] sm:$0xff]  ;;  %v6155_v13 = vpop.f32.mrf.mxu1  ;;  %v12923_v39 = vld [vmem:[#allocation115_spill] sm:$0xff] }
 0x4a5   : > { %v5714_v31 = vadd.f32 %v12922_v27, %v12921_v51 }
 0x4a6   : > { %v6407_v2 = vmax.f32 %v6375_v38, 0.0  ;;  %6347 = vmatmul.bf16.gmra.mxu2 %v6207_v12  ;;  %v6060_v45 = vadd.f32 %v6059_v60, %v5971_v42 }
 0x4a7   : > { %v5803_v12 = vadd.f32 %v12923_v39, %v5714_v31 }
 0x4a8   : > { %v7884_v24 = vpack.c.bf16 %v6407_v2, %v6406_v7  ;;  %v6149_v32 = vadd.f32 %v6148_v47, %v6060_v45  ;;  %v12920_v47 = vld [vmem:[#allocation114_spill] sm:$0xff]  ;;  %v12924_v7 = vld [vmem:[#allocation19_spill] sm:$0xff] }
 0x4a9   : > { %v6308_v48 = vpop.f32.mrf.mxu2  ;;  %v5800_v5 = vadd.f32 %v12920_v47, %v5711_v30  ;;  %v12925_v2 = vld [vmem:[#allocation102_spill] sm:$0xff]  ;;  %v5892_v40 = vadd.f32 %v12145_v3, %v5803_v12  ;;  %v8134_v12 = vld [vmem:[#allocation2 + $0x88] sm:$0xff] }
 0x4aa   : > { %7964 = vst [vmem:[%s12177_s17 + $0x18] sm:$0xff] %v7884_v24   ;;  %v6309_v41 = vadd.f32 %v12162_v35, %v6308_v48  ;;  %v6189_v49 = vmax.f32 %v6149_v32, 0.0  ;;  %v5716_v42 = vadd.f32 %v12925_v2, %v12924_v7  ;;  %v6069_v48 = vpop.f32.mrf.mxu0 }
 0x4ab   : > { %v5972_v19 = vpop.f32.mrf.mxu3  ;;  %v5889_v55 = vadd.f32 %v12135_v8, %v5800_v5  ;;  %v8127_v8 = vld [vmem:[#allocation2 + $0x50] sm:$0xff] }
 0x4ac   : > { %v5973_v29 = vadd.f32 %v5972_v19, %v5884_v11  ;;  %v6376_v52 = vadd.f32 %v8125_v54, %v6309_v41  ;;  %v8128_v11 = vld [vmem:[#allocation2 + $0x58] sm:$0xff] }
 0x4ae   : > { %v6062_v26 = vadd.f32 %v6061_v43, %v5973_v29  ;;  %v6408_v46 = vmax.f32 %v6376_v52, 0.0 }
 0x4b0   : > { %v6151_v9 = vadd.f32 %v6150_v34, %v6062_v26  ;;  %v12926_v26 = vld [vmem:[#allocation116_spill] sm:$0xff] }
 0x4b1   : > { %v6310_v16 = vpop.f32.mrf.mxu2 }
 0x4b2   : > { %v6190_v57 = vmax.f32 %v6151_v9, 0.0  ;;  %v6311_v0 = vadd.f32 %v12162_v35, %v6310_v16  ;;  %v5805_v9 = vadd.f32 %v12926_v26, %v5716_v42  ;;  %v6071_v16 = vpop.f32.mrf.mxu0 }
 0x4b3   : > { %v5975_v25 = vpop.f32.mrf.mxu3 }
 0x4b4   : > { %v6377_v63 = vadd.f32 %v8126_v58, %v6311_v0  ;;  %v6208_v60 = vpack.c.bf16 %v6190_v57, %v6189_v49  ;;  %v5976_v59 = vadd.f32 %v5975_v25, %v5887_v10  ;;  %v5894_v53 = vadd.f32 %v12157_v23, %v5805_v9  ;;  %v8129_v25 = vld [vmem:[#allocation2 + $0x60] sm:$0xff] }
 0x4b6   : > { %v6409_v28 = vmax.f32 %v6377_v63, 0.0  ;;  %6352 = vmatmul.bf16.gmra.mxu2 %v6208_v60  ;;  %v6065_v61 = vadd.f32 %v6064_v22, %v5976_v59  ;;  %v8130_v60 = vld [vmem:[#allocation2 + $0x68] sm:$0xff] }
 0x4b8   : > { %v7889_v33 = vpack.c.bf16 %v6409_v28, %v6408_v46  ;;  %v6154_v1 = vadd.f32 %v6153_v56, %v6065_v61  ;;  %v8131_v61 = vld [vmem:[#allocation2 + $0x70] sm:$0xff] }
 0x4b9   : > { %v6313_v14 = vpop.f32.mrf.mxu2 }
 0x4ba   : > { %7965 = vst [vmem:[%s12177_s17 + $0x20] sm:$0xff] %v7889_v33   ;;  %v6314_v37 = vadd.f32 %v12162_v35, %v6313_v14  ;;  %v6191_v44 = vmax.f32 %v6154_v1, 0.0 }
 0x4bb   : > { %v5977_v17 = vpop.f32.mrf.mxu3 }
 0x4bc   : > { %v5978_v36 = vadd.f32 %v5977_v17, %v5889_v55  ;;  %v6378_v43 = vadd.f32 %v8127_v8, %v6314_v37  ;;  %v8132_v17 = vld [vmem:[#allocation2 + $0x78] sm:$0xff] }
 0x4be   : > { %v6067_v6 = vadd.f32 %v6066_v21, %v5978_v36  ;;  %v6410_v29 = vmax.f32 %v6378_v43, 0.0 }
 0x4c0   : > { %v6156_v38 = vadd.f32 %v6155_v13, %v6067_v6  ;;  %v8133_v6 = vld [vmem:[#allocation2 + $0x80] sm:$0xff] }
 0x4c1   : > { %v6315_v62 = vpop.f32.mrf.mxu2  ;;  %v6158_v20 = vpop.f32.mrf.mxu1 }
 0x4c2   : > { %v6192_v24 = vmax.f32 %v6156_v38, 0.0  ;;  %v6316_v34 = vadd.f32 %v12162_v35, %v6315_v62 }
 0x4c3   : > { %v5980_v45 = vpop.f32.mrf.mxu3 }
 0x4c4   : > { %v6379_v19 = vadd.f32 %v8128_v11, %v6316_v34  ;;  %v6209_v15 = vpack.c.bf16 %v6192_v24, %v6191_v44  ;;  %v5981_v41 = vadd.f32 %v5980_v45, %v5892_v40  ;;  %v8135_v24 = vld [vmem:[#allocation2 + $0x90] sm:$0xff]  ;;  %v8136_v45 = vld [vmem:[#allocation2 + $0x98] sm:$0xff] }
 0x4c6   : > { %v6411_v32 = vmax.f32 %v6379_v19, 0.0  ;;  %6357 = vmatmul.bf16.gmra.mxu2 %v6209_v15  ;;  %v6070_v22 = vadd.f32 %v6069_v48, %v5981_v41  ;;  %v8137_v41 = vld [vmem:[#allocation2 + $0xa0] sm:$0xff] }
 0x4c8   : > { %v7894_v18 = vpack.c.bf16 %v6411_v32, %v6410_v29  ;;  %v6159_v49 = vadd.f32 %v6158_v20, %v6070_v22 }
 0x4c9   : > { %v6318_v50 = vpop.f32.mrf.mxu2  ;;  %v6160_v52 = vpop.f32.mrf.mxu1 }
 0x4ca   : > { %7966 = vst [vmem:[%s12177_s17 + $0x28] sm:$0xff] %v7894_v18   ;;  %v6319_v3 = vadd.f32 %v12162_v35, %v6318_v50  ;;  %v6193_v56 = vmax.f32 %v6159_v49, 0.0  ;;  %v8138_v18 = vld [vmem:[#allocation2 + $0xa8] sm:$0xff] }
 0x4cb   : > { %v5982_v4 = vpop.f32.mrf.mxu3 }
 0x4cc   : > { %v5983_v30 = vadd.f32 %v5982_v4, %v5894_v53  ;;  %v6380_v58 = vadd.f32 %v8129_v25, %v6319_v3  ;;  %v8139_v3 = vld [vmem:[#allocation2 + $0xb0] sm:$0xff] }
 0x4ce   : > { %v6072_v54 = vadd.f32 %v6071_v16, %v5983_v30  ;;  %v6412_v28 = vmax.f32 %v6380_v58, 0.0 }
 0x4d0   : > { %v6161_v57 = vadd.f32 %v6160_v52, %v6072_v54 }
 0x4d1   : > { %v6320_v0 = vpop.f32.mrf.mxu2 }
 0x4d2   : > { %v6194_v63 = vmax.f32 %v6161_v57, 0.0  ;;  %v6321_v10 = vadd.f32 %v12162_v35, %v6320_v0  ;;  %v8140_v57 = vld [vmem:[#allocation2 + $0xb8] sm:$0xff] }
 0x4d4   : > { %v6381_v46 = vadd.f32 %v8130_v60, %v6321_v10  ;;  %v6210_v23 = vpack.c.bf16 %v6194_v63, %v6193_v56 }
 0x4d6   : > { %v6413_v59 = vmax.f32 %v6381_v46, 0.0  ;;  %6362 = vmatmul.bf16.gmra.mxu2 %v6210_v23  ;;  %v8141_v46 = vld [vmem:[#allocation2 + $0xc0] sm:$0xff] }
 0x4d8   : > { %v7899_v47 = vpack.c.bf16 %v6413_v59, %v6412_v28  ;;  %v8142_v59 = vld [vmem:[#allocation2 + $0xc8] sm:$0xff] }
 0x4d9   : > { %v6323_v5 = vpop.f32.mrf.mxu2 }
 0x4da   : > { %7967 = vst [vmem:[%s12177_s17 + $0x30] sm:$0xff] %v7899_v47   ;;  %v6324_v33 = vadd.f32 %v12162_v35, %v6323_v5 }
 0x4dc   : > { %v6382_v55 = vadd.f32 %v8131_v61, %v6324_v33 }
 0x4de   : > { %v6414_v27 = vmax.f32 %v6382_v55, 0.0 }
 0x4e1   : > { %v6325_v14 = vpop.f32.mrf.mxu2 }
 0x4e2   : > { %v6326_v21 = vadd.f32 %v12162_v35, %v6325_v14 }
 0x4e4   : > { %v6383_v51 = vadd.f32 %v8132_v17, %v6326_v21  ;;  %v8143_v17 = vld [vmem:[#allocation2 + $0xd0] sm:$0xff] }
 0x4e6   : > { %v6415_v31 = vmax.f32 %v6383_v51, 0.0 }
 0x4e8   : > { %v7904_v36 = vpack.c.bf16 %v6415_v31, %v6414_v27  ;;  %v8144_v31 = vld [vmem:[#allocation2 + $0xd8] sm:$0xff] }
 0x4e9   : > { %v6328_v13 = vpop.f32.mrf.mxu2 }
 0x4ea   : > { %7968 = vst [vmem:[%s12177_s17 + $0x38] sm:$0xff] %v7904_v36   ;;  %v6329_v1 = vadd.f32 %v12162_v35, %v6328_v13 }
 0x4ec   : > { %v6384_v38 = vadd.f32 %v8133_v6, %v6329_v1 }
 0x4ee   : > { %v6416_v2 = vmax.f32 %v6384_v38, 0.0 }
 0x4f1   : > { %v6330_v37 = vpop.f32.mrf.mxu2 }
 0x4f2   : > { %v6331_v39 = vadd.f32 %v12162_v35, %v6330_v37 }
 0x4f4   : > { %v6385_v7 = vadd.f32 %v8134_v12, %v6331_v39  ;;  %v8145_v12 = vld [vmem:[#allocation2 + $0xe0] sm:$0xff] }
 0x4f6   : > { %v6417_v42 = vmax.f32 %v6385_v7, 0.0 }
 0x4f8   : > { %v7909_v62 = vpack.c.bf16 %v6417_v42, %v6416_v2  ;;  %v8146_v42 = vld [vmem:[#allocation2 + $0xe8] sm:$0xff] }
 0x4f9   : > { %v6333_v44 = vpop.f32.mrf.mxu2 }
 0x4fa   : > { %7969 = vst [vmem:[%s12177_s17 + $0x40] sm:$0xff] %v7909_v62   ;;  %v6334_v8 = vadd.f32 %v12162_v35, %v6333_v44 }
 0x4fc   : > { %v6386_v34 = vadd.f32 %v8135_v24, %v6334_v8 }
 0x4fe   : > { %v6418_v19 = vmax.f32 %v6386_v34, 0.0 }
 0x501   : > { %v6335_v43 = vpop.f32.mrf.mxu2 }
 0x502   : > { %v6336_v48 = vadd.f32 %v12162_v35, %v6335_v43 }
 0x504   : > { %v6387_v11 = vadd.f32 %v8136_v45, %v6336_v48  ;;  %v8147_v45 = vld [vmem:[#allocation2 + $0xf0] sm:$0xff] }
 0x506   : > { %v6419_v40 = vmax.f32 %v6387_v11, 0.0 }
 0x508   : > { %v7914_v15 = vpack.c.bf16 %v6419_v40, %v6418_v19  ;;  %v8148_v40 = vld [vmem:[#allocation2 + $0xf8] sm:$0xff] }
 0x509   : > { %v6338_v20 = vpop.f32.mrf.mxu2 }
 0x50a   : > { %7970 = vst [vmem:[%s12177_s17 + $0x48] sm:$0xff] %v7914_v15   ;;  %v6339_v29 = vadd.f32 %v12162_v35, %v6338_v20 }
 0x50c   : > { %v6388_v26 = vadd.f32 %v8137_v41, %v6339_v29 }
 0x50e   : > { %v6420_v22 = vmax.f32 %v6388_v26, 0.0 }
 0x511   : > { %v6340_v32 = vpop.f32.mrf.mxu2 }
 0x512   : > { %v6341_v9 = vadd.f32 %v12162_v35, %v6340_v32 }
 0x514   : > { %v6389_v50 = vadd.f32 %v8138_v18, %v6341_v9 }
 0x516   : > { %v6421_v53 = vmax.f32 %v6389_v50, 0.0 }
 0x518   : > { %v7919_v4 = vpack.c.bf16 %v6421_v53, %v6420_v22 }
 0x519   : > { %v6343_v30 = vpop.f32.mrf.mxu2 }
 0x51a   : > { %7971 = vst [vmem:[%s12177_s17 + $0x50] sm:$0xff] %v7919_v4   ;;  %v6344_v16 = vadd.f32 %v12162_v35, %v6343_v30 }
 0x51c   : > { %v6390_v54 = vadd.f32 %v8139_v3, %v6344_v16 }
 0x51e   : > { %v6422_v56 = vmax.f32 %v6390_v54, 0.0 }
 0x521   : > { %v6345_v49 = vpop.f32.mrf.mxu2 }
 0x522   : > { %v6346_v52 = vadd.f32 %v12162_v35, %v6345_v49 }
 0x524   : > { %v6391_v0 = vadd.f32 %v8140_v57, %v6346_v52 }
 0x526   : > { %v6423_v25 = vmax.f32 %v6391_v0, 0.0 }
 0x528   : > { %v7924_v58 = vpack.c.bf16 %v6423_v25, %v6422_v56 }
 0x529   : > { %v6348_v63 = vpop.f32.mrf.mxu2 }
 0x52a   : > { %7972 = vst [vmem:[%s12177_s17 + $0x58] sm:$0xff] %v7924_v58   ;;  %v6349_v10 = vadd.f32 %v12162_v35, %v6348_v63 }
 0x52c   : > { %v6392_v23 = vadd.f32 %v8141_v46, %v6349_v10 }
 0x52e   : > { %v6424_v5 = vmax.f32 %v6392_v23, 0.0 }
 0x531   : > { %v6350_v60 = vpop.f32.mrf.mxu2 }
 0x532   : > { %v6351_v28 = vadd.f32 %v12162_v35, %v6350_v60 }
 0x534   : > { %v6393_v47 = vadd.f32 %v8142_v59, %v6351_v28 }
 0x536   : > { %v6425_v33 = vmax.f32 %v6393_v47, 0.0 }
 0x538   : > { %v7929_v14 = vpack.c.bf16 %v6425_v33, %v6424_v5 }
 0x539   : > { %v6353_v61 = vpop.f32.mrf.mxu2 }
 0x53a   : > { %7973 = vst [vmem:[%s12177_s17 + $0x60] sm:$0xff] %v7929_v14   ;;  %v6354_v55 = vadd.f32 %v12162_v35, %v6353_v61 }
 0x53c   : > { %v6394_v51 = vadd.f32 %v8143_v17, %v6354_v55 }
 0x53e   : > { %v6426_v13 = vmax.f32 %v6394_v51, 0.0 }
 0x541   : > { %v6355_v21 = vpop.f32.mrf.mxu2 }
 0x542   : > { %v6356_v27 = vadd.f32 %v12162_v35, %v6355_v21 }
 0x544   : > { %v6395_v36 = vadd.f32 %v8144_v31, %v6356_v27 }
 0x546   : > { %v6427_v1 = vmax.f32 %v6395_v36, 0.0 }
 0x548   : > { %v7934_v37 = vpack.c.bf16 %v6427_v1, %v6426_v13 }
 0x549   : > { %v6358_v6 = vpop.f32.mrf.mxu2 }
 0x54a   : > { %7974 = vst [vmem:[%s12177_s17 + $0x68] sm:$0xff] %v7934_v37   ;;  %v6359_v38 = vadd.f32 %v12162_v35, %v6358_v6 }
 0x54c   : > { %v6396_v7 = vadd.f32 %v8145_v12, %v6359_v38 }
 0x54e   : > { %v6428_v44 = vmax.f32 %v6396_v7, 0.0 }
 0x551   : > { %v6360_v39 = vpop.f32.mrf.mxu2 }
 0x552   : > { %v6361_v2 = vadd.f32 %v12162_v35, %v6360_v39 }
 0x554   : > { %v6397_v62 = vadd.f32 %v8146_v42, %v6361_v2 }
 0x556   : > { %v6429_v8 = vmax.f32 %v6397_v62, 0.0 }
 0x558   : > { %v7939_v43 = vpack.c.bf16 %v6429_v8, %v6428_v44 }
 0x559   : > { %v6363_v24 = vpop.f32.mrf.mxu2 }
 0x55a   : > { %7975 = vst [vmem:[%s12177_s17 + $0x70] sm:$0xff] %v7939_v43   ;;  %v6364_v34 = vadd.f32 %v12162_v35, %v6363_v24 }
 0x55c   : > { %v6398_v11 = vadd.f32 %v8147_v45, %v6364_v34 }
 0x55e   : > { %v6430_v20 = vmax.f32 %v6398_v11, 0.0 }
 0x561   : > { %v6365_v48 = vpop.f32.mrf.mxu2 }
 0x562   : > { %v6366_v19 = vadd.f32 %v12162_v35, %v6365_v48 }
 0x564   : > { %v6399_v15 = vadd.f32 %v8148_v40, %v6366_v19 }
 0x566   : > { %v6431_v29 = vmax.f32 %v6399_v15, 0.0 }
 0x568   : > { %v7944_v32 = vpack.c.bf16 %v6431_v29, %v6430_v20 }
 0x56a   : > { %7976 = vst [vmem:[%s12177_s17 + $0x78] sm:$0xff] %v7944_v32  }
 0x56b   : > { %8266 = shalt.err (!%p8263_p8)
}
 0x56c   : > { %s8319_s15 = smov 64   ;;  %s8320_s17 = smov 4  }
 0x56d   : > { %8013 = dma.vmem_to_hbm [thread:$0]  (%p8399_p5), %s6510_s19, 2048, %s6512_s21, %s6497_s28, %s8319_s15, %s8319_s15, %s8320_s17  }
 0x56e PF: > { %p8035_p9 = scmp.ge.s32.totalorder %s8309_s27, 2  ;;  %s6526_s18 = sand.u32 1, %s8297_s24  }
 0x56f   : > { %s6527_s16 = scalar_lea.sflag [#allocation7], %s6526_s18 }
 0x570   : > { %p8026_p10 = pnand %p8035_p9, %p8403_p6 }
 0x572   : > { %p8027_p11 = pneg %p8026_p10 }
 0x574   : > { %8292 = dma.done.wait (%p8027_p11), %s6527_s16, 2048  }
 0x575   : > { %8294 = vsyncadd (%p8027_p11), %s6527_s16, 4294965248  ;;  %p19_p12 = scmp.ge.s32.totalorder %s8386_s30, 4   ;;  %s12927_s24 = smov %s8301_s25 }
 0x576   : > { %s12928_s25 = smov %s8305_s26  ;;  %s12929_s26 = smov %s8397_s10 }
 0x577   : > { %s12930_s27 = smov %s8386_s30  ;;  %21 = sbr.rel (!%p19_p12) target bundleno = 7 (0x7), region = 96 }
 0x57c   :  { %6533 = vsyncpa [#allocation6], 1 }
 0x57d   :  { %6535 = vsyncpa [#allocation6 + $0x1], 1 }
 0x57e   :  { %6536 = vsyncpa [#allocation9], 1 }
 0x57f   :  { %6537 = vsyncpa [#allocation7], 1 }
 0x580   :  { %6539 = vsyncpa [#allocation7 + $0x1], 1 }

</bundles_post_ra>
